<compile_context>
chip_gen: v6e
topology: v6e:2x2x1
jax: 0.10.0
libtpu: 0.0.40
codegen_flags: <defaults>
</compile_context>

<pallas_src>
import functools
import math

import jax
import jax.numpy as jnp
from jax import lax
from jax.experimental import pallas as pl
from jax.experimental.pallas import tpu as pltpu


# --------------------------------------------------------------------------- #
# Helpers
# --------------------------------------------------------------------------- #
def _round_up(x, m):
    return ((x + m - 1) // m) * m


def _pick_block(dim, target, quantum):
    """Largest divisor of `dim` that is <= target and a multiple of `quantum`."""
    if dim <= target:
        return dim
    cand = (target // quantum) * quantum
    while cand >= quantum:
        if dim % cand == 0:
            return cand
        cand -= quantum
    return dim


def _vmem_capacity_bytes():
    try:
        return int(pltpu.get_tpu_info().vmem_capacity_bytes)
    except Exception:
        return 64 * 1024 * 1024  # conservative (v7x-sized) fallback


def _layernorm(x, w, b, eps):
    # PyTorch LayerNorm: biased variance, affine (w, b are (1, D) rows).
    mu = jnp.mean(x, axis=-1, keepdims=True)
    var = jnp.mean((x - mu) ** 2, axis=-1, keepdims=True)
    return (x - mu) * lax.rsqrt(var + eps) * w + b


def _erf(x):
    # Abramowitz & Stegun 7.1.26 with an EXACT divide (~1.5e-7 abs error vs torch erf).
    a1, a2, a3, a4, a5 = (0.254829592, -0.284496736, 1.421413741,
                          -1.453152027, 1.061405429)
    p = 0.3275911
    sign = jnp.where(x < 0.0, -1.0, 1.0)
    ax = jnp.abs(x)
    t = 1.0 / (1.0 + p * ax)
    poly = ((((a5 * t + a4) * t + a3) * t + a2) * t + a1) * t
    return sign * (1.0 - poly * jnp.exp(-ax * ax))


def _gelu_exact(x):
    # nn.GELU() default = exact (erf-based) GELU.
    return 0.5 * x * (1.0 + _erf(x * (1.0 / math.sqrt(2.0))))


# --------------------------------------------------------------------------- #
# Kernel 1: LN1 + fused QKV projection (resident weight), lane-dense outputs
# --------------------------------------------------------------------------- #
def _qkv_kernel(x_ref, ln_w_ref, ln_b_ref, wqkv_ref, bqkv_ref,
                q_ref, k_ref, v_ref, *, eps):
    x = x_ref[0]                                              # (s_blk, D) f32
    xn = _layernorm(x, ln_w_ref[...], ln_b_ref[...], eps).astype(jnp.bfloat16)
    qkv = jnp.dot(xn, wqkv_ref[...],
                  preferred_element_type=jnp.float32)         # (s_blk, 3D) f32
    qkv = (qkv + bqkv_ref[...]).astype(jnp.bfloat16)
    d = q_ref.shape[-1]
    q_ref[0] = qkv[:, :d]                                     # lane-aligned slices
    k_ref[0] = qkv[:, d:2 * d]
    v_ref[0] = qkv[:, 2 * d:]


def _qkv_proj(x, p, *, s_blk, eps, vmem_limit):
    B, S_pad, D = x.shape
    out_shape = jax.ShapeDtypeStruct((B, S_pad, D), jnp.bfloat16)
    out_spec = pl.BlockSpec((1, s_blk, D), lambda b, s: (b, s, 0))
    return pl.pallas_call(
        functools.partial(_qkv_kernel, eps=eps),
        grid=(B, S_pad // s_blk),
        in_specs=[
            pl.BlockSpec((1, s_blk, D), lambda b, s: (b, s, 0)),
            pl.BlockSpec((1, D), lambda b, s: (0, 0)),
            pl.BlockSpec((1, D), lambda b, s: (0, 0)),
            pl.BlockSpec((D, 3 * D), lambda b, s: (0, 0)),    # resident fused weight
            pl.BlockSpec((1, 3 * D), lambda b, s: (0, 0)),
        ],
        out_specs=[out_spec, out_spec, out_spec],
        out_shape=[out_shape, out_shape, out_shape],
        compiler_params=pltpu.CompilerParams(
            dimension_semantics=("parallel", "parallel"),
            vmem_limit_bytes=vmem_limit),
    )(x, p["ln1_w"], p["ln1_b"], p["wqkv"], p["bqkv"])


# --------------------------------------------------------------------------- #
# Kernel 2: MHA (all heads per step) + O-projection + gate + residual
# --------------------------------------------------------------------------- #
def _attn_kernel(x_ref, q_ref, k_ref, v_ref, wo_ref, bo_ref, gates_ref, out_ref,
                 *, num_heads, head_dim, s_actual, is_gated):
    x = x_ref[0]                                              # (s_blk, D) f32
    q = q_ref[0]                                              # (s_blk, D) bf16 (pre-scaled)
    k = k_ref[0]                                              # (S_pad, D) bf16
    v = v_ref[0]                                              # (S_pad, D) bf16
    s_pad = k.shape[0]

    if s_actual < s_pad:                                      # mask padded keys (static)
        key_pos = lax.broadcasted_iota(jnp.int32, (1, s_pad), 1)
        kmask = jnp.where(key_pos < s_actual, 0.0, -1e30).astype(jnp.float32)
    else:
        kmask = None

    # TODO(synk): optional attention mask from the encoder driver is None and is
    # not plumbed through here.
    ctx_parts = []
    for h in range(num_heads):                                # static unrolled head loop
        lo = h * head_dim
        hi = lo + head_dim
        q_h = q[:, lo:hi]                                     # (s_blk, hd)
        k_h = k[:, lo:hi]                                     # (S_pad, hd)
        v_h = v[:, lo:hi]                                     # (S_pad, hd)
        s = lax.dot_general(q_h, k_h, (((1,), (1,)), ((), ())),
                            preferred_element_type=jnp.float32)   # (s_blk, S_pad)
        if kmask is not None:
            s = s + kmask
        m = jnp.max(s, axis=-1, keepdims=True)
        pexp = jnp.exp(s - m)
        denom = jnp.sum(pexp, axis=-1, keepdims=True)
        ctx_h = jnp.dot(pexp.astype(jnp.bfloat16), v_h,
                        preferred_element_type=jnp.float32)       # (s_blk, hd)
        ctx_parts.append(ctx_h / denom)                       # deferred, exact normalize
    ctx = jnp.concatenate(ctx_parts, axis=-1) if num_heads > 1 else ctx_parts[0]

    attn_out = jnp.dot(ctx.astype(jnp.bfloat16), wo_ref[...],
                       preferred_element_type=jnp.float32) + bo_ref[...]
    if is_gated:
        attn_out = attn_out * jnp.tanh(gates_ref[0])
    out_ref[0] = x + attn_out                                 # skipped = x + gated attn


def _attention(x, q, k, v, p, *, num_heads, s_blk, s_actual, is_gated, vmem_limit):
    B, S_pad, D = x.shape
    head_dim = D // num_heads
    kernel = functools.partial(_attn_kernel, num_heads=num_heads,
                               head_dim=head_dim, s_actual=s_actual,
                               is_gated=is_gated)
    return pl.pallas_call(
        kernel,
        grid=(B, S_pad // s_blk),
        in_specs=[
            pl.BlockSpec((1, s_blk, D), lambda b, s: (b, s, 0)),
            pl.BlockSpec((1, s_blk, D), lambda b, s: (b, s, 0)),
            pl.BlockSpec((1, S_pad, D), lambda b, s: (b, 0, 0)),   # not re-DMA'd across s
            pl.BlockSpec((1, S_pad, D), lambda b, s: (b, 0, 0)),
            pl.BlockSpec((D, D), lambda b, s: (0, 0)),             # resident O-proj weight
            pl.BlockSpec((1, D), lambda b, s: (0, 0)),
            pl.BlockSpec(memory_space=pltpu.MemorySpace.SMEM),
        ],
        out_specs=pl.BlockSpec((1, s_blk, D), lambda b, s: (b, s, 0)),
        out_shape=jax.ShapeDtypeStruct((B, S_pad, D), jnp.float32),
        compiler_params=pltpu.CompilerParams(
            dimension_semantics=("parallel", "parallel"),
            vmem_limit_bytes=vmem_limit),
    )(x, q, k, v, p["wo"], p["bo"], p["gates"])


# --------------------------------------------------------------------------- #
# Kernel 3: LN2 (cached) + FFN over hidden tiles + gate + residual
# --------------------------------------------------------------------------- #
def _ffn_kernel(x_ref, ln_w_ref, ln_b_ref, w1_ref, b1_ref, w2_ref, b2_ref,
                gates_ref, out_ref, acc_ref, xn_ref, *, eps, is_gated):
    j = pl.program_id(2)

    @pl.when(j == 0)
    def _():
        # LN2 + bf16 cast once per (b, s) row tile, cached for all hidden tiles.
        xn = _layernorm(x_ref[0], ln_w_ref[...], ln_b_ref[...], eps)
        xn_ref[...] = xn.astype(jnp.bfloat16)
        acc_ref[...] = jnp.zeros_like(acc_ref)

    h1 = jnp.dot(xn_ref[...], w1_ref[...],
                 preferred_element_type=jnp.float32) + b1_ref[...]   # (s_blk, hid_blk)
    g = _gelu_exact(h1)
    acc_ref[...] += jnp.dot(g.astype(jnp.bfloat16), w2_ref[...],
                            preferred_element_type=jnp.float32)      # (s_blk, D)

    @pl.when(j == pl.num_programs(2) - 1)
    def _():
        ffn_out = acc_ref[...] + b2_ref[...]
        if is_gated:
            ffn_out = ffn_out * jnp.tanh(gates_ref[1])
        out_ref[0] = x_ref[0] + ffn_out


def _ffn(skipped, p, *, s_blk, hid_blk, eps, is_gated, vmem_limit):
    B, S_pad, D = skipped.shape
    hidden = p["w1"].shape[1]
    n_hid = hidden // hid_blk
    if n_hid > 2:
        # Streamed FFN weights (v7x path): deeper buffering hides the re-fetch.
        w1_spec = pl.BlockSpec((D, hid_blk), lambda b, s, j: (0, j),
                               pipeline_mode=pl.Buffered(3))
        w2_spec = pl.BlockSpec((hid_blk, D), lambda b, s, j: (j, 0),
                               pipeline_mode=pl.Buffered(3))
    else:
        w1_spec = pl.BlockSpec((D, hid_blk), lambda b, s, j: (0, j))
        w2_spec = pl.BlockSpec((hid_blk, D), lambda b, s, j: (j, 0))
    kernel = functools.partial(_ffn_kernel, eps=eps, is_gated=is_gated)
    return pl.pallas_call(
        kernel,
        grid=(B, S_pad // s_blk, n_hid),
        in_specs=[
            pl.BlockSpec((1, s_blk, D), lambda b, s, j: (b, s, 0)),
            pl.BlockSpec((1, D), lambda b, s, j: (0, 0)),
            pl.BlockSpec((1, D), lambda b, s, j: (0, 0)),
            w1_spec,
            pl.BlockSpec((1, hid_blk), lambda b, s, j: (0, j)),
            w2_spec,
            pl.BlockSpec((1, D), lambda b, s, j: (0, 0)),
            pl.BlockSpec(memory_space=pltpu.MemorySpace.SMEM),
        ],
        out_specs=pl.BlockSpec((1, s_blk, D), lambda b, s, j: (b, s, 0)),
        out_shape=jax.ShapeDtypeStruct((B, S_pad, D), jnp.float32),
        scratch_shapes=[pltpu.VMEM((s_blk, D), jnp.float32),      # O-proj accumulator
                        pltpu.VMEM((s_blk, D), jnp.bfloat16)],    # cached LN2(x)
        compiler_params=pltpu.CompilerParams(
            dimension_semantics=("parallel", "parallel", "arbitrary"),
            vmem_limit_bytes=vmem_limit),
    )(skipped, p["ln2_w"], p["ln2_b"], p["w1"], p["b1"], p["w2"], p["b2"],
      p["gates"])


# --------------------------------------------------------------------------- #
# Encoder block / encoder stack
# --------------------------------------------------------------------------- #
def encoder_block(x, p, *, num_heads, s_blk, s_actual, hid_blk, eps, is_gated,
                  vmem_limit):
    q, k, v = _qkv_proj(x, p, s_blk=s_blk, eps=eps, vmem_limit=vmem_limit)
    # TODO(synk): once weight-DMA bound is gone, Q could be computed inside the
    # attention kernel (fusing kernel 1+2) to save its HBM round-trip on v5e/v6e.
    skipped = _attention(x, q, k, v, p, num_heads=num_heads, s_blk=s_blk,
                         s_actual=s_actual, is_gated=is_gated,
                         vmem_limit=vmem_limit)
    return _ffn(skipped, p, s_blk=s_blk, hid_blk=hid_blk, eps=eps,
                is_gated=is_gated, vmem_limit=vmem_limit)


def mllama3_vision_encoder(x, layer_params, *, num_heads, eps, is_gated):
    """Matches MLLama3VisionEncoder.forward: returns (x, intermediate_states)."""
    B, S, D = x.shape

    # Generation-adaptive sizing (v5e/v6e: 128 MiB VMEM; v7x: 64 MiB).
    vmem_cap = _vmem_capacity_bytes()
    big_vmem = vmem_cap >= (96 << 20)
    vmem_limit = min((vmem_cap * 3) // 4, 96 << 20)

    # Pad S to a multiple of 128 (padded keys are masked in-kernel); row tile is a
    # 128-multiple, larger on 128 MiB parts.
    s_target = 512 if big_vmem else 256
    S_pad = _round_up(S, 128)
    s_blk = min(s_target, S_pad)
    S_pad = _round_up(S_pad, s_blk)

    hidden = layer_params[0]["w1"].shape[1]
    # v5e/v6e: FFN weights fully VMEM-resident; v7x: large hidden tiles (+ Buffered(3)).
    hid_blk = hidden if big_vmem else _pick_block(hidden, 2560, 128)

    if S_pad != S:
        x = jnp.pad(x, ((0, 0), (0, S_pad - S), (0, 0)))

    # TODO(synk): on v5e, carrying inter-kernel activations in bf16 would halve the
    # activation HBM traffic between the three pallas_calls; kept f32 here.
    intermediate_states = []
    for p in layer_params:
        x = encoder_block(x, p, num_heads=num_heads, s_blk=s_blk, s_actual=S,
                          hid_blk=hid_blk, eps=eps, is_gated=is_gated,
                          vmem_limit=vmem_limit)
        intermediate_states.append(x[:, :S, :] if S_pad != S else x)
    out = x[:, :S, :] if S_pad != S else x
    return out, intermediate_states


# --------------------------------------------------------------------------- #
# Parameters
# --------------------------------------------------------------------------- #
def init_layer_params(key, embed_dim, hidden_dim):
    """Logical params; linear weights stored (in, out) == PyTorch weight.T."""
    ks = jax.random.split(key, 12)

    def w(k, shp):
        return 0.02 * jax.random.normal(k, shp, jnp.float32)

    return dict(
        ln1_w=jnp.ones((embed_dim,), jnp.float32),
        ln1_b=jnp.zeros((embed_dim,), jnp.float32),
        wq=w(ks[0], (embed_dim, embed_dim)), bq=w(ks[1], (embed_dim,)),
        wk=w(ks[2], (embed_dim, embed_dim)), bk=w(ks[3], (embed_dim,)),
        wv=w(ks[4], (embed_dim, embed_dim)), bv=w(ks[5], (embed_dim,)),
        wo=w(ks[6], (embed_dim, embed_dim)), bo=w(ks[7], (embed_dim,)),
        ln2_w=jnp.ones((embed_dim,), jnp.float32),
        ln2_b=jnp.zeros((embed_dim,), jnp.float32),
        w1=w(ks[8], (embed_dim, hidden_dim)), b1=w(ks[9], (hidden_dim,)),
        w2=w(ks[10], (hidden_dim, embed_dim)), b2=w(ks[11], (embed_dim,)),
        gates=jnp.full((2,), math.pi / 4.0, jnp.float32),  # [gate_attn, gate_ffn]
    )


def pack_layer_params(p, num_heads):
    """Repack logical params into the kernels' fused / bf16 layouts."""
    D = p["wq"].shape[0]
    hd = D // num_heads
    inv_sqrt_hd = 1.0 / math.sqrt(hd)
    # Attention scale 1/sqrt(head_dim) folded into Wq/bq once at pack time (free).
    wqkv = jnp.concatenate([p["wq"] * inv_sqrt_hd, p["wk"], p["wv"]],
                           axis=-1).astype(jnp.bfloat16)               # (D, 3D)
    bqkv = jnp.concatenate([p["bq"] * inv_sqrt_hd, p["bk"], p["bv"]],
                           axis=-1).reshape(1, 3 * D).astype(jnp.float32)
    return dict(
        ln1_w=p["ln1_w"].reshape(1, D), ln1_b=p["ln1_b"].reshape(1, D),
        wqkv=wqkv, bqkv=bqkv,
        wo=p["wo"].astype(jnp.bfloat16),                                # (D, D)
        bo=p["bo"].reshape(1, D),
        ln2_w=p["ln2_w"].reshape(1, D), ln2_b=p["ln2_b"].reshape(1, D),
        w1=p["w1"].astype(jnp.bfloat16), b1=p["b1"].reshape(1, -1),
        w2=p["w2"].astype(jnp.bfloat16), b2=p["b2"].reshape(1, D),
        gates=p["gates"],
    )


if __name__ == "__main__":
    B, S, D, HIDDEN, HEADS, LAYERS = 2, 128, 128, 256, 4, 2
    EPS = 1e-5

    key = jax.random.PRNGKey(0)
    kx, kp = jax.random.split(key)
    x = jax.random.normal(kx, (B, S, D), jnp.float32)
    layer_params = [
        pack_layer_params(init_layer_params(k, D, HIDDEN), HEADS)
        for k in jax.random.split(kp, LAYERS)
    ]

    fwd = jax.jit(functools.partial(mllama3_vision_encoder, num_heads=HEADS,
                                    eps=EPS, is_gated=True))
    out, intermediates = fwd(x, layer_params)
    jax.block_until_ready(out)
    jax.block_until_ready(intermediates)

    assert out.shape == (B, S, D) and len(intermediates) == LAYERS
    for t in intermediates:
        assert t.shape == (B, S, D)
    assert bool(jnp.all(jnp.isfinite(out)))
    print("KERNEL_OK")
</pallas_src>

<mosaic_0001>
module attributes {stable_mosaic.version = 11 : i64} {
  func.func @_attn_kernel(%arg0: i32, %arg1: i32, %arg2: memref<1x128x128xf32, #tpu.memory_space<vmem>>, %arg3: memref<1x128x128xbf16, #tpu.memory_space<vmem>>, %arg4: memref<1x128x128xbf16, #tpu.memory_space<vmem>>, %arg5: memref<1x128x128xbf16, #tpu.memory_space<vmem>>, %arg6: memref<128x128xbf16, #tpu.memory_space<vmem>>, %arg7: memref<1x128xf32, #tpu.memory_space<vmem>>, %arg8: memref<2xf32, #tpu.memory_space<smem>>, %arg9: memref<1x128x128xf32, #tpu.memory_space<vmem>>) attributes {dimension_semantics = [#tpu.dimension_semantics<parallel>, #tpu.dimension_semantics<parallel>], iteration_bounds = array<i64: 2, 1>, scalar_prefetch = 0 : i64, scratch_operands = 0 : i64, tpu.core_type = #tpu.core_type<tc>, window_params = [{transform_indices = @transform_0, window_bounds = array<i64: 1, 128, 128>}, {transform_indices = @transform_1, window_bounds = array<i64: 1, 128, 128>}, {transform_indices = @transform_2, window_bounds = array<i64: 1, 128, 128>}, {transform_indices = @transform_3, window_bounds = array<i64: 1, 128, 128>}, {pipeline_mode = #tpu.pipeline_mode<synchronous>, transform_indices = @transform_4, window_bounds = array<i64: 128, 128>}, {pipeline_mode = #tpu.pipeline_mode<synchronous>, transform_indices = @transform_5, window_bounds = array<i64: 1, 128>}, {transform_indices = @transform_6, window_bounds = array<i64: 2>}, {transform_indices = @transform_7, window_bounds = array<i64: 1, 128, 128>}]} {
    %c0 = arith.constant 0 : index
    %c0_0 = arith.constant 0 : index
    %c0_1 = arith.constant 0 : index
    %0 = vector.load %arg2[%c0, %c0_0, %c0_1] : memref<1x128x128xf32, #tpu.memory_space<vmem>>, vector<1x128x128xf32>
    %1 = vector.shape_cast %0 : vector<1x128x128xf32> to vector<128x128xf32>
    %c0_2 = arith.constant 0 : index
    %c0_3 = arith.constant 0 : index
    %c0_4 = arith.constant 0 : index
    %2 = vector.load %arg3[%c0_2, %c0_3, %c0_4] : memref<1x128x128xbf16, #tpu.memory_space<vmem>>, vector<1x128x128xbf16>
    %3 = vector.shape_cast %2 : vector<1x128x128xbf16> to vector<128x128xbf16>
    %c0_5 = arith.constant 0 : index
    %c0_6 = arith.constant 0 : index
    %c0_7 = arith.constant 0 : index
    %4 = vector.load %arg4[%c0_5, %c0_6, %c0_7] : memref<1x128x128xbf16, #tpu.memory_space<vmem>>, vector<1x128x128xbf16>
    %5 = vector.shape_cast %4 : vector<1x128x128xbf16> to vector<128x128xbf16>
    %c0_8 = arith.constant 0 : index
    %c0_9 = arith.constant 0 : index
    %c0_10 = arith.constant 0 : index
    %6 = vector.load %arg5[%c0_8, %c0_9, %c0_10] : memref<1x128x128xbf16, #tpu.memory_space<vmem>>, vector<1x128x128xbf16>
    %7 = vector.shape_cast %6 : vector<1x128x128xbf16> to vector<128x128xbf16>
    %8 = vector.extract_strided_slice %3 {offsets = [0, 0], sizes = [128, 32], strides = [1, 1]} : vector<128x128xbf16> to vector<128x32xbf16>
    %9 = vector.extract_strided_slice %5 {offsets = [0, 0], sizes = [128, 32], strides = [1, 1]} : vector<128x128xbf16> to vector<128x32xbf16>
    %10 = vector.extract_strided_slice %7 {offsets = [0, 0], sizes = [128, 32], strides = [1, 1]} : vector<128x128xbf16> to vector<128x32xbf16>
    %cst = arith.constant dense<0.000000e+00> : vector<128x128xf32>
    %11 = tpu.matmul %8, %9, %cst {dimension_numbers = #tpu.dot_dimension_numbers<[1], [1], [0], [0], [0, 0, 1, 0], [], []>} : vector<128x32xbf16>, vector<128x32xbf16>, vector<128x128xf32> -> vector<128x128xf32>
    %cst_11 = arith.constant dense<0xFF800000> : vector<128xf32>
    %12 = vector.multi_reduction <maximumf>, %11, %cst_11 [1] : vector<128x128xf32> to vector<128xf32>
    %13 = vector.shape_cast %12 : vector<128xf32> to vector<128x1xf32>
    %14 = vector.broadcast %13 : vector<128x1xf32> to vector<128x128xf32>
    %15 = arith.subf %11, %14 : vector<128x128xf32>
    %16 = math.exp %15 : vector<128x128xf32>
    %cst_12 = arith.constant dense<0.000000e+00> : vector<128xf32>
    %17 = vector.multi_reduction <add>, %16, %cst_12 [1] : vector<128x128xf32> to vector<128xf32>
    %18 = vector.shape_cast %17 : vector<128xf32> to vector<128x1xf32>
    %19 = arith.truncf %16 : vector<128x128xf32> to vector<128x128xbf16>
    %cst_13 = arith.constant dense<0.000000e+00> : vector<128x32xf32>
    %20 = tpu.matmul %19, %10, %cst_13 {dimension_numbers = #tpu.dot_dimension_numbers<[1], [0], [0], [1], [0, 0, 1, 1], [], []>} : vector<128x128xbf16>, vector<128x32xbf16>, vector<128x32xf32> -> vector<128x32xf32>
    %21 = vector.broadcast %18 : vector<128x1xf32> to vector<128x32xf32>
    %22 = arith.divf %20, %21 : vector<128x32xf32>
    %23 = vector.extract_strided_slice %3 {offsets = [0, 32], sizes = [128, 32], strides = [1, 1]} : vector<128x128xbf16> to vector<128x32xbf16>
    %24 = vector.extract_strided_slice %5 {offsets = [0, 32], sizes = [128, 32], strides = [1, 1]} : vector<128x128xbf16> to vector<128x32xbf16>
    %25 = vector.extract_strided_slice %7 {offsets = [0, 32], sizes = [128, 32], strides = [1, 1]} : vector<128x128xbf16> to vector<128x32xbf16>
    %cst_14 = arith.constant dense<0.000000e+00> : vector<128x128xf32>
    %26 = tpu.matmul %23, %24, %cst_14 {dimension_numbers = #tpu.dot_dimension_numbers<[1], [1], [0], [0], [0, 0, 1, 0], [], []>} : vector<128x32xbf16>, vector<128x32xbf16>, vector<128x128xf32> -> vector<128x128xf32>
    %cst_15 = arith.constant dense<0xFF800000> : vector<128xf32>
    %27 = vector.multi_reduction <maximumf>, %26, %cst_15 [1] : vector<128x128xf32> to vector<128xf32>
    %28 = vector.shape_cast %27 : vector<128xf32> to vector<128x1xf32>
    %29 = vector.broadcast %28 : vector<128x1xf32> to vector<128x128xf32>
    %30 = arith.subf %26, %29 : vector<128x128xf32>
    %31 = math.exp %30 : vector<128x128xf32>
    %cst_16 = arith.constant dense<0.000000e+00> : vector<128xf32>
    %32 = vector.multi_reduction <add>, %31, %cst_16 [1] : vector<128x128xf32> to vector<128xf32>
    %33 = vector.shape_cast %32 : vector<128xf32> to vector<128x1xf32>
    %34 = arith.truncf %31 : vector<128x128xf32> to vector<128x128xbf16>
    %cst_17 = arith.constant dense<0.000000e+00> : vector<128x32xf32>
    %35 = tpu.matmul %34, %25, %cst_17 {dimension_numbers = #tpu.dot_dimension_numbers<[1], [0], [0], [1], [0, 0, 1, 1], [], []>} : vector<128x128xbf16>, vector<128x32xbf16>, vector<128x32xf32> -> vector<128x32xf32>
    %36 = vector.broadcast %33 : vector<128x1xf32> to vector<128x32xf32>
    %37 = arith.divf %35, %36 : vector<128x32xf32>
    %38 = vector.extract_strided_slice %3 {offsets = [0, 64], sizes = [128, 32], strides = [1, 1]} : vector<128x128xbf16> to vector<128x32xbf16>
    %39 = vector.extract_strided_slice %5 {offsets = [0, 64], sizes = [128, 32], strides = [1, 1]} : vector<128x128xbf16> to vector<128x32xbf16>
    %40 = vector.extract_strided_slice %7 {offsets = [0, 64], sizes = [128, 32], strides = [1, 1]} : vector<128x128xbf16> to vector<128x32xbf16>
    %cst_18 = arith.constant dense<0.000000e+00> : vector<128x128xf32>
    %41 = tpu.matmul %38, %39, %cst_18 {dimension_numbers = #tpu.dot_dimension_numbers<[1], [1], [0], [0], [0, 0, 1, 0], [], []>} : vector<128x32xbf16>, vector<128x32xbf16>, vector<128x128xf32> -> vector<128x128xf32>
    %cst_19 = arith.constant dense<0xFF800000> : vector<128xf32>
    %42 = vector.multi_reduction <maximumf>, %41, %cst_19 [1] : vector<128x128xf32> to vector<128xf32>
    %43 = vector.shape_cast %42 : vector<128xf32> to vector<128x1xf32>
    %44 = vector.broadcast %43 : vector<128x1xf32> to vector<128x128xf32>
    %45 = arith.subf %41, %44 : vector<128x128xf32>
    %46 = math.exp %45 : vector<128x128xf32>
    %cst_20 = arith.constant dense<0.000000e+00> : vector<128xf32>
    %47 = vector.multi_reduction <add>, %46, %cst_20 [1] : vector<128x128xf32> to vector<128xf32>
    %48 = vector.shape_cast %47 : vector<128xf32> to vector<128x1xf32>
    %49 = arith.truncf %46 : vector<128x128xf32> to vector<128x128xbf16>
    %cst_21 = arith.constant dense<0.000000e+00> : vector<128x32xf32>
    %50 = tpu.matmul %49, %40, %cst_21 {dimension_numbers = #tpu.dot_dimension_numbers<[1], [0], [0], [1], [0, 0, 1, 1], [], []>} : vector<128x128xbf16>, vector<128x32xbf16>, vector<128x32xf32> -> vector<128x32xf32>
    %51 = vector.broadcast %48 : vector<128x1xf32> to vector<128x32xf32>
    %52 = arith.divf %50, %51 : vector<128x32xf32>
    %53 = vector.extract_strided_slice %3 {offsets = [0, 96], sizes = [128, 32], strides = [1, 1]} : vector<128x128xbf16> to vector<128x32xbf16>
    %54 = vector.extract_strided_slice %5 {offsets = [0, 96], sizes = [128, 32], strides = [1, 1]} : vector<128x128xbf16> to vector<128x32xbf16>
    %55 = vector.extract_strided_slice %7 {offsets = [0, 96], sizes = [128, 32], strides = [1, 1]} : vector<128x128xbf16> to vector<128x32xbf16>
    %cst_22 = arith.constant dense<0.000000e+00> : vector<128x128xf32>
    %56 = tpu.matmul %53, %54, %cst_22 {dimension_numbers = #tpu.dot_dimension_numbers<[1], [1], [0], [0], [0, 0, 1, 0], [], []>} : vector<128x32xbf16>, vector<128x32xbf16>, vector<128x128xf32> -> vector<128x128xf32>
    %cst_23 = arith.constant dense<0xFF800000> : vector<128xf32>
    %57 = vector.multi_reduction <maximumf>, %56, %cst_23 [1] : vector<128x128xf32> to vector<128xf32>
    %58 = vector.shape_cast %57 : vector<128xf32> to vector<128x1xf32>
    %59 = vector.broadcast %58 : vector<128x1xf32> to vector<128x128xf32>
    %60 = arith.subf %56, %59 : vector<128x128xf32>
    %61 = math.exp %60 : vector<128x128xf32>
    %cst_24 = arith.constant dense<0.000000e+00> : vector<128xf32>
    %62 = vector.multi_reduction <add>, %61, %cst_24 [1] : vector<128x128xf32> to vector<128xf32>
    %63 = vector.shape_cast %62 : vector<128xf32> to vector<128x1xf32>
    %64 = arith.truncf %61 : vector<128x128xf32> to vector<128x128xbf16>
    %cst_25 = arith.constant dense<0.000000e+00> : vector<128x32xf32>
    %65 = tpu.matmul %64, %55, %cst_25 {dimension_numbers = #tpu.dot_dimension_numbers<[1], [0], [0], [1], [0, 0, 1, 1], [], []>} : vector<128x128xbf16>, vector<128x32xbf16>, vector<128x32xf32> -> vector<128x32xf32>
    %66 = vector.broadcast %63 : vector<128x1xf32> to vector<128x32xf32>
    %67 = arith.divf %65, %66 : vector<128x32xf32>
    %68 = tpu.concatenate %22, %37, %52, %67 in 1 : vector<128x32xf32>, vector<128x32xf32>, vector<128x32xf32>, vector<128x32xf32> -> vector<128x128xf32>
    %69 = arith.truncf %68 : vector<128x128xf32> to vector<128x128xbf16>
    %c0_26 = arith.constant 0 : index
    %c0_27 = arith.constant 0 : index
    %70 = vector.load %arg6[%c0_26, %c0_27] : memref<128x128xbf16, #tpu.memory_space<vmem>>, vector<128x128xbf16>
    %cst_28 = arith.constant dense<0.000000e+00> : vector<128x128xf32>
    %71 = tpu.matmul %69, %70, %cst_28 {dimension_numbers = #tpu.dot_dimension_numbers<[1], [0], [0], [1], [0, 0, 1, 1], [], []>} : vector<128x128xbf16>, vector<128x128xbf16>, vector<128x128xf32> -> vector<128x128xf32>
    %c0_29 = arith.constant 0 : index
    %c0_30 = arith.constant 0 : index
    %72 = vector.load %arg7[%c0_29, %c0_30] : memref<1x128xf32, #tpu.memory_space<vmem>>, vector<1x128xf32>
    %73 = vector.broadcast %72 : vector<1x128xf32> to vector<128x128xf32>
    %74 = arith.addf %71, %73 : vector<128x128xf32>
    %c0_31 = arith.constant 0 : index
    %75 = memref.load %arg8[%c0_31] : memref<2xf32, #tpu.memory_space<smem>>
    %76 = math.tanh %75 : f32
    %77 = vector.broadcast %76 : f32 to vector<128x128xf32>
    %78 = arith.mulf %74, %77 : vector<128x128xf32>
    %79 = arith.addf %1, %78 : vector<128x128xf32>
    %c0_32 = arith.constant 0 : index
    %c0_33 = arith.constant 0 : index
    %c0_34 = arith.constant 0 : index
    %80 = vector.load %arg9[%c0_32, %c0_33, %c0_34] : memref<1x128x128xf32, #tpu.memory_space<vmem>>, vector<1x128x128xf32>
    %81 = vector.shape_cast %80 : vector<1x128x128xf32> to vector<128x128xf32>
    %82 = vector.shape_cast %79 : vector<128x128xf32> to vector<1x128x128xf32>
    tpu.vector_store %arg9[%c0_32, %c0_33, %c0_34], %82 {strides = array<i32>} : memref<1x128x128xf32, #tpu.memory_space<vmem>>, vector<1x128x128xf32>,
    return
  }
  func.func @transform_0(%arg0: i32, %arg1: i32) -> (i32, i32, i32) {
    %c0_i32 = arith.constant 0 : i32
    %c0_i32_0 = arith.constant 0 : i32
    return %arg0, %arg1, %c0_i32 : i32, i32, i32
  }
  func.func @transform_1(%arg0: i32, %arg1: i32) -> (i32, i32, i32) {
    %c0_i32 = arith.constant 0 : i32
    %c0_i32_0 = arith.constant 0 : i32
    return %arg0, %arg1, %c0_i32 : i32, i32, i32
  }
  func.func @transform_2(%arg0: i32, %arg1: i32) -> (i32, i32, i32) {
    %c0_i32 = arith.constant 0 : i32
    %c0_i32_0 = arith.constant 0 : i32
    %c0_i32_1 = arith.constant 0 : i32
    return %arg0, %c0_i32, %c0_i32_0 : i32, i32, i32
  }
  func.func @transform_3(%arg0: i32, %arg1: i32) -> (i32, i32, i32) {
    %c0_i32 = arith.constant 0 : i32
    %c0_i32_0 = arith.constant 0 : i32
    %c0_i32_1 = arith.constant 0 : i32
    return %arg0, %c0_i32, %c0_i32_0 : i32, i32, i32
  }
  func.func @transform_4(%arg0: i32, %arg1: i32) -> (i32, i32) {
    %c0_i32 = arith.constant 0 : i32
    %c0_i32_0 = arith.constant 0 : i32
    %c0_i32_1 = arith.constant 0 : i32
    return %c0_i32, %c0_i32_0 : i32, i32
  }
  func.func @transform_5(%arg0: i32, %arg1: i32) -> (i32, i32) {
    %c0_i32 = arith.constant 0 : i32
    %c0_i32_0 = arith.constant 0 : i32
    %c0_i32_1 = arith.constant 0 : i32
    return %c0_i32, %c0_i32_0 : i32, i32
  }
  func.func @transform_6(%arg0: i32, %arg1: i32) -> i32 {
    %c0_i32 = arith.constant 0 : i32
    %c0_i32_0 = arith.constant 0 : i32
    return %c0_i32 : i32
  }
  func.func @transform_7(%arg0: i32, %arg1: i32) -> (i32, i32, i32) {
    %c0_i32 = arith.constant 0 : i32
    %c0_i32_0 = arith.constant 0 : i32
    return %arg0, %arg1, %c0_i32 : i32, i32, i32
  }
}

module attributes {stable_mosaic.version = 11 : i64} {
  func.func @_qkv_kernel(%arg0: i32, %arg1: i32, %arg2: memref<1x128x128xf32, #tpu.memory_space<vmem>>, %arg3: memref<1x128xf32, #tpu.memory_space<vmem>>, %arg4: memref<1x128xf32, #tpu.memory_space<vmem>>, %arg5: memref<128x384xbf16, #tpu.memory_space<vmem>>, %arg6: memref<1x384xf32, #tpu.memory_space<vmem>>, %arg7: memref<1x128x128xbf16, #tpu.memory_space<vmem>>, %arg8: memref<1x128x128xbf16, #tpu.memory_space<vmem>>, %arg9: memref<1x128x128xbf16, #tpu.memory_space<vmem>>) attributes {dimension_semantics = [#tpu.dimension_semantics<parallel>, #tpu.dimension_semantics<parallel>], iteration_bounds = array<i64: 2, 1>, scalar_prefetch = 0 : i64, scratch_operands = 0 : i64, tpu.core_type = #tpu.core_type<tc>, window_params = [{transform_indices = @transform_0, window_bounds = array<i64: 1, 128, 128>}, {pipeline_mode = #tpu.pipeline_mode<synchronous>, transform_indices = @transform_1, window_bounds = array<i64: 1, 128>}, {pipeline_mode = #tpu.pipeline_mode<synchronous>, transform_indices = @transform_2, window_bounds = array<i64: 1, 128>}, {pipeline_mode = #tpu.pipeline_mode<synchronous>, transform_indices = @transform_3, window_bounds = array<i64: 128, 384>}, {pipeline_mode = #tpu.pipeline_mode<synchronous>, transform_indices = @transform_4, window_bounds = array<i64: 1, 384>}, {transform_indices = @transform_5, window_bounds = array<i64: 1, 128, 128>}, {transform_indices = @transform_6, window_bounds = array<i64: 1, 128, 128>}, {transform_indices = @transform_7, window_bounds = array<i64: 1, 128, 128>}]} {
    %c0 = arith.constant 0 : index
    %c0_0 = arith.constant 0 : index
    %c0_1 = arith.constant 0 : index
    %0 = vector.load %arg2[%c0, %c0_0, %c0_1] : memref<1x128x128xf32, #tpu.memory_space<vmem>>, vector<1x128x128xf32>
    %1 = vector.shape_cast %0 : vector<1x128x128xf32> to vector<128x128xf32>
    %c0_2 = arith.constant 0 : index
    %c0_3 = arith.constant 0 : index
    %2 = vector.load %arg3[%c0_2, %c0_3] : memref<1x128xf32, #tpu.memory_space<vmem>>, vector<1x128xf32>
    %c0_4 = arith.constant 0 : index
    %c0_5 = arith.constant 0 : index
    %3 = vector.load %arg4[%c0_4, %c0_5] : memref<1x128xf32, #tpu.memory_space<vmem>>, vector<1x128xf32>
    %cst = arith.constant dense<0.000000e+00> : vector<128xf32>
    %4 = vector.multi_reduction <add>, %1, %cst [1] : vector<128x128xf32> to vector<128xf32>
    %5 = vector.shape_cast %4 : vector<128xf32> to vector<128x1xf32>
    %cst_6 = arith.constant 1.280000e+02 : f32
    %6 = vector.broadcast %cst_6 : f32 to vector<128x1xf32>
    %7 = arith.divf %5, %6 : vector<128x1xf32>
    %8 = vector.broadcast %7 : vector<128x1xf32> to vector<128x128xf32>
    %9 = arith.subf %1, %8 : vector<128x128xf32>
    %10 = arith.mulf %9, %9 : vector<128x128xf32>
    %cst_7 = arith.constant dense<0.000000e+00> : vector<128xf32>
    %11 = vector.multi_reduction <add>, %10, %cst_7 [1] : vector<128x128xf32> to vector<128xf32>
    %12 = vector.shape_cast %11 : vector<128xf32> to vector<128x1xf32>
    %cst_8 = arith.constant 1.280000e+02 : f32
    %13 = vector.broadcast %cst_8 : f32 to vector<128x1xf32>
    %14 = arith.divf %12, %13 : vector<128x1xf32>
    %15 = vector.broadcast %7 : vector<128x1xf32> to vector<128x128xf32>
    %16 = arith.subf %1, %15 : vector<128x128xf32>
    %cst_9 = arith.constant 9.99999974E-6 : f32
    %17 = vector.broadcast %cst_9 : f32 to vector<128x1xf32>
    %18 = arith.addf %14, %17 : vector<128x1xf32>
    %19 = math.rsqrt %18 : vector<128x1xf32>
    %20 = vector.broadcast %19 : vector<128x1xf32> to vector<128x128xf32>
    %21 = arith.mulf %16, %20 : vector<128x128xf32>
    %22 = vector.broadcast %2 : vector<1x128xf32> to vector<128x128xf32>
    %23 = arith.mulf %21, %22 : vector<128x128xf32>
    %24 = vector.broadcast %3 : vector<1x128xf32> to vector<128x128xf32>
    %25 = arith.addf %23, %24 : vector<128x128xf32>
    %26 = arith.truncf %25 : vector<128x128xf32> to vector<128x128xbf16>
    %c0_10 = arith.constant 0 : index
    %c0_11 = arith.constant 0 : index
    %27 = vector.load %arg5[%c0_10, %c0_11] : memref<128x384xbf16, #tpu.memory_space<vmem>>, vector<128x384xbf16>
    %cst_12 = arith.constant dense<0.000000e+00> : vector<128x384xf32>
    %28 = tpu.matmul %26, %27, %cst_12 {dimension_numbers = #tpu.dot_dimension_numbers<[1], [0], [0], [1], [0, 0, 1, 1], [], []>} : vector<128x128xbf16>, vector<128x384xbf16>, vector<128x384xf32> -> vector<128x384xf32>
    %c0_13 = arith.constant 0 : index
    %c0_14 = arith.constant 0 : index
    %29 = vector.load %arg6[%c0_13, %c0_14] : memref<1x384xf32, #tpu.memory_space<vmem>>, vector<1x384xf32>
    %30 = vector.broadcast %29 : vector<1x384xf32> to vector<128x384xf32>
    %31 = arith.addf %28, %30 : vector<128x384xf32>
    %32 = arith.truncf %31 : vector<128x384xf32> to vector<128x384xbf16>
    %33 = vector.extract_strided_slice %32 {offsets = [0, 0], sizes = [128, 128], strides = [1, 1]} : vector<128x384xbf16> to vector<128x128xbf16>
    %c0_15 = arith.constant 0 : index
    %c0_16 = arith.constant 0 : index
    %c0_17 = arith.constant 0 : index
    %34 = vector.load %arg7[%c0_15, %c0_16, %c0_17] : memref<1x128x128xbf16, #tpu.memory_space<vmem>>, vector<1x128x128xbf16>
    %35 = vector.shape_cast %34 : vector<1x128x128xbf16> to vector<128x128xbf16>
    %36 = vector.shape_cast %33 : vector<128x128xbf16> to vector<1x128x128xbf16>
    tpu.vector_store %arg7[%c0_15, %c0_16, %c0_17], %36 {strides = array<i32>} : memref<1x128x128xbf16, #tpu.memory_space<vmem>>, vector<1x128x128xbf16>,
    %37 = vector.extract_strided_slice %32 {offsets = [0, 128], sizes = [128, 128], strides = [1, 1]} : vector<128x384xbf16> to vector<128x128xbf16>
    %c0_18 = arith.constant 0 : index
    %c0_19 = arith.constant 0 : index
    %c0_20 = arith.constant 0 : index
    %38 = vector.load %arg8[%c0_18, %c0_19, %c0_20] : memref<1x128x128xbf16, #tpu.memory_space<vmem>>, vector<1x128x128xbf16>
    %39 = vector.shape_cast %38 : vector<1x128x128xbf16> to vector<128x128xbf16>
    %40 = vector.shape_cast %37 : vector<128x128xbf16> to vector<1x128x128xbf16>
    tpu.vector_store %arg8[%c0_18, %c0_19, %c0_20], %40 {strides = array<i32>} : memref<1x128x128xbf16, #tpu.memory_space<vmem>>, vector<1x128x128xbf16>,
    %41 = vector.extract_strided_slice %32 {offsets = [0, 256], sizes = [128, 128], strides = [1, 1]} : vector<128x384xbf16> to vector<128x128xbf16>
    %c0_21 = arith.constant 0 : index
    %c0_22 = arith.constant 0 : index
    %c0_23 = arith.constant 0 : index
    %42 = vector.load %arg9[%c0_21, %c0_22, %c0_23] : memref<1x128x128xbf16, #tpu.memory_space<vmem>>, vector<1x128x128xbf16>
    %43 = vector.shape_cast %42 : vector<1x128x128xbf16> to vector<128x128xbf16>
    %44 = vector.shape_cast %41 : vector<128x128xbf16> to vector<1x128x128xbf16>
    tpu.vector_store %arg9[%c0_21, %c0_22, %c0_23], %44 {strides = array<i32>} : memref<1x128x128xbf16, #tpu.memory_space<vmem>>, vector<1x128x128xbf16>,
    return
  }
  func.func @transform_0(%arg0: i32, %arg1: i32) -> (i32, i32, i32) {
    %c0_i32 = arith.constant 0 : i32
    %c0_i32_0 = arith.constant 0 : i32
    return %arg0, %arg1, %c0_i32 : i32, i32, i32
  }
  func.func @transform_1(%arg0: i32, %arg1: i32) -> (i32, i32) {
    %c0_i32 = arith.constant 0 : i32
    %c0_i32_0 = arith.constant 0 : i32
    %c0_i32_1 = arith.constant 0 : i32
    return %c0_i32, %c0_i32_0 : i32, i32
  }
  func.func @transform_2(%arg0: i32, %arg1: i32) -> (i32, i32) {
    %c0_i32 = arith.constant 0 : i32
    %c0_i32_0 = arith.constant 0 : i32
    %c0_i32_1 = arith.constant 0 : i32
    return %c0_i32, %c0_i32_0 : i32, i32
  }
  func.func @transform_3(%arg0: i32, %arg1: i32) -> (i32, i32) {
    %c0_i32 = arith.constant 0 : i32
    %c0_i32_0 = arith.constant 0 : i32
    %c0_i32_1 = arith.constant 0 : i32
    return %c0_i32, %c0_i32_0 : i32, i32
  }
  func.func @transform_4(%arg0: i32, %arg1: i32) -> (i32, i32) {
    %c0_i32 = arith.constant 0 : i32
    %c0_i32_0 = arith.constant 0 : i32
    %c0_i32_1 = arith.constant 0 : i32
    return %c0_i32, %c0_i32_0 : i32, i32
  }
  func.func @transform_5(%arg0: i32, %arg1: i32) -> (i32, i32, i32) {
    %c0_i32 = arith.constant 0 : i32
    %c0_i32_0 = arith.constant 0 : i32
    return %arg0, %arg1, %c0_i32 : i32, i32, i32
  }
  func.func @transform_6(%arg0: i32, %arg1: i32) -> (i32, i32, i32) {
    %c0_i32 = arith.constant 0 : i32
    %c0_i32_0 = arith.constant 0 : i32
    return %arg0, %arg1, %c0_i32 : i32, i32, i32
  }
  func.func @transform_7(%arg0: i32, %arg1: i32) -> (i32, i32, i32) {
    %c0_i32 = arith.constant 0 : i32
    %c0_i32_0 = arith.constant 0 : i32
    return %arg0, %arg1, %c0_i32 : i32, i32, i32
  }
}

module attributes {stable_mosaic.version = 11 : i64} {
  func.func @_ffn_kernel(%arg0: i32, %arg1: i32, %arg2: i32, %arg3: memref<1x128x128xf32, #tpu.memory_space<vmem>>, %arg4: memref<1x128xf32, #tpu.memory_space<vmem>>, %arg5: memref<1x128xf32, #tpu.memory_space<vmem>>, %arg6: memref<128x256xbf16, #tpu.memory_space<vmem>>, %arg7: memref<1x256xf32, #tpu.memory_space<vmem>>, %arg8: memref<256x128xbf16, #tpu.memory_space<vmem>>, %arg9: memref<1x128xf32, #tpu.memory_space<vmem>>, %arg10: memref<2xf32, #tpu.memory_space<smem>>, %arg11: memref<1x128x128xf32, #tpu.memory_space<vmem>>, %arg12: memref<128x128xf32, #tpu.memory_space<vmem>>, %arg13: memref<128x128xbf16, #tpu.memory_space<vmem>>) attributes {dimension_semantics = [#tpu.dimension_semantics<parallel>, #tpu.dimension_semantics<parallel>, #tpu.dimension_semantics<arbitrary>], iteration_bounds = array<i64: 2, 1, 1>, scalar_prefetch = 0 : i64, scratch_operands = 2 : i64, tpu.core_type = #tpu.core_type<tc>, window_params = [{transform_indices = @transform_0, window_bounds = array<i64: 1, 128, 128>}, {pipeline_mode = #tpu.pipeline_mode<synchronous>, transform_indices = @transform_1, window_bounds = array<i64: 1, 128>}, {pipeline_mode = #tpu.pipeline_mode<synchronous>, transform_indices = @transform_2, window_bounds = array<i64: 1, 128>}, {transform_indices = @transform_3, window_bounds = array<i64: 128, 256>}, {transform_indices = @transform_4, window_bounds = array<i64: 1, 256>}, {transform_indices = @transform_5, window_bounds = array<i64: 256, 128>}, {pipeline_mode = #tpu.pipeline_mode<synchronous>, transform_indices = @transform_6, window_bounds = array<i64: 1, 128>}, {transform_indices = @transform_7, window_bounds = array<i64: 2>}, {transform_indices = @transform_8, window_bounds = array<i64: 1, 128, 128>}]} {
    %c0_i32 = arith.constant 0 : i32
    %0 = arith.cmpi eq, %arg2, %c0_i32 : i32
    %1 = arith.extui %0 : i1 to i32
    %c0_i32_0 = arith.constant 0 : i32
    %2 = arith.cmpi ne, %1, %c0_i32_0 : i32
    scf.if %2 {
      %c0_31 = arith.constant 0 : index
      %c0_32 = arith.constant 0 : index
      %c0_33 = arith.constant 0 : index
      %59 = vector.load %arg3[%c0_31, %c0_32, %c0_33] : memref<1x128x128xf32, #tpu.memory_space<vmem>>, vector<1x128x128xf32>
      %60 = vector.shape_cast %59 : vector<1x128x128xf32> to vector<128x128xf32>
      %c0_34 = arith.constant 0 : index
      %c0_35 = arith.constant 0 : index
      %61 = vector.load %arg4[%c0_34, %c0_35] : memref<1x128xf32, #tpu.memory_space<vmem>>, vector<1x128xf32>
      %c0_36 = arith.constant 0 : index
      %c0_37 = arith.constant 0 : index
      %62 = vector.load %arg5[%c0_36, %c0_37] : memref<1x128xf32, #tpu.memory_space<vmem>>, vector<1x128xf32>
      %cst_38 = arith.constant dense<0.000000e+00> : vector<128xf32>
      %63 = vector.multi_reduction <add>, %60, %cst_38 [1] : vector<128x128xf32> to vector<128xf32>
      %64 = vector.shape_cast %63 : vector<128xf32> to vector<128x1xf32>
      %cst_39 = arith.constant 1.280000e+02 : f32
      %65 = vector.broadcast %cst_39 : f32 to vector<128x1xf32>
      %66 = arith.divf %64, %65 : vector<128x1xf32>
      %67 = vector.broadcast %66 : vector<128x1xf32> to vector<128x128xf32>
      %68 = arith.subf %60, %67 : vector<128x128xf32>
      %69 = arith.mulf %68, %68 : vector<128x128xf32>
      %cst_40 = arith.constant dense<0.000000e+00> : vector<128xf32>
      %70 = vector.multi_reduction <add>, %69, %cst_40 [1] : vector<128x128xf32> to vector<128xf32>
      %71 = vector.shape_cast %70 : vector<128xf32> to vector<128x1xf32>
      %cst_41 = arith.constant 1.280000e+02 : f32
      %72 = vector.broadcast %cst_41 : f32 to vector<128x1xf32>
      %73 = arith.divf %71, %72 : vector<128x1xf32>
      %74 = vector.broadcast %66 : vector<128x1xf32> to vector<128x128xf32>
      %75 = arith.subf %60, %74 : vector<128x128xf32>
      %cst_42 = arith.constant 9.99999974E-6 : f32
      %76 = vector.broadcast %cst_42 : f32 to vector<128x1xf32>
      %77 = arith.addf %73, %76 : vector<128x1xf32>
      %78 = math.rsqrt %77 : vector<128x1xf32>
      %79 = vector.broadcast %78 : vector<128x1xf32> to vector<128x128xf32>
      %80 = arith.mulf %75, %79 : vector<128x128xf32>
      %81 = vector.broadcast %61 : vector<1x128xf32> to vector<128x128xf32>
      %82 = arith.mulf %80, %81 : vector<128x128xf32>
      %83 = vector.broadcast %62 : vector<1x128xf32> to vector<128x128xf32>
      %84 = arith.addf %82, %83 : vector<128x128xf32>
      %85 = arith.truncf %84 : vector<128x128xf32> to vector<128x128xbf16>
      %c0_43 = arith.constant 0 : index
      %c0_44 = arith.constant 0 : index
      %86 = vector.load %arg13[%c0_43, %c0_44] : memref<128x128xbf16, #tpu.memory_space<vmem>>, vector<128x128xbf16>
      tpu.vector_store %arg13[%c0_43, %c0_44], %85 {strides = array<i32>} : memref<128x128xbf16, #tpu.memory_space<vmem>>, vector<128x128xbf16>,
      %cst_45 = arith.constant 0.000000e+00 : f32
      %87 = vector.broadcast %cst_45 : f32 to vector<128x128xf32>
      %c0_46 = arith.constant 0 : index
      %c0_47 = arith.constant 0 : index
      %88 = vector.load %arg12[%c0_46, %c0_47] : memref<128x128xf32, #tpu.memory_space<vmem>>, vector<128x128xf32>
      tpu.vector_store %arg12[%c0_46, %c0_47], %87 {strides = array<i32>} : memref<128x128xf32, #tpu.memory_space<vmem>>, vector<128x128xf32>,
    } else {
    }
    %c0 = arith.constant 0 : index
    %c0_1 = arith.constant 0 : index
    %3 = vector.load %arg13[%c0, %c0_1] : memref<128x128xbf16, #tpu.memory_space<vmem>>, vector<128x128xbf16>
    %c0_2 = arith.constant 0 : index
    %c0_3 = arith.constant 0 : index
    %4 = vector.load %arg6[%c0_2, %c0_3] : memref<128x256xbf16, #tpu.memory_space<vmem>>, vector<128x256xbf16>
    %cst = arith.constant dense<0.000000e+00> : vector<128x256xf32>
    %5 = tpu.matmul %3, %4, %cst {dimension_numbers = #tpu.dot_dimension_numbers<[1], [0], [0], [1], [0, 0, 1, 1], [], []>} : vector<128x128xbf16>, vector<128x256xbf16>, vector<128x256xf32> -> vector<128x256xf32>
    %c0_4 = arith.constant 0 : index
    %c0_5 = arith.constant 0 : index
    %6 = vector.load %arg7[%c0_4, %c0_5] : memref<1x256xf32, #tpu.memory_space<vmem>>, vector<1x256xf32>
    %7 = vector.broadcast %6 : vector<1x256xf32> to vector<128x256xf32>
    %8 = arith.addf %5, %7 : vector<128x256xf32>
    %cst_6 = arith.constant 5.000000e-01 : f32
    %9 = vector.broadcast %cst_6 : f32 to vector<128x256xf32>
    %10 = arith.mulf %9, %8 : vector<128x256xf32>
    %cst_7 = arith.constant 0.707106769 : f32
    %11 = vector.broadcast %cst_7 : f32 to vector<128x256xf32>
    %12 = arith.mulf %8, %11 : vector<128x256xf32>
    %cst_8 = arith.constant 0.000000e+00 : f32
    %13 = vector.broadcast %cst_8 : f32 to vector<128x256xf32>
    %14 = arith.cmpf olt, %12, %13 : vector<128x256xf32>
    %cst_9 = arith.constant -1.000000e+00 : f32
    %cst_10 = arith.constant 1.000000e+00 : f32
    %15 = vector.broadcast %cst_9 : f32 to vector<128x256xf32>
    %16 = vector.broadcast %cst_10 : f32 to vector<128x256xf32>
    %17 = arith.select %14, %15, %16 : vector<128x256xi1>, vector<128x256xf32>
    %18 = math.absf %12 : vector<128x256xf32>
    %cst_11 = arith.constant 0.327591091 : f32
    %19 = vector.broadcast %cst_11 : f32 to vector<128x256xf32>
    %20 = arith.mulf %19, %18 : vector<128x256xf32>
    %cst_12 = arith.constant 1.000000e+00 : f32
    %21 = vector.broadcast %cst_12 : f32 to vector<128x256xf32>
    %22 = arith.addf %21, %20 : vector<128x256xf32>
    %cst_13 = arith.constant 1.000000e+00 : f32
    %23 = vector.broadcast %cst_13 : f32 to vector<128x256xf32>
    %24 = arith.divf %23, %22 : vector<128x256xf32>
    %cst_14 = arith.constant 1.06140542 : f32
    %25 = vector.broadcast %cst_14 : f32 to vector<128x256xf32>
    %26 = arith.mulf %25, %24 : vector<128x256xf32>
    %cst_15 = arith.constant -1.45315206 : f32
    %27 = vector.broadcast %cst_15 : f32 to vector<128x256xf32>
    %28 = arith.addf %26, %27 : vector<128x256xf32>
    %29 = arith.mulf %28, %24 : vector<128x256xf32>
    %cst_16 = arith.constant 1.42141378 : f32
    %30 = vector.broadcast %cst_16 : f32 to vector<128x256xf32>
    %31 = arith.addf %29, %30 : vector<128x256xf32>
    %32 = arith.mulf %31, %24 : vector<128x256xf32>
    %cst_17 = arith.constant -0.284496725 : f32
    %33 = vector.broadcast %cst_17 : f32 to vector<128x256xf32>
    %34 = arith.addf %32, %33 : vector<128x256xf32>
    %35 = arith.mulf %34, %24 : vector<128x256xf32>
    %cst_18 = arith.constant 0.254829586 : f32
    %36 = vector.broadcast %cst_18 : f32 to vector<128x256xf32>
    %37 = arith.addf %35, %36 : vector<128x256xf32>
    %38 = arith.mulf %37, %24 : vector<128x256xf32>
    %cst_19 = arith.constant 0.000000e+00 : f32
    %39 = vector.broadcast %cst_19 : f32 to vector<128x256xf32>
    %40 = arith.subf %39, %18 : vector<128x256xf32>
    %41 = arith.mulf %40, %18 : vector<128x256xf32>
    %42 = math.exp %41 : vector<128x256xf32>
    %43 = arith.mulf %38, %42 : vector<128x256xf32>
    %cst_20 = arith.constant 1.000000e+00 : f32
    %44 = vector.broadcast %cst_20 : f32 to vector<128x256xf32>
    %45 = arith.subf %44, %43 : vector<128x256xf32>
    %46 = arith.mulf %17, %45 : vector<128x256xf32>
    %cst_21 = arith.constant 1.000000e+00 : f32
    %47 = vector.broadcast %cst_21 : f32 to vector<128x256xf32>
    %48 = arith.addf %47, %46 : vector<128x256xf32>
    %49 = arith.mulf %10, %48 : vector<128x256xf32>
    %c0_22 = arith.constant 0 : index
    %c0_23 = arith.constant 0 : index
    %50 = vector.load %arg12[%c0_22, %c0_23] : memref<128x128xf32, #tpu.memory_space<vmem>>, vector<128x128xf32>
    %51 = arith.truncf %49 : vector<128x256xf32> to vector<128x256xbf16>
    %c0_24 = arith.constant 0 : index
    %c0_25 = arith.constant 0 : index
    %52 = vector.load %arg8[%c0_24, %c0_25] : memref<256x128xbf16, #tpu.memory_space<vmem>>, vector<256x128xbf16>
    %cst_26 = arith.constant dense<0.000000e+00> : vector<128x128xf32>
    %53 = tpu.matmul %51, %52, %cst_26 {dimension_numbers = #tpu.dot_dimension_numbers<[1], [0], [0], [1], [0, 0, 1, 1], [], []>} : vector<128x256xbf16>, vector<256x128xbf16>, vector<128x128xf32> -> vector<128x128xf32>
    %54 = arith.addf %50, %53 : vector<128x128xf32>
    %c0_27 = arith.constant 0 : index
    %c0_28 = arith.constant 0 : index
    %55 = vector.load %arg12[%c0_27, %c0_28] : memref<128x128xf32, #tpu.memory_space<vmem>>, vector<128x128xf32>
    tpu.vector_store %arg12[%c0_27, %c0_28], %54 {strides = array<i32>} : memref<128x128xf32, #tpu.memory_space<vmem>>, vector<128x128xf32>,
    %c0_i32_29 = arith.constant 0 : i32
    %56 = arith.cmpi eq, %arg2, %c0_i32_29 : i32
    %57 = arith.extui %56 : i1 to i32
    %c0_i32_30 = arith.constant 0 : i32
    %58 = arith.cmpi ne, %57, %c0_i32_30 : i32
    scf.if %58 {
      %c0_31 = arith.constant 0 : index
      %c0_32 = arith.constant 0 : index
      %59 = vector.load %arg12[%c0_31, %c0_32] : memref<128x128xf32, #tpu.memory_space<vmem>>, vector<128x128xf32>
      %c0_33 = arith.constant 0 : index
      %c0_34 = arith.constant 0 : index
      %60 = vector.load %arg9[%c0_33, %c0_34] : memref<1x128xf32, #tpu.memory_space<vmem>>, vector<1x128xf32>
      %61 = vector.broadcast %60 : vector<1x128xf32> to vector<128x128xf32>
      %62 = arith.addf %59, %61 : vector<128x128xf32>
      %c1 = arith.constant 1 : index
      %63 = memref.load %arg10[%c1] : memref<2xf32, #tpu.memory_space<smem>>
      %64 = math.tanh %63 : f32
      %65 = vector.broadcast %64 : f32 to vector<128x128xf32>
      %66 = arith.mulf %62, %65 : vector<128x128xf32>
      %c0_35 = arith.constant 0 : index
      %c0_36 = arith.constant 0 : index
      %c0_37 = arith.constant 0 : index
      %67 = vector.load %arg3[%c0_35, %c0_36, %c0_37] : memref<1x128x128xf32, #tpu.memory_space<vmem>>, vector<1x128x128xf32>
      %68 = vector.shape_cast %67 : vector<1x128x128xf32> to vector<128x128xf32>
      %69 = arith.addf %68, %66 : vector<128x128xf32>
      %c0_38 = arith.constant 0 : index
      %c0_39 = arith.constant 0 : index
      %c0_40 = arith.constant 0 : index
      %70 = vector.load %arg11[%c0_38, %c0_39, %c0_40] : memref<1x128x128xf32, #tpu.memory_space<vmem>>, vector<1x128x128xf32>
      %71 = vector.shape_cast %70 : vector<1x128x128xf32> to vector<128x128xf32>
      %72 = vector.shape_cast %69 : vector<128x128xf32> to vector<1x128x128xf32>
      tpu.vector_store %arg11[%c0_38, %c0_39, %c0_40], %72 {strides = array<i32>} : memref<1x128x128xf32, #tpu.memory_space<vmem>>, vector<1x128x128xf32>,
    } else {
    }
    return
  }
  func.func @transform_0(%arg0: i32, %arg1: i32, %arg2: i32) -> (i32, i32, i32) {
    %c0_i32 = arith.constant 0 : i32
    %c0_i32_0 = arith.constant 0 : i32
    return %arg0, %arg1, %c0_i32 : i32, i32, i32
  }
  func.func @transform_1(%arg0: i32, %arg1: i32, %arg2: i32) -> (i32, i32) {
    %c0_i32 = arith.constant 0 : i32
    %c0_i32_0 = arith.constant 0 : i32
    %c0_i32_1 = arith.constant 0 : i32
    return %c0_i32, %c0_i32_0 : i32, i32
  }
  func.func @transform_2(%arg0: i32, %arg1: i32, %arg2: i32) -> (i32, i32) {
    %c0_i32 = arith.constant 0 : i32
    %c0_i32_0 = arith.constant 0 : i32
    %c0_i32_1 = arith.constant 0 : i32
    return %c0_i32, %c0_i32_0 : i32, i32
  }
  func.func @transform_3(%arg0: i32, %arg1: i32, %arg2: i32) -> (i32, i32) {
    %c0_i32 = arith.constant 0 : i32
    %c0_i32_0 = arith.constant 0 : i32
    return %c0_i32, %arg2 : i32, i32
  }
  func.func @transform_4(%arg0: i32, %arg1: i32, %arg2: i32) -> (i32, i32) {
    %c0_i32 = arith.constant 0 : i32
    %c0_i32_0 = arith.constant 0 : i32
    return %c0_i32, %arg2 : i32, i32
  }
  func.func @transform_5(%arg0: i32, %arg1: i32, %arg2: i32) -> (i32, i32) {
    %c0_i32 = arith.constant 0 : i32
    %c0_i32_0 = arith.constant 0 : i32
    return %arg2, %c0_i32 : i32, i32
  }
  func.func @transform_6(%arg0: i32, %arg1: i32, %arg2: i32) -> (i32, i32) {
    %c0_i32 = arith.constant 0 : i32
    %c0_i32_0 = arith.constant 0 : i32
    %c0_i32_1 = arith.constant 0 : i32
    return %c0_i32, %c0_i32_0 : i32, i32
  }
  func.func @transform_7(%arg0: i32, %arg1: i32, %arg2: i32) -> i32 {
    %c0_i32 = arith.constant 0 : i32
    %c0_i32_0 = arith.constant 0 : i32
    return %c0_i32 : i32
  }
  func.func @transform_8(%arg0: i32, %arg1: i32, %arg2: i32) -> (i32, i32, i32) {
    %c0_i32 = arith.constant 0 : i32
    %c0_i32_0 = arith.constant 0 : i32
    return %arg0, %arg1, %c0_i32 : i32, i32, i32
  }
}

module attributes {stable_mosaic.version = 11 : i64} {
  func.func @_qkv_kernel(%arg0: i32, %arg1: i32, %arg2: memref<1x128x128xf32, #tpu.memory_space<vmem>>, %arg3: memref<1x128xf32, #tpu.memory_space<vmem>>, %arg4: memref<1x128xf32, #tpu.memory_space<vmem>>, %arg5: memref<128x384xbf16, #tpu.memory_space<vmem>>, %arg6: memref<1x384xf32, #tpu.memory_space<vmem>>, %arg7: memref<1x128x128xbf16, #tpu.memory_space<vmem>>, %arg8: memref<1x128x128xbf16, #tpu.memory_space<vmem>>, %arg9: memref<1x128x128xbf16, #tpu.memory_space<vmem>>) attributes {dimension_semantics = [#tpu.dimension_semantics<parallel>, #tpu.dimension_semantics<parallel>], iteration_bounds = array<i64: 2, 1>, scalar_prefetch = 0 : i64, scratch_operands = 0 : i64, tpu.core_type = #tpu.core_type<tc>, window_params = [{transform_indices = @transform_0, window_bounds = array<i64: 1, 128, 128>}, {pipeline_mode = #tpu.pipeline_mode<synchronous>, transform_indices = @transform_1, window_bounds = array<i64: 1, 128>}, {pipeline_mode = #tpu.pipeline_mode<synchronous>, transform_indices = @transform_2, window_bounds = array<i64: 1, 128>}, {pipeline_mode = #tpu.pipeline_mode<synchronous>, transform_indices = @transform_3, window_bounds = array<i64: 128, 384>}, {pipeline_mode = #tpu.pipeline_mode<synchronous>, transform_indices = @transform_4, window_bounds = array<i64: 1, 384>}, {transform_indices = @transform_5, window_bounds = array<i64: 1, 128, 128>}, {transform_indices = @transform_6, window_bounds = array<i64: 1, 128, 128>}, {transform_indices = @transform_7, window_bounds = array<i64: 1, 128, 128>}]} {
    %c0 = arith.constant 0 : index
    %c0_0 = arith.constant 0 : index
    %c0_1 = arith.constant 0 : index
    %0 = vector.load %arg2[%c0, %c0_0, %c0_1] : memref<1x128x128xf32, #tpu.memory_space<vmem>>, vector<1x128x128xf32>
    %1 = vector.shape_cast %0 : vector<1x128x128xf32> to vector<128x128xf32>
    %c0_2 = arith.constant 0 : index
    %c0_3 = arith.constant 0 : index
    %2 = vector.load %arg3[%c0_2, %c0_3] : memref<1x128xf32, #tpu.memory_space<vmem>>, vector<1x128xf32>
    %c0_4 = arith.constant 0 : index
    %c0_5 = arith.constant 0 : index
    %3 = vector.load %arg4[%c0_4, %c0_5] : memref<1x128xf32, #tpu.memory_space<vmem>>, vector<1x128xf32>
    %cst = arith.constant dense<0.000000e+00> : vector<128xf32>
    %4 = vector.multi_reduction <add>, %1, %cst [1] : vector<128x128xf32> to vector<128xf32>
    %5 = vector.shape_cast %4 : vector<128xf32> to vector<128x1xf32>
    %cst_6 = arith.constant 1.280000e+02 : f32
    %6 = vector.broadcast %cst_6 : f32 to vector<128x1xf32>
    %7 = arith.divf %5, %6 : vector<128x1xf32>
    %8 = vector.broadcast %7 : vector<128x1xf32> to vector<128x128xf32>
    %9 = arith.subf %1, %8 : vector<128x128xf32>
    %10 = arith.mulf %9, %9 : vector<128x128xf32>
    %cst_7 = arith.constant dense<0.000000e+00> : vector<128xf32>
    %11 = vector.multi_reduction <add>, %10, %cst_7 [1] : vector<128x128xf32> to vector<128xf32>
    %12 = vector.shape_cast %11 : vector<128xf32> to vector<128x1xf32>
    %cst_8 = arith.constant 1.280000e+02 : f32
    %13 = vector.broadcast %cst_8 : f32 to vector<128x1xf32>
    %14 = arith.divf %12, %13 : vector<128x1xf32>
    %15 = vector.broadcast %7 : vector<128x1xf32> to vector<128x128xf32>
    %16 = arith.subf %1, %15 : vector<128x128xf32>
    %cst_9 = arith.constant 9.99999974E-6 : f32
    %17 = vector.broadcast %cst_9 : f32 to vector<128x1xf32>
    %18 = arith.addf %14, %17 : vector<128x1xf32>
    %19 = math.rsqrt %18 : vector<128x1xf32>
    %20 = vector.broadcast %19 : vector<128x1xf32> to vector<128x128xf32>
    %21 = arith.mulf %16, %20 : vector<128x128xf32>
    %22 = vector.broadcast %2 : vector<1x128xf32> to vector<128x128xf32>
    %23 = arith.mulf %21, %22 : vector<128x128xf32>
    %24 = vector.broadcast %3 : vector<1x128xf32> to vector<128x128xf32>
    %25 = arith.addf %23, %24 : vector<128x128xf32>
    %26 = arith.truncf %25 : vector<128x128xf32> to vector<128x128xbf16>
    %c0_10 = arith.constant 0 : index
    %c0_11 = arith.constant 0 : index
    %27 = vector.load %arg5[%c0_10, %c0_11] : memref<128x384xbf16, #tpu.memory_space<vmem>>, vector<128x384xbf16>
    %cst_12 = arith.constant dense<0.000000e+00> : vector<128x384xf32>
    %28 = tpu.matmul %26, %27, %cst_12 {dimension_numbers = #tpu.dot_dimension_numbers<[1], [0], [0], [1], [0, 0, 1, 1], [], []>} : vector<128x128xbf16>, vector<128x384xbf16>, vector<128x384xf32> -> vector<128x384xf32>
    %c0_13 = arith.constant 0 : index
    %c0_14 = arith.constant 0 : index
    %29 = vector.load %arg6[%c0_13, %c0_14] : memref<1x384xf32, #tpu.memory_space<vmem>>, vector<1x384xf32>
    %30 = vector.broadcast %29 : vector<1x384xf32> to vector<128x384xf32>
    %31 = arith.addf %28, %30 : vector<128x384xf32>
    %32 = arith.truncf %31 : vector<128x384xf32> to vector<128x384xbf16>
    %33 = vector.extract_strided_slice %32 {offsets = [0, 0], sizes = [128, 128], strides = [1, 1]} : vector<128x384xbf16> to vector<128x128xbf16>
    %c0_15 = arith.constant 0 : index
    %c0_16 = arith.constant 0 : index
    %c0_17 = arith.constant 0 : index
    %34 = vector.load %arg7[%c0_15, %c0_16, %c0_17] : memref<1x128x128xbf16, #tpu.memory_space<vmem>>, vector<1x128x128xbf16>
    %35 = vector.shape_cast %34 : vector<1x128x128xbf16> to vector<128x128xbf16>
    %36 = vector.shape_cast %33 : vector<128x128xbf16> to vector<1x128x128xbf16>
    tpu.vector_store %arg7[%c0_15, %c0_16, %c0_17], %36 {strides = array<i32>} : memref<1x128x128xbf16, #tpu.memory_space<vmem>>, vector<1x128x128xbf16>,
    %37 = vector.extract_strided_slice %32 {offsets = [0, 128], sizes = [128, 128], strides = [1, 1]} : vector<128x384xbf16> to vector<128x128xbf16>
    %c0_18 = arith.constant 0 : index
    %c0_19 = arith.constant 0 : index
    %c0_20 = arith.constant 0 : index
    %38 = vector.load %arg8[%c0_18, %c0_19, %c0_20] : memref<1x128x128xbf16, #tpu.memory_space<vmem>>, vector<1x128x128xbf16>
    %39 = vector.shape_cast %38 : vector<1x128x128xbf16> to vector<128x128xbf16>
    %40 = vector.shape_cast %37 : vector<128x128xbf16> to vector<1x128x128xbf16>
    tpu.vector_store %arg8[%c0_18, %c0_19, %c0_20], %40 {strides = array<i32>} : memref<1x128x128xbf16, #tpu.memory_space<vmem>>, vector<1x128x128xbf16>,
    %41 = vector.extract_strided_slice %32 {offsets = [0, 256], sizes = [128, 128], strides = [1, 1]} : vector<128x384xbf16> to vector<128x128xbf16>
    %c0_21 = arith.constant 0 : index
    %c0_22 = arith.constant 0 : index
    %c0_23 = arith.constant 0 : index
    %42 = vector.load %arg9[%c0_21, %c0_22, %c0_23] : memref<1x128x128xbf16, #tpu.memory_space<vmem>>, vector<1x128x128xbf16>
    %43 = vector.shape_cast %42 : vector<1x128x128xbf16> to vector<128x128xbf16>
    %44 = vector.shape_cast %41 : vector<128x128xbf16> to vector<1x128x128xbf16>
    tpu.vector_store %arg9[%c0_21, %c0_22, %c0_23], %44 {strides = array<i32>} : memref<1x128x128xbf16, #tpu.memory_space<vmem>>, vector<1x128x128xbf16>,
    return
  }
  func.func @transform_0(%arg0: i32, %arg1: i32) -> (i32, i32, i32) {
    %c0_i32 = arith.constant 0 : i32
    %c0_i32_0 = arith.constant 0 : i32
    return %arg0, %arg1, %c0_i32 : i32, i32, i32
  }
  func.func @transform_1(%arg0: i32, %arg1: i32) -> (i32, i32) {
    %c0_i32 = arith.constant 0 : i32
    %c0_i32_0 = arith.constant 0 : i32
    %c0_i32_1 = arith.constant 0 : i32
    return %c0_i32, %c0_i32_0 : i32, i32
  }
  func.func @transform_2(%arg0: i32, %arg1: i32) -> (i32, i32) {
    %c0_i32 = arith.constant 0 : i32
    %c0_i32_0 = arith.constant 0 : i32
    %c0_i32_1 = arith.constant 0 : i32
    return %c0_i32, %c0_i32_0 : i32, i32
  }
  func.func @transform_3(%arg0: i32, %arg1: i32) -> (i32, i32) {
    %c0_i32 = arith.constant 0 : i32
    %c0_i32_0 = arith.constant 0 : i32
    %c0_i32_1 = arith.constant 0 : i32
    return %c0_i32, %c0_i32_0 : i32, i32
  }
  func.func @transform_4(%arg0: i32, %arg1: i32) -> (i32, i32) {
    %c0_i32 = arith.constant 0 : i32
    %c0_i32_0 = arith.constant 0 : i32
    %c0_i32_1 = arith.constant 0 : i32
    return %c0_i32, %c0_i32_0 : i32, i32
  }
  func.func @transform_5(%arg0: i32, %arg1: i32) -> (i32, i32, i32) {
    %c0_i32 = arith.constant 0 : i32
    %c0_i32_0 = arith.constant 0 : i32
    return %arg0, %arg1, %c0_i32 : i32, i32, i32
  }
  func.func @transform_6(%arg0: i32, %arg1: i32) -> (i32, i32, i32) {
    %c0_i32 = arith.constant 0 : i32
    %c0_i32_0 = arith.constant 0 : i32
    return %arg0, %arg1, %c0_i32 : i32, i32, i32
  }
  func.func @transform_7(%arg0: i32, %arg1: i32) -> (i32, i32, i32) {
    %c0_i32 = arith.constant 0 : i32
    %c0_i32_0 = arith.constant 0 : i32
    return %arg0, %arg1, %c0_i32 : i32, i32, i32
  }
}

</mosaic_0001>

<bundles_post_ra>
// kernel: mllama3_vision_encoder.9
= control target key start
LH: loop header
LB: loop body
LE: loop exit
PB: predicated region body
PF: predicated region fallthrough
CT: control target
= control target key end

     0   :  { %s1911_s24 = smov 0   ;;  %s1913_s25 = smov 0   ;;  %s2275_s0 = inlined_call_operand.vmem [shape: f32[2,128,128], index: 0, kind: input, shape index: {}]   ;;  %s2276_s1 = inlined_call_operand.vmem [shape: f32[1,128], index: 1, kind: input, shape index: {}]   ;;  %s2277_s2 = inlined_call_operand.vmem [shape: f32[1,128], index: 2, kind: input, shape index: {}]   ;;  %s2278_s3 = inlined_call_operand.vmem [shape: bf16[128,384], index: 3, kind: input, shape index: {}]   ;;  %s2279_s4 = inlined_call_operand.vmem [shape: f32[1,384], index: 4, kind: input, shape index: {}]   ;;  %s2280_s5 = inlined_call_operand.vmem [shape: bf16[2,128,128], index: 5, kind: output, shape index: {0}]   ;;  %s2281_s6 = inlined_call_operand.vmem [shape: bf16[2,128,128], index: 6, kind: output, shape index: {1}]   ;;  %s2282_s7 = inlined_call_operand.vmem [shape: bf16[2,128,128], index: 7, kind: output, shape index: {2}]  }
   0x1   :  { %s1915_s26 = smov 0  }
   0x2 LB: > { %s30_s27 = sadd.s32 1, %s1864_s25  ;;  %p1431_p0 = scmp.ge.s32.totalorder %s1868_s26, 1  ;;  %s1868_s26 = sphi %s1915_s26, %s18_s26   ;;  %s1864_s25 = sphi %s1913_s25, %s2284_s25   ;;  %s1860_s24 = sphi %s1911_s24, %s2283_s24  }
   0x3   : > { %p32_p1 = scmp.ge.s32.totalorder %s30_s27, 2  ;;  %p267_p2 = scmp.lt.s32.totalorder %s1868_s26, 3 }
   0x5   : > { %s2286_s27 = smov (%p32_p1, %s30_s27), 0  ;;  %p268_p3 = pnand %p1431_p0, %p267_p2 }
   0x6   : > { %p326_p4 = scmp.lt.s32.totalorder (!%p268_p3), %s1860_s24, 1 }
   0x7   : > { %271 = sbr.rel (%p268_p3) target bundleno = 588 (0x24c), region = 40 }
   0xc   : > { %s2288_s24 = smov (!%p326_p4, %s1860_s24), 1  ;;  %v1782_v16 = vld [vmem:[%s2278_s3 + $0xac] ss:$12 sps:$4 sm:$0xff]   ;;  %v1784_v17 = vld [vmem:[%s2278_s3 + $0xa8] ss:$12 sps:$4 sm:$0xff]  }
   0xd   : > { %s1516_s28 = sshll.u32 %s2288_s24, 7  ;;  %790 = vmatprep.subr.bf16.mxu0 %v1782_v16  ;;  %v1785_v53 = vld [vmem:[%s2278_s3 + $0x94] ss:$12 sps:$4 sm:$0xff]   ;;  %v1787_v54 = vld [vmem:[%s2278_s3 + $0xb0] ss:$12 sps:$4 sm:$0xff]   ;;  %s1517_s29 = sshll.u32 %s2288_s24, 6 }
   0xe   : > { %s333_s8 = scalar_lea.vmem %s2275_s0, %s1516_s28  ;;  %791 = vmatpush1.bf16.msra.mxu0 %v1784_v17  ;;  %v1788_v55 = vld [vmem:[%s2278_s3 + $0x90] ss:$12 sps:$4 sm:$0xff]   ;;  %1725 = vmatprep.subr.bf16.mxu1 %v1787_v54  ;;  %v1795_v16 = vld [vmem:[%s2278_s3 + $0x80] ss:$12 sps:$4 sm:$0xff]   ;;  %s2182_s9 = scalar_lea.vmem %s2280_s5, %s1517_s29 }
   0xf   : > { %v366_v0 = vld [vmem:[%s333_s8] sm:$0xff]  ;;  %v368_v1 = vld [vmem:[%s333_s8 + $0x10] sm:$0xff]  ;;  %v367_v2 = vld [vmem:[%s333_s8 + $0x8] sm:$0xff]  ;;  %792 = vmatprep.subr.bf16.mxu0 %v1785_v53  ;;  %1726 = vmatpush3.bf16.msra.mxu1 %v1787_v54  ;;  %s2191_s11 = scalar_lea.vmem %s2281_s6, %s1517_s29  ;;  %s2200_s14 = scalar_lea.vmem %s2282_s7, %s1517_s29 }
  0x10   : > { %384 = vadd.xlane.f32.xlu0 %v366_v0  ;;  %388 = vadd.xlane.f32.xlu1 %v368_v1  ;;  %v369_v3 = vld [vmem:[%s333_s8 + $0x18] sm:$0xff]  ;;  %v370_v4 = vld [vmem:[%s333_s8 + $0x20] sm:$0xff]  ;;  %v371_v5 = vld [vmem:[%s333_s8 + $0x28] sm:$0xff] }
  0x11   : > { %v372_v6 = vld [vmem:[%s333_s8 + $0x30] sm:$0xff]  ;;  %v373_v7 = vld [vmem:[%s333_s8 + $0x38] sm:$0xff]  ;;  %v1935_v8 = vld [vmem:[%s333_s8 + $0x40] sm:$0xff] }
  0x12   : > { %v1937_v9 = vld [vmem:[%s333_s8 + $0x48] sm:$0xff]  ;;  %v1941_v10 = vld [vmem:[%s333_s8 + $0x50] sm:$0xff]  ;;  %v1943_v11 = vld [vmem:[%s333_s8 + $0x58] sm:$0xff]  ;;  %793 = vmatpush1.bf16.msra.mxu0 %v1788_v55 }
  0x13   : > { %v1947_v12 = vld [vmem:[%s333_s8 + $0x60] sm:$0xff]  ;;  %v1949_v13 = vld [vmem:[%s333_s8 + $0x68] sm:$0xff]  ;;  %v1953_v14 = vld [vmem:[%s333_s8 + $0x70] sm:$0xff] }
  0x14   : > { %386 = vadd.xlane.f32.xlu0 %v367_v2  ;;  %390 = vadd.xlane.f32.xlu1 %v369_v3  ;;  %v1955_v15 = vld [vmem:[%s333_s8 + $0x78] sm:$0xff] }
  0x18   : > { %392 = vadd.xlane.f32.xlu0 %v370_v4  ;;  %394 = vadd.xlane.f32.xlu1 %v371_v5 }
  0x1c   : > { %396 = vadd.xlane.f32.xlu0 %v372_v6  ;;  %398 = vadd.xlane.f32.xlu1 %v373_v7 }
  0x20   : > { %400 = vadd.xlane.f32.xlu0 %v1935_v8  ;;  %402 = vadd.xlane.f32.xlu1 %v1937_v9 }
  0x24   : > { %404 = vadd.xlane.f32.xlu0 %v1941_v10  ;;  %406 = vadd.xlane.f32.xlu1 %v1943_v11 }
  0x28   : > { %408 = vadd.xlane.f32.xlu0 %v1947_v12  ;;  %410 = vadd.xlane.f32.xlu1 %v1949_v13 }
  0x2c   : > { %412 = vadd.xlane.f32.xlu0 %v1953_v14  ;;  %414 = vadd.xlane.f32.xlu1 %v1955_v15 }
  0x99   : > { %v385_v18 = vpop.xlane.xlu0 %384  ;;  %v389_v19 = vpop.xlane.xlu1 %388 }
  0x9a   : > { %v417_v20 = vmul.f32 0.0078125, %v385_v18  ;;  %v419_v21 = vmul.f32 0.0078125, %v389_v19 }
  0x9c   : > { %v1965_v22 = vsub.f32 %v366_v0, %v417_v20  ;;  %v1967_v23 = vsub.f32 %v368_v1, %v419_v21  ;;  %v1789_v0 = vld [vmem:[%s2278_s3 + $0x7c] ss:$12 sps:$4 sm:$0xff]   ;;  %v1791_v1 = vld [vmem:[%s2278_s3 + $0x98] ss:$12 sps:$4 sm:$0xff]   ;;  %v1796_v20 = vld [vmem:[%s2278_s3 + $0x60] ss:$12 sps:$4 sm:$0xff]  }
  0x9d   : > { %v387_v24 = vpop.xlane.xlu0 %386  ;;  %v391_v25 = vpop.xlane.xlu1 %390  ;;  %794 = vmatprep.subr.bf16.mxu0 %v1789_v0  ;;  %1727 = vmatprep.subr.bf16.mxu1 %v1791_v1 }
  0x9e   : > { %v418_v26 = vmul.f32 0.0078125, %v387_v24  ;;  %v449_v27 = vmul.f32 %v1965_v22, %v1965_v22  ;;  %v420_v28 = vmul.f32 0.0078125, %v391_v25  ;;  %v451_v31 = vmul.f32 %v1967_v23, %v1967_v23  ;;  %1728 = vmatpush3.bf16.msra.mxu1 %v1791_v1 }
  0x9f   : > { %1729 = vmatprep.subr.bf16.mxu1 %v1795_v16 }
  0xa0   : > { %v1971_v29 = vsub.f32 %v367_v2, %v418_v26  ;;  %465 = vadd.xlane.f32.xlu0 %v449_v27  ;;  %v1973_v30 = vsub.f32 %v369_v3, %v420_v28  ;;  %v1799_v27 = vld [vmem:[%s2278_s3 + $0x68] ss:$12 sps:$4 sm:$0xff]  }
  0xa1   : > { %v393_v32 = vpop.xlane.xlu0 %392  ;;  %v395_v33 = vpop.xlane.xlu1 %394 }
  0xa2   : > { %v421_v34 = vmul.f32 0.0078125, %v393_v32  ;;  %v450_v35 = vmul.f32 %v1971_v29, %v1971_v29  ;;  %v422_v36 = vmul.f32 0.0078125, %v395_v33  ;;  %v452_v39 = vmul.f32 %v1973_v30, %v1973_v30  ;;  %1730 = vmatpush3.bf16.msra.mxu1 %v1795_v16  ;;  %v1800_v33 = vld [vmem:[%s2278_s3 + $0x48] ss:$12 sps:$4 sm:$0xff]  }
  0xa3   : > { %1731 = vmatprep.subr.bf16.mxu1 %v1799_v27 }
  0xa4   : > { %v1979_v37 = vsub.f32 %v370_v4, %v421_v34  ;;  %469 = vadd.xlane.f32.xlu0 %v451_v31  ;;  %467 = vadd.xlane.f32.xlu1 %v450_v35  ;;  %v1981_v38 = vsub.f32 %v371_v5, %v422_v36  ;;  %v1792_v5 = vld [vmem:[%s2278_s3 + $0x78] ss:$12 sps:$4 sm:$0xff]   ;;  %v1804_v36 = vld [vmem:[%s2278_s3 + $0x30] ss:$12 sps:$4 sm:$0xff]  }
  0xa5   : > { %v397_v40 = vpop.xlane.xlu0 %396  ;;  %v399_v41 = vpop.xlane.xlu1 %398  ;;  %795 = vmatpush1.bf16.msra.mxu0 %v1792_v5 }
  0xa6   : > { %v423_v42 = vmul.f32 0.0078125, %v397_v40  ;;  %v453_v43 = vmul.f32 %v1979_v37, %v1979_v37  ;;  %v424_v44 = vmul.f32 0.0078125, %v399_v41  ;;  %v454_v47 = vmul.f32 %v1981_v38, %v1981_v38  ;;  %1732 = vmatpush3.bf16.msra.mxu1 %v1799_v27  ;;  %v1807_v40 = vld [vmem:[%s2278_s3 + $0x38] ss:$12 sps:$4 sm:$0xff]  }
  0xa7   : > { %v1808_v41 = vld [vmem:[%s2278_s3 + $0x18] ss:$12 sps:$4 sm:$0xff]  }
  0xa8   : > { %v1987_v45 = vsub.f32 %v372_v6, %v423_v42  ;;  %471 = vadd.xlane.f32.xlu1 %v452_v39  ;;  %473 = vadd.xlane.f32.xlu0 %v453_v43  ;;  %v1989_v46 = vsub.f32 %v373_v7, %v424_v44  ;;  %v1805_v39 = vld [vmem:[%s2278_s3 + $0x1c] ss:$12 sps:$4 sm:$0xff]   ;;  %v1809_v42 = vld [vmem:[%s2278_s3 + $0x4] ss:$12 sps:$4 sm:$0xff]   ;;  %v1811_v43 = vld [vmem:[%s2278_s3 + $0x20] ss:$12 sps:$4 sm:$0xff]  }
  0xa9   : > { %v401_v48 = vpop.xlane.xlu0 %400  ;;  %v403_v49 = vpop.xlane.xlu1 %402  ;;  %v1812_v44 = vld [vmem:[%s2278_s3] ss:$12 sps:$4 sm:$0xff]  }
  0xaa   : > { %v425_v50 = vmul.f32 0.0078125, %v401_v48  ;;  %v455_v51 = vmul.f32 %v1987_v45, %v1987_v45  ;;  %v426_v52 = vmul.f32 0.0078125, %v403_v49  ;;  %v456_v58 = vmul.f32 %v1989_v46, %v1989_v46 }
  0xab   : > { %v1870_v48 = vmov 0  }
  0xac   : > { %v2005_v56 = vsub.f32 %v1935_v8, %v425_v50  ;;  %475 = vadd.xlane.f32.xlu1 %v454_v47  ;;  %477 = vadd.xlane.f32.xlu0 %v455_v51  ;;  %v2008_v57 = vsub.f32 %v1937_v9, %v426_v52  ;;  %v1813_v47 = vld [vmem:[%s2278_s3 + $0x8] ss:$12 sps:$4 sm:$0xff]  }
  0xad   : > { %v405_v59 = vpop.xlane.xlu0 %404  ;;  %v407_v60 = vpop.xlane.xlu1 %406  ;;  %822 = vmatprep.mubr.bf16.mxu0 %v1870_v48 }
  0xae   : > { %v427_v61 = vmul.f32 0.0078125, %v405_v59  ;;  %v457_v62 = vmul.f32 %v2005_v56, %v2005_v56  ;;  %v428_v63 = vmul.f32 0.0078125, %v407_v60  ;;  %v458_v4 = vmul.f32 %v2008_v57, %v2008_v57 }
  0xb0   : > { %v2021_v2 = vsub.f32 %v1941_v10, %v427_v61  ;;  %479 = vadd.xlane.f32.xlu1 %v456_v58  ;;  %481 = vadd.xlane.f32.xlu0 %v457_v62  ;;  %v2024_v3 = vsub.f32 %v1943_v11, %v428_v63  ;;  %v1793_v11 = vld [vmem:[%s2278_s3 + $0x64] ss:$12 sps:$4 sm:$0xff]  }
  0xb1   : > { %v409_v6 = vpop.xlane.xlu0 %408  ;;  %v411_v7 = vpop.xlane.xlu1 %410  ;;  %796 = vmatprep.subr.bf16.mxu0 %v1793_v11 }
  0xb2   : > { %v429_v8 = vmul.f32 0.0078125, %v409_v6  ;;  %v459_v9 = vmul.f32 %v2021_v2, %v2021_v2  ;;  %v430_v10 = vmul.f32 0.0078125, %v411_v7  ;;  %v460_v19 = vmul.f32 %v2024_v3, %v2024_v3  ;;  %797 = vmatpush1.bf16.msra.mxu0 %v1796_v20 }
  0xb4   : > { %v2040_v17 = vsub.f32 %v1947_v12, %v429_v8  ;;  %483 = vadd.xlane.f32.xlu1 %v458_v4  ;;  %485 = vadd.xlane.f32.xlu0 %v459_v9  ;;  %v2043_v18 = vsub.f32 %v1949_v13, %v430_v10  ;;  %v1797_v13 = vld [vmem:[%s2278_s3 + $0x4c] ss:$12 sps:$4 sm:$0xff]  }
  0xb5   : > { %v413_v21 = vpop.xlane.xlu0 %412  ;;  %v415_v24 = vpop.xlane.xlu1 %414  ;;  %798 = vmatprep.subr.bf16.mxu0 %v1797_v13 }
  0xb6   : > { %v431_v25 = vmul.f32 0.0078125, %v413_v21  ;;  %v461_v12 = vmul.f32 %v2040_v17, %v2040_v17  ;;  %v432_v26 = vmul.f32 0.0078125, %v415_v24  ;;  %v462_v32 = vmul.f32 %v2043_v18, %v2043_v18  ;;  %799 = vmatpush1.bf16.msra.mxu0 %v1800_v33 }
  0xb8   : > { %v2059_v28 = vsub.f32 %v1953_v14, %v431_v25  ;;  %487 = vadd.xlane.f32.xlu1 %v460_v19  ;;  %489 = vadd.xlane.f32.xlu0 %v461_v12  ;;  %v2062_v31 = vsub.f32 %v1955_v15, %v432_v26  ;;  %v1801_v14 = vld [vmem:[%s2278_s3 + $0x34] ss:$12 sps:$4 sm:$0xff]   ;;  %v1803_v15 = vld [vmem:[%s2278_s3 + $0x50] ss:$12 sps:$4 sm:$0xff]  }
  0xb9   : > { %800 = vmatprep.subr.bf16.mxu0 %v1801_v14  ;;  %1733 = vmatprep.subr.bf16.mxu1 %v1803_v15  ;;  %v2107_v25 = vld [vmem:[%s2276_s1] ss:$0 sm:$0xff] }
  0xba   : > { %v463_v34 = vmul.f32 %v2059_v28, %v2059_v28  ;;  %v464_v35 = vmul.f32 %v2062_v31, %v2062_v31  ;;  %801 = vmatpush1.bf16.msra.mxu0 %v1804_v36  ;;  %1734 = vmatpush3.bf16.msra.mxu1 %v1803_v15  ;;  %v2114_v36 = vld [vmem:[%s2277_s2] ss:$0 sm:$0xff] }
  0xbb   : > { %802 = vmatprep.subr.bf16.mxu0 %v1805_v39  ;;  %1735 = vmatprep.subr.bf16.mxu1 %v1807_v40 }
  0xbc   : > { %491 = vadd.xlane.f32.xlu1 %v462_v32  ;;  %493 = vadd.xlane.f32.xlu0 %v463_v34 }
  0xbe   : > { %803 = vmatpush1.bf16.msra.mxu0 %v1808_v41  ;;  %1736 = vmatpush3.bf16.msra.mxu1 %v1807_v40 }
  0xbf   : > { %804 = vmatprep.subr.bf16.mxu0 %v1809_v42  ;;  %1737 = vmatprep.subr.bf16.mxu1 %v1811_v43 }
  0xc0   : > { %495 = vadd.xlane.f32.xlu1 %v464_v35 }
  0xc2   : > { %805 = vmatpush1.bf16.msra.mxu0 %v1812_v44  ;;  %1738 = vmatpush3.bf16.msra.mxu1 %v1811_v43 }
  0xc3   : > { %1739 = vmatprep.subr.bf16.mxu1 %v1813_v47 }
  0xc6   : > { %1740 = vmatpush3.bf16.msra.mxu1 %v1813_v47 }
 0x129   : > { %v466_v49 = vpop.xlane.xlu0 %465 }
 0x12a   : > { %v497_v50 = vmul.f32 0.0078125, %v466_v49 }
 0x12c   : > { %v513_v51 = vadd.f32 1e-05, %v497_v50 }
 0x12d   : > { %v468_v52 = vpop.xlane.xlu1 %467  ;;  %v470_v53 = vpop.xlane.xlu0 %469 }
 0x12e   : > { %1814 = vrsqrt.f32 %v513_v51  ;;  %v498_v54 = vmul.f32 0.0078125, %v468_v52  ;;  %v499_v55 = vmul.f32 0.0078125, %v470_v53 }
 0x130   : > { %v514_v58 = vadd.f32 1e-05, %v498_v54  ;;  %v515_v59 = vadd.f32 1e-05, %v499_v55 }
 0x131   : > { %v472_v60 = vpop.xlane.xlu1 %471  ;;  %v474_v61 = vpop.xlane.xlu0 %473 }
 0x132   : > { %1816 = vrsqrt.f32 %v514_v58  ;;  %v500_v62 = vmul.f32 0.0078125, %v472_v60  ;;  %v501_v63 = vmul.f32 0.0078125, %v474_v61 }
 0x133   : > { %1818 = vrsqrt.f32 %v515_v59 }
 0x134   : > { %v516_v0 = vadd.f32 1e-05, %v500_v62  ;;  %v517_v1 = vadd.f32 1e-05, %v501_v63 }
 0x135   : > { %v476_v4 = vpop.xlane.xlu1 %475  ;;  %v478_v5 = vpop.xlane.xlu0 %477 }
 0x136   : > { %1820 = vrsqrt.f32 %v516_v0  ;;  %v502_v6 = vmul.f32 0.0078125, %v476_v4  ;;  %v503_v7 = vmul.f32 0.0078125, %v478_v5 }
 0x137   : > { %1822 = vrsqrt.f32 %v517_v1 }
 0x138   : > { %v518_v8 = vadd.f32 1e-05, %v502_v6  ;;  %v519_v9 = vadd.f32 1e-05, %v503_v7 }
 0x139   : > { %v480_v10 = vpop.xlane.xlu1 %479  ;;  %v482_v11 = vpop.xlane.xlu0 %481 }
 0x13a   : > { %1824 = vrsqrt.f32 %v518_v8  ;;  %v504_v16 = vmul.f32 0.0078125, %v480_v10  ;;  %v505_v19 = vmul.f32 0.0078125, %v482_v11 }
 0x13b   : > { %v1815_v20 = vpop.eup %1814  ;;  %1826 = vrsqrt.f32 %v519_v9 }
 0x13c   : > { %v520_v21 = vadd.f32 1e-05, %v504_v16  ;;  %v521_v24 = vadd.f32 1e-05, %v505_v19  ;;  %v545_v12 = vmul.f32 %v1815_v20, %v1965_v22 }
 0x13d   : > { %v484_v26 = vpop.xlane.xlu1 %483  ;;  %v486_v13 = vpop.xlane.xlu0 %485 }
 0x13e   : > { %1828 = vrsqrt.f32 %v520_v21  ;;  %v506_v27 = vmul.f32 0.0078125, %v484_v26  ;;  %v507_v32 = vmul.f32 0.0078125, %v486_v13  ;;  %v567_v34 = vmul.f32 %v2107_v25, %v545_v12 }
 0x13f   : > { %v1817_v33 = vpop.eup %1816  ;;  %1830 = vrsqrt.f32 %v521_v24 }
 0x140   : > { %v1819_v14 = vpop.eup %1818  ;;  %v522_v15 = vadd.f32 1e-05, %v506_v27  ;;  %v523_v35 = vadd.f32 1e-05, %v507_v32  ;;  %v546_v39 = vmul.f32 %v1817_v33, %v1971_v29  ;;  %v589_v49 = vadd.f32 %v2114_v36, %v567_v34 }
 0x141   : > { %v488_v22 = vpop.xlane.xlu1 %487  ;;  %v490_v40 = vpop.xlane.xlu0 %489  ;;  %v547_v41 = vmul.f32 %v1819_v14, %v1967_v23 }
 0x142   : > { %1832 = vrsqrt.f32 %v522_v15  ;;  %v508_v42 = vmul.f32 0.0078125, %v488_v22  ;;  %v509_v43 = vmul.f32 0.0078125, %v490_v40  ;;  %v568_v44 = vmul.f32 %v2107_v25, %v546_v39 }
 0x143   : > { %v1821_v47 = vpop.eup %1820  ;;  %1834 = vrsqrt.f32 %v523_v35  ;;  %v569_v23 = vmul.f32 %v2107_v25, %v547_v41 }
 0x144   : > { %v1823_v50 = vpop.eup %1822  ;;  %v524_v51 = vadd.f32 1e-05, %v508_v42  ;;  %v525_v52 = vadd.f32 1e-05, %v509_v43  ;;  %v590_v53 = vadd.f32 %v2114_v36, %v568_v44  ;;  %v548_v29 = vmul.f32 %v1821_v47, %v1973_v30 }
 0x145   : > { %v492_v54 = vpop.xlane.xlu1 %491  ;;  %v494_v55 = vpop.xlane.xlu0 %493  ;;  %v549_v58 = vmul.f32 %v1823_v50, %v1979_v37  ;;  %v591_v37 = vadd.f32 %v2114_v36, %v569_v23 }
 0x146   : > { %1836 = vrsqrt.f32 %v524_v51  ;;  %v510_v59 = vmul.f32 0.0078125, %v492_v54  ;;  %v511_v60 = vmul.f32 0.0078125, %v494_v55  ;;  %v605_v61 = vpack.c.bf16 %v590_v53, %v589_v49 }
 0x147   : > { %v1825_v62 = vpop.eup %1824  ;;  %1838 = vrsqrt.f32 %v525_v52  ;;  %v570_v63 = vmul.f32 %v2107_v25, %v548_v29  ;;  %v571_v5 = vmul.f32 %v2107_v25, %v549_v58 }
 0x148   : > { %v1827_v0 = vpop.eup %1826  ;;  %v526_v1 = vadd.f32 1e-05, %v510_v59  ;;  %v527_v4 = vadd.f32 1e-05, %v511_v60  ;;  %823 = vmatmul.mubr.bf16.vlgmr.msra.gmra.mxu0 %v605_v61  ;;  %1741 = vmatprep.mubr.bf16.mxu1 %v605_v61  ;;  %v550_v30 = vmul.f32 %v1825_v62, %v1981_v38 }
 0x149   : > { %v496_v6 = vpop.xlane.xlu1 %495  ;;  %v592_v7 = vadd.f32 %v2114_v36, %v570_v63  ;;  %832 = vmatprep.mubr.bf16.mxu0 %v1870_v48  ;;  %v551_v8 = vmul.f32 %v1827_v0, %v1987_v45  ;;  %v593_v21 = vadd.f32 %v2114_v36, %v571_v5 }
 0x14a   : > { %1840 = vrsqrt.f32 %v526_v1  ;;  %v512_v9 = vmul.f32 0.0078125, %v496_v6  ;;  %v572_v10 = vmul.f32 %v2107_v25, %v550_v30 }
 0x14b   : > { %v1829_v11 = vpop.eup %1828  ;;  %1842 = vrsqrt.f32 %v527_v4  ;;  %v606_v16 = vpack.c.bf16 %v592_v7, %v591_v37  ;;  %v573_v38 = vmul.f32 %v2107_v25, %v551_v8 }
 0x14c   : > { %v1831_v19 = vpop.eup %1830  ;;  %v528_v20 = vadd.f32 1e-05, %v512_v9  ;;  %v594_v24 = vadd.f32 %v2114_v36, %v572_v10  ;;  %v552_v12 = vmul.f32 %v1829_v11, %v1989_v46 }
 0x14d   : > { %1742 = vmatmul.mubr.bf16.vlgmr.msra.gmra.mxu1 %v606_v16  ;;  %v553_v45 = vmul.f32 %v1831_v19, %v2005_v56  ;;  %v595_v32 = vadd.f32 %v2114_v36, %v573_v38 }
 0x14e   : > { %1844 = vrsqrt.f32 %v528_v20  ;;  %v607_v26 = vpack.c.bf16 %v594_v24, %v593_v21  ;;  %v574_v13 = vmul.f32 %v2107_v25, %v552_v12 }
 0x14f   : > { %v1833_v27 = vpop.eup %1832  ;;  %v575_v15 = vmul.f32 %v2107_v25, %v553_v45 }
 0x150   : > { %v1835_v33 = vpop.eup %1834  ;;  %833 = vmatmul.mubr.bf16.gmra.mxu0 %v606_v16  ;;  %1745 = vmatprep.mubr.bf16.mxu1 %v607_v26  ;;  %v596_v34 = vadd.f32 %v2114_v36, %v574_v13  ;;  %v554_v14 = vmul.f32 %v1833_v27, %v2008_v57 }
 0x151   : > { %842 = vmatprep.mubr.bf16.mxu0 %v1870_v48  ;;  %v555_v46 = vmul.f32 %v1835_v33, %v2021_v2  ;;  %v597_v41 = vadd.f32 %v2114_v36, %v575_v15 }
 0x152   : > { %v608_v56 = vpack.c.bf16 %v596_v34, %v595_v32  ;;  %v576_v35 = vmul.f32 %v2107_v25, %v554_v14 }
 0x153   : > { %v1837_v39 = vpop.eup %1836  ;;  %v577_v22 = vmul.f32 %v2107_v25, %v555_v46 }
 0x154   : > { %v1839_v40 = vpop.eup %1838  ;;  %v598_v42 = vadd.f32 %v2114_v36, %v576_v35  ;;  %v556_v43 = vmul.f32 %v1837_v39, %v2024_v3 }
 0x155   : > { %1746 = vmatmul.mubr.bf16.gmra.mxu1 %v608_v56  ;;  %v557_v57 = vmul.f32 %v1839_v40, %v2040_v17  ;;  %v599_v49 = vadd.f32 %v2114_v36, %v577_v22 }
 0x156   : > { %v609_v44 = vpack.c.bf16 %v598_v42, %v597_v41  ;;  %v578_v47 = vmul.f32 %v2107_v25, %v556_v43 }
 0x157   : > { %v1841_v2 = vpop.eup %1840  ;;  %v579_v53 = vmul.f32 %v2107_v25, %v557_v57 }
 0x158   : > { %v1843_v50 = vpop.eup %1842  ;;  %843 = vmatmul.mubr.bf16.gmra.mxu0 %v607_v26  ;;  %1749 = vmatprep.mubr.bf16.mxu1 %v609_v44  ;;  %v600_v51 = vadd.f32 %v2114_v36, %v578_v47  ;;  %v558_v52 = vmul.f32 %v1841_v2, %v2043_v18 }
 0x159   : > { %852 = vmatprep.mubr.bf16.mxu0 %v1870_v48  ;;  %v559_v3 = vmul.f32 %v1843_v50, %v2059_v28  ;;  %v601_v55 = vadd.f32 %v2114_v36, %v579_v53 }
 0x15a   : > { %v610_v17 = vpack.c.bf16 %v600_v51, %v599_v49  ;;  %v580_v29 = vmul.f32 %v2107_v25, %v558_v52 }
 0x15b   : > { %v1845_v54 = vpop.eup %1844  ;;  %v581_v59 = vmul.f32 %v2107_v25, %v559_v3 }
 0x15c   : > { %v602_v23 = vadd.f32 %v2114_v36, %v580_v29  ;;  %v560_v58 = vmul.f32 %v1845_v54, %v2062_v31  ;;  %v647_v31 = vlaneseq }
 0x15d   : > { %1750 = vmatmul.mubr.bf16.gmra.mxu1 %v610_v17  ;;  %v603_v28 = vadd.f32 %v2114_v36, %v581_v59 }
 0x15e   : > { %v611_v18 = vpack.c.bf16 %v602_v23, %v601_v55  ;;  %v582_v60 = vmul.f32 %v2107_v25, %v560_v58  ;;  %v648_v25 = vshrl.u32 %v647_v31, 7 }
 0x160   : > { %853 = vmatmul.mubr.bf16.gmra.mxu0 %v608_v56  ;;  %1753 = vmatprep.mubr.bf16.mxu1 %v611_v18  ;;  %v604_v61 = vadd.f32 %v2114_v36, %v582_v60  ;;  %v649_v63 = vsub.s32 0, %v648_v25  ;;  %v645_v36 = vld [vmem:[%s2279_s4] sm:$0x7]  ;;  %v653_v0 = vsub.s32 1, %v648_v25  ;;  %v657_v5 = vsub.s32 2, %v648_v25 }
 0x161   : > { %862 = vmatprep.mubr.bf16.mxu0 %v1870_v48 }
 0x162   : > { %v612_v62 = vpack.c.bf16 %v604_v61, %v603_v28  ;;  %v2172_v4 = vrot.slane %v645_v36, %v649_v63  ;;  %v2174_v6 = vrot.slane %v645_v36, %v653_v0  ;;  %v2184_v9 = vrot.slane %v645_v36, %v657_v5 }
 0x165   : > { %1754 = vmatmul.mubr.bf16.gmra.mxu1 %v612_v62 }
 0x168   : > { %863 = vmatmul.mubr.bf16.gmra.mxu0 %v609_v44 }
 0x169   : > { %872 = vmatprep.mubr.bf16.mxu0 %v1870_v48 }
 0x170   : > { %873 = vmatmul.mubr.bf16.gmra.mxu0 %v610_v17 }
 0x171   : > { %882 = vmatprep.mubr.bf16.mxu0 %v1870_v48 }
 0x178   : > { %883 = vmatmul.mubr.bf16.gmra.mxu0 %v611_v18 }
 0x179   : > { %892 = vmatprep.mubr.bf16.mxu0 %v1870_v48 }
 0x180   : > { %893 = vmatmul.mubr.bf16.gmra.mxu0 %v612_v62 }
 0x208   : > { %v824_v1 = vpop.f32.mrf.mxu0 }
 0x209   : > { %v825_v48 = vadd.f32 %v824_v1, %v2172_v4 }
 0x20a   : > { %v826_v30 = vpop.f32.mrf.mxu0 }
 0x20b   : > { %v827_v11 = vadd.f32 %v826_v30, %v2174_v6 }
 0x20c   : > { %v828_v37 = vpop.f32.mrf.mxu0 }
 0x20d   : > { %v829_v7 = vadd.f32 %v828_v37, %v2172_v4  ;;  %v1743_v8 = vpop.f32.mrf.mxu1 }
 0x20e   : > { %v830_v10 = vpop.f32.mrf.mxu0  ;;  %v946_v12 = vadd.f32 %v1743_v8, %v2184_v9 }
 0x20f   : > { %v1571_v16 = vpack.c.bf16 %v829_v7, %v825_v48  ;;  %v831_v38 = vadd.f32 %v830_v10, %v2174_v6  ;;  %v937_v19 = vpop.f32.mrf.mxu1 }
 0x210   : > { %v834_v20 = vpop.f32.mrf.mxu0  ;;  %v938_v27 = vadd.f32 %v937_v19, %v2184_v9 }
 0x211   : > { %1572 = vst [vmem:[%s2182_s9] sm:$0xff] %v1571_v16   ;;  %v1611_v21 = vpack.c.bf16 %v831_v38, %v827_v11  ;;  %v1744_v24 = vpop.f32.mrf.mxu1  ;;  %v835_v14 = vadd.f32 %v834_v20, %v2172_v4 }
 0x212   : > { %v949_v45 = vadd.f32 %v1744_v24, %v2184_v9  ;;  %v836_v26 = vpop.f32.mrf.mxu0 }
 0x213   : > { %1612 = vst [vmem:[%s2191_s11] sm:$0xff] %v1611_v21   ;;  %v940_v13 = vpop.f32.mrf.mxu1  ;;  %v837_v39 = vadd.f32 %v836_v26, %v2174_v6 }
 0x214   : > { %v1656_v32 = vpack.c.bf16 %v949_v45, %v946_v12  ;;  %v941_v33 = vadd.f32 %v940_v13, %v2184_v9  ;;  %v838_v34 = vpop.f32.mrf.mxu0 }
 0x215   : > { %v839_v15 = vadd.f32 %v838_v34, %v2172_v4  ;;  %v1747_v46 = vpop.f32.mrf.mxu1 }
 0x216   : > { %1702 = vst [vmem:[%s2200_s14 + $0x8] sm:$0xff] %v1656_v32   ;;  %v1651_v56 = vpack.c.bf16 %v941_v33, %v938_v27  ;;  %v840_v35 = vpop.f32.mrf.mxu0  ;;  %v962_v44 = vadd.f32 %v1747_v46, %v2184_v9 }
 0x217   : > { %v1576_v22 = vpack.c.bf16 %v839_v15, %v835_v14  ;;  %v841_v40 = vadd.f32 %v840_v35, %v2174_v6  ;;  %v953_v41 = vpop.f32.mrf.mxu1 }
 0x218   : > { %1652 = vst [vmem:[%s2200_s14] sm:$0xff] %v1651_v56   ;;  %v844_v42 = vpop.f32.mrf.mxu0  ;;  %v954_v50 = vadd.f32 %v953_v41, %v2184_v9 }
 0x219   : > { %1688 = vst [vmem:[%s2182_s9 + $0x8] sm:$0xff] %v1576_v22   ;;  %v1616_v43 = vpack.c.bf16 %v841_v40, %v837_v39  ;;  %v1748_v57 = vpop.f32.mrf.mxu1  ;;  %v845_v3 = vadd.f32 %v844_v42, %v2172_v4 }
 0x21a   : > { %v965_v47 = vadd.f32 %v1748_v57, %v2184_v9  ;;  %v846_v2 = vpop.f32.mrf.mxu0 }
 0x21b   : > { %1695 = vst [vmem:[%s2191_s11 + $0x8] sm:$0xff] %v1616_v43   ;;  %v956_v49 = vpop.f32.mrf.mxu1  ;;  %v847_v23 = vadd.f32 %v846_v2, %v2174_v6 }
 0x21c   : > { %v1666_v51 = vpack.c.bf16 %v965_v47, %v962_v44  ;;  %v957_v52 = vadd.f32 %v956_v49, %v2184_v9  ;;  %v848_v53 = vpop.f32.mrf.mxu0 }
 0x21d   : > { %v849_v17 = vadd.f32 %v848_v53, %v2172_v4  ;;  %v1751_v29 = vpop.f32.mrf.mxu1 }
 0x21e   : > { %1704 = vst [vmem:[%s2200_s14 + $0x18] sm:$0xff] %v1666_v51   ;;  %v1661_v54 = vpack.c.bf16 %v957_v52, %v954_v50  ;;  %v850_v55 = vpop.f32.mrf.mxu0  ;;  %v978_v62 = vadd.f32 %v1751_v29, %v2184_v9 }
 0x21f   : > { %v1581_v58 = vpack.c.bf16 %v849_v17, %v845_v3  ;;  %v851_v59 = vadd.f32 %v850_v55, %v2174_v6  ;;  %v969_v18 = vpop.f32.mrf.mxu1 }
 0x220   : > { %1703 = vst [vmem:[%s2200_s14 + $0x10] sm:$0xff] %v1661_v54   ;;  %v854_v60 = vpop.f32.mrf.mxu0  ;;  %v970_v36 = vadd.f32 %v969_v18, %v2184_v9 }
 0x221   : > { %1689 = vst [vmem:[%s2182_s9 + $0x10] sm:$0xff] %v1581_v58   ;;  %v1621_v28 = vpack.c.bf16 %v851_v59, %v847_v23  ;;  %v1752_v61 = vpop.f32.mrf.mxu1  ;;  %v855_v5 = vadd.f32 %v854_v60, %v2172_v4 }
 0x222   : > { %v981_v31 = vadd.f32 %v1752_v61, %v2184_v9  ;;  %v856_v25 = vpop.f32.mrf.mxu0 }
 0x223   : > { %1696 = vst [vmem:[%s2191_s11 + $0x10] sm:$0xff] %v1621_v28   ;;  %v972_v63 = vpop.f32.mrf.mxu1  ;;  %v857_v10 = vadd.f32 %v856_v25, %v2174_v6 }
 0x224   : > { %v1676_v0 = vpack.c.bf16 %v981_v31, %v978_v62  ;;  %v973_v1 = vadd.f32 %v972_v63, %v2184_v9  ;;  %v858_v30 = vpop.f32.mrf.mxu0 }
 0x225   : > { %v859_v37 = vadd.f32 %v858_v30, %v2172_v4  ;;  %v1755_v48 = vpop.f32.mrf.mxu1 }
 0x226   : > { %1706 = vst [vmem:[%s2200_s14 + $0x28] sm:$0xff] %v1676_v0   ;;  %v1671_v7 = vpack.c.bf16 %v973_v1, %v970_v36  ;;  %v860_v8 = vpop.f32.mrf.mxu0  ;;  %v994_v24 = vadd.f32 %v1755_v48, %v2184_v9 }
 0x227   : > { %v1586_v11 = vpack.c.bf16 %v859_v37, %v855_v5  ;;  %v861_v16 = vadd.f32 %v860_v8, %v2174_v6  ;;  %v985_v38 = vpop.f32.mrf.mxu1 }
 0x228   : > { %1705 = vst [vmem:[%s2200_s14 + $0x20] sm:$0xff] %v1671_v7   ;;  %v864_v19 = vpop.f32.mrf.mxu0  ;;  %v986_v13 = vadd.f32 %v985_v38, %v2184_v9 }
 0x229   : > { %1690 = vst [vmem:[%s2182_s9 + $0x18] sm:$0xff] %v1586_v11   ;;  %v1626_v20 = vpack.c.bf16 %v861_v16, %v857_v10  ;;  %v1756_v21 = vpop.f32.mrf.mxu1  ;;  %v865_v34 = vadd.f32 %v864_v19, %v2172_v4 }
 0x22a   : > { %v997_v12 = vadd.f32 %v1756_v21, %v2184_v9  ;;  %v866_v45 = vpop.f32.mrf.mxu0 }
 0x22b   : > { %1697 = vst [vmem:[%s2191_s11 + $0x18] sm:$0xff] %v1626_v20   ;;  %v988_v26 = vpop.f32.mrf.mxu1  ;;  %v867_v56 = vadd.f32 %v866_v45, %v2174_v6 }
 0x22c   : > { %v1686_v27 = vpack.c.bf16 %v997_v12, %v994_v24  ;;  %v989_v32 = vadd.f32 %v988_v26, %v2184_v9  ;;  %v868_v33 = vpop.f32.mrf.mxu0 }
 0x22d   : > { %v869_v14 = vadd.f32 %v868_v33, %v2172_v4 }
 0x22e   : > { %1708 = vst [vmem:[%s2200_s14 + $0x38] sm:$0xff] %v1686_v27   ;;  %v1681_v15 = vpack.c.bf16 %v989_v32, %v986_v13  ;;  %v870_v46 = vpop.f32.mrf.mxu0 }
 0x22f   : > { %v1591_v35 = vpack.c.bf16 %v869_v14, %v865_v34  ;;  %v871_v39 = vadd.f32 %v870_v46, %v2174_v6 }
 0x230   : > { %1707 = vst [vmem:[%s2200_s14 + $0x30] sm:$0xff] %v1681_v15   ;;  %v874_v22 = vpop.f32.mrf.mxu0 }
 0x231   : > { %1691 = vst [vmem:[%s2182_s9 + $0x20] sm:$0xff] %v1591_v35   ;;  %v1631_v40 = vpack.c.bf16 %v871_v39, %v867_v56  ;;  %v875_v42 = vadd.f32 %v874_v22, %v2172_v4 }
 0x232   : > { %v876_v9 = vpop.f32.mrf.mxu0 }
 0x233   : > { %1698 = vst [vmem:[%s2191_s11 + $0x20] sm:$0xff] %v1631_v40   ;;  %v877_v44 = vadd.f32 %v876_v9, %v2174_v6 }
 0x234   : > { %v878_v41 = vpop.f32.mrf.mxu0 }
 0x235   : > { %v879_v43 = vadd.f32 %v878_v41, %v2172_v4 }
 0x236   : > { %v880_v57 = vpop.f32.mrf.mxu0 }
 0x237   : > { %v1596_v47 = vpack.c.bf16 %v879_v43, %v875_v42  ;;  %v881_v2 = vadd.f32 %v880_v57, %v2174_v6 }
 0x238   : > { %v884_v49 = vpop.f32.mrf.mxu0 }
 0x239   : > { %1692 = vst [vmem:[%s2182_s9 + $0x28] sm:$0xff] %v1596_v47   ;;  %v1636_v50 = vpack.c.bf16 %v881_v2, %v877_v44  ;;  %v885_v53 = vadd.f32 %v884_v49, %v2172_v4 }
 0x23a   : > { %v886_v51 = vpop.f32.mrf.mxu0 }
 0x23b   : > { %1699 = vst [vmem:[%s2191_s11 + $0x28] sm:$0xff] %v1636_v50   ;;  %v887_v29 = vadd.f32 %v886_v51, %v2174_v6 }
 0x23c   : > { %v888_v52 = vpop.f32.mrf.mxu0 }
 0x23d   : > { %v889_v3 = vadd.f32 %v888_v52, %v2172_v4 }
 0x23e   : > { %v890_v17 = vpop.f32.mrf.mxu0 }
 0x23f   : > { %v1601_v54 = vpack.c.bf16 %v889_v3, %v885_v53  ;;  %v891_v55 = vadd.f32 %v890_v17, %v2174_v6 }
 0x240   : > { %v894_v23 = vpop.f32.mrf.mxu0 }
 0x241   : > { %1693 = vst [vmem:[%s2182_s9 + $0x30] sm:$0xff] %v1601_v54   ;;  %v1641_v58 = vpack.c.bf16 %v891_v55, %v887_v29  ;;  %v895_v60 = vadd.f32 %v894_v23, %v2172_v4 }
 0x242   : > { %v896_v59 = vpop.f32.mrf.mxu0 }
 0x243   : > { %1700 = vst [vmem:[%s2191_s11 + $0x30] sm:$0xff] %v1641_v58   ;;  %v897_v62 = vadd.f32 %v896_v59, %v2174_v6 }
 0x244   : > { %v898_v18 = vpop.f32.mrf.mxu0 }
 0x245   : > { %v899_v28 = vadd.f32 %v898_v18, %v2172_v4 }
 0x246   : > { %v900_v61 = vpop.f32.mrf.mxu0 }
 0x247   : > { %v1606_v31 = vpack.c.bf16 %v899_v28, %v895_v60  ;;  %v901_v25 = vadd.f32 %v900_v61, %v2174_v6 }
 0x249   : > { %1694 = vst [vmem:[%s2182_s9 + $0x38] sm:$0xff] %v1606_v31   ;;  %v1646_v63 = vpack.c.bf16 %v901_v25, %v897_v62 }
 0x24b   : > { %1701 = vst [vmem:[%s2191_s11 + $0x38] sm:$0xff] %v1646_v63  }
 0x24c PF: > { %s18_s26 = sadd.s32 1, %s1868_s26   ;;  %s2283_s24 = smov %s1864_s25 }
 0x24d   : > { %p15_p5 = scmp.ge.s32.totalorder %s18_s26, 4   ;;  %s2284_s25 = smov %s2286_s27 }
 0x24f   :  { %17 = sbr.rel (!%p15_p5) target bundleno = 2 (0x2), region = 94 }

// kernel: mllama3_vision_encoder.7
= control target key start
LH: loop header
LB: loop body
LE: loop exit
PB: predicated region body
PF: predicated region fallthrough
CT: control target
= control target key end

     0   :  { %12 = vsyncpa [#allocation3], 0  ;;  %s4087_s24 = smov 0   ;;  %s4089_s25 = smov 0   ;;  %s5373_s0 = inlined_call_operand.vmem [shape: f32[2,128,128], index: 0, kind: input, shape index: {}]   ;;  %s5374_s1 = inlined_call_operand.vmem [shape: bf16[2,128,128], index: 1, kind: input, shape index: {}]   ;;  %s5375_s2 = inlined_call_operand.vmem [shape: bf16[2,128,128], index: 2, kind: input, shape index: {}]   ;;  %s5376_s3 = inlined_call_operand.vmem [shape: bf16[2,128,128], index: 3, kind: input, shape index: {}]   ;;  %s5377_s4 = inlined_call_operand.vmem [shape: bf16[128,128], index: 4, kind: input, shape index: {}]   ;;  %s5378_s5 = inlined_call_operand.vmem [shape: f32[1,128], index: 5, kind: input, shape index: {}]   ;;  %s5379_s6 = inlined_call_operand.vmem [shape: f32[2], index: 6, kind: input, shape index: {}]   ;;  %s5380_s7 = inlined_call_operand.vmem [shape: f32[2,128,128], index: 7, kind: output, shape index: {}]  }
   0x1   :  { %s4091_s26 = smov 0  }
   0x2 LB: > { %s2958_s27 = sadd.s32 4294967295, %s4041_s26   ;;  %s30_s28 = sadd.s32 1, %s4037_s25  ;;  %s4041_s26 = sphi %s4091_s26, %s18_s26   ;;  %s4037_s25 = sphi %s4089_s25, %s5487_s25   ;;  %s4033_s24 = sphi %s4087_s24, %s5486_s24  }
   0x3   : > { %p32_p0 = scmp.ge.s32.totalorder %s30_s28, 2  ;;  %p2960_p1 = scmp.ge.s32.totalorder %s4041_s26, 1 }
   0x4   : > { %p234_p2 = scmp.lt.s32.totalorder %s4041_s26, 3  ;;  %p4112_p4 = scmp.eq.s32.totalorder %s2958_s27, 0 }
   0x5   : > { %s5489_s28 = smov (%p32_p0, %s30_s28), 0  ;;  %s253_s10 = sshll.u32 %s5379_s6, 4  ;;  %s254_s10 = int_to_ptr.vmem [resolvable:$true] %s253_s10 }
   0x6   : > { %p4108_p3 = pnand %p2960_p1, %p234_p2  ;;  %s4000_s11 = scalar_lea.vmem %s254_s10, 16 }
   0x7   : > { %p4001_p7 = scmp.ne.s32.totalorder %s254_s10, %s4000_s11  ;;  %p4008_p11 = scmp.lt.s32.totalorder %s254_s10, %s254_s10 }
   0x8   : > { %p3533_p5 = pneg %p4108_p3  ;;  %p4009_p12 = scmp.lt.s32.totalorder %s4000_s11, %s4000_s11 }
   0xa   : > { %p3534_p6 = pnand %p4112_p4, %p3533_p5  ;;  %p4010_p13 = por %p4009_p12, %p4008_p11 }
   0xc   : > { %p4002_p8 = pneg %p3534_p6 }
   0xe   : > { %p4003_p9 = pnand %p4002_p8, %p4001_p7 }
  0x10   : > { %p4004_p10 = pneg %p4003_p9 }
  0x12   : > { %p4011_p0 = pnand %p4010_p13, %p4004_p10 }
  0x14   : > { %4014 = shalt.err (!%p4011_p0)
}
  0x15   : > { %s4043_s12 = smov [#allocation2]   ;;  %308 = sbr.rel (%p4108_p3) target bundleno = 2364 (0x93c), region = 48 }
  0x16   : > { %3536 = dma.vmem_to_smem (!%p3534_p6), %s254_s10, 16, %s4043_s12, [#allocation3]  }
  0x1a   : > { %4028 = dma.done.wait (%p4112_p4), [#allocation3], 16  }
  0x1b   : > { %4030 = vsyncadd (%p4112_p4), [#allocation3], 4294967280 }
  0x1c   : > { %314 = sfence }
  0x1d   : > { %p369_p1 = scmp.lt.s32.totalorder %s4033_s24, 1  ;;  %vm553_vm0 = vcmask 261120   ;;  %s4044_s17 = smov 96   ;;  %vm2554_vm1 = vcmask 523264   ;;  %vm2571_vm2 = vcmask 785408  }
  0x1e   : > { %s4045_s27 = smov 64   ;;  %s4046_s29 = smov 32  }
  0x1f   : > { %s5491_s24 = smov (!%p369_p1, %s4033_s24), 1 }
  0x20   : > { %s4134_s13 = sshll.u32 %s5491_s24, 6 }
  0x21   : > { %s4140_s16 = scalar_lea.vmem %s5375_s2, %s4134_s13  ;;  %s4165_s20 = scalar_lea.vmem %s5374_s1, %s4134_s13 }
  0x22   : > { %v4143_v0 = vld [vmem:[%s4140_s16 + $0x38] sm:$0xff]   ;;  %v4146_v1 = vld [vmem:[%s4140_s16 + $0x30] sm:$0xff]   ;;  %v4159_v3 = vld [vmem:[%s4140_s16 + $0x28] sm:$0xff]   ;;  %s4254_s23 = scalar_lea.vmem %s5376_s3, %s4134_s13 }
  0x23   : > { %3495 = vmatprep.subr.msk.bf16.mxu0 %vm553_vm0, %v4143_v0  ;;  %v600_v2 = vsel %vm553_vm0, %v4143_v0, 0  ;;  %1026 = vrot.lane.b32.xlu0 %v4143_v0, %s4044_s17  ;;  %v597_v4 = vsel %vm553_vm0, %v4146_v1, 0  ;;  %v4172_v5 = vld [vmem:[%s4165_s20] sm:$0xff]   ;;  %v594_v6 = vsel %vm553_vm0, %v4159_v3, 0  ;;  %v4188_v9 = vld [vmem:[%s4140_s16 + $0x18] sm:$0xff]   ;;  %v4195_v11 = vld [vmem:[%s4140_s16 + $0x10] sm:$0xff]  }
  0x24   : > { %3192 = vmatpush3.bf16.xpose.msra.mxu0 %v600_v2  ;;  %1024 = vrot.lane.b32.xlu1 %v4146_v1, %s4044_s17  ;;  %v4181_v7 = vld [vmem:[%s4140_s16 + $0x20] sm:$0xff]   ;;  %v588_v10 = vsel %vm553_vm0, %v4188_v9, 0  ;;  %v585_v12 = vsel %vm553_vm0, %v4195_v11, 0  ;;  %v4202_v13 = vld [vmem:[%s4140_s16 + $0x8] sm:$0xff]   ;;  %v4219_v18 = vld [vmem:[%s4165_s20 + $0x10] sm:$0xff]  }
  0x25   : > { %3496 = vmatprep.subr.msk.bf16.mxu0 %vm553_vm0, %v4146_v1  ;;  %3207 = vmatprep.mubr.msk.bf16.mxu0 %vm553_vm0, %v4172_v5  ;;  %v591_v8 = vsel %vm553_vm0, %v4181_v7, 0  ;;  %v582_v14 = vsel %vm553_vm0, %v4202_v13, 0  ;;  %v4209_v15 = vld [vmem:[%s4140_s16] sm:$0xff]   ;;  %v4216_v17 = vld [vmem:[%s4165_s20 + $0x8] sm:$0xff]   ;;  %v4226_v19 = vld [vmem:[%s4165_s20 + $0x18] sm:$0xff]  }
  0x26   : > { %v579_v16 = vsel %vm553_vm0, %v4209_v15, 0  ;;  %v4229_v20 = vld [vmem:[%s4165_s20 + $0x20] sm:$0xff]   ;;  %v4236_v21 = vld [vmem:[%s4165_s20 + $0x28] sm:$0xff]   ;;  %v4239_v22 = vld [vmem:[%s4165_s20 + $0x30] sm:$0xff]  }
  0x27   : > { %1022 = vrot.lane.b32.xlu0 %v4159_v3, %s4044_s17  ;;  %v4246_v23 = vld [vmem:[%s4165_s20 + $0x38] sm:$0xff]   ;;  %v4260_v25 = vld [vmem:[%s4254_s23 + $0x30] sm:$0xff]   ;;  %v4267_v26 = vld [vmem:[%s4254_s23 + $0x28] sm:$0xff]  }
  0x28   : > { %v4257_v24 = vld [vmem:[%s4254_s23 + $0x38] sm:$0xff]   ;;  %v4272_v27 = vld [vmem:[%s4254_s23 + $0x20] sm:$0xff]   ;;  %v4280_v29 = vld [vmem:[%s4254_s23 + $0x10] sm:$0xff]  }
  0x29   : > { %3223 = vmatprep.subr.bf16.mxu1 %v4257_v24  ;;  %v4277_v28 = vld [vmem:[%s4254_s23 + $0x18] sm:$0xff]   ;;  %v4286_v30 = vld [vmem:[%s4254_s23 + $0x8] sm:$0xff]   ;;  %v4291_v31 = vld [vmem:[%s4254_s23] sm:$0xff]  }
  0x2a   : > { %3224 = vmatpush3.bf16.msra.mxu1 %v4257_v24 }
  0x2b   : > { %3225 = vmatprep.subr.bf16.mxu1 %v4260_v25 }
  0x2c   : > { %3194 = vmatpush3.bf16.xpose.msra.mxu0 %v597_v4 }
  0x2d   : > { %3497 = vmatprep.subr.msk.bf16.mxu0 %vm553_vm0, %v4159_v3 }
  0x2e   : > { %3226 = vmatpush3.bf16.msra.mxu1 %v4260_v25 }
  0x2f   : > { %3227 = vmatprep.subr.bf16.mxu1 %v4267_v26 }
  0x32   : > { %3228 = vmatpush3.bf16.msra.mxu1 %v4267_v26 }
  0x33   : > { %3229 = vmatprep.subr.bf16.mxu1 %v4272_v27 }
  0x34   : > { %3196 = vmatpush3.bf16.xpose.msra.mxu0 %v594_v6 }
  0x35   : > { %3498 = vmatprep.subr.msk.bf16.mxu0 %vm553_vm0, %v4181_v7 }
  0x36   : > { %3230 = vmatpush3.bf16.msra.mxu1 %v4272_v27 }
  0x37   : > { %3231 = vmatprep.subr.bf16.mxu1 %v4277_v28 }
  0x3a   : > { %3232 = vmatpush3.bf16.msra.mxu1 %v4277_v28 }
  0x3b   : > { %3233 = vmatprep.subr.bf16.mxu1 %v4280_v29 }
  0x3c   : > { %3198 = vmatpush3.bf16.xpose.msra.mxu0 %v591_v8 }
  0x3d   : > { %3499 = vmatprep.subr.msk.bf16.mxu0 %vm553_vm0, %v4188_v9 }
  0x3e   : > { %3234 = vmatpush3.bf16.msra.mxu1 %v4280_v29 }
  0x3f   : > { %3235 = vmatprep.subr.bf16.mxu1 %v4286_v30 }
  0x42   : > { %3236 = vmatpush3.bf16.msra.mxu1 %v4286_v30 }
  0x43   : > { %3237 = vmatprep.subr.bf16.mxu1 %v4291_v31 }
  0x44   : > { %3200 = vmatpush3.bf16.xpose.msra.mxu0 %v588_v10 }
  0x45   : > { %3500 = vmatprep.subr.msk.bf16.mxu0 %vm553_vm0, %v4195_v11 }
  0x46   : > { %3238 = vmatpush3.bf16.msra.mxu1 %v4291_v31 }
  0x4c   : > { %3202 = vmatpush3.bf16.xpose.msra.mxu0 %v585_v12 }
  0x4d   : > { %3501 = vmatprep.subr.msk.bf16.mxu0 %vm553_vm0, %v4202_v13 }
  0x54   : > { %3204 = vmatpush3.bf16.xpose.msra.mxu0 %v582_v14 }
  0x55   : > { %3502 = vmatprep.subr.msk.bf16.mxu0 %vm553_vm0, %v4209_v15 }
  0x5c   : > { %3206 = vmatpush3.bf16.xpose.msra.mxu0 %v579_v16 }
  0x63   : > { %3208 = vmatmul.mubr.msk.bf16.vlgmr.msra.gmra.mxu0 %vm553_vm0, %v4216_v17 }
  0x64   : > { %3211 = vmatprep.mubr.msk.bf16.mxu0 %vm553_vm0, %v4219_v18 }
  0x6b   : > { %3212 = vmatmul.mubr.msk.bf16.gmra.mxu0 %vm553_vm0, %v4226_v19 }
  0x6c   : > { %3215 = vmatprep.mubr.msk.bf16.mxu0 %vm553_vm0, %v4229_v20 }
  0x73   : > { %3216 = vmatmul.mubr.msk.bf16.gmra.mxu0 %vm553_vm0, %v4236_v21 }
  0x74   : > { %3219 = vmatprep.mubr.msk.bf16.mxu0 %vm553_vm0, %v4239_v22 }
  0x7b   : > { %3220 = vmatmul.mubr.msk.bf16.gmra.mxu0 %vm553_vm0, %v4246_v23 }
  0x95   : > { %v4295_v32 = vpop.permute.xlu0 %1026 }
  0x96   : > { %3503 = vmatprep.subr.msk.bf16.mxu1 %vm553_vm0, %v4295_v32  ;;  %v1025_v49 = vpop.permute.xlu1 %1024 }
  0x99   : > { %v1023_v50 = vpop.permute.xlu0 %1022 }
 0x123   : > { %v4300_v33 = vpop.f32.mrf.mxu0 }
 0x124   : > { %703 = vmax.xlane.f32.xlu1 %v4300_v33 }
 0x125   : > { %v636_v34 = vpop.f32.mrf.mxu0 }
 0x126   : > { %699 = vmax.xlane.f32.xlu0 %v636_v34 }
 0x127   : > { %v3210_v35 = vpop.f32.mrf.mxu0 }
 0x128   : > { %705 = vmax.xlane.f32.xlu1 %v3210_v35 }
 0x129   : > { %v639_v36 = vpop.f32.mrf.mxu0 }
 0x12a   : > { %701 = vmax.xlane.f32.xlu0 %v639_v36 }
 0x12b   : > { %v4303_v37 = vpop.f32.mrf.mxu0 }
 0x12c   : > { %711 = vmax.xlane.f32.xlu1 %v4303_v37 }
 0x12d   : > { %v4306_v38 = vpop.f32.mrf.mxu0 }
 0x12f   : > { %v4308_v39 = vpop.f32.mrf.mxu0 }
 0x130   : > { %707 = vmax.xlane.f32.xlu1 %v4306_v38 }
 0x131   : > { %v4311_v40 = vpop.f32.mrf.mxu0 }
 0x133   : > { %v4313_v41 = vpop.f32.mrf.mxu0 }
 0x134   : > { %713 = vmax.xlane.f32.xlu1 %v4308_v39 }
 0x135   : > { %v4316_v42 = vpop.f32.mrf.mxu0 }
 0x137   : > { %v4318_v43 = vpop.f32.mrf.mxu0 }
 0x138   : > { %709 = vmax.xlane.f32.xlu1 %v4311_v40 }
 0x139   : > { %v4321_v44 = vpop.f32.mrf.mxu0 }
 0x13b   : > { %v4324_v45 = vpop.f32.mrf.mxu0 }
 0x13c   : > { %717 = vmax.xlane.f32.xlu1 %v4321_v44 }
 0x13d   : > { %v4329_v46 = vpop.f32.mrf.mxu0 }
 0x13f   : > { %v4332_v47 = vpop.f32.mrf.mxu0 }
 0x140   : > { %1020 = vrot.lane.b32.xlu0 %v4181_v7, %s4044_s17  ;;  %727 = vmax.xlane.f32.xlu1 %v4324_v45 }
 0x141   : > { %v4335_v48 = vpop.f32.mrf.mxu0 }
 0x144   : > { %723 = vmax.xlane.f32.xlu1 %v4329_v46 }
 0x148   : > { %729 = vmax.xlane.f32.xlu1 %v4332_v47 }
 0x14c   : > { %725 = vmax.xlane.f32.xlu1 %v4335_v48 }
 0x15d   : > { %1018 = vrot.lane.b32.xlu1 %v4188_v9, %s4044_s17 }
 0x15f   : > { %719 = vmax.xlane.f32.xlu0 %v4313_v41 }
 0x161   : > { %998 = vrot.lane.b32.xlu1 %v4216_v17, %s4044_s17 }
 0x163   : > { %715 = vmax.xlane.f32.xlu0 %v4316_v42 }
 0x165   : > { %1002 = vrot.lane.b32.xlu1 %v4226_v19, %s4044_s17 }
 0x167   : > { %721 = vmax.xlane.f32.xlu0 %v4318_v43 }
 0x169   : > { %1006 = vrot.lane.b32.xlu1 %v4236_v21, %s4044_s17 }
 0x16d   : > { %1010 = vrot.lane.b32.xlu1 %v4246_v23, %s4044_s17 }
 0x171   : > { %1305 = vrot.lane.b32.xlu1 %v4260_v25, %s4044_s17 }
 0x175   : > { %1297 = vrot.lane.b32.xlu1 %v4280_v29, %s4044_s17 }
 0x179   : > { %1293 = vrot.lane.b32.xlu1 %v4291_v31, %s4044_s17 }
 0x17d   : > { %1016 = vrot.lane.b32.xlu0 %v4195_v11, %s4044_s17  ;;  %1474 = vrot.lane.b32.xlu1 %v4146_v1, %s4045_s27 }
 0x181   : > { %1014 = vrot.lane.b32.xlu0 %v4202_v13, %s4044_s17 }
 0x185   : > { %1012 = vrot.lane.b32.xlu0 %v4209_v15, %s4044_s17 }
 0x189   : > { %996 = vrot.lane.b32.xlu0 %v4172_v5, %s4044_s17 }
 0x18d   : > { %1000 = vrot.lane.b32.xlu0 %v4219_v18, %s4044_s17 }
 0x191   : > { %1004 = vrot.lane.b32.xlu0 %v4229_v20, %s4044_s17 }
 0x195   : > { %1008 = vrot.lane.b32.xlu0 %v4239_v22, %s4044_s17 }
 0x199   : > { %1307 = vrot.lane.b32.xlu0 %v4257_v24, %s4044_s17 }
 0x19d   : > { %1303 = vrot.lane.b32.xlu0 %v4267_v26, %s4044_s17 }
 0x1a1   : > { %1301 = vrot.lane.b32.xlu0 %v4272_v27, %s4044_s17 }
 0x1a5   : > { %1299 = vrot.lane.b32.xlu0 %v4277_v28, %s4044_s17 }
 0x1a9   : > { %1295 = vrot.lane.b32.xlu0 %v4286_v30, %s4044_s17 }
 0x1ad   : > { %v704_v51 = vpop.xlane.xlu1 %703  ;;  %1476 = vrot.lane.b32.xlu0 %v4143_v0, %s4045_s27 }
 0x1ae   : > { %v733_v54 = vsub.f32 %v4300_v33, %v704_v51 }
 0x1af   : > { %v700_v52 = vpop.xlane.xlu0 %699 }
 0x1b0   : > { %v731_v53 = vsub.f32 %v636_v34, %v700_v52  ;;  %v751_v61 = vmul.f32 1.442695, %v733_v54 }
 0x1b1   : > { %v706_v55 = vpop.xlane.xlu1 %705 }
 0x1b2   : > { %v747_v56 = vmul.f32 1.442695, %v731_v53  ;;  %v734_v57 = vsub.f32 %v3210_v35, %v706_v55 }
 0x1b3   : > { %v702_v58 = vpop.xlane.xlu0 %701 }
 0x1b4   : > { %v753_v59 = vmul.f32 1.442695, %v734_v57  ;;  %v732_v60 = vsub.f32 %v639_v36, %v702_v58  ;;  %3719 = vpow2.f32 %v747_v56  ;;  %v1071_v57 = vsel %vm553_vm0, %v1025_v49, 0 }
 0x1b5   : > { %v712_v62 = vpop.xlane.xlu1 %711 }
 0x1b6   : > { %v749_v63 = vmul.f32 1.442695, %v732_v60  ;;  %3721 = vpow2.f32 %v753_v59  ;;  %v737_v10 = vsub.f32 %v4303_v37, %v712_v62 }
 0x1b8   : > { %3723 = vpow2.f32 %v749_v63  ;;  %v759_v35 = vmul.f32 1.442695, %v737_v10  ;;  %v1021_v63 = vpop.permute.xlu0 %1020 }
 0x1b9   : > { %3725 = vpow2.f32 %v751_v61  ;;  %v708_v2 = vpop.xlane.xlu1 %707 }
 0x1ba   : > { %v735_v4 = vsub.f32 %v4306_v38, %v708_v2 }
 0x1bc   : > { %v755_v12 = vmul.f32 1.442695, %v735_v4 }
 0x1bd   : > { %v714_v6 = vpop.xlane.xlu1 %713 }
 0x1be   : > { %v738_v8 = vsub.f32 %v4308_v39, %v714_v6  ;;  %3727 = vpow2.f32 %v755_v12  ;;  %v1065_v6 = vsel %vm553_vm0, %v1021_v63, 0 }
 0x1c0   : > { %v761_v14 = vmul.f32 1.442695, %v738_v8 }
 0x1c1   : > { %v710_v16 = vpop.xlane.xlu1 %709  ;;  %v4386_v34 = vpop.eup %3719 }
 0x1c2   : > { %v736_v33 = vsub.f32 %v4311_v40, %v710_v16  ;;  %3729 = vpow2.f32 %v761_v14  ;;  %v1074_v40 = vsel %vm553_vm0, %v4295_v32, 0 }
 0x1c3   : > { %v4388_v36 = vpop.eup %3721 }
 0x1c4   : > { %v757_v51 = vmul.f32 1.442695, %v736_v33 }
 0x1c5   : > { %v4390_v52 = vpop.eup %3723  ;;  %v718_v38 = vpop.xlane.xlu1 %717 }
 0x1c6   : > { %v4392_v53 = vpop.eup %3725  ;;  %3731 = vpow2.f32 %v757_v51  ;;  %v811_v37 = vpack.c.bf16 %v4390_v52, %v4386_v34  ;;  %v740_v10 = vsub.f32 %v4321_v44, %v718_v38 }
 0x1c7   : > { %3733 = vpow2.f32 %v759_v35  ;;  %v812_v39 = vpack.c.bf16 %v4388_v36, %v4392_v53 }
 0x1c8   : > { %3239 = vmatprep.mubr.bf16.mxu1 %v811_v37 }
 0x1c9   : > { %3240 = vmatmul.mubr.bf16.vlgmr.msra.gmra.mxu1 %v812_v39  ;;  %v728_v54 = vpop.xlane.xlu1 %727 }
 0x1ca   : > { %3256 = vmatpush3.bf16.xpose.msra.mxu1 %v1074_v40 }
 0x1cb   : > { %3504 = vmatprep.subr.msk.bf16.mxu1 %vm553_vm0, %v1025_v49  ;;  %v4401_v56 = vpop.eup %3727  ;;  %v1068_v49 = vsel %vm553_vm0, %v1023_v50, 0 }
 0x1cd   : > { %v724_v55 = vpop.xlane.xlu1 %723 }
 0x1ce   : > { %v743_v51 = vsub.f32 %v4329_v46, %v724_v55 }
 0x1cf   : > { %v4404_v58 = vpop.eup %3729 }
 0x1d0   : > { %5386 = vst [vmem:[#allocation5_spill] sm:$0xff] %v4404_v58  ;;  %v771_v38 = vmul.f32 1.442695, %v743_v51 }
 0x1d1   : > { %v730_v62 = vpop.xlane.xlu1 %729 }
 0x1d2   : > { %3258 = vmatpush3.bf16.xpose.msra.mxu1 %v1071_v57 }
 0x1d3   : > { %v4406_v59 = vpop.eup %3731  ;;  %3505 = vmatprep.subr.msk.bf16.mxu1 %vm553_vm0, %v1023_v50  ;;  %v765_v50 = vmul.f32 1.442695, %v740_v10 }
 0x1d4   : > { %v4409_v60 = vpop.eup %3733  ;;  %v813_v32 = vpack.c.bf16 %v4406_v59, %v4401_v56 }
 0x1d5   : > { %v814_v61 = vpack.c.bf16 %v4404_v58, %v4409_v60  ;;  %v726_v2 = vpop.xlane.xlu1 %725  ;;  %3735 = vpow2.f32 %v765_v50 }
 0x1d6   : > { %3243 = vmatprep.mubr.bf16.mxu1 %v813_v32  ;;  %v744_v14 = vsub.f32 %v4335_v48, %v726_v2  ;;  %v746_v32 = vsub.f32 %v4332_v47, %v730_v62 }
 0x1d7   : > { %3244 = vmatmul.mubr.bf16.gmra.mxu1 %v814_v61  ;;  %v745_v61 = vsub.f32 %v4324_v45, %v728_v54 }
 0x1d8   : > { %v773_v37 = vmul.f32 1.442695, %v744_v14  ;;  %v777_v46 = vmul.f32 1.442695, %v746_v32 }
 0x1d9   : > { %v1019_v4 = vpop.permute.xlu1 %1018 }
 0x1da   : > { %3260 = vmatpush3.bf16.xpose.msra.mxu1 %v1068_v49  ;;  %v1062_v8 = vsel %vm553_vm0, %v1019_v4, 0  ;;  %v775_v49 = vmul.f32 1.442695, %v745_v61 }
 0x1db   : > { %3506 = vmatprep.subr.msk.bf16.mxu1 %vm553_vm0, %v1021_v63 }
 0x1e2   : > { %3262 = vmatpush3.bf16.xpose.msra.mxu1 %v1065_v6  ;;  %v4432_v62 = vpop.eup %3735 }
 0x1e3   : > { %3507 = vmatprep.subr.msk.bf16.mxu1 %vm553_vm0, %v1019_v4 }
 0x1e8   : > { %v720_v12 = vpop.xlane.xlu0 %719 }
 0x1e9   : > { %v741_v16 = vsub.f32 %v4313_v41, %v720_v12 }
 0x1ea   : > { %3264 = vmatpush3.bf16.xpose.msra.mxu1 %v1062_v8 }
 0x1eb   : > { %v767_v40 = vmul.f32 1.442695, %v741_v16 }
 0x1ec   : > { %v716_v33 = vpop.xlane.xlu0 %715 }
 0x1ed   : > { %v739_v35 = vsub.f32 %v4316_v42, %v716_v33 }
 0x1ef   : > { %v763_v39 = vmul.f32 1.442695, %v739_v35  ;;  %v999_v35 = vpop.permute.xlu1 %998 }
 0x1f0   : > { %v722_v57 = vpop.xlane.xlu0 %721 }
 0x1f1   : > { %3737 = vpow2.f32 %v763_v39  ;;  %v742_v44 = vsub.f32 %v4318_v43, %v722_v57 }
 0x1f2   : > { %3739 = vpow2.f32 %v773_v37 }
 0x1f3   : > { %v769_v48 = vmul.f32 1.442695, %v742_v44  ;;  %3741 = vpow2.f32 %v767_v40  ;;  %v1003_v37 = vpop.permute.xlu1 %1002 }
 0x1f4   : > { %v1017_v41 = vpop.permute.xlu0 %1016 }
 0x1f5   : > { %3743 = vpow2.f32 %v769_v48  ;;  %3508 = vmatprep.subr.msk.bf16.mxu1 %vm553_vm0, %v1017_v41  ;;  %v1059_v42 = vsel %vm553_vm0, %v1017_v41, 0 }
 0x1f6   : > { %3745 = vpow2.f32 %v771_v38  ;;  %3266 = vmatpush3.bf16.xpose.msra.mxu1 %v1059_v42 }
 0x1f7   : > { %3747 = vpow2.f32 %v777_v46  ;;  %v1007_v40 = vpop.permute.xlu1 %1006 }
 0x1f8   : > { %v1015_v55 = vpop.permute.xlu0 %1014  ;;  %3749 = vpow2.f32 %v775_v49 }
 0x1f9   : > { %3509 = vmatprep.subr.msk.bf16.mxu1 %vm553_vm0, %v1015_v55  ;;  %v1056_v43 = vsel %vm553_vm0, %v1015_v55, 0 }
 0x1fb   : > { %v1011_v44 = vpop.permute.xlu1 %1010 }
 0x1fc   : > { %v1013_v47 = vpop.permute.xlu0 %1012 }
 0x1fd   : > { %v1053_v10 = vsel %vm553_vm0, %v1013_v47, 0 }
 0x1fe   : > { %v4434_v45 = vpop.eup %3737  ;;  %3268 = vmatpush3.bf16.xpose.msra.mxu1 %v1056_v43 }
 0x1ff   : > { %v815_v54 = vpack.c.bf16 %v4432_v62, %v4434_v45  ;;  %3510 = vmatprep.subr.msk.bf16.mxu1 %vm553_vm0, %v1013_v47  ;;  %v4439_v63 = vpop.eup %3739  ;;  %v1306_v32 = vpop.permute.xlu1 %1305 }
 0x200   : > { %v4441_v2 = vpop.eup %3741  ;;  %v997_v33 = vpop.permute.xlu0 %996 }
 0x201   : > { %3247 = vmatprep.mubr.bf16.mxu1 %v815_v54 }
 0x202   : > { %v4443_v4 = vpop.eup %3743 }
 0x203   : > { %v4445_v6 = vpop.eup %3745  ;;  %v816_v8 = vpack.c.bf16 %v4443_v4, %v4441_v2  ;;  %v1298_v41 = vpop.permute.xlu1 %1297 }
 0x204   : > { %v817_v12 = vpack.c.bf16 %v4439_v63, %v4445_v6  ;;  %v4452_v14 = vpop.eup %3747  ;;  %v1001_v51 = vpop.permute.xlu0 %1000 }
 0x205   : > { %3248 = vmatmul.mubr.bf16.gmra.mxu1 %v816_v8  ;;  %5387 = vst [vmem:[#allocation6_spill] sm:$0xff] %v4452_v14  ;;  %v4454_v50 = vpop.eup %3749 }
 0x206   : > { %3251 = vmatprep.mubr.bf16.mxu1 %v817_v12  ;;  %3270 = vmatpush3.bf16.xpose.msra.mxu1 %v1053_v10  ;;  %5388 = vst [vmem:[#allocation7_spill] sm:$0xff] %v4454_v50  ;;  %v818_v16 = vpack.c.bf16 %v4452_v14, %v4454_v50 }
 0x207   : > { %v1294_v46 = vpop.permute.xlu1 %1293 }
 0x208   : > { %v1005_v39 = vpop.permute.xlu0 %1004 }
 0x20c   : > { %v1009_v57 = vpop.permute.xlu0 %1008 }
 0x20d   : > { %3252 = vmatmul.mubr.bf16.gmra.mxu1 %v818_v16 }
 0x20e   : > { %3271 = vmatprep.mubr.msk.bf16.mxu1 %vm553_vm0, %v997_v33 }
 0x210   : > { %v1308_v38 = vpop.permute.xlu0 %1307 }
 0x211   : > { %3287 = vmatprep.subr.bf16.mxu0 %v1308_v38 }
 0x212   : > { %3288 = vmatpush3.bf16.msra.mxu0 %v1308_v38 }
 0x213   : > { %3289 = vmatprep.subr.bf16.mxu0 %v1306_v32 }
 0x214   : > { %v1304_v48 = vpop.permute.xlu0 %1303 }
 0x215   : > { %3272 = vmatmul.mubr.msk.bf16.vlgmr.msra.gmra.mxu1 %vm553_vm0, %v999_v35 }
 0x216   : > { %3275 = vmatprep.mubr.msk.bf16.mxu1 %vm553_vm0, %v1001_v51  ;;  %3290 = vmatpush3.bf16.msra.mxu0 %v1306_v32 }
 0x217   : > { %3291 = vmatprep.subr.bf16.mxu0 %v1304_v48 }
 0x218   : > { %v1302_v1 = vpop.permute.xlu0 %1301 }
 0x21a   : > { %3292 = vmatpush3.bf16.msra.mxu0 %v1304_v48 }
 0x21b   : > { %3293 = vmatprep.subr.bf16.mxu0 %v1302_v1 }
 0x21c   : > { %v1300_v0 = vpop.permute.xlu0 %1299 }
 0x21d   : > { %3276 = vmatmul.mubr.msk.bf16.gmra.mxu1 %vm553_vm0, %v1003_v37 }
 0x21e   : > { %3279 = vmatprep.mubr.msk.bf16.mxu1 %vm553_vm0, %v1005_v39  ;;  %3294 = vmatpush3.bf16.msra.mxu0 %v1302_v1 }
 0x21f   : > { %3295 = vmatprep.subr.bf16.mxu0 %v1300_v0 }
 0x220   : > { %v1296_v61 = vpop.permute.xlu0 %1295 }
 0x222   : > { %3296 = vmatpush3.bf16.msra.mxu0 %v1300_v0 }
 0x223   : > { %3297 = vmatprep.subr.bf16.mxu0 %v1298_v41 }
 0x224   : > { %v4472_v55 = vpop.permute.xlu0 %1476 }
 0x225   : > { %3280 = vmatmul.mubr.msk.bf16.gmra.mxu1 %vm553_vm0, %v1007_v40 }
 0x226   : > { %3283 = vmatprep.mubr.msk.bf16.mxu1 %vm553_vm0, %v1009_v57  ;;  %3298 = vmatpush3.bf16.msra.mxu0 %v1298_v41 }
 0x227   : > { %3299 = vmatprep.subr.bf16.mxu0 %v1296_v61 }
 0x22a   : > { %3300 = vmatpush3.bf16.msra.mxu0 %v1296_v61 }
 0x22b   : > { %3301 = vmatprep.subr.bf16.mxu0 %v1294_v46 }
 0x22d   : > { %3284 = vmatmul.mubr.msk.bf16.gmra.mxu1 %vm553_vm0, %v1011_v44 }
 0x22e   : > { %3302 = vmatpush3.bf16.msra.mxu0 %v1294_v46 }
 0x22f   : > { %3511 = vmatprep.subr.msk.bf16.mxu0 %vm553_vm0, %v4472_v55 }
 0x289   : > { %v4470_v42 = vpop.f32.mrf.mxu1 }
 0x28a   : > { %5389 = vst [vmem:[#allocation8_spill] sm:$0xff] %v4470_v42 }
 0x28b   : > { %v4476_v49 = vpop.f32.mrf.mxu1 }
 0x28c   : > { %5390 = vst [vmem:[#allocation9_spill] sm:$0xff] %v4476_v49  ;;  %v3980_v49 = vld [vmem:[%s4140_s16 + $0x10] sm:$0xff]  }
 0x28d   : > { %v4478_v43 = vpop.f32.mrf.mxu1 }
 0x28e   : > { %5391 = vst [vmem:[#allocation10_spill] sm:$0xff] %v4478_v43  ;;  %v3981_v43 = vld [vmem:[%s4140_s16 + $0x18] sm:$0xff]  }
 0x28f   : > { %v4480_v47 = vpop.f32.mrf.mxu1 }
 0x290   : > { %5392 = vst [vmem:[#allocation11_spill] sm:$0xff] %v4480_v47 }
 0x297   : > { %v4482_v54 = vpop.f32.mrf.mxu1 }
 0x298   : > { %5393 = vst [vmem:[#allocation12_spill] sm:$0xff] %v4482_v54 }
 0x299   : > { %v4484_v8 = vpop.f32.mrf.mxu1 }
 0x29a   : > { %5394 = vst [vmem:[#allocation13_spill] sm:$0xff] %v4484_v8 }
 0x29b   : > { %v4486_v10 = vpop.f32.mrf.mxu1 }
 0x29c   : > { %5395 = vst [vmem:[#allocation14_spill] sm:$0xff] %v4486_v10 }
 0x29d   : > { %v4488_v12 = vpop.f32.mrf.mxu1 }
 0x29e   : > { %5396 = vst [vmem:[#allocation15_spill] sm:$0xff] %v4488_v12 }
 0x2c5   : > { %v4490_v16 = vpop.f32.mrf.mxu1 }
 0x2c6   : > { %5397 = vst [vmem:[#allocation16_spill] sm:$0xff] %v4490_v16 }
 0x2c7   : > { %v4492_v33 = vpop.f32.mrf.mxu1 }
 0x2c8   : > { %5398 = vst [vmem:[#allocation17_spill] sm:$0xff] %v4492_v33 }
 0x2c9   : > { %v4494_v35 = vpop.f32.mrf.mxu1 }
 0x2ca   : > { %5399 = vst [vmem:[#allocation18_spill] sm:$0xff] %v4494_v35 }
 0x2cb   : > { %v4496_v51 = vpop.f32.mrf.mxu1 }
 0x2cc   : > { %5400 = vst [vmem:[#allocation19_spill] sm:$0xff] %v4496_v51 }
 0x2cd   : > { %v4498_v37 = vpop.f32.mrf.mxu1 }
 0x2ce   : > { %5401 = vst [vmem:[#allocation20_spill] sm:$0xff] %v4498_v37 }
 0x2cf   : > { %v4500_v39 = vpop.f32.mrf.mxu1 }
 0x2d0   : > { %5402 = vst [vmem:[#allocation21_spill] sm:$0xff] %v4500_v39 }
 0x2d1   : > { %v4502_v40 = vpop.f32.mrf.mxu1 }
 0x2d2   : > { %5403 = vst [vmem:[#allocation22_spill] sm:$0xff] %v4502_v40 }
 0x2d3   : > { %v4504_v57 = vpop.f32.mrf.mxu1 }
 0x2d4   : > { %5404 = vst [vmem:[#allocation23_spill] sm:$0xff] %v4504_v57 }
 0x2d5   : > { %v3273_v44 = vpop.f32.mrf.mxu1 }
 0x2d6   : > { %1177 = vmax.xlane.f32.xlu1 %v3273_v44 }
 0x2d7   : > { %v1110_v38 = vpop.f32.mrf.mxu1 }
 0x2d8   : > { %1173 = vmax.xlane.f32.xlu0 %v1110_v38 }
 0x2d9   : > { %v3274_v32 = vpop.f32.mrf.mxu1 }
 0x2da   : > { %1179 = vmax.xlane.f32.xlu1 %v3274_v32 }
 0x2db   : > { %v1113_v48 = vpop.f32.mrf.mxu1 }
 0x2dd   : > { %v4506_v1 = vpop.f32.mrf.mxu1 }
 0x2de   : > { %1175 = vmax.xlane.f32.xlu1 %v1113_v48 }
 0x2df   : > { %v4508_v0 = vpop.f32.mrf.mxu1 }
 0x2e1   : > { %v4514_v41 = vpop.f32.mrf.mxu1 }
 0x2e3   : > { %v4518_v61 = vpop.f32.mrf.mxu1 }
 0x2e5   : > { %v4520_v46 = vpop.f32.mrf.mxu1 }
 0x2e7   : > { %v4522_v40 = vpop.f32.mrf.mxu1 }
 0x2e9   : > { %v4524_v37 = vpop.f32.mrf.mxu1 }
 0x2eb   : > { %v4526_v57 = vpop.f32.mrf.mxu1 }
 0x2ed   : > { %v4528_v39 = vpop.f32.mrf.mxu1 }
 0x2ee   : > { %1470 = vrot.lane.b32.xlu0 %v4181_v7, %s4045_s27 }
 0x2ef   : > { %1472 = vrot.lane.b32.xlu1 %v4159_v3, %s4045_s27  ;;  %v4530_v54 = vpop.f32.mrf.mxu1 }
 0x2f1   : > { %v4532_v3 = vpop.f32.mrf.mxu1 }
 0x2f2   : > { %1468 = vrot.lane.b32.xlu0 %v4188_v9, %s4045_s27 }
 0x2f3   : > { %v4536_v9 = vpop.f32.mrf.mxu1 }
 0x311   : > { %1185 = vmax.xlane.f32.xlu0 %v4506_v1 }
 0x313   : > { %1181 = vmax.xlane.f32.xlu1 %v4508_v0 }
 0x315   : > { %1187 = vmax.xlane.f32.xlu0 %v4514_v41 }
 0x317   : > { %1199 = vmax.xlane.f32.xlu1 %v4536_v9 }
 0x319   : > { %1183 = vmax.xlane.f32.xlu0 %v4518_v61 }
 0x31d   : > { %1193 = vmax.xlane.f32.xlu0 %v4520_v46 }
 0x321   : > { %1189 = vmax.xlane.f32.xlu0 %v4522_v40 }
 0x325   : > { %1195 = vmax.xlane.f32.xlu0 %v4524_v37 }
 0x328   : > { %1466 = vrot.lane.b32.xlu1 %v4195_v11, %s4045_s27  ;;  %v1475_v11 = vpop.permute.xlu1 %1474 }
 0x329   : > { %1191 = vmax.xlane.f32.xlu0 %v4526_v57 }
 0x32c   : > { %1452 = vrot.lane.b32.xlu1 %v4226_v19, %s4045_s27 }
 0x32d   : > { %1201 = vmax.xlane.f32.xlu0 %v4528_v39 }
 0x330   : > { %1456 = vrot.lane.b32.xlu1 %v4236_v21, %s4045_s27 }
 0x331   : > { %1197 = vmax.xlane.f32.xlu0 %v4530_v54 }
 0x334   : > { %1460 = vrot.lane.b32.xlu1 %v4246_v23, %s4045_s27 }
 0x335   : > { %1203 = vmax.xlane.f32.xlu0 %v4532_v3 }
 0x338   : > { %1755 = vrot.lane.b32.xlu1 %v4260_v25, %s4045_s27 }
 0x33c   : > { %1747 = vrot.lane.b32.xlu1 %v4280_v29, %s4045_s27 }
 0x340   : > { %1743 = vrot.lane.b32.xlu1 %v4291_v31, %s4045_s27 }
 0x34b   : > { %1464 = vrot.lane.b32.xlu0 %v4202_v13, %s4045_s27 }
 0x34f   : > { %1462 = vrot.lane.b32.xlu0 %v4209_v15, %s4045_s27 }
 0x353   : > { %1446 = vrot.lane.b32.xlu0 %v4172_v5, %s4045_s27 }
 0x357   : > { %1448 = vrot.lane.b32.xlu0 %v4216_v17, %s4045_s27 }
 0x35b   : > { %1450 = vrot.lane.b32.xlu0 %v4219_v18, %s4045_s27 }
 0x35f   : > { %v1178_v19 = vpop.xlane.xlu1 %1177  ;;  %1454 = vrot.lane.b32.xlu0 %v4229_v20, %s4045_s27 }
 0x360   : > { %v1207_v25 = vsub.f32 %v3273_v44, %v1178_v19 }
 0x361   : > { %v1174_v21 = vpop.xlane.xlu0 %1173 }
 0x362   : > { %v1205_v23 = vsub.f32 %v1110_v38, %v1174_v21  ;;  %v1225_v18 = vmul.f32 1.442695, %v1207_v25 }
 0x363   : > { %v1180_v13 = vpop.xlane.xlu1 %1179  ;;  %1458 = vrot.lane.b32.xlu0 %v4239_v22, %s4045_s27 }
 0x364   : > { %v1208_v15 = vsub.f32 %v3274_v32, %v1180_v13  ;;  %v1221_v5 = vmul.f32 1.442695, %v1205_v23 }
 0x365   : > { %v1471_v32 = vpop.permute.xlu0 %1470 }
 0x366   : > { %v1227_v29 = vmul.f32 1.442695, %v1208_v15  ;;  %3751 = vpow2.f32 %v1221_v5 }
 0x367   : > { %v1176_v31 = vpop.xlane.xlu1 %1175  ;;  %1757 = vrot.lane.b32.xlu0 %v4257_v24, %s4045_s27 }
 0x368   : > { %v1206_v17 = vsub.f32 %v1113_v48, %v1176_v31  ;;  %3753 = vpow2.f32 %v1227_v29  ;;  %v1515_v48 = vsel %vm553_vm0, %v1471_v32, 0 }
 0x369   : > { %v1469_v19 = vpop.permute.xlu0 %1468 }
 0x36a   : > { %v1223_v10 = vmul.f32 1.442695, %v1206_v17  ;;  %v1512_v23 = vsel %vm553_vm0, %v1469_v19, 0 }
 0x36b   : > { %1753 = vrot.lane.b32.xlu0 %v4267_v26, %s4045_s27 }
 0x36c   : > { %3755 = vpow2.f32 %v1223_v10  ;;  %v1473_v10 = vpop.permute.xlu1 %1472 }
 0x36d   : > { %3757 = vpow2.f32 %v1225_v18  ;;  %v1518_v38 = vsel %vm553_vm0, %v1473_v10, 0 }
 0x36f   : > { %1751 = vrot.lane.b32.xlu0 %v4272_v27, %s4045_s27 }
 0x373   : > { %1749 = vrot.lane.b32.xlu0 %v4277_v28, %s4045_s27  ;;  %v4584_v20 = vpop.eup %3751  ;;  %v1524_v28 = vsel %vm553_vm0, %v4472_v55, 0 }
 0x375   : > { %v4588_v22 = vpop.eup %3753 }
 0x377   : > { %1745 = vrot.lane.b32.xlu0 %v4286_v30, %s4045_s27  ;;  %v1521_v30 = vsel %vm553_vm0, %v1475_v11, 0 }
 0x379   : > { %v4590_v24 = vpop.eup %3755 }
 0x37a   : > { %v4592_v44 = vpop.eup %3757  ;;  %v1285_v26 = vpack.c.bf16 %v4590_v24, %v4584_v20 }
 0x37b   : > { %v1286_v27 = vpack.c.bf16 %v4588_v22, %v4592_v44 }
 0x37c   : > { %3303 = vmatprep.mubr.bf16.mxu0 %v1285_v26 }
 0x37d   : > { %3304 = vmatmul.mubr.bf16.vlgmr.msra.gmra.mxu0 %v1286_v27 }
 0x37e   : > { %3320 = vmatpush3.bf16.xpose.msra.mxu0 %v1524_v28 }
 0x37f   : > { %3512 = vmatprep.subr.msk.bf16.mxu0 %vm553_vm0, %v1475_v11 }
 0x386   : > { %3322 = vmatpush3.bf16.xpose.msra.mxu0 %v1521_v30 }
 0x387   : > { %3513 = vmatprep.subr.msk.bf16.mxu0 %vm553_vm0, %v1473_v10 }
 0x38e   : > { %3324 = vmatpush3.bf16.xpose.msra.mxu0 %v1518_v38 }
 0x38f   : > { %3514 = vmatprep.subr.msk.bf16.mxu0 %vm553_vm0, %v1471_v32 }
 0x396   : > { %3326 = vmatpush3.bf16.xpose.msra.mxu0 %v1515_v48 }
 0x397   : > { %3515 = vmatprep.subr.msk.bf16.mxu0 %vm553_vm0, %v1469_v19 }
 0x39a   : > { %v1186_v55 = vpop.xlane.xlu0 %1185 }
 0x39b   : > { %v1211_v25 = vsub.f32 %v4506_v1, %v1186_v55 }
 0x39c   : > { %v1182_v21 = vpop.xlane.xlu1 %1181 }
 0x39d   : > { %v1209_v11 = vsub.f32 %v4508_v0, %v1182_v21  ;;  %v1233_v26 = vmul.f32 1.442695, %v1211_v25 }
 0x39e   : > { %3328 = vmatpush3.bf16.xpose.msra.mxu0 %v1512_v23  ;;  %v1188_v13 = vpop.xlane.xlu0 %1187 }
 0x39f   : > { %v1212_v15 = vsub.f32 %v4514_v41, %v1188_v13  ;;  %v1229_v29 = vmul.f32 1.442695, %v1209_v11 }
 0x3a0   : > { %v1200_v5 = vpop.xlane.xlu1 %1199 }
 0x3a1   : > { %v1235_v31 = vmul.f32 1.442695, %v1212_v15  ;;  %3759 = vpow2.f32 %v1229_v29 }
 0x3a2   : > { %v1184_v17 = vpop.xlane.xlu0 %1183 }
 0x3a3   : > { %v1210_v18 = vsub.f32 %v4518_v61, %v1184_v17  ;;  %3761 = vpow2.f32 %v1235_v31 }
 0x3a4   : > { %v1467_v27 = vpop.permute.xlu1 %1466 }
 0x3a5   : > { %v1231_v28 = vmul.f32 1.442695, %v1210_v18  ;;  %3516 = vmatprep.subr.msk.bf16.mxu0 %vm553_vm0, %v1467_v27  ;;  %v1509_v0 = vsel %vm553_vm0, %v1467_v27, 0 }
 0x3a6   : > { %v1194_v30 = vpop.xlane.xlu0 %1193  ;;  %3330 = vmatpush3.bf16.xpose.msra.mxu0 %v1509_v0 }
 0x3a7   : > { %3763 = vpow2.f32 %v1231_v28  ;;  %v1215_v61 = vsub.f32 %v4520_v46, %v1194_v30  ;;  %v1218_v46 = vsub.f32 %v4536_v9, %v1200_v5 }
 0x3a8   : > { %3765 = vpow2.f32 %v1233_v26 }
 0x3a9   : > { %v1241_v13 = vmul.f32 1.442695, %v1215_v61 }
 0x3aa   : > { %v1190_v1 = vpop.xlane.xlu0 %1189 }
 0x3ab   : > { %v1213_v41 = vsub.f32 %v4522_v40, %v1190_v1 }
 0x3ad   : > { %v1237_v32 = vmul.f32 1.442695, %v1213_v41  ;;  %v3977_v41 = vld [vmem:[%s4140_s16 + $0x38] sm:$0xff]  }
 0x3ae   : > { %v1196_v10 = vpop.xlane.xlu0 %1195  ;;  %v4617_v48 = vpop.eup %3759  ;;  %1926 = vrot.lane.b32.xlu0 %v3977_v41, %s4046_s29 }
 0x3af   : > { %v1216_v38 = vsub.f32 %v4524_v37, %v1196_v10  ;;  %3767 = vpow2.f32 %v1237_v32 }
 0x3b0   : > { %v4619_v21 = vpop.eup %3761 }
 0x3b1   : > { %v1243_v19 = vmul.f32 1.442695, %v1216_v38  ;;  %v3978_v38 = vld [vmem:[%s4140_s16 + $0x28] sm:$0xff]  }
 0x3b2   : > { %v1192_v55 = vpop.xlane.xlu0 %1191  ;;  %1922 = vrot.lane.b32.xlu1 %v3978_v38, %s4046_s29 }
 0x3b3   : > { %v1214_v11 = vsub.f32 %v4526_v57, %v1192_v55  ;;  %3769 = vpow2.f32 %v1243_v19  ;;  %v1247_v57 = vmul.f32 1.442695, %v1218_v46  ;;  %v3979_v19 = vld [vmem:[%s4140_s16 + $0x30] sm:$0xff]  }
 0x3b4   : > { %v4622_v23 = vpop.eup %3763  ;;  %1924 = vrot.lane.b32.xlu0 %v3979_v19, %s4046_s29 }
 0x3b5   : > { %v4624_v15 = vpop.eup %3765  ;;  %v1239_v40 = vmul.f32 1.442695, %v1214_v11  ;;  %v1287_v37 = vpack.c.bf16 %v4622_v23, %v4617_v48 }
 0x3b6   : > { %v1202_v25 = vpop.xlane.xlu0 %1201  ;;  %v1288_v29 = vpack.c.bf16 %v4619_v21, %v4624_v15 }
 0x3b7   : > { %3771 = vpow2.f32 %v1239_v40  ;;  %3307 = vmatprep.mubr.bf16.mxu0 %v1287_v37  ;;  %v1219_v31 = vsub.f32 %v4528_v39, %v1202_v25 }
 0x3b8   : > { %3773 = vpow2.f32 %v1241_v13  ;;  %3308 = vmatmul.mubr.bf16.gmra.mxu0 %v1288_v29  ;;  %1920 = vrot.lane.b32.xlu0 %v4181_v7, %s4046_s29  ;;  %v1453_v7 = vpop.permute.xlu1 %1452 }
 0x3b9   : > { %3775 = vpow2.f32 %v1247_v57  ;;  %v1249_v27 = vmul.f32 1.442695, %v1219_v31 }
 0x3ba   : > { %v1198_v17 = vpop.xlane.xlu0 %1197 }
 0x3bb   : > { %v1217_v18 = vsub.f32 %v4530_v54, %v1198_v17 }
 0x3bc   : > { %v4634_v0 = vpop.eup %3767 }
 0x3bd   : > { %v1245_v26 = vmul.f32 1.442695, %v1217_v18  ;;  %v1457_v18 = vpop.permute.xlu1 %1456 }
 0x3be   : > { %v1204_v9 = vpop.xlane.xlu0 %1203 }
 0x3bf   : > { %3777 = vpow2.f32 %v1245_v26  ;;  %v1220_v5 = vsub.f32 %v4532_v3, %v1204_v9 }
 0x3c0   : > { %3779 = vpow2.f32 %v1249_v27  ;;  %v4636_v1 = vpop.eup %3769 }
 0x3c1   : > { %v1251_v28 = vmul.f32 1.442695, %v1220_v5  ;;  %v1461_v27 = vpop.permute.xlu1 %1460 }
 0x3c2   : > { %v1465_v30 = vpop.permute.xlu0 %1464 }
 0x3c3   : > { %3781 = vpow2.f32 %v1251_v28  ;;  %3517 = vmatprep.subr.msk.bf16.mxu0 %vm553_vm0, %v1465_v30  ;;  %v1506_v54 = vsel %vm553_vm0, %v1465_v30, 0 }
 0x3c4   : > { %v4640_v39 = vpop.eup %3771  ;;  %3332 = vmatpush3.bf16.xpose.msra.mxu0 %v1506_v54 }
 0x3c5   : > { %v4644_v3 = vpop.eup %3773  ;;  %v1289_v10 = vpack.c.bf16 %v4640_v39, %v4634_v0  ;;  %v1756_v5 = vpop.permute.xlu1 %1755 }
 0x3c6   : > { %v1290_v61 = vpack.c.bf16 %v4636_v1, %v4644_v3  ;;  %v1463_v32 = vpop.permute.xlu0 %1462  ;;  %v4656_v11 = vpop.eup %3775 }
 0x3c7   : > { %3311 = vmatprep.mubr.bf16.mxu0 %v1289_v10  ;;  %3518 = vmatprep.subr.msk.bf16.mxu0 %vm553_vm0, %v1463_v32  ;;  %v1503_v55 = vsel %vm553_vm0, %v1463_v32, 0 }
 0x3c8   : > { %3312 = vmatmul.mubr.bf16.gmra.mxu0 %v1290_v61 }
 0x3c9   : > { %v1748_v41 = vpop.permute.xlu1 %1747 }
 0x3ca   : > { %v1447_v46 = vpop.permute.xlu0 %1446 }
 0x3cc   : > { %v4658_v13 = vpop.eup %3777  ;;  %3334 = vmatpush3.bf16.xpose.msra.mxu0 %v1503_v55 }
 0x3cd   : > { %v1291_v40 = vpack.c.bf16 %v4656_v11, %v4658_v13  ;;  %v4664_v37 = vpop.eup %3779  ;;  %v1744_v38 = vpop.permute.xlu1 %1743 }
 0x3ce   : > { %v1449_v57 = vpop.permute.xlu0 %1448 }
 0x3cf   : > { %3315 = vmatprep.mubr.bf16.mxu0 %v1291_v40 }
 0x3d0   : > { %v4666_v25 = vpop.eup %3781 }
 0x3d1   : > { %v1292_v29 = vpack.c.bf16 %v4666_v25, %v4664_v37 }
 0x3d2   : > { %v1451_v31 = vpop.permute.xlu0 %1450 }
 0x3d3   : > { %3316 = vmatmul.mubr.bf16.gmra.mxu0 %v1292_v29 }
 0x3d4   : > { %3335 = vmatprep.mubr.msk.bf16.mxu0 %vm553_vm0, %v1447_v46 }
 0x3d6   : > { %v1455_v17 = vpop.permute.xlu0 %1454 }
 0x3da   : > { %v1459_v26 = vpop.permute.xlu0 %1458 }
 0x3db   : > { %3336 = vmatmul.mubr.msk.bf16.vlgmr.msra.gmra.mxu0 %vm553_vm0, %v1449_v57 }
 0x3dc   : > { %3339 = vmatprep.mubr.msk.bf16.mxu0 %vm553_vm0, %v1451_v31 }
 0x3de   : > { %v1758_v9 = vpop.permute.xlu0 %1757 }
 0x3df   : > { %3351 = vmatprep.subr.bf16.mxu1 %v1758_v9 }
 0x3e0   : > { %3352 = vmatpush3.bf16.msra.mxu1 %v1758_v9 }
 0x3e1   : > { %3353 = vmatprep.subr.bf16.mxu1 %v1756_v5 }
 0x3e2   : > { %v1754_v28 = vpop.permute.xlu0 %1753 }
 0x3e3   : > { %3340 = vmatmul.mubr.msk.bf16.gmra.mxu0 %vm553_vm0, %v1453_v7 }
 0x3e4   : > { %3343 = vmatprep.mubr.msk.bf16.mxu0 %vm553_vm0, %v1455_v17  ;;  %3354 = vmatpush3.bf16.msra.mxu1 %v1756_v5 }
 0x3e5   : > { %3355 = vmatprep.subr.bf16.mxu1 %v1754_v28 }
 0x3e6   : > { %v1752_v30 = vpop.permute.xlu0 %1751 }
 0x3e8   : > { %3356 = vmatpush3.bf16.msra.mxu1 %v1754_v28 }
 0x3e9   : > { %3357 = vmatprep.subr.bf16.mxu1 %v1752_v30 }
 0x3ea   : > { %v1750_v54 = vpop.permute.xlu0 %1749 }
 0x3eb   : > { %3344 = vmatmul.mubr.msk.bf16.gmra.mxu0 %vm553_vm0, %v1457_v18 }
 0x3ec   : > { %3347 = vmatprep.mubr.msk.bf16.mxu0 %vm553_vm0, %v1459_v26  ;;  %3358 = vmatpush3.bf16.msra.mxu1 %v1752_v30 }
 0x3ed   : > { %3359 = vmatprep.subr.bf16.mxu1 %v1750_v54 }
 0x3ee   : > { %v1746_v10 = vpop.permute.xlu0 %1745 }
 0x3f0   : > { %3360 = vmatpush3.bf16.msra.mxu1 %v1750_v54 }
 0x3f1   : > { %3361 = vmatprep.subr.bf16.mxu1 %v1748_v41 }
 0x3f3   : > { %3348 = vmatmul.mubr.msk.bf16.gmra.mxu0 %vm553_vm0, %v1461_v27 }
 0x3f4   : > { %3362 = vmatpush3.bf16.msra.mxu1 %v1748_v41 }
 0x3f5   : > { %3363 = vmatprep.subr.bf16.mxu1 %v1746_v10 }
 0x3f8   : > { %3364 = vmatpush3.bf16.msra.mxu1 %v1746_v10 }
 0x3f9   : > { %3365 = vmatprep.subr.bf16.mxu1 %v1744_v38 }
 0x3fc   : > { %3366 = vmatpush3.bf16.msra.mxu1 %v1744_v38 }
 0x420   : > { %v4682_v19 = vpop.permute.xlu0 %1926 }
 0x421   : > { %3519 = vmatprep.subr.msk.bf16.mxu1 %vm553_vm0, %v4682_v19 }
 0x43d   : > { %v4678_v61 = vpop.f32.mrf.mxu0 }
 0x43e   : > { %5405 = vst [vmem:[#allocation24_spill] sm:$0xff] %v4678_v61 }
 0x43f   : > { %v4680_v32 = vpop.f32.mrf.mxu0 }
 0x440   : > { %5406 = vst [vmem:[#allocation25_spill] sm:$0xff] %v4680_v32 }
 0x441   : > { %v4686_v55 = vpop.f32.mrf.mxu0 }
 0x442   : > { %5407 = vst [vmem:[#allocation26_spill] sm:$0xff] %v4686_v55 }
 0x443   : > { %v4688_v40 = vpop.f32.mrf.mxu0 }
 0x444   : > { %5408 = vst [vmem:[#allocation27_spill] sm:$0xff] %v4688_v40 }
 0x478   : > { %v4690_v46 = vpop.f32.mrf.mxu0 }
 0x479   : > { %5409 = vst [vmem:[#allocation28_spill] sm:$0xff] %v4690_v46  ;;  %v3984_v46 = vld [vmem:[%s4140_s16] sm:$0xff]  }
 0x47a   : > { %v4692_v29 = vpop.f32.mrf.mxu0 }
 0x47b   : > { %5410 = vst [vmem:[#allocation29_spill] sm:$0xff] %v4692_v29  ;;  %v3992_v29 = vld [vmem:[%s4165_s20 + $0x38] sm:$0xff]  }
 0x47c   : > { %v4694_v57 = vpop.f32.mrf.mxu0 }
 0x47d   : > { %5411 = vst [vmem:[#allocation30_spill] sm:$0xff] %v4694_v57  ;;  %v3983_v57 = vld [vmem:[%s4165_s20] sm:$0xff]  }
 0x47e   : > { %v4696_v31 = vpop.f32.mrf.mxu0 }
 0x47f   : > { %5412 = vst [vmem:[#allocation31_spill] sm:$0xff] %v4696_v31  ;;  %v3987_v31 = vld [vmem:[%s4165_s20 + $0x20] sm:$0xff]  }
 0x488   : > { %v4698_v7 = vpop.f32.mrf.mxu0 }
 0x489   : > { %5413 = vst [vmem:[#allocation32_spill] sm:$0xff] %v4698_v7 }
 0x48a   : > { %v4700_v17 = vpop.f32.mrf.mxu0 }
 0x48b   : > { %5414 = vst [vmem:[#allocation33_spill] sm:$0xff] %v4700_v17 }
 0x48c   : > { %v4702_v18 = vpop.f32.mrf.mxu0 }
 0x48d   : > { %5415 = vst [vmem:[#allocation34_spill] sm:$0xff] %v4702_v18  ;;  %v4796_v18 = vpop.permute.xlu0 %1924 }
 0x48e   : > { %v4704_v26 = vpop.f32.mrf.mxu0 }
 0x48f   : > { %5416 = vst [vmem:[#allocation35_spill] sm:$0xff] %v4704_v26 }
 0x493   : > { %v4706_v27 = vpop.f32.mrf.mxu0 }
 0x494   : > { %5417 = vst [vmem:[#allocation36_spill] sm:$0xff] %v4706_v27 }
 0x495   : > { %v4708_v9 = vpop.f32.mrf.mxu0 }
 0x496   : > { %5418 = vst [vmem:[#allocation37_spill] sm:$0xff] %v4708_v9  ;;  %v3986_v9 = vld [vmem:[%s4165_s20 + $0x8] sm:$0xff]  }
 0x497   : > { %v4710_v5 = vpop.f32.mrf.mxu0 }
 0x498   : > { %5419 = vst [vmem:[#allocation38_spill] sm:$0xff] %v4710_v5 }
 0x499   : > { %v4712_v28 = vpop.f32.mrf.mxu0 }
 0x49a   : > { %5420 = vst [vmem:[#allocation39_spill] sm:$0xff] %v4712_v28  ;;  %v3985_v28 = vld [vmem:[%s4165_s20 + $0x10] sm:$0xff]  }
 0x49b   : > { %v4714_v30 = vpop.f32.mrf.mxu0 }
 0x49c   : > { %1627 = vmax.xlane.f32.xlu1 %v4714_v30 }
 0x49d   : > { %v4717_v54 = vpop.f32.mrf.mxu0 }
 0x49e   : > { %1623 = vmax.xlane.f32.xlu0 %v4717_v54 }
 0x49f   : > { %v4720_v41 = vpop.f32.mrf.mxu0 }
 0x4a0   : > { %1629 = vmax.xlane.f32.xlu1 %v4720_v41 }
 0x4a1   : > { %v4723_v10 = vpop.f32.mrf.mxu0 }
 0x4a3   : > { %v4725_v38 = vpop.f32.mrf.mxu0 }
 0x4a4   : > { %1625 = vmax.xlane.f32.xlu1 %v4723_v10  ;;  %1635 = vmax.xlane.f32.xlu0 %v4725_v38 }
 0x4a5   : > { %v4729_v12 = vpop.f32.mrf.mxu0 }
 0x4a7   : > { %v4731_v8 = vpop.f32.mrf.mxu0 }
 0x4a8   : > { %1631 = vmax.xlane.f32.xlu1 %v4729_v12 }
 0x4a9   : > { %v4734_v35 = vpop.f32.mrf.mxu0 }
 0x4aa   : > { %1633 = vmax.xlane.f32.xlu0 %v4734_v35 }
 0x4ab   : > { %v4738_v16 = vpop.f32.mrf.mxu0 }
 0x4ac   : > { %1637 = vmax.xlane.f32.xlu1 %v4731_v8 }
 0x4ad   : > { %v4741_v33 = vpop.f32.mrf.mxu0 }
 0x4af   : > { %v4744_v51 = vpop.f32.mrf.mxu0 }
 0x4b0   : > { %1643 = vmax.xlane.f32.xlu1 %v4738_v16 }
 0x4b1   : > { %v4747_v47 = vpop.f32.mrf.mxu0 }
 0x4b3   : > { %v4754_v42 = vpop.f32.mrf.mxu0 }
 0x4b4   : > { %1639 = vmax.xlane.f32.xlu1 %v4741_v33 }
 0x4b5   : > { %v4757_v5 = vpop.f32.mrf.mxu0 }
 0x4b7   : > { %v4760_v27 = vpop.f32.mrf.mxu0 }
 0x4b8   : > { %1645 = vmax.xlane.f32.xlu1 %v4744_v51 }
 0x4bc   : > { %1641 = vmax.xlane.f32.xlu1 %v4747_v47 }
 0x4c0   : > { %1916 = vrot.lane.b32.xlu0 %v3980_v49, %s4046_s29  ;;  %v4763_v49 = vpop.f32.mrf.mxu0 }
 0x4cd   : > { %1918 = vrot.lane.b32.xlu1 %v3981_v43, %s4046_s29  ;;  %v3982_v43 = vld [vmem:[%s4140_s16 + $0x8] sm:$0xff]  }
 0x4df   : > { %1651 = vmax.xlane.f32.xlu0 %v4754_v42 }
 0x4e3   : > { %1647 = vmax.xlane.f32.xlu0 %v4757_v5 }
 0x4e7   : > { %1653 = vmax.xlane.f32.xlu0 %v4760_v27 }
 0x4f1   : > { %1649 = vmax.xlane.f32.xlu1 %v4763_v49 }
 0x4fd   : > { %1914 = vrot.lane.b32.xlu0 %v3982_v43, %s4046_s29  ;;  %v3988_v43 = vld [vmem:[%s4165_s20 + $0x18] sm:$0xff]  }
 0x501   : > { %1896 = vrot.lane.b32.xlu0 %v3983_v57, %s4046_s29  ;;  %v3989_v57 = vld [vmem:[%s4165_s20 + $0x30] sm:$0xff]  }
 0x502   : > { %1912 = vrot.lane.b32.xlu1 %v3984_v46, %s4046_s29  ;;  %v3990_v46 = vld [vmem:[%s4165_s20 + $0x28] sm:$0xff]  }
 0x505   : > { %1900 = vrot.lane.b32.xlu0 %v3985_v28, %s4046_s29  ;;  %v3991_v28 = vld [vmem:[%s4254_s23 + $0x30] sm:$0xff]  }
 0x506   : > { %1898 = vrot.lane.b32.xlu1 %v3986_v9, %s4046_s29  ;;  %v3993_v9 = vld [vmem:[%s4254_s23 + $0x20] sm:$0xff]  }
 0x509   : > { %1904 = vrot.lane.b32.xlu0 %v3987_v31, %s4046_s29  ;;  %v3994_v31 = vld [vmem:[%s4254_s23 + $0x38] sm:$0xff]  }
 0x50a   : > { %1902 = vrot.lane.b32.xlu1 %v3988_v43, %s4046_s29  ;;  %v3995_v43 = vld [vmem:[%s4254_s23 + $0x10] sm:$0xff]  }
 0x50d   : > { %1908 = vrot.lane.b32.xlu0 %v3989_v57, %s4046_s29  ;;  %v3996_v57 = vld [vmem:[%s4254_s23 + $0x28] sm:$0xff]  }
 0x50e   : > { %1906 = vrot.lane.b32.xlu1 %v3990_v46, %s4046_s29  ;;  %v3997_v46 = vld [vmem:[%s4254_s23 + $0x18] sm:$0xff]  }
 0x511   : > { %2205 = vrot.lane.b32.xlu0 %v3991_v28, %s4046_s29  ;;  %v4800_v28 = vpop.permute.xlu1 %1922 }
 0x512   : > { %1910 = vrot.lane.b32.xlu1 %v3992_v29, %s4046_s29  ;;  %v4802_v29 = vpop.permute.xlu0 %1920 }
 0x515   : > { %2201 = vrot.lane.b32.xlu0 %v3993_v9, %s4046_s29 }
 0x516   : > { %2207 = vrot.lane.b32.xlu1 %v3994_v31, %s4046_s29 }
 0x519   : > { %2197 = vrot.lane.b32.xlu0 %v3995_v43, %s4046_s29 }
 0x51a   : > { %2203 = vrot.lane.b32.xlu1 %v3996_v57, %s4046_s29 }
 0x51e   : > { %2199 = vrot.lane.b32.xlu1 %v3997_v46, %s4046_s29 }
 0x525   : > { %v1628_v7 = vpop.xlane.xlu1 %1627 }
 0x526   : > { %v1657_v43 = vsub.f32 %v4714_v30, %v1628_v7 }
 0x527   : > { %v1624_v9 = vpop.xlane.xlu0 %1623 }
 0x528   : > { %v1655_v55 = vsub.f32 %v4717_v54, %v1624_v9  ;;  %v1675_v46 = vmul.f32 1.442695, %v1657_v43 }
 0x529   : > { %v1630_v31 = vpop.xlane.xlu1 %1629 }
 0x52a   : > { %v1658_v61 = vsub.f32 %v4720_v41, %v1630_v31  ;;  %v1671_v26 = vmul.f32 1.442695, %v1655_v55 }
 0x52c   : > { %v1677_v17 = vmul.f32 1.442695, %v1658_v61  ;;  %3783 = vpow2.f32 %v1671_v26 }
 0x52d   : > { %v1626_v57 = vpop.xlane.xlu1 %1625  ;;  %v1636_v40 = vpop.xlane.xlu0 %1635 }
 0x52e   : > { %v1656_v32 = vsub.f32 %v4723_v10, %v1626_v57  ;;  %v1661_v50 = vsub.f32 %v4725_v38, %v1636_v40  ;;  %3785 = vpow2.f32 %v1677_v17 }
 0x530   : > { %v1673_v14 = vmul.f32 1.442695, %v1656_v32  ;;  %v1683_v7 = vmul.f32 1.442695, %v1661_v50 }
 0x531   : > { %v1632_v58 = vpop.xlane.xlu1 %1631 }
 0x532   : > { %v1659_v54 = vsub.f32 %v4729_v12, %v1632_v58  ;;  %3787 = vpow2.f32 %v1673_v14 }
 0x533   : > { %v1634_v9 = vpop.xlane.xlu0 %1633  ;;  %3789 = vpow2.f32 %v1675_v46 }
 0x534   : > { %v1679_v41 = vmul.f32 1.442695, %v1659_v54  ;;  %v1660_v55 = vsub.f32 %v4734_v35, %v1634_v9 }
 0x535   : > { %v1638_v61 = vpop.xlane.xlu1 %1637 }
 0x536   : > { %v1681_v30 = vmul.f32 1.442695, %v1660_v55  ;;  %v1662_v10 = vsub.f32 %v4731_v8, %v1638_v61  ;;  %3791 = vpow2.f32 %v1679_v41 }
 0x538   : > { %3793 = vpow2.f32 %v1681_v30  ;;  %v1685_v32 = vmul.f32 1.442695, %v1662_v10  ;;  %v1971_v10 = vsel %vm553_vm0, %v4796_v18, 0 }
 0x539   : > { %3795 = vpow2.f32 %v1683_v7  ;;  %v1644_v40 = vpop.xlane.xlu1 %1643  ;;  %v4812_v26 = vpop.eup %3783 }
 0x53a   : > { %3797 = vpow2.f32 %v1685_v32  ;;  %v1665_v43 = vsub.f32 %v4738_v16, %v1644_v40 }
 0x53b   : > { %v4814_v58 = vpop.eup %3785 }
 0x53c   : > { %v1691_v61 = vmul.f32 1.442695, %v1665_v43 }
 0x53d   : > { %v1640_v17 = vpop.xlane.xlu1 %1639 }
 0x53e   : > { %v1663_v12 = vsub.f32 %v4741_v33, %v1640_v17  ;;  %v1974_v33 = vsel %vm553_vm0, %v4682_v19, 0 }
 0x53f   : > { %v4816_v14 = vpop.eup %3787 }
 0x540   : > { %v4819_v50 = vpop.eup %3789  ;;  %v1735_v8 = vpack.c.bf16 %v4816_v14, %v4812_v26  ;;  %v1687_v46 = vmul.f32 1.442695, %v1663_v12 }
 0x541   : > { %v1646_v35 = vpop.xlane.xlu1 %1645  ;;  %v1736_v31 = vpack.c.bf16 %v4814_v58, %v4819_v50 }
 0x542   : > { %v1666_v38 = vsub.f32 %v4744_v51, %v1646_v35  ;;  %3367 = vmatprep.mubr.bf16.mxu1 %v1735_v8  ;;  %3799 = vpow2.f32 %v1687_v46 }
 0x543   : > { %v4827_v57 = vpop.eup %3791  ;;  %3368 = vmatmul.mubr.bf16.vlgmr.msra.gmra.mxu1 %v1736_v31 }
 0x544   : > { %v1693_v9 = vmul.f32 1.442695, %v1666_v38  ;;  %3384 = vmatpush3.bf16.xpose.msra.mxu1 %v1974_v33  ;;  %v1917_v38 = vpop.permute.xlu0 %1916 }
 0x545   : > { %v4831_v54 = vpop.eup %3793  ;;  %v1642_v41 = vpop.xlane.xlu1 %1641  ;;  %3520 = vmatprep.subr.msk.bf16.mxu1 %vm553_vm0, %v4796_v18  ;;  %v1959_v46 = vsel %vm553_vm0, %v1917_v38, 0 }
 0x546   : > { %v4833_v55 = vpop.eup %3795  ;;  %v1664_v16 = vsub.f32 %v4747_v47, %v1642_v41  ;;  %v1737_v51 = vpack.c.bf16 %v4831_v54, %v4827_v57  ;;  %3801 = vpow2.f32 %v1693_v9  ;;  %v1968_v47 = vsel %vm553_vm0, %v4800_v28, 0 }
 0x547   : > { %v4840_v7 = vpop.eup %3797 }
 0x548   : > { %v1689_v19 = vmul.f32 1.442695, %v1664_v16  ;;  %3371 = vmatprep.mubr.bf16.mxu1 %v1737_v51  ;;  %v1738_v30 = vpack.c.bf16 %v4840_v7, %v4833_v55 }
 0x549   : > { %v1919_v8 = vpop.permute.xlu1 %1918 }
 0x54a   : > { %3803 = vpow2.f32 %v1689_v19  ;;  %v1962_v31 = vsel %vm553_vm0, %v1919_v8, 0 }
 0x54b   : > { %3805 = vpow2.f32 %v1691_v61  ;;  %3372 = vmatmul.mubr.bf16.gmra.mxu1 %v1738_v30 }
 0x54c   : > { %3386 = vmatpush3.bf16.xpose.msra.mxu1 %v1971_v10 }
 0x54d   : > { %3521 = vmatprep.subr.msk.bf16.mxu1 %vm553_vm0, %v4800_v28  ;;  %v1965_v28 = vsel %vm553_vm0, %v4802_v29, 0 }
 0x54f   : > { %v4850_v32 = vpop.eup %3799 }
 0x553   : > { %v4852_v40 = vpop.eup %3801 }
 0x554   : > { %3388 = vmatpush3.bf16.xpose.msra.mxu1 %v1968_v47 }
 0x555   : > { %3522 = vmatprep.subr.msk.bf16.mxu1 %vm553_vm0, %v4802_v29 }
 0x557   : > { %v4856_v17 = vpop.eup %3803 }
 0x558   : > { %v4858_v12 = vpop.eup %3805  ;;  %v1739_v18 = vpack.c.bf16 %v4856_v17, %v4850_v32 }
 0x559   : > { %v1740_v35 = vpack.c.bf16 %v4852_v40, %v4858_v12 }
 0x55a   : > { %3375 = vmatprep.mubr.bf16.mxu1 %v1739_v18 }
 0x55b   : > { %3376 = vmatmul.mubr.bf16.gmra.mxu1 %v1740_v35 }
 0x55c   : > { %3390 = vmatpush3.bf16.xpose.msra.mxu1 %v1965_v28 }
 0x55d   : > { %3523 = vmatprep.subr.msk.bf16.mxu1 %vm553_vm0, %v1919_v8 }
 0x564   : > { %3392 = vmatpush3.bf16.xpose.msra.mxu1 %v1962_v31 }
 0x565   : > { %3524 = vmatprep.subr.msk.bf16.mxu1 %vm553_vm0, %v1917_v38 }
 0x568   : > { %v1652_v43 = vpop.xlane.xlu0 %1651 }
 0x569   : > { %v1669_v61 = vsub.f32 %v4754_v42, %v1652_v43 }
 0x56b   : > { %v1699_v18 = vmul.f32 1.442695, %v1669_v61 }
 0x56c   : > { %v1648_v33 = vpop.xlane.xlu0 %1647  ;;  %3394 = vmatpush3.bf16.xpose.msra.mxu1 %v1959_v46 }
 0x56d   : > { %v1667_v16 = vsub.f32 %v4757_v5, %v1648_v33 }
 0x56f   : > { %v1695_v19 = vmul.f32 1.442695, %v1667_v16 }
 0x570   : > { %v1654_v9 = vpop.xlane.xlu0 %1653 }
 0x571   : > { %v1670_v51 = vsub.f32 %v4760_v27, %v1654_v9  ;;  %3807 = vpow2.f32 %v1695_v19 }
 0x573   : > { %v1701_v30 = vmul.f32 1.442695, %v1670_v51 }
 0x574   : > { %v1915_v41 = vpop.permute.xlu0 %1914 }
 0x575   : > { %3525 = vmatprep.subr.msk.bf16.mxu1 %vm553_vm0, %v1915_v41  ;;  %v1956_v29 = vsel %vm553_vm0, %v1915_v41, 0  ;;  %3809 = vpow2.f32 %v1701_v30 }
 0x576   : > { %3396 = vmatpush3.bf16.xpose.msra.mxu1 %v1956_v29 }
 0x578   : > { %v1897_v43 = vpop.permute.xlu0 %1896 }
 0x57a   : > { %v1650_v10 = vpop.xlane.xlu1 %1649 }
 0x57b   : > { %v1668_v47 = vsub.f32 %v4763_v49, %v1650_v10 }
 0x57c   : > { %v1901_v33 = vpop.permute.xlu0 %1900 }
 0x57d   : > { %v1697_v35 = vmul.f32 1.442695, %v1668_v47 }
 0x57e   : > { %v1913_v28 = vpop.permute.xlu1 %1912  ;;  %v4878_v27 = vpop.eup %3807 }
 0x57f   : > { %3811 = vpow2.f32 %v1697_v35  ;;  %3526 = vmatprep.subr.msk.bf16.mxu1 %vm553_vm0, %v1913_v28  ;;  %v1953_v5 = vsel %vm553_vm0, %v1913_v28, 0 }
 0x580   : > { %3813 = vpow2.f32 %v1699_v18  ;;  %3398 = vmatpush3.bf16.xpose.msra.mxu1 %v1953_v5  ;;  %v1905_v41 = vpop.permute.xlu0 %1904 }
 0x582   : > { %v4880_v42 = vpop.eup %3809  ;;  %v1899_v46 = vpop.permute.xlu1 %1898 }
 0x584   : > { %v1909_v29 = vpop.permute.xlu0 %1908 }
 0x586   : > { %v1903_v9 = vpop.permute.xlu1 %1902 }
 0x588   : > { %v2206_v19 = vpop.permute.xlu0 %2205 }
 0x58a   : > { %v1907_v16 = vpop.permute.xlu1 %1906 }
 0x58c   : > { %v4882_v8 = vpop.eup %3811  ;;  %v2202_v10 = vpop.permute.xlu0 %2201 }
 0x58d   : > { %v4884_v38 = vpop.eup %3813  ;;  %v1741_v49 = vpack.c.bf16 %v4882_v8, %v4878_v27 }
 0x58e   : > { %v1742_v31 = vpack.c.bf16 %v4880_v42, %v4884_v38  ;;  %v1911_v51 = vpop.permute.xlu1 %1910 }
 0x58f   : > { %3379 = vmatprep.mubr.bf16.mxu1 %v1741_v49 }
 0x590   : > { %3380 = vmatmul.mubr.bf16.gmra.mxu1 %v1742_v31  ;;  %v2198_v5 = vpop.permute.xlu0 %2197 }
 0x591   : > { %3399 = vmatprep.mubr.msk.bf16.mxu1 %vm553_vm0, %v1897_v43 }
 0x592   : > { %v2208_v61 = vpop.permute.xlu1 %2207 }
 0x593   : > { %3415 = vmatprep.subr.bf16.mxu0 %v2208_v61 }
 0x594   : > { %3416 = vmatpush3.bf16.msra.mxu0 %v2208_v61 }
 0x595   : > { %3417 = vmatprep.subr.bf16.mxu0 %v2206_v19 }
 0x596   : > { %v2204_v30 = vpop.permute.xlu1 %2203 }
 0x598   : > { %3400 = vmatmul.mubr.msk.bf16.vlgmr.msra.gmra.mxu1 %vm553_vm0, %v1899_v46  ;;  %3418 = vmatpush3.bf16.msra.mxu0 %v2206_v19 }
 0x599   : > { %3403 = vmatprep.mubr.msk.bf16.mxu1 %vm553_vm0, %v1901_v33  ;;  %3419 = vmatprep.subr.bf16.mxu0 %v2204_v30 }
 0x59a   : > { %v2200_v47 = vpop.permute.xlu1 %2199 }
 0x59c   : > { %3420 = vmatpush3.bf16.msra.mxu0 %v2204_v30 }
 0x59d   : > { %3421 = vmatprep.subr.bf16.mxu0 %v2202_v10 }
 0x5a0   : > { %3404 = vmatmul.mubr.msk.bf16.gmra.mxu1 %vm553_vm0, %v1903_v9  ;;  %3422 = vmatpush3.bf16.msra.mxu0 %v2202_v10 }
 0x5a1   : > { %3407 = vmatprep.mubr.msk.bf16.mxu1 %vm553_vm0, %v1905_v41  ;;  %3423 = vmatprep.subr.bf16.mxu0 %v2200_v47 }
 0x5a4   : > { %3424 = vmatpush3.bf16.msra.mxu0 %v2200_v47 }
 0x5a5   : > { %3425 = vmatprep.subr.bf16.mxu0 %v2198_v5 }
 0x5a8   : > { %3408 = vmatmul.mubr.msk.bf16.gmra.mxu1 %vm553_vm0, %v1907_v16  ;;  %3426 = vmatpush3.bf16.msra.mxu0 %v2198_v5 }
 0x5a9   : > { %3411 = vmatprep.mubr.msk.bf16.mxu1 %vm553_vm0, %v1909_v29 }
 0x5b0   : > { %3412 = vmatmul.mubr.msk.bf16.gmra.mxu1 %vm553_vm0, %v1911_v51 }
 0x603   : > { %v4898_v18 = vpop.f32.mrf.mxu1 }
 0x604   : > { %5421 = vst [vmem:[#allocation40_spill] sm:$0xff] %v4898_v18 }
 0x605   : > { %v4900_v35 = vpop.f32.mrf.mxu1 }
 0x607   : > { %v4902_v28 = vpop.f32.mrf.mxu1 }
 0x608   : > { %5422 = vst [vmem:[#allocation41_spill] sm:$0xff] %v4902_v28 }
 0x609   : > { %v4904_v49 = vpop.f32.mrf.mxu1 }
 0x60a   : > { %5423 = vst [vmem:[#allocation42_spill] sm:$0xff] %v4904_v49  ;;  %v3999_v49 = vld [vmem:[%s4254_s23] sm:$0xff]  }
 0x60b   : > { %v4906_v31 = vpop.f32.mrf.mxu1 }
 0x60c   : > { %5424 = vst [vmem:[#allocation43_spill] sm:$0xff] %v4906_v31 }
 0x60d   : > { %v4908_v43 = vpop.f32.mrf.mxu1 }
 0x60e   : > { %5425 = vst [vmem:[#allocation44_spill] sm:$0xff] %v4908_v43 }
 0x60f   : > { %v4910_v46 = vpop.f32.mrf.mxu1 }
 0x610   : > { %5426 = vst [vmem:[#allocation45_spill] sm:$0xff] %v4910_v46 }
 0x611   : > { %v4912_v33 = vpop.f32.mrf.mxu1 }
 0x612   : > { %5427 = vst [vmem:[#allocation46_spill] sm:$0xff] %v4912_v33 }
 0x61b   : > { %v4914_v9 = vpop.f32.mrf.mxu1 }
 0x61c   : > { %5428 = vst [vmem:[#allocation47_spill] sm:$0xff] %v4914_v9 }
 0x61d   : > { %v4916_v41 = vpop.f32.mrf.mxu1 }
 0x61e   : > { %5429 = vst [vmem:[#allocation48_spill] sm:$0xff] %v4916_v41  ;;  %v3998_v41 = vld [vmem:[%s4254_s23 + $0x8] sm:$0xff]  }
 0x61f   : > { %v4918_v16 = vpop.f32.mrf.mxu1 }
 0x620   : > { %5430 = vst [vmem:[#allocation49_spill] sm:$0xff] %v4918_v16 }
 0x621   : > { %v4920_v29 = vpop.f32.mrf.mxu1 }
 0x622   : > { %5431 = vst [vmem:[#allocation50_spill] sm:$0xff] %v4920_v29 }
 0x650   : > { %v4922_v51 = vpop.f32.mrf.mxu1 }
 0x651   : > { %5432 = vst [vmem:[#allocation51_spill] sm:$0xff] %v4922_v51 }
 0x652   : > { %v4924_v61 = vpop.f32.mrf.mxu1 }
 0x653   : > { %5433 = vst [vmem:[#allocation52_spill] sm:$0xff] %v4924_v61 }
 0x654   : > { %v4926_v19 = vpop.f32.mrf.mxu1 }
 0x655   : > { %5434 = vst [vmem:[#allocation53_spill] sm:$0xff] %v4926_v19 }
 0x656   : > { %v4928_v30 = vpop.f32.mrf.mxu1 }
 0x657   : > { %5435 = vst [vmem:[#allocation54_spill] sm:$0xff] %v4928_v30 }
 0x658   : > { %v4930_v10 = vpop.f32.mrf.mxu1 }
 0x659   : > { %2077 = vmax.xlane.f32.xlu0 %v4930_v10 }
 0x65a   : > { %v4933_v47 = vpop.f32.mrf.mxu1 }
 0x65c   : > { %v4935_v5 = vpop.f32.mrf.mxu1 }
 0x65d   : > { %2073 = vmax.xlane.f32.xlu0 %v4933_v47 }
 0x65e   : > { %v4938_v31 = vpop.f32.mrf.mxu1 }
 0x65f   : > { %2075 = vmax.xlane.f32.xlu1 %v4938_v31 }
 0x660   : > { %v4941_v51 = vpop.f32.mrf.mxu1 }
 0x661   : > { %2079 = vmax.xlane.f32.xlu0 %v4935_v5 }
 0x662   : > { %v4944_v19 = vpop.f32.mrf.mxu1 }
 0x663   : > { %2085 = vmax.xlane.f32.xlu1 %v4941_v51 }
 0x664   : > { %v4947_v46 = vpop.f32.mrf.mxu1 }
 0x665   : > { %2087 = vmax.xlane.f32.xlu0 %v4947_v46 }
 0x666   : > { %v4950_v30 = vpop.f32.mrf.mxu1 }
 0x667   : > { %2081 = vmax.xlane.f32.xlu1 %v4944_v19 }
 0x668   : > { %v4953_v61 = vpop.f32.mrf.mxu1 }
 0x669   : > { %2083 = vmax.xlane.f32.xlu0 %v4950_v30 }
 0x66a   : > { %v4956_v33 = vpop.f32.mrf.mxu1 }
 0x66b   : > { %2093 = vmax.xlane.f32.xlu1 %v4953_v61 }
 0x66c   : > { %v4959_v43 = vpop.f32.mrf.mxu1 }
 0x66d   : > { %2095 = vmax.xlane.f32.xlu0 %v4959_v43 }
 0x66e   : > { %v4962_v16 = vpop.f32.mrf.mxu1 }
 0x66f   : > { %2089 = vmax.xlane.f32.xlu1 %v4956_v33 }
 0x670   : > { %v4965_v9 = vpop.f32.mrf.mxu1 }
 0x671   : > { %2091 = vmax.xlane.f32.xlu0 %v4962_v16 }
 0x672   : > { %v4968_v28 = vpop.f32.mrf.mxu1 }
 0x673   : > { %2101 = vmax.xlane.f32.xlu1 %v4965_v9 }
 0x674   : > { %v4971_v18 = vpop.f32.mrf.mxu1 }
 0x675   : > { %2103 = vmax.xlane.f32.xlu0 %v4971_v18 }
 0x676   : > { %v4975_v29 = vpop.f32.mrf.mxu1 }
 0x677   : > { %2097 = vmax.xlane.f32.xlu1 %v4968_v28 }
 0x679   : > { %2099 = vmax.xlane.f32.xlu0 %v4975_v29 }
 0x688   : > { %2195 = vrot.lane.b32.xlu1 %v3998_v41, %s4046_s29 }
 0x68f   : > { %2193 = vrot.lane.b32.xlu0 %v3999_v49, %s4046_s29 }
 0x6ac   : > { %1253 = vadd.xlane.f32.xlu1 %v4584_v20 }
 0x6ae   : > { %1255 = vadd.xlane.f32.xlu0 %v4590_v24 }
 0x6b0   : > { %1269 = vadd.xlane.f32.xlu1 %v4634_v0 }
 0x6b2   : > { %1271 = vadd.xlane.f32.xlu0 %v4640_v39 }
 0x6b4   : > { %1257 = vadd.xlane.f32.xlu1 %v4592_v44 }
 0x6b6   : > { %1259 = vadd.xlane.f32.xlu0 %v4588_v22 }
 0x6b8   : > { %1273 = vadd.xlane.f32.xlu1 %v4644_v3 }
 0x6ba   : > { %1275 = vadd.xlane.f32.xlu0 %v4636_v1 }
 0x6bc   : > { %1703 = vadd.xlane.f32.xlu1 %v4812_v26 }
 0x6be   : > { %1705 = vadd.xlane.f32.xlu0 %v4816_v14 }
 0x6c0   : > { %1719 = vadd.xlane.f32.xlu1 %v4850_v32 }
 0x6c2   : > { %1721 = vadd.xlane.f32.xlu0 %v4856_v17 }
 0x6c4   : > { %1707 = vadd.xlane.f32.xlu1 %v4819_v50 }
 0x6c6   : > { %1709 = vadd.xlane.f32.xlu0 %v4814_v58 }
 0x6c8   : > { %1723 = vadd.xlane.f32.xlu1 %v4858_v12 }
 0x6ca   : > { %1725 = vadd.xlane.f32.xlu0 %v4852_v40 }
 0x6cc   : > { %1261 = vadd.xlane.f32.xlu1 %v4617_v48 }
 0x6ce   : > { %1263 = vadd.xlane.f32.xlu0 %v4622_v23 }
 0x6d0   : > { %1277 = vadd.xlane.f32.xlu1 %v4658_v13 }
 0x6d2   : > { %1279 = vadd.xlane.f32.xlu0 %v4656_v11 }
 0x6d4   : > { %1265 = vadd.xlane.f32.xlu1 %v4624_v15 }
 0x6d6   : > { %1267 = vadd.xlane.f32.xlu0 %v4619_v21 }
 0x6d8   : > { %1281 = vadd.xlane.f32.xlu1 %v4664_v37 }
 0x6da   : > { %1283 = vadd.xlane.f32.xlu0 %v4666_v25 }
 0x6dc   : > { %1711 = vadd.xlane.f32.xlu1 %v4827_v57 }
 0x6de   : > { %1713 = vadd.xlane.f32.xlu0 %v4831_v54 }
 0x6e0   : > { %1727 = vadd.xlane.f32.xlu1 %v4878_v27 }
 0x6e2   : > { %v2078_v20 = vpop.xlane.xlu0 %2077  ;;  %1729 = vadd.xlane.f32.xlu0 %v4882_v8 }
 0x6e3   : > { %v2107_v23 = vsub.f32 %v4930_v10, %v2078_v20 }
 0x6e4   : > { %1715 = vadd.xlane.f32.xlu1 %v4833_v55 }
 0x6e5   : > { %v2125_v11 = vmul.f32 1.442695, %v2107_v23 }
 0x6e6   : > { %v2074_v22 = vpop.xlane.xlu0 %2073  ;;  %1717 = vadd.xlane.f32.xlu0 %v4840_v7 }
 0x6e7   : > { %v2105_v24 = vsub.f32 %v4933_v47, %v2074_v22 }
 0x6e8   : > { %1731 = vadd.xlane.f32.xlu1 %v4884_v38  ;;  %v2076_v44 = vpop.xlane.xlu1 %2075 }
 0x6e9   : > { %v2121_v48 = vmul.f32 1.442695, %v2105_v24  ;;  %v2106_v21 = vsub.f32 %v4938_v31, %v2076_v44 }
 0x6ea   : > { %v2080_v15 = vpop.xlane.xlu0 %2079  ;;  %1733 = vadd.xlane.f32.xlu0 %v4880_v42 }
 0x6eb   : > { %v2123_v0 = vmul.f32 1.442695, %v2106_v21  ;;  %v2108_v1 = vsub.f32 %v4935_v5, %v2080_v15  ;;  %3815 = vpow2.f32 %v2121_v48 }
 0x6ec   : > { %779 = vadd.xlane.f32.xlu1 %v4386_v34  ;;  %v2086_v39 = vpop.xlane.xlu1 %2085 }
 0x6ed   : > { %3817 = vpow2.f32 %v2123_v0  ;;  %v2127_v3 = vmul.f32 1.442695, %v2108_v1  ;;  %v2111_v26 = vsub.f32 %v4941_v51, %v2086_v39 }
 0x6ee   : > { %v2088_v13 = vpop.xlane.xlu0 %2087  ;;  %781 = vadd.xlane.f32.xlu0 %v4390_v52 }
 0x6ef   : > { %3819 = vpow2.f32 %v2127_v3  ;;  %v2112_v37 = vsub.f32 %v4947_v46, %v2088_v13  ;;  %v2133_v57 = vmul.f32 1.442695, %v2111_v26  ;;  %v5437_v26 = vld [vmem:[#allocation7_spill] sm:$0xff] }
 0x6f0   : > { %795 = vadd.xlane.f32.xlu1 %v4434_v45  ;;  %v2082_v25 = vpop.xlane.xlu1 %2081  ;;  %3821 = vpow2.f32 %v2125_v11 }
 0x6f1   : > { %v2135_v34 = vmul.f32 1.442695, %v2112_v37  ;;  %v2109_v52 = vsub.f32 %v4944_v19, %v2082_v25  ;;  %v5436_v25 = vld [vmem:[#allocation5_spill] sm:$0xff] }
 0x6f2   : > { %v2084_v58 = vpop.xlane.xlu0 %2083  ;;  %797 = vadd.xlane.f32.xlu0 %v4432_v62 }
 0x6f3   : > { %v2110_v14 = vsub.f32 %v4950_v30, %v2084_v58  ;;  %3823 = vpow2.f32 %v2135_v34  ;;  %v2129_v40 = vmul.f32 1.442695, %v2109_v52  ;;  %v5438_v58 = vld [vmem:[#allocation6_spill] sm:$0xff] }
 0x6f4   : > { %783 = vadd.xlane.f32.xlu1 %v4392_v53  ;;  %v2094_v50 = vpop.xlane.xlu1 %2093  ;;  %3825 = vpow2.f32 %v2133_v57 }
 0x6f5   : > { %v2131_v45 = vmul.f32 1.442695, %v2110_v14  ;;  %v2115_v53 = vsub.f32 %v4953_v61, %v2094_v50 }
 0x6f6   : > { %v2096_v54 = vpop.xlane.xlu0 %2095  ;;  %785 = vadd.xlane.f32.xlu0 %v4388_v36 }
 0x6f7   : > { %v2116_v55 = vsub.f32 %v4959_v43, %v2096_v54  ;;  %3827 = vpow2.f32 %v2131_v45 }
 0x6f8   : > { %799 = vadd.xlane.f32.xlu1 %v4441_v2  ;;  %v2090_v7 = vpop.xlane.xlu1 %2089  ;;  %v3816_v62 = vpop.eup %3815  ;;  %3829 = vpow2.f32 %v2129_v40  ;;  %v2141_v2 = vmul.f32 1.442695, %v2115_v53 }
 0x6f9   : > { %v2143_v36 = vmul.f32 1.442695, %v2116_v55  ;;  %v2113_v38 = vsub.f32 %v4956_v33, %v2090_v7  ;;  %v5439_v55 = vld [vmem:[#allocation25_spill] sm:$0xff] }
 0x6fa   : > { %v3818_v32 = vpop.eup %3817  ;;  %v2092_v17 = vpop.xlane.xlu0 %2091  ;;  %801 = vadd.xlane.f32.xlu0 %v4443_v4 }
 0x6fb   : > { %v2185_v12 = vpack.c.bf16 %v3818_v32, %v3816_v62  ;;  %v2114_v42 = vsub.f32 %v4962_v16, %v2092_v17  ;;  %3831 = vpow2.f32 %v2143_v36  ;;  %v2137_v41 = vmul.f32 1.442695, %v2113_v38  ;;  %v5441_v36 = vld [vmem:[#allocation33_spill] sm:$0xff] }
 0x6fc   : > { %v3820_v27 = vpop.eup %3819  ;;  %787 = vadd.xlane.f32.xlu1 %v4401_v56  ;;  %v2102_v8 = vpop.xlane.xlu1 %2101  ;;  %3833 = vpow2.f32 %v2141_v2 }
 0x6fd   : > { %3431 = vmatprep.mubr.bf16.mxu0 %v2185_v12  ;;  %v3822_v31 = vpop.eup %3821  ;;  %v2139_v43 = vmul.f32 1.442695, %v2114_v42  ;;  %v2119_v16 = vsub.f32 %v4965_v9, %v2102_v8  ;;  %v5442_v8 = vld [vmem:[#allocation35_spill] sm:$0xff] }
 0x6fe   : > { %v2104_v49 = vpop.xlane.xlu0 %2103  ;;  %2159 = vadd.xlane.f32.xlu0 %v3820_v27  ;;  %v2186_v22 = vpack.c.bf16 %v3820_v27, %v3822_v31 }
 0x6ff   : > { %v2120_v4 = vsub.f32 %v4971_v18, %v2104_v49  ;;  %3835 = vpow2.f32 %v2139_v43  ;;  %v2149_v30 = vmul.f32 1.442695, %v2119_v16  ;;  %v5444_v16 = vld [vmem:[#allocation26_spill] sm:$0xff] }
 0x700   : > { %2157 = vadd.xlane.f32.xlu1 %v3822_v31  ;;  %v2098_v46 = vpop.xlane.xlu1 %2097  ;;  %v3824_v19 = vpop.eup %3823  ;;  %3837 = vpow2.f32 %v2137_v41 }
 0x701   : > { %v2151_v51 = vmul.f32 1.442695, %v2120_v4  ;;  %v2117_v18 = vsub.f32 %v4968_v28, %v2098_v46  ;;  %v3826_v47 = vpop.eup %3825  ;;  %v5443_v46 = vld [vmem:[#allocation24_spill] sm:$0xff] }
 0x702   : > { %v2100_v56 = vpop.xlane.xlu0 %2099  ;;  %2155 = vadd.xlane.f32.xlu0 %v3818_v32  ;;  %v2188_v23 = vpack.c.bf16 %v3824_v19, %v3826_v47 }
 0x703   : > { %v2118_v61 = vsub.f32 %v4975_v29, %v2100_v56  ;;  %3839 = vpow2.f32 %v2151_v51  ;;  %v2145_v20 = vmul.f32 1.442695, %v2117_v18  ;;  %v5445_v18 = vld [vmem:[#allocation32_spill] sm:$0xff] }
 0x704   : > { %2153 = vadd.xlane.f32.xlu1 %v3816_v62  ;;  %v2196_v33 = vpop.permute.xlu1 %2195  ;;  %v3828_v5 = vpop.eup %3827  ;;  %3841 = vpow2.f32 %v2149_v30  ;;  %v5440_v62 = vld [vmem:[#allocation27_spill] sm:$0xff] }
 0x705   : > { %3427 = vmatprep.subr.bf16.mxu0 %v2196_v33  ;;  %v2147_v9 = vmul.f32 1.442695, %v2118_v61  ;;  %v3830_v29 = vpop.eup %3829 }
 0x706   : > { %2167 = vadd.xlane.f32.xlu0 %v3824_v19  ;;  %3428 = vmatpush3.bf16.msra.mxu0 %v2196_v33  ;;  %v2194_v10 = vpop.permute.xlu0 %2193  ;;  %v2187_v24 = vpack.c.bf16 %v3828_v5, %v3830_v29 }
 0x707   : > { %3429 = vmatprep.subr.bf16.mxu0 %v2194_v10  ;;  %3843 = vpow2.f32 %v2147_v9 }
 0x708   : > { %2165 = vadd.xlane.f32.xlu1 %v3826_v47  ;;  %v3832_v44 = vpop.eup %3831  ;;  %3845 = vpow2.f32 %v2145_v20  ;;  %v5446_v47 = vld [vmem:[#allocation34_spill] sm:$0xff] }
 0x709   : > { %v3834_v28 = vpop.eup %3833 }
 0x70a   : > { %2163 = vadd.xlane.f32.xlu0 %v3828_v5  ;;  %3430 = vmatpush3.bf16.msra.mxu0 %v2194_v10  ;;  %v2190_v11 = vpack.c.bf16 %v3832_v44, %v3834_v28 }
 0x70c   : > { %2161 = vadd.xlane.f32.xlu1 %v3830_v29  ;;  %v3836_v48 = vpop.eup %3835 }
 0x70d   : > { %3432 = vmatmul.mubr.bf16.vlgmr.msra.gmra.mxu0 %v2186_v22  ;;  %v3838_v21 = vpop.eup %3837 }
 0x70e   : > { %2175 = vadd.xlane.f32.xlu0 %v3832_v44  ;;  %3435 = vmatprep.mubr.bf16.mxu0 %v2187_v24  ;;  %v2189_v15 = vpack.c.bf16 %v3836_v48, %v3838_v21 }
 0x710   : > { %2173 = vadd.xlane.f32.xlu1 %v3834_v28  ;;  %v3840_v0 = vpop.eup %3839  ;;  %v5447_v28 = vld [vmem:[#allocation42_spill] sm:$0xff] }
 0x711   : > { %v3842_v1 = vpop.eup %3841 }
 0x712   : > { %2171 = vadd.xlane.f32.xlu0 %v3836_v48  ;;  %v2192_v37 = vpack.c.bf16 %v3840_v0, %v3842_v1 }
 0x714   : > { %2169 = vadd.xlane.f32.xlu1 %v3838_v21  ;;  %v3844_v39 = vpop.eup %3843 }
 0x715   : > { %3436 = vmatmul.mubr.bf16.gmra.mxu0 %v2188_v23  ;;  %v3846_v3 = vpop.eup %3845 }
 0x716   : > { %2183 = vadd.xlane.f32.xlu0 %v3840_v0  ;;  %3439 = vmatprep.mubr.bf16.mxu0 %v2189_v15  ;;  %v2191_v13 = vpack.c.bf16 %v3844_v39, %v3846_v3 }
 0x718   : > { %2181 = vadd.xlane.f32.xlu1 %v3842_v1 }
 0x71a   : > { %2179 = vadd.xlane.f32.xlu0 %v3844_v39  ;;  %v5448_v39 = vld [vmem:[#allocation48_spill] sm:$0xff] }
 0x71c   : > { %2177 = vadd.xlane.f32.xlu1 %v3846_v3 }
 0x71d   : > { %3440 = vmatmul.mubr.bf16.gmra.mxu0 %v2190_v11  ;;  %v5449_v11 = vld [vmem:[#allocation50_spill] sm:$0xff] }
 0x71e   : > { %789 = vadd.xlane.f32.xlu0 %v4406_v59  ;;  %3443 = vmatprep.mubr.bf16.mxu0 %v2191_v13 }
 0x720   : > { %803 = vadd.xlane.f32.xlu1 %v4445_v6 }
 0x722   : > { %805 = vadd.xlane.f32.xlu0 %v4439_v63 }
 0x724   : > { %791 = vadd.xlane.f32.xlu1 %v4409_v60 }
 0x725   : > { %3444 = vmatmul.mubr.bf16.gmra.mxu0 %v2192_v37 }
 0x726   : > { %793 = vadd.xlane.f32.xlu0 %v5436_v25 }
 0x728   : > { %807 = vadd.xlane.f32.xlu1 %v5437_v26 }
 0x72a   : > { %809 = vadd.xlane.f32.xlu0 %v5438_v58 }
 0x735   : > { %v1254_v34 = vpop.xlane.xlu1 %1253 }
 0x736   : > { %3847 = vrcp.f32 %v1254_v34  ;;  %v5450_v34 = vld [vmem:[#allocation40_spill] sm:$0xff] }
 0x737   : > { %v1256_v14 = vpop.xlane.xlu0 %1255 }
 0x738   : > { %3849 = vrcp.f32 %v1256_v14 }
 0x739   : > { %v1270_v59 = vpop.xlane.xlu1 %1269 }
 0x73a   : > { %3851 = vrcp.f32 %v1270_v59  ;;  %v5451_v59 = vld [vmem:[#allocation41_spill] sm:$0xff] }
 0x73b   : > { %v1272_v50 = vpop.xlane.xlu0 %1271 }
 0x73c   : > { %3853 = vrcp.f32 %v1272_v50 }
 0x73d   : > { %v1258_v6 = vpop.xlane.xlu1 %1257 }
 0x73e   : > { %3855 = vrcp.f32 %v1258_v6 }
 0x73f   : > { %v1260_v63 = vpop.xlane.xlu0 %1259 }
 0x740   : > { %3857 = vrcp.f32 %v1260_v63 }
 0x741   : > { %v1274_v60 = vpop.xlane.xlu1 %1273 }
 0x742   : > { %3859 = vrcp.f32 %v1274_v60 }
 0x743   : > { %v3848_v57 = vpop.eup %3847  ;;  %v1276_v52 = vpop.xlane.xlu0 %1275 }
 0x744   : > { %3861 = vrcp.f32 %v1276_v52  ;;  %v1415_v7 = vmul.f32 %v3848_v57, %v5439_v55  ;;  %v5453_v55 = vld [vmem:[#allocation49_spill] sm:$0xff] }
 0x745   : > { %v3850_v54 = vpop.eup %3849  ;;  %v1704_v45 = vpop.xlane.xlu1 %1703 }
 0x746   : > { %3863 = vrcp.f32 %v1704_v45  ;;  %v1417_v32 = vmul.f32 %v3850_v54, %v5440_v62  ;;  %v5452_v54 = vld [vmem:[#allocation47_spill] sm:$0xff] }
 0x747   : > { %v3852_v40 = vpop.eup %3851  ;;  %v1706_v53 = vpop.xlane.xlu0 %1705 }
 0x748   : > { %3865 = vrcp.f32 %v1706_v53  ;;  %v3567_v17 = vpack.i.bf16 %v1417_v32, %v1415_v7  ;;  %v1431_v42 = vmul.f32 %v3852_v40, %v5441_v36  ;;  %v5455_v36 = vld [vmem:[#allocation31_spill] sm:$0xff] }
 0x749   : > { %v3854_v12 = vpop.eup %3853  ;;  %v1720_v27 = vpop.xlane.xlu1 %1719 }
 0x74a   : > { %3867 = vrcp.f32 %v1720_v27  ;;  %3568 = vrot.lane.b32.xlu1 %v3567_v17, %s4046_s29  ;;  %v1433_v2 = vmul.f32 %v3854_v12, %v5442_v8  ;;  %v5454_v12 = vld [vmem:[#allocation29_spill] sm:$0xff] }
 0x74b   : > { %v3856_v38 = vpop.eup %3855  ;;  %v1722_v49 = vpop.xlane.xlu0 %1721 }
 0x74c   : > { %3869 = vrcp.f32 %v1722_v49  ;;  %v3572_v31 = vpack.i.bf16 %v1433_v2, %v1431_v42  ;;  %v1419_v41 = vmul.f32 %v3856_v38, %v5443_v46  ;;  %v5457_v46 = vld [vmem:[#allocation39_spill] sm:$0xff] }
 0x74d   : > { %v3858_v43 = vpop.eup %3857  ;;  %v1708_v4 = vpop.xlane.xlu1 %1707 }
 0x74e   : > { %3871 = vrcp.f32 %v1708_v4  ;;  %3573 = vrot.lane.b32.xlu0 %v3572_v31, %s4046_s29  ;;  %v1421_v56 = vmul.f32 %v3858_v43, %v5444_v16  ;;  %v5456_v43 = vld [vmem:[#allocation37_spill] sm:$0xff] }
 0x74f   : > { %v3860_v51 = vpop.eup %3859  ;;  %v1710_v61 = vpop.xlane.xlu0 %1709 }
 0x750   : > { %3873 = vrcp.f32 %v1710_v61  ;;  %v3577_v33 = vpack.i.bf16 %v1421_v56, %v1419_v41  ;;  %v1435_v10 = vmul.f32 %v3860_v51, %v5445_v18 }
 0x751   : > { %v3862_v19 = vpop.eup %3861  ;;  %v1724_v30 = vpop.xlane.xlu1 %1723 }
 0x752   : > { %3875 = vrcp.f32 %v1724_v30  ;;  %3578 = vrot.lane.b32.xlu1 %v3577_v33, %s4046_s29  ;;  %v1437_v9 = vmul.f32 %v3862_v19, %v5446_v47  ;;  %v5458_v33 = vld [vmem:[#allocation28_spill] sm:$0xff]  ;;  %v5459_v30 = vld [vmem:[#allocation30_spill] sm:$0xff] }
 0x753   : > { %v3864_v5 = vpop.eup %3863  ;;  %v1726_v20 = vpop.xlane.xlu0 %1725 }
 0x754   : > { %3877 = vrcp.f32 %v1726_v20  ;;  %v3582_v29 = vpack.i.bf16 %v1437_v9, %v1435_v10  ;;  %v1865_v44 = vmul.f32 %v3864_v5, %v4900_v35  ;;  %v5460_v5 = vld [vmem:[#allocation36_spill] sm:$0xff] }
 0x755   : > { %v3866_v22 = vpop.eup %3865  ;;  %v1262_v24 = vpop.xlane.xlu1 %1261 }
 0x756   : > { %3879 = vrcp.f32 %v1262_v24  ;;  %3583 = vrot.lane.b32.xlu1 %v3582_v29, %s4046_s29  ;;  %v1867_v48 = vmul.f32 %v3866_v22, %v5447_v28  ;;  %v5461_v29 = vld [vmem:[#allocation38_spill] sm:$0xff] }
 0x757   : > { %v3868_v21 = vpop.eup %3867  ;;  %v1264_v23 = vpop.xlane.xlu0 %1263 }
 0x758   : > { %3881 = vrcp.f32 %v1264_v23  ;;  %v3587_v15 = vpack.i.bf16 %v1867_v48, %v1865_v44  ;;  %v1881_v3 = vmul.f32 %v3868_v21, %v5448_v39  ;;  %v5462_v48 = vld [vmem:[#allocation44_spill] sm:$0xff]  ;;  %v5463_v23 = vld [vmem:[#allocation46_spill] sm:$0xff] }
 0x759   : > { %v3870_v0 = vpop.eup %3869  ;;  %v1278_v1 = vpop.xlane.xlu1 %1277 }
 0x75a   : > { %3883 = vrcp.f32 %v1278_v1  ;;  %3588 = vrot.lane.b32.xlu0 %v3587_v15, %s4045_s27  ;;  %v1883_v13 = vmul.f32 %v3870_v0, %v5449_v11  ;;  %v3711_v0 = vld [vmem:[%s5377_s4 + $0x38] sm:$0xff]   ;;  %v3712_v1 = vld [vmem:[%s5377_s4 + $0x30] sm:$0xff]  }
 0x75b   : > { %v3872_v37 = vpop.eup %3871  ;;  %v1280_v25 = vpop.xlane.xlu0 %1279  ;;  %3447 = vmatprep.subr.bf16.mxu0 %v3711_v0  ;;  %3479 = vmatprep.subr.bf16.mxu1 %v3711_v0 }
 0x75c   : > { %3885 = vrcp.f32 %v1280_v25  ;;  %v3592_v26 = vpack.i.bf16 %v1883_v13, %v1881_v3  ;;  %v1869_v14 = vmul.f32 %v3872_v37, %v5450_v34  ;;  %3448 = vmatpush3.bf16.msra.mxu0 %v3711_v0  ;;  %3487 = vmatpush3.bf16.msra.mxu1 %v3711_v0  ;;  %v5464_v13 = vld [vmem:[#allocation52_spill] sm:$0xff]  ;;  %v5465_v25 = vld [vmem:[#allocation54_spill] sm:$0xff]  ;;  %v3714_v34 = vld [vmem:[%s5377_s4 + $0x20] sm:$0xff]  }
 0x75d   : > { %v3874_v35 = vpop.eup %3873  ;;  %v1266_v58 = vpop.xlane.xlu1 %1265  ;;  %3449 = vmatprep.subr.bf16.mxu0 %v3712_v1  ;;  %3480 = vmatprep.subr.bf16.mxu1 %v3712_v1  ;;  %v5467_v0 = vld [vmem:[#allocation43_spill] sm:$0xff] }
 0x75e   : > { %3887 = vrcp.f32 %v1266_v58  ;;  %3593 = vrot.lane.b32.xlu1 %v3592_v26, %s4045_s27  ;;  %v1871_v50 = vmul.f32 %v3874_v35, %v5451_v59  ;;  %v3713_v35 = vld [vmem:[%s5377_s4 + $0x28] sm:$0xff]   ;;  %v3716_v59 = vld [vmem:[%s5377_s4 + $0x10] sm:$0xff]  }
 0x75f   : > { %v3876_v6 = vpop.eup %3875  ;;  %v1268_v63 = vpop.xlane.xlu0 %1267 }
 0x760   : > { %3889 = vrcp.f32 %v1268_v63  ;;  %v3597_v60 = vpack.i.bf16 %v1871_v50, %v1869_v14  ;;  %v1885_v45 = vmul.f32 %v3876_v6, %v5452_v54  ;;  %3450 = vmatpush3.bf16.msra.mxu0 %v3712_v1  ;;  %3488 = vmatpush3.bf16.msra.mxu1 %v3712_v1  ;;  %v3715_v14 = vld [vmem:[%s5377_s4 + $0x18] sm:$0xff]  }
 0x761   : > { %v3878_v57 = vpop.eup %3877  ;;  %v1282_v52 = vpop.xlane.xlu1 %1281  ;;  %3451 = vmatprep.subr.bf16.mxu0 %v3713_v35  ;;  %3481 = vmatprep.subr.bf16.mxu1 %v3713_v35 }
 0x762   : > { %3891 = vrcp.f32 %v1282_v52  ;;  %3598 = vrot.lane.b32.xlu0 %v3597_v60, %s4045_s27  ;;  %v1887_v7 = vmul.f32 %v3878_v57, %v5453_v55 }
 0x763   : > { %v3880_v62 = vpop.eup %3879  ;;  %v1284_v32 = vpop.xlane.xlu0 %1283 }
 0x764   : > { %3893 = vrcp.f32 %v1284_v32  ;;  %v3602_v40 = vpack.i.bf16 %v1887_v7, %v1885_v45  ;;  %v1423_v27 = vmul.f32 %v3880_v62, %v5454_v12  ;;  %3452 = vmatpush3.bf16.msra.mxu0 %v3713_v35  ;;  %3489 = vmatpush3.bf16.msra.mxu1 %v3713_v35 }
 0x765   : > { %v3882_v53 = vpop.eup %3881  ;;  %v1712_v17 = vpop.xlane.xlu1 %1711  ;;  %3453 = vmatprep.subr.bf16.mxu0 %v3714_v34  ;;  %3482 = vmatprep.subr.bf16.mxu1 %v3714_v34 }
 0x766   : > { %3895 = vrcp.f32 %v1712_v17  ;;  %3603 = vrot.lane.b32.xlu1 %v3602_v40, %s4045_s27  ;;  %v1425_v42 = vmul.f32 %v3882_v53, %v5455_v36 }
 0x767   : > { %v3884_v8 = vpop.eup %3883  ;;  %v1714_v2 = vpop.xlane.xlu0 %1713 }
 0x768   : > { %3897 = vrcp.f32 %v1714_v2  ;;  %v3607_v38 = vpack.i.bf16 %v1425_v42, %v1423_v27  ;;  %v1439_v4 = vmul.f32 %v3884_v8, %v5456_v43  ;;  %3454 = vmatpush3.bf16.msra.mxu0 %v3714_v34  ;;  %3490 = vmatpush3.bf16.msra.mxu1 %v3714_v34 }
 0x769   : > { %v3886_v49 = vpop.eup %3885  ;;  %v1728_v31 = vpop.xlane.xlu1 %1727  ;;  %3455 = vmatprep.subr.bf16.mxu0 %v3715_v14  ;;  %3483 = vmatprep.subr.bf16.mxu1 %v3715_v14 }
 0x76a   : > { %3899 = vrcp.f32 %v1728_v31  ;;  %3608 = vrot.lane.b32.xlu0 %v3607_v38, %s4046_s29  ;;  %v1441_v41 = vmul.f32 %v3886_v49, %v5457_v46  ;;  %v3717_v31 = vld [vmem:[%s5377_s4 + $0x8] sm:$0xff]  }
 0x76b   : > { %v3888_v16 = vpop.eup %3887  ;;  %v1730_v56 = vpop.xlane.xlu0 %1729 }
 0x76c   : > { %3901 = vrcp.f32 %v1730_v56  ;;  %v3612_v51 = vpack.i.bf16 %v1441_v41, %v1439_v4  ;;  %v1427_v19 = vmul.f32 %v3888_v16, %v5458_v33  ;;  %3456 = vmatpush3.bf16.msra.mxu0 %v3715_v14  ;;  %3491 = vmatpush3.bf16.msra.mxu1 %v3715_v14  ;;  %v3718_v4 = vld [vmem:[%s5377_s4] sm:$0xff]  }
 0x76d   : > { %v3890_v61 = vpop.eup %3889  ;;  %v1716_v50 = vpop.xlane.xlu1 %1715  ;;  %3457 = vmatprep.subr.bf16.mxu0 %v3716_v59  ;;  %3484 = vmatprep.subr.bf16.mxu1 %v3716_v59 }
 0x76e   : > { %3613 = vrot.lane.b32.xlu1 %v3612_v51, %s4046_s29  ;;  %v1429_v18 = vmul.f32 %v3890_v61, %v5459_v30 }
 0x76f   : > { %v3892_v10 = vpop.eup %3891  ;;  %v1718_v6 = vpop.xlane.xlu0 %1717 }
 0x770   : > { %v3617_v47 = vpack.i.bf16 %v1429_v18, %v1427_v19  ;;  %v1443_v20 = vmul.f32 %v3892_v10, %v5460_v5  ;;  %3458 = vmatpush3.bf16.msra.mxu0 %v3716_v59  ;;  %3492 = vmatpush3.bf16.msra.mxu1 %v3716_v59 }
 0x771   : > { %v3894_v9 = vpop.eup %3893  ;;  %v5106_v63 = vpop.xlane.xlu1 %1731  ;;  %3459 = vmatprep.subr.bf16.mxu0 %v3717_v31  ;;  %3485 = vmatprep.subr.bf16.mxu1 %v3717_v31 }
 0x772   : > { %3618 = vrot.lane.b32.xlu0 %v3617_v47, %s4046_s29  ;;  %v1445_v22 = vmul.f32 %v3894_v9, %v5461_v29 }
 0x773   : > { %v3896_v24 = vpop.eup %3895  ;;  %v1734_v60 = vpop.xlane.xlu0 %1733 }
 0x774   : > { %v3622_v44 = vpack.i.bf16 %v1445_v22, %v1443_v20  ;;  %v1873_v21 = vmul.f32 %v3896_v24, %v5462_v48  ;;  %3460 = vmatpush3.bf16.msra.mxu0 %v3717_v31  ;;  %3493 = vmatpush3.bf16.msra.mxu1 %v3717_v31 }
 0x775   : > { %v3898_v28 = vpop.eup %3897  ;;  %v5108_v57 = vpop.xlane.xlu1 %779  ;;  %3461 = vmatprep.subr.bf16.mxu0 %v3718_v4  ;;  %3486 = vmatprep.subr.bf16.mxu1 %v3718_v4 }
 0x776   : > { %3623 = vrot.lane.b32.xlu1 %v3622_v44, %s4046_s29  ;;  %v1875_v15 = vmul.f32 %v3898_v28, %v5463_v23  ;;  %s2764_s29 = sld [smem:[#allocation2]] }
 0x777   : > { %v3900_v39 = vpop.eup %3899  ;;  %v5110_v52 = vpop.xlane.xlu0 %781 }
 0x778   : > { %v3627_v3 = vpack.i.bf16 %v1875_v15, %v1873_v21  ;;  %v1889_v37 = vmul.f32 %v3900_v39, %v5464_v13  ;;  %3462 = vmatpush3.bf16.msra.mxu0 %v3718_v4  ;;  %3494 = vmatpush3.bf16.msra.mxu1 %v3718_v4  ;;  %v5466_v21 = vld [vmem:[#allocation45_spill] sm:$0xff] }
 0x779   : > { %v3902_v11 = vpop.eup %3901  ;;  %v5112_v54 = vpop.xlane.xlu1 %795 }
 0x77a   : > { %3628 = vrot.lane.b32.xlu0 %v3627_v3, %s4045_s27  ;;  %v1891_v26 = vmul.f32 %v3902_v11, %v5465_v25 }
 0x77b   : > { %v5114_v45 = vpop.xlane.xlu0 %797 }
 0x77c   : > { %v3632_v58 = vpack.i.bf16 %v1891_v26, %v1889_v37 }
 0x77d   : > { %v5116_v55 = vpop.xlane.xlu1 %783 }
 0x77e   : > { %3633 = vrot.lane.b32.xlu1 %v3632_v58, %s4045_s27 }
 0x77f   : > { %v5118_v7 = vpop.xlane.xlu0 %785 }
 0x781   : > { %v5120_v62 = vpop.xlane.xlu1 %799 }
 0x783   : > { %v5122_v32 = vpop.xlane.xlu0 %801 }
 0x785   : > { %v5124_v40 = vpop.xlane.xlu1 %787 }
 0x787   : > { %v2160_v53 = vpop.xlane.xlu0 %2159 }
 0x788   : > { %3903 = vrcp.f32 %v2160_v53 }
 0x789   : > { %v2158_v17 = vpop.xlane.xlu1 %2157 }
 0x78a   : > { %3905 = vrcp.f32 %v2158_v17 }
 0x78b   : > { %v2156_v12 = vpop.xlane.xlu0 %2155 }
 0x78c   : > { %3907 = vrcp.f32 %v2156_v12 }
 0x78d   : > { %v2154_v27 = vpop.xlane.xlu1 %2153  ;;  %3909 = vrcp.f32 %v1718_v6 }
 0x78e   : > { %3911 = vrcp.f32 %v2154_v27 }
 0x78f   : > { %v2168_v36 = vpop.xlane.xlu0 %2167  ;;  %3913 = vrcp.f32 %v1716_v50 }
 0x791   : > { %v2166_v42 = vpop.xlane.xlu1 %2165 }
 0x793   : > { %v2164_v8 = vpop.xlane.xlu0 %2163 }
 0x794   : > { %3915 = vrcp.f32 %v2164_v8 }
 0x795   : > { %v2162_v2 = vpop.xlane.xlu1 %2161  ;;  %v3904_v16 = vpop.eup %3903 }
 0x796   : > { %3917 = vrcp.f32 %v2162_v2 }
 0x797   : > { %v2176_v38 = vpop.xlane.xlu0 %2175  ;;  %v3906_v56 = vpop.eup %3905  ;;  %3919 = vrcp.f32 %v2168_v36 }
 0x798   : > { %3921 = vrcp.f32 %v2166_v42 }
 0x799   : > { %v2174_v49 = vpop.xlane.xlu1 %2173  ;;  %v3908_v30 = vpop.eup %3907  ;;  %3923 = vrcp.f32 %v2176_v38 }
 0x79a   : > { %v3910_v10 = vpop.eup %3909  ;;  %3925 = vrcp.f32 %v2174_v49 }
 0x79b   : > { %v2172_v46 = vpop.xlane.xlu0 %2171  ;;  %v3912_v5 = vpop.eup %3911  ;;  %v1879_v23 = vmul.f32 %v3910_v10, %v5466_v21 }
 0x79c   : > { %3927 = vrcp.f32 %v2172_v46  ;;  %v3914_v24 = vpop.eup %3913 }
 0x79d   : > { %v2170_v51 = vpop.xlane.xlu1 %2169  ;;  %3929 = vrcp.f32 %v1734_v60  ;;  %v1877_v1 = vmul.f32 %v3914_v24, %v5467_v0 }
 0x79e   : > { %3931 = vrcp.f32 %v2170_v51 }
 0x79f   : > { %v2184_v20 = vpop.xlane.xlu0 %2183  ;;  %3933 = vrcp.f32 %v5106_v63  ;;  %v3647_v37 = vpack.i.bf16 %v1879_v23, %v1877_v1 }
 0x7a1   : > { %v2182_v44 = vpop.xlane.xlu1 %2181  ;;  %v3916_v39 = vpop.eup %3915 }
 0x7a3   : > { %v2180_v3 = vpop.xlane.xlu0 %2179  ;;  %v3918_v25 = vpop.eup %3917 }
 0x7a4   : > { %v3920_v58 = vpop.eup %3919  ;;  %3935 = vrcp.f32 %v2180_v3 }
 0x7a5   : > { %v2178_v26 = vpop.xlane.xlu1 %2177  ;;  %v3922_v14 = vpop.eup %3921 }
 0x7a6   : > { %v3924_v50 = vpop.eup %3923  ;;  %3937 = vrcp.f32 %v2178_v26 }
 0x7a7   : > { %v3926_v60 = vpop.eup %3925  ;;  %3939 = vrcp.f32 %v2184_v20  ;;  %v790_v23 = vpop.xlane.xlu0 %789 }
 0x7a8   : > { %3941 = vrcp.f32 %v2182_v44 }
 0x7a9   : > { %v3928_v36 = vpop.eup %3927  ;;  %v5149_v0 = vpop.xlane.xlu1 %803 }
 0x7aa   : > { %v3930_v8 = vpop.eup %3929 }
 0x7ab   : > { %v3932_v31 = vpop.eup %3931 }
 0x7ac   : > { %v3934_v46 = vpop.eup %3933 }
 0x7cd   : > { %v3433_v43 = vpop.f32.mrf.mxu0 }
 0x7ce   : > { %v2319_v33 = vmul.f32 %v3906_v56, %v3433_v43  ;;  %v5468_v56 = vld [vmem:[#allocation53_spill] sm:$0xff] }
 0x7cf   : > { %v2251_v41 = vpop.f32.mrf.mxu0  ;;  %v1895_v51 = vmul.f32 %v3930_v8, %v5468_v56  ;;  %v5472_v56 = vld [vmem:[#allocation9_spill] sm:$0xff] }
 0x7d0   : > { %v2315_v22 = vmul.f32 %v3912_v5, %v2251_v41 }
 0x7d1   : > { %v3434_v61 = vpop.f32.mrf.mxu0 }
 0x7d2   : > { %v2321_v19 = vmul.f32 %v3904_v16, %v3434_v61 }
 0x7d3   : > { %v2254_v18 = vpop.f32.mrf.mxu0 }
 0x7d4   : > { %v3637_v47 = vpack.i.bf16 %v2321_v19, %v2319_v33  ;;  %v2317_v9 = vmul.f32 %v3908_v30, %v2254_v18  ;;  %v5469_v33 = vld [vmem:[#allocation51_spill] sm:$0xff]  ;;  %v3936_v30 = vpop.eup %3935 }
 0x7d5   : > { %v3437_v29 = vpop.f32.mrf.mxu0  ;;  %v1893_v19 = vmul.f32 %v3934_v46, %v5469_v33 }
 0x7d6   : > { %3638 = vrot.lane.b32.xlu0 %v3637_v47, %s4044_s17  ;;  %v3642_v48 = vpack.i.bf16 %v2317_v9, %v2315_v22  ;;  %v2327_v17 = vmul.f32 %v3922_v14, %v3437_v29  ;;  %v3938_v9 = vpop.eup %3937 }
 0x7d7   : > { %v2267_v28 = vpop.f32.mrf.mxu0  ;;  %v3662_v47 = vpack.i.bf16 %v1895_v51, %v1893_v19  ;;  %v3940_v20 = vpop.eup %3939 }
 0x7d8   : > { %v2323_v34 = vmul.f32 %v3918_v25, %v2267_v28  ;;  %v3942_v24 = vpop.eup %3941 }
 0x7d9   : > { %v3438_v15 = vpop.f32.mrf.mxu0 }
 0x7da   : > { %3643 = vrot.lane.b32.xlu0 %v3642_v48, %s4044_s17  ;;  %v2329_v6 = vmul.f32 %v3920_v58, %v3438_v15  ;;  %v2765_v48 = vstv %s2764_s29  ;;  %v5147_v15 = vpop.xlane.xlu0 %805 }
 0x7db   : > { %v2270_v11 = vpop.f32.mrf.mxu0  ;;  %3943 = vtanh.f32 %v2765_v48 }
 0x7dc   : > { %v2325_v13 = vmul.f32 %v3916_v39, %v2270_v11  ;;  %v3677_v2 = vpack.i.bf16 %v2329_v6, %v2327_v17  ;;  %v792_v39 = vpop.xlane.xlu1 %791  ;;  %3945 = vrcp.f32 %v5116_v55 }
 0x7dd   : > { %v3441_v35 = vpop.f32.mrf.mxu0  ;;  %3947 = vrcp.f32 %v5118_v7 }
 0x7de   : > { %3648 = vrot.lane.b32.xlu0 %v3647_v37, %s4045_s27  ;;  %v3667_v63 = vpack.i.bf16 %v2325_v13, %v2323_v34  ;;  %v2335_v12 = vmul.f32 %v3926_v60, %v3441_v35  ;;  %v794_v1 = vpop.xlane.xlu0 %793  ;;  %3949 = vrcp.f32 %v5108_v57 }
 0x7df   : > { %v2283_v59 = vpop.f32.mrf.mxu0  ;;  %3951 = vrcp.f32 %v5110_v52 }
 0x7e0   : > { %v2331_v4 = vmul.f32 %v3932_v31, %v2283_v59  ;;  %v5155_v13 = vpop.xlane.xlu1 %807  ;;  %3953 = vrcp.f32 %v5112_v54 }
 0x7e1   : > { %v3442_v53 = vpop.f32.mrf.mxu0  ;;  %3955 = vrcp.f32 %v5114_v45 }
 0x7e2   : > { %v2337_v27 = vmul.f32 %v3924_v50, %v3442_v53  ;;  %3668 = vrot.lane.b32.xlu0 %v3667_v63, %s4044_s17  ;;  %v5151_v3 = vpop.xlane.xlu0 %809  ;;  %3957 = vrcp.f32 %v5120_v62  ;;  %v5471_v63 = vld [vmem:[#allocation10_spill] sm:$0xff] }
 0x7e3   : > { %v2286_v42 = vpop.f32.mrf.mxu0  ;;  %3959 = vrcp.f32 %v5122_v32 }
 0x7e4   : > { %v3652_v38 = vpack.i.bf16 %v2337_v27, %v2335_v12  ;;  %v2333_v49 = vmul.f32 %v3928_v36, %v2286_v42  ;;  %v3569_v25 = vpop.permute.xlu1 %3568  ;;  %3961 = vrcp.f32 %v5124_v40  ;;  %v5470_v40 = vld [vmem:[#allocation8_spill] sm:$0xff] }
 0x7e5   : > { %v3445_v43 = vpop.f32.mrf.mxu0  ;;  %3963 = vrcp.f32 %v790_v23  ;;  %v3571_v17 = vunpack.i.h.bf16 %v3569_v25  ;;  %v3570_v12 = vunpack.i.l.bf16 %v3569_v25 }
 0x7e6   : > { %3678 = vrot.lane.b32.xlu0 %v3677_v2, %s4044_s17  ;;  %3653 = vrot.lane.b32.xlu1 %v3652_v38, %s4044_s17  ;;  %v3657_v16 = vpack.i.bf16 %v2333_v49, %v2331_v4  ;;  %v2343_v44 = vmul.f32 %v3942_v24, %v3445_v43  ;;  %v5153_v11 = vpop.permute.xlu0 %3573  ;;  %3965 = vrcp.f32 %v792_v39 }
 0x7e7   : > { %v2299_v41 = vpop.f32.mrf.mxu0  ;;  %3967 = vrcp.f32 %v794_v1  ;;  %v5476_v1 = vld [vmem:[#allocation16_spill] sm:$0xff] }
 0x7e8   : > { %v2339_v5 = vmul.f32 %v3938_v9, %v2299_v41  ;;  %v3944_v21 = vpop.eup %3943  ;;  %v3579_v35 = vpop.permute.xlu1 %3578  ;;  %v5475_v9 = vld [vmem:[#allocation17_spill] sm:$0xff]  ;;  %3969 = vrcp.f32 %v5149_v0 }
 0x7e9   : > { %v3446_v61 = vpop.f32.mrf.mxu0  ;;  %3527 = vpush %v3944_v21  ;;  %v3946_v57 = vpop.eup %3945  ;;  %v3581_v34 = vunpack.i.h.bf16 %v3579_v35  ;;  %v3580_v14 = vunpack.i.l.bf16 %v3579_v35  ;;  %3971 = vrcp.f32 %v5147_v15  ;;  %v5478_v0 = vld [vmem:[#allocation13_spill] sm:$0xff] }
 0x7ea   : > { %3658 = vrot.lane.b32.xlu1 %v3657_v16, %s4044_s17  ;;  %v2345_v29 = vmul.f32 %v3940_v20, %v3446_v61  ;;  %v5157_v37 = vpop.permute.xlu0 %3588  ;;  %v3948_v52 = vpop.eup %3947  ;;  %v969_v6 = vmul.f32 %v3946_v57, %v5470_v40  ;;  %v5473_v61 = vld [vmem:[#allocation11_spill] sm:$0xff]  ;;  %3973 = vrcp.f32 %v5155_v13 }
 0x7eb   : > { %v2302_v18 = vpop.f32.mrf.mxu0  ;;  %v3950_v62 = vpop.eup %3949  ;;  %v971_v60 = vmul.f32 %v3948_v52, %v5471_v63  ;;  %v3591_v43 = vunpack.i.h.bf16 %v5157_v37  ;;  %v3590_v4 = vunpack.i.l.bf16 %v5157_v37  ;;  %3975 = vrcp.f32 %v5151_v3  ;;  %v5479_v40 = vld [vmem:[#allocation15_spill] sm:$0xff] }
 0x7ec   : > { %v2341_v10 = vmul.f32 %v3936_v30, %v2302_v18  ;;  %v3682_v28 = vpack.i.bf16 %v2345_v29, %v2343_v44  ;;  %v5170_v55 = vpop.permute.xlu1 %3583  ;;  %v3952_v50 = vpop.eup %3951  ;;  %v2540_v2 = vsel %vm553_vm0, %v969_v6, %v3580_v14  ;;  %v965_v51 = vmul.f32 %v3950_v62, %v5472_v56 }
 0x7ed   : > { %v3954_v53 = vpop.eup %3953  ;;  %v2541_v8 = vsel %vm553_vm0, %v971_v60, %v3581_v34  ;;  %v967_v33 = vmul.f32 %v3952_v50, %v5473_v61  ;;  %v3586_v35 = vunpack.i.h.bf16 %v5170_v55  ;;  %v5477_v34 = vld [vmem:[#allocation18_spill] sm:$0xff] }
 0x7ee   : > { %3663 = vrot.lane.b32.xlu1 %v3662_v47, %s4045_s27  ;;  %v3672_v22 = vpack.i.bf16 %v2341_v10, %v2339_v5  ;;  %v3599_v26 = vpop.permute.xlu0 %3598  ;;  %v3956_v42 = vpop.eup %3955  ;;  %v5474_v10 = vld [vmem:[#allocation19_spill] sm:$0xff]  ;;  %v5196_v5 = vmul.f32 %v3954_v53, %v5475_v9  ;;  %v5480_v60 = vld [vmem:[#allocation14_spill] sm:$0xff] }
 0x7ef   : > { %v3601_v59 = vunpack.i.h.bf16 %v3599_v26  ;;  %v3600_v32 = vunpack.i.l.bf16 %v3599_v26  ;;  %v3958_v31 = vpop.eup %3957  ;;  %v5193_v47 = vmul.f32 %v3956_v42, %v5474_v10  ;;  %v2539_v44 = vsel %vm553_vm0, %v967_v33, %v3571_v17  ;;  %v5481_v17 = vld [vmem:[#allocation12_spill] sm:$0xff] }
 0x7f0   : > { %v5174_v54 = vpop.permute.xlu1 %3593  ;;  %v3960_v16 = vpop.eup %3959  ;;  %v985_v39 = vmul.f32 %v3958_v31, %v5476_v1  ;;  %v2556_v25 = vsel %vm2554_vm1, %v2539_v44, %v3591_v43  ;;  %v3576_v42 = vunpack.i.h.bf16 %v5153_v11 }
 0x7f1   : > { %v2557_v46 = vsel %vm2554_vm1, %v2540_v2, %v3600_v32  ;;  %v2558_v41 = vsel %vm2554_vm1, %v2541_v8, %v3601_v59  ;;  %v3962_v18 = vpop.eup %3961  ;;  %v987_v14 = vmul.f32 %v3960_v16, %v5477_v34  ;;  %v3575_v8 = vunpack.i.l.bf16 %v5153_v11 }
 0x7f2   : > { %3673 = vrot.lane.b32.xlu1 %v3672_v22, %s4044_s17  ;;  %v5165_v58 = vpop.permute.xlu0 %3608  ;;  %v3964_v24 = vpop.eup %3963  ;;  %v973_v62 = vmul.f32 %v3962_v18, %v5478_v0  ;;  %v3585_v2 = vunpack.i.l.bf16 %v5170_v55  ;;  %v3596_v61 = vunpack.i.h.bf16 %v5174_v54  ;;  %v2547_v0 = vsel %vm553_vm0, %v5193_v47, %v3576_v42 }
 0x7f3   : > { %v3966_v23 = vpop.eup %3965  ;;  %v975_v15 = vmul.f32 %v3964_v24, %v5479_v40  ;;  %v3611_v6 = vunpack.i.h.bf16 %v5165_v58  ;;  %v3610_v63 = vunpack.i.l.bf16 %v5165_v58  ;;  %v2549_v3 = vsel %vm553_vm0, %v987_v14, %v3586_v35 }
 0x7f4   : > { %v5180_v27 = vpop.permute.xlu1 %3603  ;;  %v3968_v26 = vpop.eup %3967  ;;  %v977_v13 = vmul.f32 %v3966_v23, %v5481_v17 }
 0x7f5   : > { %v979_v53 = vmul.f32 %v3968_v26, %v5480_v60  ;;  %v3606_v58 = vunpack.i.h.bf16 %v5180_v27  ;;  %v2542_v11 = vsel %vm553_vm0, %v973_v62, %v3610_v63  ;;  %v2546_v62 = vsel %vm553_vm0, %v5196_v5, %v3575_v8 }
 0x7f6   : > { %3683 = vrot.lane.b32.xlu1 %v3682_v28, %s4044_s17  ;;  %v5172_v7 = vpop.permute.xlu0 %3618  ;;  %v2538_v28 = vsel %vm553_vm0, %v965_v51, %v3570_v12  ;;  %s3042_s17 = sshll.u32 %s5491_s24, 7 }
 0x7f7   : > { %v2555_v37 = vsel %vm2554_vm1, %v2538_v28, %v3590_v4  ;;  %v3620_v31 = vunpack.i.l.bf16 %v5172_v7  ;;  %v2543_v4 = vsel %vm553_vm0, %v975_v15, %v3611_v6  ;;  %v2564_v15 = vsel %vm2554_vm1, %v2547_v0, %v3596_v61  ;;  %s5291_s11 = scalar_lea.vmem %s5373_s0, %s3042_s17  ;;  %s5302_s13 = scalar_lea.vmem %s5380_s7, %s3042_s17 }
 0x7f8   : > { %v5198_v20 = vpop.permute.xlu1 %3613 }
 0x7f9   : > { %v2544_v18 = vsel %vm553_vm0, %v977_v13, %v3620_v31  ;;  %v3615_v17 = vunpack.i.l.bf16 %v5198_v20 }
 0x7fa   : > { %v5176_v45 = vpop.permute.xlu0 %3628 }
 0x7fb   : > { %v3631_v12 = vunpack.i.h.bf16 %v5176_v45 }
 0x7fc   : > { %v5213_v59 = vpop.permute.xlu1 %3623 }
 0x7fd   : > { %v2560_v55 = vsel %vm2554_vm1, %v2543_v4, %v3631_v12  ;;  %v5482_v12 = vld [vmem:[#allocation21_spill] sm:$0xff] }
 0x800   : > { %v5231_v43 = vpop.permute.xlu1 %3633 }
 0x801   : > { %v3636_v8 = vunpack.i.h.bf16 %v5231_v43 }
 0x81a   : > { %s3528_s27 = spop %3527 }
 0x848   : > { %v3639_v36 = vpop.permute.xlu0 %3638 }
 0x849   : > { %v3641_v38 = vunpack.i.h.bf16 %v3639_v36  ;;  %v3640_v49 = vunpack.i.l.bf16 %v3639_v36  ;;  %v3630_v36 = vunpack.i.l.bf16 %v5176_v45 }
 0x84b   : > { %v2574_v19 = vsel %vm2571_vm2, %v2557_v46, %v3640_v49  ;;  %v2575_v30 = vsel %vm2571_vm2, %v2558_v41, %v3641_v38  ;;  %v3605_v38 = vunpack.i.l.bf16 %v5180_v27  ;;  %v3621_v49 = vunpack.i.h.bf16 %v5172_v7 }
 0x84c   : > { %v2589_v29 = vpack.c.bf16 %v2575_v30, %v2574_v19  ;;  %v3644_v22 = vpop.permute.xlu0 %3643  ;;  %v2559_v16 = vsel %vm2554_vm1, %v2542_v11, %v3630_v36  ;;  %v2548_v27 = vsel %vm553_vm0, %v985_v39, %v3585_v2  ;;  %v3595_v19 = vunpack.i.l.bf16 %v5174_v54  ;;  %v3970_v54 = vpop.eup %3969  ;;  %v5483_v36 = vld [vmem:[#allocation23_spill] sm:$0xff] }
 0x84d   : > { %v3646_v48 = vunpack.i.h.bf16 %v3644_v22  ;;  %v3645_v21 = vunpack.i.l.bf16 %v3644_v22  ;;  %v2545_v30 = vsel %vm553_vm0, %v979_v53, %v3621_v49  ;;  %v3972_v35 = vpop.eup %3971  ;;  %v3616_v53 = vunpack.i.h.bf16 %v5198_v20 }
 0x84e   : > { %v3974_v14 = vpop.eup %3973  ;;  %v2563_v6 = vsel %vm2554_vm1, %v2546_v62, %v3595_v19  ;;  %v989_v5 = vmul.f32 %v3970_v54, %v5482_v12  ;;  %v991_v42 = vmul.f32 %v3972_v35, %v5483_v36  ;;  %v3626_v49 = vunpack.i.h.bf16 %v5213_v59  ;;  %v410_v62 = vld [vmem:[%s5291_s11 + $0x8] sm:$0xff] }
 0x84f   : > { %v2572_v57 = vsel %vm2571_vm2, %v2555_v37, %v3645_v21  ;;  %v2573_v52 = vsel %vm2571_vm2, %v2556_v25, %v3646_v48  ;;  %v2565_v48 = vsel %vm2554_vm1, %v2548_v27, %v3605_v38  ;;  %v2566_v21 = vsel %vm2554_vm1, %v2549_v3, %v3606_v58  ;;  %v3976_v40 = vpop.eup %3975 }
 0x850   : > { %v3649_v32 = vpop.permute.xlu0 %3648  ;;  %v2588_v50 = vpack.c.bf16 %v2573_v52, %v2572_v57  ;;  %v3635_v3 = vunpack.i.l.bf16 %v5231_v43  ;;  %v2551_v2 = vsel %vm553_vm0, %v991_v42, %v3616_v53  ;;  %v2550_v58 = vsel %vm553_vm0, %v989_v5, %v3615_v17  ;;  %v5484_v43 = vld [vmem:[#allocation20_spill] sm:$0xff] }
 0x851   : > { %v3651_v56 = vunpack.i.h.bf16 %v3649_v32  ;;  %v3650_v51 = vunpack.i.l.bf16 %v3649_v32  ;;  %v3625_v20 = vunpack.i.l.bf16 %v5213_v59  ;;  %v2568_v11 = vsel %vm2554_vm1, %v2551_v2, %v3636_v8  ;;  %v416_v8 = vld [vmem:[%s5291_s11 + $0x38] sm:$0xff] }
 0x852   : > { %3463 = vmatprep.mubr.bf16.mxu0 %v2588_v50  ;;  %v2567_v4 = vsel %vm2554_vm1, %v2550_v58, %v3635_v3 }
 0x853   : > { %3464 = vmatmul.mubr.bf16.vlgmr.msra.gmra.mxu0 %v2589_v29  ;;  %v2562_v23 = vsel %vm2554_vm1, %v2545_v30, %v3651_v56  ;;  %v2561_v1 = vsel %vm2554_vm1, %v2544_v18, %v3650_v51 }
 0x854   : > { %v3669_v45 = vpop.permute.xlu0 %3668 }
 0x855   : > { %v3671_v46 = vunpack.i.h.bf16 %v3669_v45  ;;  %v3670_v41 = vunpack.i.l.bf16 %v3669_v45 }
 0x857   : > { %v2576_v7 = vsel %vm2571_vm2, %v2559_v16, %v3670_v41  ;;  %v2577_v33 = vsel %vm2571_vm2, %v2560_v55, %v3671_v46  ;;  %v993_v55 = vmul.f32 %v3974_v14, %v5484_v43  ;;  %v5485_v16 = vld [vmem:[#allocation22_spill] sm:$0xff]  ;;  %v417_v43 = vld [vmem:[%s5291_s11 + $0x40] sm:$0xff] }
 0x858   : > { %v3679_v10 = vpop.permute.xlu0 %3678  ;;  %v3654_v9 = vpop.permute.xlu1 %3653  ;;  %v2590_v29 = vpack.c.bf16 %v2577_v33, %v2576_v7  ;;  %v995_v56 = vmul.f32 %v3976_v40, %v5485_v16 }
 0x859   : > { %v3681_v22 = vunpack.i.h.bf16 %v3679_v10  ;;  %v3680_v24 = vunpack.i.l.bf16 %v3679_v10  ;;  %v3656_v44 = vunpack.i.h.bf16 %v3654_v9  ;;  %v3655_v28 = vunpack.i.l.bf16 %v3654_v9 }
 0x85a   : > { %3467 = vmatprep.mubr.bf16.mxu0 %v2590_v29  ;;  %v2553_v59 = vsel %vm553_vm0, %v995_v56, %v3626_v49  ;;  %v2552_v33 = vsel %vm553_vm0, %v993_v55, %v3625_v20  ;;  %v419_v49 = vld [vmem:[%s5291_s11 + $0x50] sm:$0xff] }
 0x85b   : > { %v2582_v39 = vsel %vm2571_vm2, %v2565_v48, %v3655_v28  ;;  %v2583_v37 = vsel %vm2571_vm2, %v2566_v21, %v3656_v44  ;;  %v2578_v25 = vsel %vm2571_vm2, %v2561_v1, %v3680_v24  ;;  %v2579_v26 = vsel %vm2571_vm2, %v2562_v23, %v3681_v22  ;;  %v5286_v24 = vld [vmem:[%s5378_s5] ss:$0 sm:$0xff]  ;;  %v411_v21 = vld [vmem:[%s5291_s11 + $0x10] sm:$0xff] }
 0x85c   : > { %v2593_v57 = vpack.c.bf16 %v2583_v37, %v2582_v39  ;;  %v3659_v52 = vpop.permute.xlu1 %3658  ;;  %v2591_v34 = vpack.c.bf16 %v2579_v26, %v2578_v25  ;;  %v5293_v28 = vstv %s3528_s27  ;;  %v409_v39 = vld [vmem:[%s5291_s11] sm:$0xff] }
 0x85d   : > { %v3661_v32 = vunpack.i.h.bf16 %v3659_v52  ;;  %v3660_v50 = vunpack.i.l.bf16 %v3659_v52 }
 0x85e   : > { %3468 = vmatmul.mubr.bf16.gmra.mxu0 %v2591_v34 }
 0x85f   : > { %v2580_v63 = vsel %vm2571_vm2, %v2563_v6, %v3660_v50  ;;  %v2581_v60 = vsel %vm2571_vm2, %v2564_v15, %v3661_v32 }
 0x860   : > { %v3664_v47 = vpop.permute.xlu1 %3663  ;;  %v2592_v13 = vpack.c.bf16 %v2581_v60, %v2580_v63  ;;  %v415_v63 = vld [vmem:[%s5291_s11 + $0x30] sm:$0xff] }
 0x861   : > { %v3666_v46 = vunpack.i.h.bf16 %v3664_v47  ;;  %v3665_v41 = vunpack.i.l.bf16 %v3664_v47  ;;  %v413_v47 = vld [vmem:[%s5291_s11 + $0x20] sm:$0xff] }
 0x862   : > { %3471 = vmatprep.mubr.bf16.mxu1 %v2592_v13 }
 0x863   : > { %3472 = vmatmul.mubr.bf16.vlgmr.msra.gmra.mxu1 %v2593_v57  ;;  %v2569_v18 = vsel %vm2554_vm1, %v2552_v33, %v3665_v41  ;;  %v2570_v10 = vsel %vm2554_vm1, %v2553_v59, %v3666_v46  ;;  %v412_v57 = vld [vmem:[%s5291_s11 + $0x18] sm:$0xff] }
 0x864   : > { %v3674_v38 = vpop.permute.xlu1 %3673 }
 0x865   : > { %v3676_v31 = vunpack.i.h.bf16 %v3674_v38  ;;  %v3675_v45 = vunpack.i.l.bf16 %v3674_v38 }
 0x867   : > { %v2584_v51 = vsel %vm2571_vm2, %v2567_v4, %v3675_v45  ;;  %v2585_v27 = vsel %vm2571_vm2, %v2568_v11, %v3676_v31  ;;  %v414_v4 = vld [vmem:[%s5291_s11 + $0x28] sm:$0xff] }
 0x868   : > { %v3684_v61 = vpop.permute.xlu1 %3683  ;;  %v2594_v7 = vpack.c.bf16 %v2585_v27, %v2584_v51 }
 0x869   : > { %v3686_v19 = vunpack.i.h.bf16 %v3684_v61  ;;  %v3685_v30 = vunpack.i.l.bf16 %v3684_v61  ;;  %v420_v61 = vld [vmem:[%s5291_s11 + $0x58] sm:$0xff] }
 0x86a   : > { %3475 = vmatprep.mubr.bf16.mxu1 %v2594_v7 }
 0x86b   : > { %v2586_v9 = vsel %vm2571_vm2, %v2569_v18, %v3685_v30  ;;  %v2587_v29 = vsel %vm2571_vm2, %v2570_v10, %v3686_v19  ;;  %v418_v30 = vld [vmem:[%s5291_s11 + $0x48] sm:$0xff] }
 0x86c   : > { %v2595_v22 = vpack.c.bf16 %v2587_v29, %v2586_v9 }
 0x86e   : > { %3476 = vmatmul.mubr.bf16.gmra.mxu1 %v2595_v22 }
 0x913   : > { %v3465_v44 = vpop.f32.mrf.mxu0 }
 0x914   : > { %v2710_v48 = vadd.f32 %v3465_v44, %v5286_v24  ;;  %v423_v44 = vld [vmem:[%s5291_s11 + $0x70] sm:$0xff] }
 0x915   : > { %v2701_v23 = vpop.f32.mrf.mxu0 }
 0x916   : > { %v2771_v1 = vmul.f32 %v5293_v28, %v2710_v48  ;;  %v2702_v54 = vadd.f32 %v5286_v24, %v2701_v23 }
 0x917   : > { %v3466_v37 = vpop.f32.mrf.mxu0 }
 0x918   : > { %v2787_v25 = vadd.f32 %v2771_v1, %v411_v21  ;;  %v2769_v26 = vmul.f32 %v5293_v28, %v2702_v54  ;;  %v2713_v35 = vadd.f32 %v3466_v37, %v5286_v24  ;;  %v421_v1 = vld [vmem:[%s5291_s11 + $0x60] sm:$0xff] }
 0x919   : > { %v2704_v52 = vpop.f32.mrf.mxu0 }
 0x91a   : > { %2803 = vst [vmem:[%s5302_s13 + $0x10] sm:$0xff] %v2787_v25  ;;  %v2785_v34 = vadd.f32 %v2769_v26, %v409_v39  ;;  %v2772_v14 = vmul.f32 %v5293_v28, %v2713_v35  ;;  %v2705_v0 = vadd.f32 %v5286_v24, %v2704_v52  ;;  %v424_v26 = vld [vmem:[%s5291_s11 + $0x78] sm:$0xff] }
 0x91c   : > { %2801 = vst [vmem:[%s5302_s13] sm:$0xff] %v2785_v34  ;;  %v2788_v32 = vadd.f32 %v2772_v14, %v412_v57  ;;  %v2770_v50 = vmul.f32 %v5293_v28, %v2705_v0  ;;  %v422_v14 = vld [vmem:[%s5291_s11 + $0x68] sm:$0xff] }
 0x91e   : > { %2804 = vst [vmem:[%s5302_s13 + $0x18] sm:$0xff] %v2788_v32  ;;  %v2786_v40 = vadd.f32 %v2770_v50, %v410_v62  ;;  %v3469_v15 = vpop.f32.mrf.mxu0 }
 0x91f   : > { %v2726_v6 = vadd.f32 %v3469_v15, %v5286_v24 }
 0x920   : > { %2802 = vst [vmem:[%s5302_s13 + $0x8] sm:$0xff] %v2786_v40  ;;  %v2717_v60 = vpop.f32.mrf.mxu0 }
 0x921   : > { %v2775_v53 = vmul.f32 %v5293_v28, %v2726_v6  ;;  %v2718_v17 = vadd.f32 %v5286_v24, %v2717_v60 }
 0x922   : > { %v3470_v13 = vpop.f32.mrf.mxu0 }
 0x923   : > { %v2791_v12 = vadd.f32 %v2775_v53, %v415_v63  ;;  %v2773_v5 = vmul.f32 %v5293_v28, %v2718_v17  ;;  %v2729_v36 = vadd.f32 %v3470_v13, %v5286_v24  ;;  %v3473_v42 = vpop.f32.mrf.mxu1 }
 0x924   : > { %v2742_v3 = vadd.f32 %v3473_v42, %v5286_v24  ;;  %v2720_v2 = vpop.f32.mrf.mxu0 }
 0x925   : > { %2807 = vst [vmem:[%s5302_s13 + $0x30] sm:$0xff] %v2791_v12  ;;  %v2789_v58 = vadd.f32 %v2773_v5, %v413_v47  ;;  %v2776_v38 = vmul.f32 %v5293_v28, %v2729_v36  ;;  %v2721_v20 = vadd.f32 %v5286_v24, %v2720_v2  ;;  %v2733_v31 = vpop.f32.mrf.mxu1 }
 0x926   : > { %v2779_v45 = vmul.f32 %v5293_v28, %v2742_v3  ;;  %v2734_v11 = vadd.f32 %v5286_v24, %v2733_v31 }
 0x927   : > { %2805 = vst [vmem:[%s5302_s13 + $0x20] sm:$0xff] %v2789_v58  ;;  %v2792_v46 = vadd.f32 %v2776_v38, %v416_v8  ;;  %v2774_v41 = vmul.f32 %v5293_v28, %v2721_v20  ;;  %v3474_v55 = vpop.f32.mrf.mxu1 }
 0x928   : > { %v2795_v16 = vadd.f32 %v2779_v45, %v419_v49  ;;  %v2777_v56 = vmul.f32 %v5293_v28, %v2734_v11  ;;  %v2745_v51 = vadd.f32 %v3474_v55, %v5286_v24 }
 0x929   : > { %2808 = vst [vmem:[%s5302_s13 + $0x38] sm:$0xff] %v2792_v46  ;;  %v2790_v27 = vadd.f32 %v2774_v41, %v414_v4  ;;  %v2736_v7 = vpop.f32.mrf.mxu1 }
 0x92a   : > { %2811 = vst [vmem:[%s5302_s13 + $0x50] sm:$0xff] %v2795_v16  ;;  %v2793_v59 = vadd.f32 %v2777_v56, %v417_v43  ;;  %v2780_v33 = vmul.f32 %v5293_v28, %v2745_v51  ;;  %v2737_v19 = vadd.f32 %v5286_v24, %v2736_v7 }
 0x92b   : > { %2806 = vst [vmem:[%s5302_s13 + $0x28] sm:$0xff] %v2790_v27 }
 0x92c   : > { %2809 = vst [vmem:[%s5302_s13 + $0x40] sm:$0xff] %v2793_v59  ;;  %v2796_v18 = vadd.f32 %v2780_v33, %v420_v61  ;;  %v2778_v10 = vmul.f32 %v5293_v28, %v2737_v19 }
 0x92e   : > { %2812 = vst [vmem:[%s5302_s13 + $0x58] sm:$0xff] %v2796_v18  ;;  %v2794_v9 = vadd.f32 %v2778_v10, %v418_v30  ;;  %v3477_v29 = vpop.f32.mrf.mxu1 }
 0x92f   : > { %v2758_v22 = vadd.f32 %v3477_v29, %v5286_v24 }
 0x930   : > { %2810 = vst [vmem:[%s5302_s13 + $0x48] sm:$0xff] %v2794_v9  ;;  %v2749_v48 = vpop.f32.mrf.mxu1 }
 0x931   : > { %v2783_v21 = vmul.f32 %v5293_v28, %v2758_v22  ;;  %v2750_v23 = vadd.f32 %v5286_v24, %v2749_v48 }
 0x932   : > { %v3478_v54 = vpop.f32.mrf.mxu1 }
 0x933   : > { %v2799_v39 = vadd.f32 %v2783_v21, %v423_v44  ;;  %v2781_v37 = vmul.f32 %v5293_v28, %v2750_v23  ;;  %v2761_v25 = vadd.f32 %v3478_v54, %v5286_v24 }
 0x934   : > { %v2752_v35 = vpop.f32.mrf.mxu1 }
 0x935   : > { %2815 = vst [vmem:[%s5302_s13 + $0x70] sm:$0xff] %v2799_v39  ;;  %v2797_v57 = vadd.f32 %v2781_v37, %v421_v1  ;;  %v2784_v52 = vmul.f32 %v5293_v28, %v2761_v25  ;;  %v2753_v34 = vadd.f32 %v5286_v24, %v2752_v35 }
 0x937   : > { %2813 = vst [vmem:[%s5302_s13 + $0x60] sm:$0xff] %v2797_v57  ;;  %v2800_v0 = vadd.f32 %v2784_v52, %v424_v26  ;;  %v2782_v62 = vmul.f32 %v5293_v28, %v2753_v34 }
 0x939   : > { %2816 = vst [vmem:[%s5302_s13 + $0x78] sm:$0xff] %v2800_v0  ;;  %v2798_v32 = vadd.f32 %v2782_v62, %v422_v14 }
 0x93b   : > { %2814 = vst [vmem:[%s5302_s13 + $0x68] sm:$0xff] %v2798_v32 }
 0x93c PF: > { %s18_s26 = sadd.s32 1, %s4041_s26   ;;  %s5486_s24 = smov %s4037_s25 }
 0x93d   : > { %p15_p2 = scmp.ge.s32.totalorder %s18_s26, 4   ;;  %s5487_s25 = smov %s5489_s28 }
 0x93f   :  { %17 = sbr.rel (!%p15_p2) target bundleno = 2 (0x2), region = 92 }
 0x944   :  { %2847 = vsyncpa [#allocation3], 1 }
 0x945   :  { %2849 = vsyncpa [#allocation3 + $0x1], 1 }

// kernel: mllama3_vision_encoder.6
= control target key start
LH: loop header
LB: loop body
LE: loop exit
PB: predicated region body
PF: predicated region fallthrough
CT: control target
= control target key end

     0   :  { %13 = vsyncpa [#allocation3], 0  ;;  %s2706_s0 = inlined_call_operand.hbm [shape: f32[2,128,128], index: 0, kind: input, shape index: {}]   ;;  %s2707_s1 = inlined_call_operand.hbm [shape: f32[1,128], index: 1, kind: input, shape index: {}]   ;;  %s2708_s2 = inlined_call_operand.hbm [shape: f32[1,128], index: 2, kind: input, shape index: {}]   ;;  %s2709_s3 = inlined_call_operand.hbm [shape: bf16[128,384], index: 3, kind: input, shape index: {}]   ;;  %s2710_s4 = inlined_call_operand.hbm [shape: f32[1,384], index: 4, kind: input, shape index: {}]   ;;  %s2711_s5 = inlined_call_operand.vmem [shape: bf16[2,128,128], index: 5, kind: output, shape index: {0}]   ;;  %s2712_s6 = inlined_call_operand.vmem [shape: bf16[2,128,128], index: 6, kind: output, shape index: {1}]   ;;  %s2713_s7 = inlined_call_operand.vmem [shape: bf16[2,128,128], index: 7, kind: output, shape index: {2}]  }
   0x1   :  { %15 = vsyncpa [#allocation3 + $0x1], 0 }
   0x2   :  { %16 = vsyncpa [#allocation5], 0 }
   0x3   :  { %17 = vsyncpa [#allocation8], 0  ;;  %s2281_s24 = smov 0   ;;  %s2283_s25 = smov 0  }
   0x4   :  { %s2285_s26 = smov 0   ;;  %s2287_s27 = smov 0  }
   0x5   :  { %s2289_s28 = smov 0   ;;  %s2291_s29 = smov 0  }
   0x6 LB: > { %s1534_s30 = sadd.s32 4294967295, %s2229_s29   ;;  %p57_p0 = scmp.ne.s32.totalorder %s2213_s25, %s2209_s24  ;;  %s2229_s29 = sphi %s2291_s29, %s23_s29   ;;  %s2225_s28 = sphi %s2289_s28, %s2723_s28   ;;  %s2221_s27 = sphi %s2287_s27, %s2722_s27   ;;  %s2217_s26 = sphi %s2285_s26, %s2721_s26   ;;  %s2213_s25 = sphi %s2283_s25, %s2720_s25   ;;  %s2209_s24 = sphi %s2281_s24, %s2719_s24  }
   0x7   : > { %p2311_p1 = scmp.eq.s32.totalorder %s1534_s30, 0  ;;  %p1536_p2 = scmp.ge.s32.totalorder %s2229_s29, 1 }
   0x8   : > { %p236_p3 = scmp.lt.s32.totalorder %s2229_s29, 3  ;;  %s2231_s11 = smov [#allocation4]  }
   0x9   : > { %p2319_p4 = por %p2311_p1, %p57_p0  ;;  %s249_s12 = sshll.u32 %s2231_s11, 4  ;;  %s250_s12 = int_to_ptr.vmem [resolvable:$true] %s249_s12 }
   0xa   : > { %p2323_p5 = pnand %p1536_p2, %p236_p3  ;;  %s2232_s13 = smov [#allocation7]  }
   0xb   : > { %s270_s14 = sshll.u32 %s2232_s13, 4  ;;  %s2233_s16 = smov [#allocation6]   ;;  %s2335_s14 = int_to_ptr.vmem [resolvable:$true] %s270_s14 }
   0xc   : > { %p1892_p6 = pneg %p2323_p5  ;;  %s260_s17 = sshll.u32 %s2233_s16, 4  ;;  %s261_s17 = int_to_ptr.vmem [resolvable:$true] %s260_s17 }
   0xd   : > { %s2050_s18 = scalar_lea.vmem %s250_s12, 16  ;;  %s2057_s19 = scalar_lea.vmem %s250_s12, 32 }
   0xe   : > { %p2331_p7 = pnand %p1892_p6, %p2311_p1  ;;  %p2051_p9 = scmp.ne.s32.totalorder %s250_s12, %s2050_s18 }
   0xf   : > { %p2058_p12 = scmp.lt.s32.totalorder %s250_s12, %s250_s12  ;;  %p2059_p13 = scmp.lt.s32.totalorder %s2057_s19, %s2050_s18 }
  0x10   : > { %p2041_p8 = pneg %p2331_p7 }
  0x11   : > { %p2060_p0 = por %p2059_p13, %p2058_p12 }
  0x12   : > { %p2053_p10 = pnand %p2051_p9, %p2041_p8 }
  0x14   : > { %p2054_p11 = pneg %p2053_p10 }
  0x16   : > { %p2061_p2 = pnand %p2060_p0, %p2054_p11 }
  0x18   : > { %2064 = shalt.err (!%p2061_p2)
}
  0x19   : > { %1895 = dma.hbm_to_vmem [thread:$0]  (!%p2331_p7), %s2707_s1, 16, %s250_s12, [#allocation5]  }
  0x1a   : > { %s2076_s22 = scalar_lea.vmem %s2335_s14, 3072  ;;  %p2084_p10 = scmp.lt.s32.totalorder %s2335_s14, %s2335_s14 }
  0x1b   : > { %p2077_p3 = scmp.ne.s32.totalorder %s2335_s14, %s2076_s22  ;;  %p2085_p11 = scmp.lt.s32.totalorder %s2076_s22, %s2076_s22 }
  0x1d   : > { %p2079_p6 = pnand %p2077_p3, %p2041_p8  ;;  %p2086_p12 = por %p2085_p11, %p2084_p10 }
  0x1f   : > { %p2080_p9 = pneg %p2079_p6 }
  0x21   : > { %p2087_p13 = pnand %p2086_p12, %p2080_p9 }
  0x23   : > { %2090 = shalt.err (!%p2087_p13)
}
  0x24   : > { %s2234_s23 = smov 192   ;;  %s2235_s24 = smov 12  }
  0x25   : > { %1901 = dma.hbm_to_vmem [thread:$0]  (!%p2331_p7), %s2709_s3, 3072, %s2335_s14, [#allocation8], %s2234_s23, %s2234_s23, %s2235_s24  }
  0x26   : > { %s2102_s12 = scalar_lea.vmem %s261_s17, 16  ;;  %s2109_s13 = scalar_lea.vmem %s261_s17, 32 }
  0x27   : > { %p2103_p0 = scmp.ne.s32.totalorder %s261_s17, %s2102_s12  ;;  %p2110_p6 = scmp.lt.s32.totalorder %s261_s17, %s261_s17 }
  0x28   : > { %p2111_p9 = scmp.lt.s32.totalorder %s2109_s13, %s2102_s12 }
  0x29   : > { %p2105_p2 = pnand %p2103_p0, %p2041_p8 }
  0x2a   : > { %p2112_p10 = por %p2111_p9, %p2110_p6 }
  0x2b   : > { %p2106_p3 = pneg %p2105_p2 }
  0x2d   : > { %p2113_p11 = pnand %p2112_p10, %p2106_p3 }
  0x2f   : > { %2116 = shalt.err (!%p2113_p11)
}
  0x30   : > { %1898 = dma.hbm_to_vmem [thread:$0]  (!%p2331_p7), %s2708_s2, 16, %s261_s17, [#allocation5]  }
  0x31   : > { %s2236_s14 = smov [#allocation9]  }
  0x32   : > { %s284_s19 = sshll.u32 %s2236_s14, 4  ;;  %s285_s19 = int_to_ptr.vmem [resolvable:$true] %s284_s19 }
  0x33   : > { %s2128_s20 = scalar_lea.vmem %s285_s19, 48  ;;  %s2135_s21 = scalar_lea.vmem %s285_s19, 64 }
  0x34   : > { %p2129_p12 = scmp.ne.s32.totalorder %s285_s19, %s2128_s20  ;;  %p2136_p2 = scmp.lt.s32.totalorder %s285_s19, %s285_s19 }
  0x35   : > { %p2137_p3 = scmp.lt.s32.totalorder %s2135_s21, %s2128_s20 }
  0x36   : > { %p2131_p13 = pnand %p2129_p12, %p2041_p8 }
  0x37   : > { %p2138_p6 = por %p2137_p3, %p2136_p2 }
  0x38   : > { %p2132_p0 = pneg %p2131_p13 }
  0x3a   : > { %p2139_p9 = pnand %p2138_p6, %p2132_p0 }
  0x3c   : > { %2142 = shalt.err (!%p2139_p9)
}
  0x3d   : > { %1904 = dma.hbm_to_vmem [thread:$0]  (!%p2331_p7), %s2710_s4, 48, %s285_s19, [#allocation8]  }
  0x3e   : > { %s35_s17 = sadd.s32 1, %s2225_s28  ;;  %s44_s24 = sadd.s32 1, %s2217_s26 }
  0x3f   : > { %p37_p8 = scmp.ge.s32.totalorder %s35_s17, 2  ;;  %p51_p10 = scmp.ne.s32.totalorder %s2217_s26, %s2213_s25 }
  0x40   : > { %p52_p11 = scmp.eq.s32.totalorder %s2229_s29, 0  ;;  %p1913_p12 = scmp.lt.s32.totalorder %s2229_s29, 2 }
  0x41   : > { %s2725_s17 = smov (%p37_p8, %s35_s17), 0  ;;  %s295_s15 = sand.u32 1, %s2217_s26  }
  0x42   : > { %p53_p13 = por %p52_p11, %p51_p10  ;;  %s39_s30 = ssub.s32 %s2225_s28, %s2725_s17 }
  0x43   : > { %p42_p0 = scmp.eq.s32.totalorder %s39_s30, 0  ;;  %s1542_s11 = sshll.u32 %s295_s15, 7 }
  0x44   : > { %s1633_s12 = sshll.u32 %s2225_s28, 11  ;;  %s299_s19 = scalar_lea.vmem [#allocation2], %s1542_s11 }
  0x45   : > { %s2389_s13 = scalar_select %p42_p0, %s2217_s26, %s44_s24  }
  0x46   : > { %s307_s14 = scalar_lea.hbm %s2706_s0, %s1633_s12  ;;  %s308_s20 = sshll.u32 %s299_s19, 4  ;;  %s309_s20 = int_to_ptr.vmem [resolvable:$true] %s308_s20 }
  0x47   : > { %p2396_p7 = pnand %p1913_p12, %p53_p13  ;;  %s296_s22 = scalar_lea.sflag [#allocation3], %s295_s15 }
  0x48   : > { %s2156_s23 = scalar_lea.vmem %s309_s20, 2048  ;;  %s2237_s24 = smov [#allocation2]  }
  0x49   : > { %p2145_p2 = pneg %p2396_p7  ;;  %p2157_p3 = scmp.ne.s32.totalorder %s309_s20, %s2156_s23 }
  0x4a   : > { %s2161_s30 = sshll.u32 %s2237_s24, 4  ;;  %s2162_s30 = int_to_ptr.vmem [resolvable:$false] %s2161_s30 }
  0x4b   : > { %p2159_p6 = pnand %p2157_p3, %p2145_p2  ;;  %s2163_s12 = scalar_lea.vmem %s2162_s30, 4096 }
  0x4c   : > { %p2164_p8 = scmp.lt.s32.totalorder %s309_s20, %s2162_s30  ;;  %p2165_p10 = scmp.lt.s32.totalorder %s2163_s12, %s2156_s23 }
  0x4d   : > { %p2160_p9 = pneg %p2159_p6 }
  0x4e   : > { %p2166_p11 = por %p2165_p10, %p2164_p8 }
  0x50   : > { %p2167_p0 = pnand %p2166_p11, %p2160_p9 }
  0x52   : > { %2170 = shalt.err (!%p2167_p0)
}
  0x53   : > { %s2238_s11 = smov 128   ;;  %s2239_s16 = smov 8  }
  0x54   : > { %1908 = dma.hbm_to_vmem [thread:$0]  (!%p2396_p7), %s307_s14, 2048, %s309_s20, %s296_s22, %s2238_s11, %s2238_s11, %s2239_s16  }
  0x55   : > { %320 = sbr.rel (%p2323_p5) target bundleno = 668 (0x29c), region = 40  ;;  %s322_s15 = sand.u32 (!%p2323_p5), 1, %s2213_s25  }
  0x56   : > { %s1546_s18 = sshll.u32 (!%p2323_p5), %s322_s15, 7  ;;  %s323_s19 = scalar_lea.sflag (!%p2323_p5), [#allocation3], %s322_s15 }
  0x57   : > { %s2407_s24 = scalar_lea.vmem (!%p2323_p5), [#allocation2], %s1546_s18 }
  0x5a   : > { %2196 = dma.done.wait (%p2319_p4), %s323_s19, 2048  }
  0x5b   : > { %2198 = vsyncadd (%p2319_p4), %s323_s19, 4294965248 }
  0x5c   : > { %2200 = dma.done.wait (%p2311_p1), [#allocation5], 32  }
  0x5d   : > { %2202 = vsyncadd (%p2311_p1), [#allocation5], 4294967264 }
  0x5e   : > { %2204 = dma.done.wait (%p2311_p1), [#allocation8], 3120  }
  0x5f   : > { %2206 = vsyncadd (%p2311_p1), [#allocation8], 4294964176  ;;  %v427_v0 = vld [vmem:[%s2407_s24] sm:$0xff]  ;;  %v429_v1 = vld [vmem:[%s2407_s24 + $0x10] sm:$0xff]  ;;  %p397_p1 = scmp.lt.s32.totalorder %s2221_s27, 1 }
  0x60   : > { %445 = vadd.xlane.f32.xlu0 %v427_v0  ;;  %449 = vadd.xlane.f32.xlu1 %v429_v1  ;;  %v428_v2 = vld [vmem:[%s2407_s24 + $0x8] sm:$0xff]  ;;  %v430_v3 = vld [vmem:[%s2407_s24 + $0x18] sm:$0xff]  ;;  %v431_v4 = vld [vmem:[%s2407_s24 + $0x20] sm:$0xff] }
  0x61   : > { %v432_v5 = vld [vmem:[%s2407_s24 + $0x28] sm:$0xff]  ;;  %v433_v6 = vld [vmem:[%s2407_s24 + $0x30] sm:$0xff]  ;;  %v434_v7 = vld [vmem:[%s2407_s24 + $0x38] sm:$0xff]  ;;  %s2727_s27 = smov (!%p397_p1, %s2221_s27), 1 }
  0x62   : > { %v2430_v8 = vld [vmem:[%s2407_s24 + $0x40] sm:$0xff]  ;;  %v2433_v9 = vld [vmem:[%s2407_s24 + $0x48] sm:$0xff]  ;;  %v2438_v10 = vld [vmem:[%s2407_s24 + $0x50] sm:$0xff]  ;;  %s1634_s8 = sshll.u32 %s2727_s27, 6 }
  0x63   : > { %v2441_v11 = vld [vmem:[%s2407_s24 + $0x58] sm:$0xff]  ;;  %v2446_v12 = vld [vmem:[%s2407_s24 + $0x60] sm:$0xff]  ;;  %v2449_v13 = vld [vmem:[%s2407_s24 + $0x68] sm:$0xff]  ;;  %s2604_s14 = scalar_lea.vmem %s2711_s5, %s1634_s8  ;;  %s2613_s21 = scalar_lea.vmem %s2712_s6, %s1634_s8 }
  0x64   : > { %447 = vadd.xlane.f32.xlu0 %v428_v2  ;;  %451 = vadd.xlane.f32.xlu1 %v430_v3  ;;  %v2454_v14 = vld [vmem:[%s2407_s24 + $0x70] sm:$0xff]  ;;  %v2457_v15 = vld [vmem:[%s2407_s24 + $0x78] sm:$0xff]  ;;  %s2622_s30 = scalar_lea.vmem %s2713_s7, %s1634_s8 }
  0x65   : > { %v1975_v16 = vld [vmem:[#allocation7 + $0xac] ss:$12 sps:$4 sm:$0xff]   ;;  %v1977_v17 = vld [vmem:[#allocation7 + $0xa8] ss:$12 sps:$4 sm:$0xff]   ;;  %v1980_v54 = vld [vmem:[#allocation7 + $0xb0] ss:$12 sps:$4 sm:$0xff]  }
  0x66   : > { %851 = vmatprep.subr.bf16.mxu0 %v1975_v16  ;;  %v1978_v53 = vld [vmem:[#allocation7 + $0x94] ss:$12 sps:$4 sm:$0xff]   ;;  %v1981_v55 = vld [vmem:[#allocation7 + $0x90] ss:$12 sps:$4 sm:$0xff]   ;;  %1842 = vmatprep.subr.bf16.mxu1 %v1980_v54 }
  0x67   : > { %852 = vmatpush1.bf16.msra.mxu0 %v1977_v17  ;;  %1843 = vmatpush3.bf16.msra.mxu1 %v1980_v54  ;;  %v1988_v17 = vld [vmem:[#allocation7 + $0x80] ss:$12 sps:$4 sm:$0xff]  }
  0x68   : > { %453 = vadd.xlane.f32.xlu0 %v431_v4  ;;  %455 = vadd.xlane.f32.xlu1 %v432_v5 }
  0x69   : > { %853 = vmatprep.subr.bf16.mxu0 %v1978_v53 }
  0x6b   : > { %854 = vmatpush1.bf16.msra.mxu0 %v1981_v55 }
  0x6c   : > { %457 = vadd.xlane.f32.xlu0 %v433_v6  ;;  %459 = vadd.xlane.f32.xlu1 %v434_v7 }
  0x70   : > { %461 = vadd.xlane.f32.xlu0 %v2430_v8  ;;  %463 = vadd.xlane.f32.xlu1 %v2433_v9 }
  0x74   : > { %465 = vadd.xlane.f32.xlu0 %v2438_v10  ;;  %467 = vadd.xlane.f32.xlu1 %v2441_v11 }
  0x78   : > { %469 = vadd.xlane.f32.xlu0 %v2446_v12  ;;  %471 = vadd.xlane.f32.xlu1 %v2449_v13 }
  0x7c   : > { %473 = vadd.xlane.f32.xlu0 %v2454_v14  ;;  %475 = vadd.xlane.f32.xlu1 %v2457_v15 }
  0xe9   : > { %v446_v18 = vpop.xlane.xlu0 %445  ;;  %v450_v19 = vpop.xlane.xlu1 %449 }
  0xea   : > { %v478_v20 = vmul.f32 0.0078125, %v446_v18  ;;  %v480_v21 = vmul.f32 0.0078125, %v450_v19 }
  0xec   : > { %v2461_v22 = vsub.f32 %v427_v0, %v478_v20  ;;  %v2463_v23 = vsub.f32 %v429_v1, %v480_v21  ;;  %v1982_v0 = vld [vmem:[#allocation7 + $0x7c] ss:$12 sps:$4 sm:$0xff]   ;;  %v1984_v1 = vld [vmem:[#allocation7 + $0x98] ss:$12 sps:$4 sm:$0xff]   ;;  %v1989_v20 = vld [vmem:[#allocation7 + $0x60] ss:$12 sps:$4 sm:$0xff]  }
  0xed   : > { %v448_v24 = vpop.xlane.xlu0 %447  ;;  %v452_v25 = vpop.xlane.xlu1 %451  ;;  %855 = vmatprep.subr.bf16.mxu0 %v1982_v0  ;;  %1844 = vmatprep.subr.bf16.mxu1 %v1984_v1 }
  0xee   : > { %v479_v26 = vmul.f32 0.0078125, %v448_v24  ;;  %v510_v27 = vmul.f32 %v2461_v22, %v2461_v22  ;;  %v481_v28 = vmul.f32 0.0078125, %v452_v25  ;;  %v512_v31 = vmul.f32 %v2463_v23, %v2463_v23  ;;  %1845 = vmatpush3.bf16.msra.mxu1 %v1984_v1 }
  0xef   : > { %1846 = vmatprep.subr.bf16.mxu1 %v1988_v17 }
  0xf0   : > { %v2467_v29 = vsub.f32 %v428_v2, %v479_v26  ;;  %526 = vadd.xlane.f32.xlu0 %v510_v27  ;;  %v2469_v30 = vsub.f32 %v430_v3, %v481_v28  ;;  %v1992_v28 = vld [vmem:[#allocation7 + $0x68] ss:$12 sps:$4 sm:$0xff]  }
  0xf1   : > { %v454_v32 = vpop.xlane.xlu0 %453  ;;  %v456_v33 = vpop.xlane.xlu1 %455 }
  0xf2   : > { %v482_v34 = vmul.f32 0.0078125, %v454_v32  ;;  %v511_v35 = vmul.f32 %v2467_v29, %v2467_v29  ;;  %v483_v36 = vmul.f32 0.0078125, %v456_v33  ;;  %v513_v39 = vmul.f32 %v2469_v30, %v2469_v30  ;;  %1847 = vmatpush3.bf16.msra.mxu1 %v1988_v17  ;;  %v1993_v33 = vld [vmem:[#allocation7 + $0x48] ss:$12 sps:$4 sm:$0xff]  }
  0xf3   : > { %1848 = vmatprep.subr.bf16.mxu1 %v1992_v28 }
  0xf4   : > { %v2475_v37 = vsub.f32 %v431_v4, %v482_v34  ;;  %530 = vadd.xlane.f32.xlu0 %v512_v31  ;;  %528 = vadd.xlane.f32.xlu1 %v511_v35  ;;  %v2477_v38 = vsub.f32 %v432_v5, %v483_v36  ;;  %v1985_v5 = vld [vmem:[#allocation7 + $0x78] ss:$12 sps:$4 sm:$0xff]   ;;  %v1994_v35 = vld [vmem:[#allocation7 + $0x34] ss:$12 sps:$4 sm:$0xff]   ;;  %v1996_v36 = vld [vmem:[#allocation7 + $0x50] ss:$12 sps:$4 sm:$0xff]  }
  0xf5   : > { %v458_v40 = vpop.xlane.xlu0 %457  ;;  %v460_v41 = vpop.xlane.xlu1 %459  ;;  %856 = vmatpush1.bf16.msra.mxu0 %v1985_v5 }
  0xf6   : > { %v484_v42 = vmul.f32 0.0078125, %v458_v40  ;;  %v514_v43 = vmul.f32 %v2475_v37, %v2475_v37  ;;  %v485_v44 = vmul.f32 0.0078125, %v460_v41  ;;  %v515_v47 = vmul.f32 %v2477_v38, %v2477_v38  ;;  %1849 = vmatpush3.bf16.msra.mxu1 %v1992_v28  ;;  %v2000_v40 = vld [vmem:[#allocation7 + $0x38] ss:$12 sps:$4 sm:$0xff]  }
  0xf7   : > { %1850 = vmatprep.subr.bf16.mxu1 %v1996_v36  ;;  %v2001_v41 = vld [vmem:[#allocation7 + $0x18] ss:$12 sps:$4 sm:$0xff]  }
  0xf8   : > { %v2483_v45 = vsub.f32 %v433_v6, %v484_v42  ;;  %532 = vadd.xlane.f32.xlu1 %v513_v39  ;;  %534 = vadd.xlane.f32.xlu0 %v514_v43  ;;  %v2485_v46 = vsub.f32 %v434_v7, %v485_v44  ;;  %v1998_v39 = vld [vmem:[#allocation7 + $0x1c] ss:$12 sps:$4 sm:$0xff]   ;;  %v2002_v42 = vld [vmem:[#allocation7 + $0x4] ss:$12 sps:$4 sm:$0xff]   ;;  %v2004_v43 = vld [vmem:[#allocation7 + $0x20] ss:$12 sps:$4 sm:$0xff]  }
  0xf9   : > { %v462_v48 = vpop.xlane.xlu0 %461  ;;  %v464_v49 = vpop.xlane.xlu1 %463  ;;  %v2005_v44 = vld [vmem:[#allocation7] ss:$12 sps:$4 sm:$0xff]  }
  0xfa   : > { %v486_v50 = vmul.f32 0.0078125, %v462_v48  ;;  %v516_v51 = vmul.f32 %v2483_v45, %v2483_v45  ;;  %v487_v52 = vmul.f32 0.0078125, %v464_v49  ;;  %v517_v58 = vmul.f32 %v2485_v46, %v2485_v46  ;;  %1851 = vmatpush3.bf16.msra.mxu1 %v1996_v36 }
  0xfb   : > { %1852 = vmatprep.subr.bf16.mxu1 %v2000_v40  ;;  %v2240_v48 = vmov 0  }
  0xfc   : > { %v2492_v56 = vsub.f32 %v2430_v8, %v486_v50  ;;  %536 = vadd.xlane.f32.xlu1 %v515_v47  ;;  %538 = vadd.xlane.f32.xlu0 %v516_v51  ;;  %v2495_v57 = vsub.f32 %v2433_v9, %v487_v52  ;;  %v2006_v47 = vld [vmem:[#allocation7 + $0x8] ss:$12 sps:$4 sm:$0xff]  }
  0xfd   : > { %v466_v59 = vpop.xlane.xlu0 %465  ;;  %v468_v60 = vpop.xlane.xlu1 %467  ;;  %883 = vmatprep.mubr.bf16.mxu0 %v2240_v48 }
  0xfe   : > { %v488_v61 = vmul.f32 0.0078125, %v466_v59  ;;  %v518_v62 = vmul.f32 %v2492_v56, %v2492_v56  ;;  %v489_v63 = vmul.f32 0.0078125, %v468_v60  ;;  %v519_v4 = vmul.f32 %v2495_v57, %v2495_v57  ;;  %1853 = vmatpush3.bf16.msra.mxu1 %v2000_v40 }
  0xff   : > { %1854 = vmatprep.subr.bf16.mxu1 %v2004_v43 }
 0x100   : > { %v2502_v2 = vsub.f32 %v2438_v10, %v488_v61  ;;  %540 = vadd.xlane.f32.xlu1 %v517_v58  ;;  %542 = vadd.xlane.f32.xlu0 %v518_v62  ;;  %v2505_v3 = vsub.f32 %v2441_v11, %v489_v63  ;;  %v1986_v10 = vld [vmem:[#allocation7 + $0x64] ss:$12 sps:$4 sm:$0xff]  }
 0x101   : > { %v470_v6 = vpop.xlane.xlu0 %469  ;;  %v472_v7 = vpop.xlane.xlu1 %471  ;;  %857 = vmatprep.subr.bf16.mxu0 %v1986_v10 }
 0x102   : > { %v490_v8 = vmul.f32 0.0078125, %v470_v6  ;;  %v520_v9 = vmul.f32 %v2502_v2, %v2502_v2  ;;  %v491_v16 = vmul.f32 0.0078125, %v472_v7  ;;  %v521_v19 = vmul.f32 %v2505_v3, %v2505_v3  ;;  %858 = vmatpush1.bf16.msra.mxu0 %v1989_v20  ;;  %1855 = vmatpush3.bf16.msra.mxu1 %v2004_v43 }
 0x103   : > { %1856 = vmatprep.subr.bf16.mxu1 %v2006_v47 }
 0x104   : > { %v2512_v11 = vsub.f32 %v2446_v12, %v490_v8  ;;  %544 = vadd.xlane.f32.xlu1 %v519_v4  ;;  %546 = vadd.xlane.f32.xlu0 %v520_v9  ;;  %v2515_v18 = vsub.f32 %v2449_v13, %v491_v16  ;;  %v1990_v12 = vld [vmem:[#allocation7 + $0x4c] ss:$12 sps:$4 sm:$0xff]  }
 0x105   : > { %v474_v21 = vpop.xlane.xlu0 %473  ;;  %v476_v24 = vpop.xlane.xlu1 %475  ;;  %859 = vmatprep.subr.bf16.mxu0 %v1990_v12 }
 0x106   : > { %v492_v25 = vmul.f32 0.0078125, %v474_v21  ;;  %v522_v26 = vmul.f32 %v2512_v11, %v2512_v11  ;;  %v493_v27 = vmul.f32 0.0078125, %v476_v24  ;;  %v523_v32 = vmul.f32 %v2515_v18, %v2515_v18  ;;  %860 = vmatpush1.bf16.msra.mxu0 %v1993_v33  ;;  %1857 = vmatpush3.bf16.msra.mxu1 %v2006_v47 }
 0x107   : > { %861 = vmatprep.subr.bf16.mxu0 %v1994_v35 }
 0x108   : > { %v2522_v13 = vsub.f32 %v2454_v14, %v492_v25  ;;  %548 = vadd.xlane.f32.xlu1 %v521_v19  ;;  %550 = vadd.xlane.f32.xlu0 %v522_v26  ;;  %v2525_v31 = vsub.f32 %v2457_v15, %v493_v27  ;;  %v1997_v15 = vld [vmem:[#allocation7 + $0x30] ss:$12 sps:$4 sm:$0xff]  }
 0x109   : > { %v2534_v25 = vld [vmem:[#allocation4] ss:$0 sm:$0xff] }
 0x10a   : > { %v524_v34 = vmul.f32 %v2522_v13, %v2522_v13  ;;  %v525_v14 = vmul.f32 %v2525_v31, %v2525_v31  ;;  %862 = vmatpush1.bf16.msra.mxu0 %v1997_v15  ;;  %v2538_v15 = vld [vmem:[#allocation6] ss:$0 sm:$0xff] }
 0x10b   : > { %863 = vmatprep.subr.bf16.mxu0 %v1998_v39 }
 0x10c   : > { %552 = vadd.xlane.f32.xlu1 %v523_v32  ;;  %554 = vadd.xlane.f32.xlu0 %v524_v34 }
 0x10e   : > { %864 = vmatpush1.bf16.msra.mxu0 %v2001_v41 }
 0x10f   : > { %865 = vmatprep.subr.bf16.mxu0 %v2002_v42 }
 0x110   : > { %556 = vadd.xlane.f32.xlu1 %v525_v14 }
 0x112   : > { %866 = vmatpush1.bf16.msra.mxu0 %v2005_v44 }
 0x179   : > { %v527_v49 = vpop.xlane.xlu0 %526 }
 0x17a   : > { %v558_v50 = vmul.f32 0.0078125, %v527_v49 }
 0x17c   : > { %v574_v51 = vadd.f32 1e-05, %v558_v50 }
 0x17d   : > { %v529_v52 = vpop.xlane.xlu1 %528  ;;  %v531_v53 = vpop.xlane.xlu0 %530 }
 0x17e   : > { %2007 = vrsqrt.f32 %v574_v51  ;;  %v559_v54 = vmul.f32 0.0078125, %v529_v52  ;;  %v560_v55 = vmul.f32 0.0078125, %v531_v53 }
 0x180   : > { %v575_v58 = vadd.f32 1e-05, %v559_v54  ;;  %v576_v59 = vadd.f32 1e-05, %v560_v55 }
 0x181   : > { %v533_v60 = vpop.xlane.xlu1 %532  ;;  %v535_v61 = vpop.xlane.xlu0 %534 }
 0x182   : > { %2009 = vrsqrt.f32 %v575_v58  ;;  %v561_v62 = vmul.f32 0.0078125, %v533_v60  ;;  %v562_v63 = vmul.f32 0.0078125, %v535_v61 }
 0x183   : > { %2011 = vrsqrt.f32 %v576_v59 }
 0x184   : > { %v577_v0 = vadd.f32 1e-05, %v561_v62  ;;  %v578_v1 = vadd.f32 1e-05, %v562_v63 }
 0x185   : > { %v537_v4 = vpop.xlane.xlu1 %536  ;;  %v539_v5 = vpop.xlane.xlu0 %538 }
 0x186   : > { %2013 = vrsqrt.f32 %v577_v0  ;;  %v563_v6 = vmul.f32 0.0078125, %v537_v4  ;;  %v564_v7 = vmul.f32 0.0078125, %v539_v5 }
 0x187   : > { %2015 = vrsqrt.f32 %v578_v1 }
 0x188   : > { %v579_v8 = vadd.f32 1e-05, %v563_v6  ;;  %v580_v9 = vadd.f32 1e-05, %v564_v7 }
 0x189   : > { %v541_v16 = vpop.xlane.xlu1 %540  ;;  %v543_v10 = vpop.xlane.xlu0 %542 }
 0x18a   : > { %2017 = vrsqrt.f32 %v579_v8  ;;  %v565_v17 = vmul.f32 0.0078125, %v541_v16  ;;  %v566_v19 = vmul.f32 0.0078125, %v543_v10 }
 0x18b   : > { %v2008_v20 = vpop.eup %2007  ;;  %2019 = vrsqrt.f32 %v580_v9 }
 0x18c   : > { %v581_v21 = vadd.f32 1e-05, %v565_v17  ;;  %v582_v24 = vadd.f32 1e-05, %v566_v19  ;;  %v606_v26 = vmul.f32 %v2008_v20, %v2461_v22 }
 0x18d   : > { %v545_v27 = vpop.xlane.xlu1 %544  ;;  %v547_v12 = vpop.xlane.xlu0 %546 }
 0x18e   : > { %2021 = vrsqrt.f32 %v581_v21  ;;  %v567_v28 = vmul.f32 0.0078125, %v545_v27  ;;  %v568_v32 = vmul.f32 0.0078125, %v547_v12  ;;  %v628_v34 = vmul.f32 %v2534_v25, %v606_v26 }
 0x18f   : > { %v2010_v33 = vpop.eup %2009  ;;  %2023 = vrsqrt.f32 %v582_v24 }
 0x190   : > { %v2012_v35 = vpop.eup %2011  ;;  %v583_v36 = vadd.f32 1e-05, %v567_v28  ;;  %v584_v14 = vadd.f32 1e-05, %v568_v32  ;;  %v607_v39 = vmul.f32 %v2010_v33, %v2467_v29  ;;  %v650_v49 = vadd.f32 %v2538_v15, %v628_v34 }
 0x191   : > { %v549_v40 = vpop.xlane.xlu1 %548  ;;  %v551_v41 = vpop.xlane.xlu0 %550  ;;  %v608_v22 = vmul.f32 %v2012_v35, %v2463_v23 }
 0x192   : > { %2025 = vrsqrt.f32 %v583_v36  ;;  %v569_v42 = vmul.f32 0.0078125, %v549_v40  ;;  %v570_v43 = vmul.f32 0.0078125, %v551_v41  ;;  %v629_v44 = vmul.f32 %v2534_v25, %v607_v39 }
 0x193   : > { %v2014_v47 = vpop.eup %2013  ;;  %2027 = vrsqrt.f32 %v584_v14  ;;  %v630_v23 = vmul.f32 %v2534_v25, %v608_v22 }
 0x194   : > { %v2016_v50 = vpop.eup %2015  ;;  %v585_v51 = vadd.f32 1e-05, %v569_v42  ;;  %v586_v52 = vadd.f32 1e-05, %v570_v43  ;;  %v651_v53 = vadd.f32 %v2538_v15, %v629_v44  ;;  %v609_v29 = vmul.f32 %v2014_v47, %v2469_v30 }
 0x195   : > { %v553_v54 = vpop.xlane.xlu1 %552  ;;  %v555_v55 = vpop.xlane.xlu0 %554  ;;  %v610_v58 = vmul.f32 %v2016_v50, %v2475_v37  ;;  %v652_v37 = vadd.f32 %v2538_v15, %v630_v23 }
 0x196   : > { %2029 = vrsqrt.f32 %v585_v51  ;;  %v571_v59 = vmul.f32 0.0078125, %v553_v54  ;;  %v572_v60 = vmul.f32 0.0078125, %v555_v55  ;;  %v666_v61 = vpack.c.bf16 %v651_v53, %v650_v49 }
 0x197   : > { %v2018_v62 = vpop.eup %2017  ;;  %2031 = vrsqrt.f32 %v586_v52  ;;  %v631_v63 = vmul.f32 %v2534_v25, %v609_v29  ;;  %v632_v5 = vmul.f32 %v2534_v25, %v610_v58 }
 0x198   : > { %v2020_v0 = vpop.eup %2019  ;;  %v587_v1 = vadd.f32 1e-05, %v571_v59  ;;  %v588_v4 = vadd.f32 1e-05, %v572_v60  ;;  %884 = vmatmul.mubr.bf16.vlgmr.msra.gmra.mxu0 %v666_v61  ;;  %1858 = vmatprep.mubr.bf16.mxu1 %v666_v61  ;;  %v611_v30 = vmul.f32 %v2018_v62, %v2477_v38 }
 0x199   : > { %v557_v6 = vpop.xlane.xlu1 %556  ;;  %v653_v7 = vadd.f32 %v2538_v15, %v631_v63  ;;  %893 = vmatprep.mubr.bf16.mxu0 %v2240_v48  ;;  %v612_v8 = vmul.f32 %v2020_v0, %v2483_v45  ;;  %v654_v21 = vadd.f32 %v2538_v15, %v632_v5 }
 0x19a   : > { %2033 = vrsqrt.f32 %v587_v1  ;;  %v573_v9 = vmul.f32 0.0078125, %v557_v6  ;;  %v633_v16 = vmul.f32 %v2534_v25, %v611_v30 }
 0x19b   : > { %v2022_v10 = vpop.eup %2021  ;;  %2035 = vrsqrt.f32 %v588_v4  ;;  %v667_v17 = vpack.c.bf16 %v653_v7, %v652_v37  ;;  %v634_v38 = vmul.f32 %v2534_v25, %v612_v8 }
 0x19c   : > { %v2024_v19 = vpop.eup %2023  ;;  %v589_v20 = vadd.f32 1e-05, %v573_v9  ;;  %v655_v24 = vadd.f32 %v2538_v15, %v633_v16  ;;  %v613_v26 = vmul.f32 %v2022_v10, %v2485_v46 }
 0x19d   : > { %1859 = vmatmul.mubr.bf16.vlgmr.msra.gmra.mxu1 %v667_v17  ;;  %v614_v45 = vmul.f32 %v2024_v19, %v2492_v56  ;;  %v656_v32 = vadd.f32 %v2538_v15, %v634_v38 }
 0x19e   : > { %2037 = vrsqrt.f32 %v589_v20  ;;  %v668_v27 = vpack.c.bf16 %v655_v24, %v654_v21  ;;  %v635_v12 = vmul.f32 %v2534_v25, %v613_v26 }
 0x19f   : > { %v2026_v28 = vpop.eup %2025  ;;  %v636_v36 = vmul.f32 %v2534_v25, %v614_v45 }
 0x1a0   : > { %v2028_v33 = vpop.eup %2027  ;;  %894 = vmatmul.mubr.bf16.gmra.mxu0 %v667_v17  ;;  %1862 = vmatprep.mubr.bf16.mxu1 %v668_v27  ;;  %v657_v34 = vadd.f32 %v2538_v15, %v635_v12  ;;  %v615_v35 = vmul.f32 %v2026_v28, %v2495_v57 }
 0x1a1   : > { %903 = vmatprep.mubr.bf16.mxu0 %v2240_v48  ;;  %v616_v46 = vmul.f32 %v2028_v33, %v2502_v2  ;;  %v658_v22 = vadd.f32 %v2538_v15, %v636_v36 }
 0x1a2   : > { %v669_v56 = vpack.c.bf16 %v657_v34, %v656_v32  ;;  %v637_v14 = vmul.f32 %v2534_v25, %v615_v35 }
 0x1a3   : > { %v2030_v39 = vpop.eup %2029  ;;  %v638_v40 = vmul.f32 %v2534_v25, %v616_v46 }
 0x1a4   : > { %v2032_v41 = vpop.eup %2031  ;;  %v659_v42 = vadd.f32 %v2538_v15, %v637_v14  ;;  %v617_v43 = vmul.f32 %v2030_v39, %v2505_v3 }
 0x1a5   : > { %1863 = vmatmul.mubr.bf16.gmra.mxu1 %v669_v56  ;;  %v618_v57 = vmul.f32 %v2032_v41, %v2512_v11  ;;  %v660_v49 = vadd.f32 %v2538_v15, %v638_v40 }
 0x1a6   : > { %v670_v44 = vpack.c.bf16 %v659_v42, %v658_v22  ;;  %v639_v47 = vmul.f32 %v2534_v25, %v617_v43 }
 0x1a7   : > { %v2034_v2 = vpop.eup %2033  ;;  %v640_v53 = vmul.f32 %v2534_v25, %v618_v57 }
 0x1a8   : > { %v2036_v50 = vpop.eup %2035  ;;  %904 = vmatmul.mubr.bf16.gmra.mxu0 %v668_v27  ;;  %1866 = vmatprep.mubr.bf16.mxu1 %v670_v44  ;;  %v661_v51 = vadd.f32 %v2538_v15, %v639_v47  ;;  %v619_v52 = vmul.f32 %v2034_v2, %v2515_v18 }
 0x1a9   : > { %913 = vmatprep.mubr.bf16.mxu0 %v2240_v48  ;;  %v620_v3 = vmul.f32 %v2036_v50, %v2522_v13  ;;  %v662_v55 = vadd.f32 %v2538_v15, %v640_v53 }
 0x1aa   : > { %v671_v11 = vpack.c.bf16 %v661_v51, %v660_v49  ;;  %v641_v29 = vmul.f32 %v2534_v25, %v619_v52 }
 0x1ab   : > { %v2038_v54 = vpop.eup %2037  ;;  %v642_v59 = vmul.f32 %v2534_v25, %v620_v3 }
 0x1ac   : > { %v663_v23 = vadd.f32 %v2538_v15, %v641_v29  ;;  %v621_v58 = vmul.f32 %v2038_v54, %v2525_v31  ;;  %v708_v31 = vlaneseq }
 0x1ad   : > { %1867 = vmatmul.mubr.bf16.gmra.mxu1 %v671_v11  ;;  %v664_v13 = vadd.f32 %v2538_v15, %v642_v59 }
 0x1ae   : > { %v672_v18 = vpack.c.bf16 %v663_v23, %v662_v55  ;;  %v643_v60 = vmul.f32 %v2534_v25, %v621_v58  ;;  %v709_v25 = vshrl.u32 %v708_v31, 7 }
 0x1b0   : > { %914 = vmatmul.mubr.bf16.gmra.mxu0 %v669_v56  ;;  %1870 = vmatprep.mubr.bf16.mxu1 %v672_v18  ;;  %v665_v61 = vadd.f32 %v2538_v15, %v643_v60  ;;  %v710_v63 = vsub.s32 0, %v709_v25  ;;  %v706_v15 = vld [vmem:[#allocation9] sm:$0x7]  ;;  %v714_v0 = vsub.s32 1, %v709_v25  ;;  %v718_v5 = vsub.s32 2, %v709_v25 }
 0x1b1   : > { %923 = vmatprep.mubr.bf16.mxu0 %v2240_v48 }
 0x1b2   : > { %v673_v62 = vpack.c.bf16 %v665_v61, %v664_v13  ;;  %v2595_v4 = vrot.slane %v706_v15, %v710_v63  ;;  %v2597_v6 = vrot.slane %v706_v15, %v714_v0  ;;  %v2606_v9 = vrot.slane %v706_v15, %v718_v5 }
 0x1b5   : > { %1871 = vmatmul.mubr.bf16.gmra.mxu1 %v673_v62 }
 0x1b8   : > { %924 = vmatmul.mubr.bf16.gmra.mxu0 %v670_v44 }
 0x1b9   : > { %933 = vmatprep.mubr.bf16.mxu0 %v2240_v48 }
 0x1c0   : > { %934 = vmatmul.mubr.bf16.gmra.mxu0 %v671_v11 }
 0x1c1   : > { %943 = vmatprep.mubr.bf16.mxu0 %v2240_v48 }
 0x1c8   : > { %944 = vmatmul.mubr.bf16.gmra.mxu0 %v672_v18 }
 0x1c9   : > { %953 = vmatprep.mubr.bf16.mxu0 %v2240_v48 }
 0x1d0   : > { %954 = vmatmul.mubr.bf16.gmra.mxu0 %v673_v62 }
 0x258   : > { %v885_v1 = vpop.f32.mrf.mxu0 }
 0x259   : > { %v886_v7 = vadd.f32 %v885_v1, %v2595_v4 }
 0x25a   : > { %v887_v30 = vpop.f32.mrf.mxu0 }
 0x25b   : > { %v888_v10 = vadd.f32 %v887_v30, %v2597_v6 }
 0x25c   : > { %v889_v37 = vpop.f32.mrf.mxu0 }
 0x25d   : > { %v890_v48 = vadd.f32 %v889_v37, %v2595_v4  ;;  %v1860_v8 = vpop.f32.mrf.mxu1 }
 0x25e   : > { %v891_v16 = vpop.f32.mrf.mxu0  ;;  %v1007_v26 = vadd.f32 %v1860_v8, %v2606_v9 }
 0x25f   : > { %v1688_v17 = vpack.c.bf16 %v890_v48, %v886_v7  ;;  %v892_v38 = vadd.f32 %v891_v16, %v2597_v6  ;;  %v998_v19 = vpop.f32.mrf.mxu1 }
 0x260   : > { %v895_v20 = vpop.f32.mrf.mxu0  ;;  %v999_v28 = vadd.f32 %v998_v19, %v2606_v9 }
 0x261   : > { %1689 = vst [vmem:[%s2604_s14] sm:$0xff] %v1688_v17   ;;  %v1728_v21 = vpack.c.bf16 %v892_v38, %v888_v10  ;;  %v1861_v24 = vpop.f32.mrf.mxu1  ;;  %v896_v35 = vadd.f32 %v895_v20, %v2595_v4 }
 0x262   : > { %v1010_v45 = vadd.f32 %v1861_v24, %v2606_v9  ;;  %v897_v27 = vpop.f32.mrf.mxu0 }
 0x263   : > { %1729 = vst [vmem:[%s2613_s21] sm:$0xff] %v1728_v21   ;;  %v1001_v12 = vpop.f32.mrf.mxu1  ;;  %v898_v39 = vadd.f32 %v897_v27, %v2597_v6 }
 0x264   : > { %v1773_v32 = vpack.c.bf16 %v1010_v45, %v1007_v26  ;;  %v1002_v33 = vadd.f32 %v1001_v12, %v2606_v9  ;;  %v899_v34 = vpop.f32.mrf.mxu0 }
 0x265   : > { %v900_v36 = vadd.f32 %v899_v34, %v2595_v4  ;;  %v1864_v46 = vpop.f32.mrf.mxu1 }
 0x266   : > { %1819 = vst [vmem:[%s2622_s30 + $0x8] sm:$0xff] %v1773_v32   ;;  %v1768_v56 = vpack.c.bf16 %v1002_v33, %v999_v28  ;;  %v901_v14 = vpop.f32.mrf.mxu0  ;;  %v1023_v44 = vadd.f32 %v1864_v46, %v2606_v9 }
 0x267   : > { %v1693_v40 = vpack.c.bf16 %v900_v36, %v896_v35  ;;  %v902_v41 = vadd.f32 %v901_v14, %v2597_v6  ;;  %v1014_v22 = vpop.f32.mrf.mxu1 }
 0x268   : > { %1769 = vst [vmem:[%s2622_s30] sm:$0xff] %v1768_v56   ;;  %v905_v42 = vpop.f32.mrf.mxu0  ;;  %v1015_v50 = vadd.f32 %v1014_v22, %v2606_v9 }
 0x269   : > { %1805 = vst [vmem:[%s2604_s14 + $0x8] sm:$0xff] %v1693_v40   ;;  %v1733_v43 = vpack.c.bf16 %v902_v41, %v898_v39  ;;  %v1865_v57 = vpop.f32.mrf.mxu1  ;;  %v906_v3 = vadd.f32 %v905_v42, %v2595_v4 }
 0x26a   : > { %v1026_v47 = vadd.f32 %v1865_v57, %v2606_v9  ;;  %v907_v2 = vpop.f32.mrf.mxu0 }
 0x26b   : > { %1812 = vst [vmem:[%s2613_s21 + $0x8] sm:$0xff] %v1733_v43   ;;  %v1017_v49 = vpop.f32.mrf.mxu1  ;;  %v908_v23 = vadd.f32 %v907_v2, %v2597_v6 }
 0x26c   : > { %v1783_v51 = vpack.c.bf16 %v1026_v47, %v1023_v44  ;;  %v1018_v52 = vadd.f32 %v1017_v49, %v2606_v9  ;;  %v909_v53 = vpop.f32.mrf.mxu0 }
 0x26d   : > { %v910_v11 = vadd.f32 %v909_v53, %v2595_v4  ;;  %v1868_v29 = vpop.f32.mrf.mxu1 }
 0x26e   : > { %1821 = vst [vmem:[%s2622_s30 + $0x18] sm:$0xff] %v1783_v51   ;;  %v1778_v54 = vpack.c.bf16 %v1018_v52, %v1015_v50  ;;  %v911_v55 = vpop.f32.mrf.mxu0  ;;  %v1039_v62 = vadd.f32 %v1868_v29, %v2606_v9 }
 0x26f   : > { %v1698_v58 = vpack.c.bf16 %v910_v11, %v906_v3  ;;  %v912_v59 = vadd.f32 %v911_v55, %v2597_v6  ;;  %v1030_v18 = vpop.f32.mrf.mxu1 }
 0x270   : > { %1820 = vst [vmem:[%s2622_s30 + $0x10] sm:$0xff] %v1778_v54   ;;  %v915_v60 = vpop.f32.mrf.mxu0  ;;  %v1031_v15 = vadd.f32 %v1030_v18, %v2606_v9 }
 0x271   : > { %1806 = vst [vmem:[%s2604_s14 + $0x10] sm:$0xff] %v1698_v58   ;;  %v1738_v13 = vpack.c.bf16 %v912_v59, %v908_v23  ;;  %v1869_v61 = vpop.f32.mrf.mxu1  ;;  %v916_v5 = vadd.f32 %v915_v60, %v2595_v4 }
 0x272   : > { %v1042_v31 = vadd.f32 %v1869_v61, %v2606_v9  ;;  %v917_v25 = vpop.f32.mrf.mxu0 }
 0x273   : > { %1813 = vst [vmem:[%s2613_s21 + $0x10] sm:$0xff] %v1738_v13   ;;  %v1033_v63 = vpop.f32.mrf.mxu1  ;;  %v918_v16 = vadd.f32 %v917_v25, %v2597_v6 }
 0x274   : > { %v1793_v0 = vpack.c.bf16 %v1042_v31, %v1039_v62  ;;  %v1034_v1 = vadd.f32 %v1033_v63, %v2606_v9  ;;  %v919_v30 = vpop.f32.mrf.mxu0 }
 0x275   : > { %v920_v37 = vadd.f32 %v919_v30, %v2595_v4  ;;  %v1872_v7 = vpop.f32.mrf.mxu1 }
 0x276   : > { %1823 = vst [vmem:[%s2622_s30 + $0x28] sm:$0xff] %v1793_v0   ;;  %v1788_v48 = vpack.c.bf16 %v1034_v1, %v1031_v15  ;;  %v921_v8 = vpop.f32.mrf.mxu0  ;;  %v1055_v24 = vadd.f32 %v1872_v7, %v2606_v9 }
 0x277   : > { %v1703_v10 = vpack.c.bf16 %v920_v37, %v916_v5  ;;  %v922_v17 = vadd.f32 %v921_v8, %v2597_v6  ;;  %v1046_v38 = vpop.f32.mrf.mxu1 }
 0x278   : > { %1822 = vst [vmem:[%s2622_s30 + $0x20] sm:$0xff] %v1788_v48   ;;  %v925_v19 = vpop.f32.mrf.mxu0  ;;  %v1047_v12 = vadd.f32 %v1046_v38, %v2606_v9 }
 0x279   : > { %1807 = vst [vmem:[%s2604_s14 + $0x18] sm:$0xff] %v1703_v10   ;;  %v1743_v20 = vpack.c.bf16 %v922_v17, %v918_v16  ;;  %v1873_v21 = vpop.f32.mrf.mxu1  ;;  %v926_v34 = vadd.f32 %v925_v19, %v2595_v4 }
 0x27a   : > { %v1058_v26 = vadd.f32 %v1873_v21, %v2606_v9  ;;  %v927_v45 = vpop.f32.mrf.mxu0 }
 0x27b   : > { %1814 = vst [vmem:[%s2613_s21 + $0x18] sm:$0xff] %v1743_v20   ;;  %v1049_v27 = vpop.f32.mrf.mxu1  ;;  %v928_v56 = vadd.f32 %v927_v45, %v2597_v6 }
 0x27c   : > { %v1803_v28 = vpack.c.bf16 %v1058_v26, %v1055_v24  ;;  %v1050_v32 = vadd.f32 %v1049_v27, %v2606_v9  ;;  %v929_v33 = vpop.f32.mrf.mxu0 }
 0x27d   : > { %v930_v35 = vadd.f32 %v929_v33, %v2595_v4 }
 0x27e   : > { %1825 = vst [vmem:[%s2622_s30 + $0x38] sm:$0xff] %v1803_v28   ;;  %v1798_v36 = vpack.c.bf16 %v1050_v32, %v1047_v12  ;;  %v931_v46 = vpop.f32.mrf.mxu0 }
 0x27f   : > { %v1708_v14 = vpack.c.bf16 %v930_v35, %v926_v34  ;;  %v932_v39 = vadd.f32 %v931_v46, %v2597_v6 }
 0x280   : > { %1824 = vst [vmem:[%s2622_s30 + $0x30] sm:$0xff] %v1798_v36   ;;  %v935_v40 = vpop.f32.mrf.mxu0 }
 0x281   : > { %1808 = vst [vmem:[%s2604_s14 + $0x20] sm:$0xff] %v1708_v14   ;;  %v1748_v41 = vpack.c.bf16 %v932_v39, %v928_v56  ;;  %v936_v42 = vadd.f32 %v935_v40, %v2595_v4 }
 0x282   : > { %v937_v9 = vpop.f32.mrf.mxu0 }
 0x283   : > { %1815 = vst [vmem:[%s2613_s21 + $0x20] sm:$0xff] %v1748_v41   ;;  %v938_v44 = vadd.f32 %v937_v9, %v2597_v6 }
 0x284   : > { %v939_v22 = vpop.f32.mrf.mxu0 }
 0x285   : > { %v940_v43 = vadd.f32 %v939_v22, %v2595_v4 }
 0x286   : > { %v941_v57 = vpop.f32.mrf.mxu0 }
 0x287   : > { %v1713_v47 = vpack.c.bf16 %v940_v43, %v936_v42  ;;  %v942_v2 = vadd.f32 %v941_v57, %v2597_v6 }
 0x288   : > { %v945_v49 = vpop.f32.mrf.mxu0 }
 0x289   : > { %1809 = vst [vmem:[%s2604_s14 + $0x28] sm:$0xff] %v1713_v47   ;;  %v1753_v50 = vpack.c.bf16 %v942_v2, %v938_v44  ;;  %v946_v53 = vadd.f32 %v945_v49, %v2595_v4 }
 0x28a   : > { %v947_v51 = vpop.f32.mrf.mxu0 }
 0x28b   : > { %1816 = vst [vmem:[%s2613_s21 + $0x28] sm:$0xff] %v1753_v50   ;;  %v948_v29 = vadd.f32 %v947_v51, %v2597_v6 }
 0x28c   : > { %v949_v52 = vpop.f32.mrf.mxu0 }
 0x28d   : > { %v950_v3 = vadd.f32 %v949_v52, %v2595_v4 }
 0x28e   : > { %v951_v11 = vpop.f32.mrf.mxu0 }
 0x28f   : > { %v1718_v54 = vpack.c.bf16 %v950_v3, %v946_v53  ;;  %v952_v55 = vadd.f32 %v951_v11, %v2597_v6 }
 0x290   : > { %v955_v23 = vpop.f32.mrf.mxu0 }
 0x291   : > { %1810 = vst [vmem:[%s2604_s14 + $0x30] sm:$0xff] %v1718_v54   ;;  %v1758_v58 = vpack.c.bf16 %v952_v55, %v948_v29  ;;  %v956_v60 = vadd.f32 %v955_v23, %v2595_v4 }
 0x292   : > { %v957_v59 = vpop.f32.mrf.mxu0 }
 0x293   : > { %1817 = vst [vmem:[%s2613_s21 + $0x30] sm:$0xff] %v1758_v58   ;;  %v958_v62 = vadd.f32 %v957_v59, %v2597_v6 }
 0x294   : > { %v959_v18 = vpop.f32.mrf.mxu0 }
 0x295   : > { %v960_v13 = vadd.f32 %v959_v18, %v2595_v4 }
 0x296   : > { %v961_v61 = vpop.f32.mrf.mxu0 }
 0x297   : > { %v1723_v31 = vpack.c.bf16 %v960_v13, %v956_v60  ;;  %v962_v25 = vadd.f32 %v961_v61, %v2597_v6 }
 0x299   : > { %1811 = vst [vmem:[%s2604_s14 + $0x38] sm:$0xff] %v1723_v31   ;;  %v1763_v63 = vpack.c.bf16 %v962_v25, %v958_v62 }
 0x29b   : > { %1818 = vst [vmem:[%s2613_s21 + $0x38] sm:$0xff] %v1763_v63  }
 0x29c PF: > { %s23_s29 = sadd.s32 1, %s2229_s29   ;;  %s2719_s24 = smov %s2213_s25 }
 0x29d   : > { %p20_p4 = scmp.ge.s32.totalorder %s23_s29, 4   ;;  %s2720_s25 = smov %s2217_s26 }
 0x29e   : > { %s2721_s26 = smov %s2389_s13  ;;  %s2722_s27 = smov %s2225_s28 }
 0x29f   : > { %s2723_s28 = smov %s2725_s17  ;;  %22 = sbr.rel (!%p20_p4) target bundleno = 6 (0x6), region = 120 }
 0x2a4   :  { %1381 = vsyncpa [#allocation3], 1 }
 0x2a5   :  { %1383 = vsyncpa [#allocation3 + $0x1], 1 }
 0x2a6   :  { %1384 = vsyncpa [#allocation5], 1 }
 0x2a7   :  { %1385 = vsyncpa [#allocation8], 1 }

// kernel: mllama3_vision_encoder.8
= control target key start
LH: loop header
LB: loop body
LE: loop exit
PB: predicated region body
PF: predicated region fallthrough
CT: control target
= control target key end

     0   :  { %13 = vsyncpa [#allocation5], 0  ;;  %s3007_s27 = smov 0   ;;  %s3009_s28 = smov 0   ;;  %s4372_s0 = inlined_call_operand.vmem [shape: f32[2,128,128], index: 0, kind: input, shape index: {}]   ;;  %s4373_s1 = inlined_call_operand.vmem [shape: f32[1,128], index: 1, kind: input, shape index: {}]   ;;  %s4374_s2 = inlined_call_operand.vmem [shape: f32[1,128], index: 2, kind: input, shape index: {}]   ;;  %s4375_s3 = inlined_call_operand.vmem [shape: bf16[128,256], index: 3, kind: input, shape index: {}]   ;;  %s4376_s4 = inlined_call_operand.vmem [shape: f32[1,256], index: 4, kind: input, shape index: {}]   ;;  %s4377_s5 = inlined_call_operand.vmem [shape: bf16[256,128], index: 5, kind: input, shape index: {}]   ;;  %s4378_s6 = inlined_call_operand.vmem [shape: f32[1,128], index: 6, kind: input, shape index: {}]   ;;  %s4379_s7 = inlined_call_operand.vmem [shape: f32[2], index: 7, kind: input, shape index: {}]   ;;  %s4380_s8 = inlined_call_operand.vmem [shape: f32[2,128,128], index: 8, kind: output, shape index: {}]  }
   0x1   :  { %s3011_s29 = smov 0  }
   0x2 LB: > { %s2462_s30 = sadd.s32 4294967295, %s2957_s29   ;;  %s38_s9 = sadd.s32 1, %s2953_s28  ;;  %s2957_s29 = sphi %s3011_s29, %s19_s29   ;;  %s2953_s28 = sphi %s3009_s28, %s4510_s28   ;;  %s2949_s27 = sphi %s3007_s27, %s4509_s27  }
   0x3   : > { %p40_p0 = scmp.ge.s32.totalorder %s38_s9, 2  ;;  %p2464_p1 = scmp.ge.s32.totalorder %s2957_s29, 1 }
   0x4   : > { %p261_p2 = scmp.lt.s32.totalorder %s2957_s29, 3  ;;  %p3032_p4 = scmp.eq.s32.totalorder %s2462_s30, 0 }
   0x5   : > { %s4512_s9 = smov (%p40_p0, %s38_s9), 0  ;;  %s309_s14 = sshll.u32 %s4379_s7, 4  ;;  %s310_s14 = int_to_ptr.vmem [resolvable:$true] %s309_s14 }
   0x6   : > { %p3028_p3 = pnand %p2464_p1, %p261_p2  ;;  %s2916_s15 = scalar_lea.vmem %s310_s14, 16 }
   0x7   : > { %p2917_p7 = scmp.ne.s32.totalorder %s310_s14, %s2916_s15  ;;  %p2924_p11 = scmp.lt.s32.totalorder %s310_s14, %s310_s14 }
   0x8   : > { %p2673_p5 = pneg %p3028_p3  ;;  %p2925_p12 = scmp.lt.s32.totalorder %s2916_s15, %s2916_s15 }
   0xa   : > { %p2674_p6 = pnand %p3032_p4, %p2673_p5  ;;  %p2926_p13 = por %p2925_p12, %p2924_p11 }
   0xc   : > { %p2918_p8 = pneg %p2674_p6 }
   0xe   : > { %p2919_p9 = pnand %p2918_p8, %p2917_p7 }
  0x10   : > { %p2920_p10 = pneg %p2919_p9 }
  0x12   : > { %p2927_p0 = pnand %p2926_p13, %p2920_p10 }
  0x14   : > { %2930 = shalt.err (!%p2927_p0)
}
  0x15   : > { %s2959_s16 = smov [#allocation4]   ;;  %335 = sbr.rel (%p3028_p3) target bundleno = 994 (0x3e2), region = 52 }
  0x16   : > { %2676 = dma.vmem_to_smem (!%p2674_p6), %s310_s14, 16, %s2959_s16, [#allocation5]  }
  0x1a   : > { %2944 = dma.done.wait (%p3032_p4), [#allocation5], 16  }
  0x1b   : > { %2946 = vsyncadd (%p3032_p4), [#allocation5], 4294967280 }
  0x1c   : > { %341 = sfence }
  0x1d   : > { %p393_p1 = scmp.lt.s32.totalorder %s2949_s27, 1  ;;  %v2706_v62 = vld [vmem:[%s4375_s3 + $0x74] ss:$8 sps:$4 sm:$0xff]   ;;  %s4136_s30 = sld [smem:[#allocation4 + $0x1]] }
  0x1e   : > { %941 = vmatprep.subr.bf16.mxu0 %v2706_v62 }
  0x1f   : > { %s4514_s27 = smov (!%p393_p1, %s2949_s27), 1 }
  0x20   : > { %s2538_s17 = sshll.u32 %s4514_s27, 7 }
  0x21   : > { %s3059_s20 = scalar_lea.vmem %s4372_s0, %s2538_s17  ;;  %s4300_s15 = scalar_lea.vmem %s4380_s8, %s2538_s17 }
  0x22   : > { %v434_v0 = vld [vmem:[%s3059_s20] sm:$0xff]  ;;  %v436_v1 = vld [vmem:[%s3059_s20 + $0x10] sm:$0xff]  ;;  %v435_v2 = vld [vmem:[%s3059_s20 + $0x8] sm:$0xff] }
  0x23   : > { %452 = vadd.xlane.f32.xlu0 %v434_v0  ;;  %456 = vadd.xlane.f32.xlu1 %v436_v1  ;;  %v437_v3 = vld [vmem:[%s3059_s20 + $0x18] sm:$0xff]  ;;  %v438_v4 = vld [vmem:[%s3059_s20 + $0x20] sm:$0xff]  ;;  %v439_v5 = vld [vmem:[%s3059_s20 + $0x28] sm:$0xff] }
  0x24   : > { %v440_v6 = vld [vmem:[%s3059_s20 + $0x30] sm:$0xff]  ;;  %v441_v7 = vld [vmem:[%s3059_s20 + $0x38] sm:$0xff]  ;;  %v442_v8 = vld [vmem:[%s3059_s20 + $0x40] sm:$0xff] }
  0x25   : > { %v443_v9 = vld [vmem:[%s3059_s20 + $0x48] sm:$0xff]  ;;  %v444_v10 = vld [vmem:[%s3059_s20 + $0x50] sm:$0xff]  ;;  %v3073_v11 = vld [vmem:[%s3059_s20 + $0x58] sm:$0xff] }
  0x26   : > { %v3077_v12 = vld [vmem:[%s3059_s20 + $0x60] sm:$0xff]  ;;  %v3080_v13 = vld [vmem:[%s3059_s20 + $0x68] sm:$0xff]  ;;  %v3085_v14 = vld [vmem:[%s3059_s20 + $0x70] sm:$0xff] }
  0x27   : > { %454 = vadd.xlane.f32.xlu0 %v435_v2  ;;  %458 = vadd.xlane.f32.xlu1 %v437_v3  ;;  %v3088_v15 = vld [vmem:[%s3059_s20 + $0x78] sm:$0xff] }
  0x2b   : > { %460 = vadd.xlane.f32.xlu0 %v438_v4  ;;  %462 = vadd.xlane.f32.xlu1 %v439_v5 }
  0x2f   : > { %464 = vadd.xlane.f32.xlu0 %v440_v6  ;;  %466 = vadd.xlane.f32.xlu1 %v441_v7 }
  0x33   : > { %468 = vadd.xlane.f32.xlu0 %v442_v8  ;;  %470 = vadd.xlane.f32.xlu1 %v443_v9 }
  0x37   : > { %472 = vadd.xlane.f32.xlu0 %v444_v10  ;;  %474 = vadd.xlane.f32.xlu1 %v3073_v11 }
  0x3b   : > { %476 = vadd.xlane.f32.xlu0 %v3077_v12  ;;  %478 = vadd.xlane.f32.xlu1 %v3080_v13 }
  0x3f   : > { %480 = vadd.xlane.f32.xlu0 %v3085_v14  ;;  %482 = vadd.xlane.f32.xlu1 %v3088_v15 }
  0xac   : > { %v453_v16 = vpop.xlane.xlu0 %452  ;;  %v457_v17 = vpop.xlane.xlu1 %456 }
  0xad   : > { %v485_v18 = vmul.f32 0.0078125, %v453_v16  ;;  %v487_v19 = vmul.f32 0.0078125, %v457_v17 }
  0xaf   : > { %v3092_v20 = vsub.f32 %v434_v0, %v485_v18  ;;  %v3094_v21 = vsub.f32 %v436_v1, %v487_v19  ;;  %v2708_v1 = vld [vmem:[%s4375_s3 + $0x70] ss:$8 sps:$4 sm:$0xff]  }
  0xb0   : > { %v455_v22 = vpop.xlane.xlu0 %454  ;;  %v459_v23 = vpop.xlane.xlu1 %458  ;;  %942 = vmatpush1.bf16.msra.mxu0 %v2708_v1 }
  0xb1   : > { %v486_v24 = vmul.f32 0.0078125, %v455_v22  ;;  %v517_v25 = vmul.f32 %v3092_v20, %v3092_v20  ;;  %v488_v26 = vmul.f32 0.0078125, %v459_v23  ;;  %v519_v29 = vmul.f32 %v3094_v21, %v3094_v21  ;;  %v2712_v22 = vld [vmem:[%s4375_s3 + $0x54] ss:$8 sps:$4 sm:$0xff]   ;;  %v2714_v23 = vld [vmem:[%s4375_s3 + $0x50] ss:$8 sps:$4 sm:$0xff]  }
  0xb3   : > { %v3098_v27 = vsub.f32 %v435_v2, %v486_v24  ;;  %533 = vadd.xlane.f32.xlu0 %v517_v25  ;;  %v3100_v28 = vsub.f32 %v437_v3, %v488_v26  ;;  %v2715_v24 = vld [vmem:[%s4375_s3 + $0x44] ss:$8 sps:$4 sm:$0xff]   ;;  %v2717_v25 = vld [vmem:[%s4375_s3 + $0x40] ss:$8 sps:$4 sm:$0xff]   ;;  %v2718_v26 = vld [vmem:[%s4375_s3 + $0x34] ss:$8 sps:$4 sm:$0xff]  }
  0xb4   : > { %v461_v30 = vpop.xlane.xlu0 %460  ;;  %v463_v31 = vpop.xlane.xlu1 %462 }
  0xb5   : > { %v489_v32 = vmul.f32 0.0078125, %v461_v30  ;;  %v518_v33 = vmul.f32 %v3098_v27, %v3098_v27  ;;  %v490_v34 = vmul.f32 0.0078125, %v463_v31  ;;  %v520_v37 = vmul.f32 %v3100_v28, %v3100_v28  ;;  %v2721_v30 = vld [vmem:[%s4375_s3 + $0x24] ss:$8 sps:$4 sm:$0xff]   ;;  %v2723_v31 = vld [vmem:[%s4375_s3 + $0x20] ss:$8 sps:$4 sm:$0xff]  }
  0xb7   : > { %v3106_v35 = vsub.f32 %v438_v4, %v489_v32  ;;  %537 = vadd.xlane.f32.xlu0 %v519_v29  ;;  %535 = vadd.xlane.f32.xlu1 %v518_v33  ;;  %v3108_v36 = vsub.f32 %v439_v5, %v490_v34  ;;  %v2720_v29 = vld [vmem:[%s4375_s3 + $0x30] ss:$8 sps:$4 sm:$0xff]   ;;  %v2724_v32 = vld [vmem:[%s4375_s3 + $0x14] ss:$8 sps:$4 sm:$0xff]   ;;  %v2727_v34 = vld [vmem:[%s4375_s3 + $0x4] ss:$8 sps:$4 sm:$0xff]  }
  0xb8   : > { %v465_v38 = vpop.xlane.xlu0 %464  ;;  %v467_v39 = vpop.xlane.xlu1 %466  ;;  %v2726_v33 = vld [vmem:[%s4375_s3 + $0x10] ss:$8 sps:$4 sm:$0xff]  }
  0xb9   : > { %v491_v40 = vmul.f32 0.0078125, %v465_v38  ;;  %v521_v41 = vmul.f32 %v3106_v35, %v3106_v35  ;;  %v492_v42 = vmul.f32 0.0078125, %v467_v39  ;;  %v522_v45 = vmul.f32 %v3108_v36, %v3108_v36 }
  0xba   : > { %v2960_v38 = vmov 0  }
  0xbb   : > { %v3114_v43 = vsub.f32 %v440_v6, %v491_v40  ;;  %539 = vadd.xlane.f32.xlu1 %v520_v37  ;;  %541 = vadd.xlane.f32.xlu0 %v521_v41  ;;  %v3116_v44 = vsub.f32 %v441_v7, %v492_v42  ;;  %v2729_v37 = vld [vmem:[%s4375_s3] ss:$8 sps:$4 sm:$0xff]  }
  0xbc   : > { %v469_v46 = vpop.xlane.xlu0 %468  ;;  %v471_v47 = vpop.xlane.xlu1 %470  ;;  %973 = vmatprep.mubr.bf16.mxu0 %v2960_v38 }
  0xbd   : > { %v493_v48 = vmul.f32 0.0078125, %v469_v46  ;;  %v523_v49 = vmul.f32 %v3114_v43, %v3114_v43  ;;  %v494_v50 = vmul.f32 0.0078125, %v471_v47  ;;  %v524_v53 = vmul.f32 %v3116_v44, %v3116_v44 }
  0xbf   : > { %v3122_v51 = vsub.f32 %v442_v8, %v493_v48  ;;  %543 = vadd.xlane.f32.xlu1 %v522_v45  ;;  %545 = vadd.xlane.f32.xlu0 %v523_v49  ;;  %v3124_v52 = vsub.f32 %v443_v9, %v494_v50  ;;  %v2709_v8 = vld [vmem:[%s4375_s3 + $0x64] ss:$8 sps:$4 sm:$0xff]  }
  0xc0   : > { %v473_v54 = vpop.xlane.xlu0 %472  ;;  %v475_v55 = vpop.xlane.xlu1 %474  ;;  %943 = vmatprep.subr.bf16.mxu0 %v2709_v8 }
  0xc1   : > { %v495_v56 = vmul.f32 0.0078125, %v473_v54  ;;  %v525_v57 = vmul.f32 %v3122_v51, %v3122_v51  ;;  %v496_v58 = vmul.f32 0.0078125, %v475_v55  ;;  %v526_v61 = vmul.f32 %v3124_v52, %v3124_v52 }
  0xc3   : > { %v3130_v59 = vsub.f32 %v444_v10, %v495_v56  ;;  %547 = vadd.xlane.f32.xlu1 %v524_v53  ;;  %549 = vadd.xlane.f32.xlu0 %v525_v57  ;;  %v3133_v60 = vsub.f32 %v3073_v11, %v496_v58  ;;  %v2711_v11 = vld [vmem:[%s4375_s3 + $0x60] ss:$8 sps:$4 sm:$0xff]  }
  0xc4   : > { %v477_v63 = vpop.xlane.xlu0 %476  ;;  %v479_v0 = vpop.xlane.xlu1 %478  ;;  %944 = vmatpush1.bf16.msra.mxu0 %v2711_v11 }
  0xc5   : > { %v497_v2 = vmul.f32 0.0078125, %v477_v63  ;;  %v527_v3 = vmul.f32 %v3130_v59, %v3130_v59  ;;  %v498_v4 = vmul.f32 0.0078125, %v479_v0  ;;  %v528_v7 = vmul.f32 %v3133_v60, %v3133_v60  ;;  %945 = vmatprep.subr.bf16.mxu0 %v2712_v22 }
  0xc7   : > { %v3146_v5 = vsub.f32 %v3077_v12, %v497_v2  ;;  %551 = vadd.xlane.f32.xlu1 %v526_v61  ;;  %553 = vadd.xlane.f32.xlu0 %v527_v3  ;;  %v3149_v6 = vsub.f32 %v3080_v13, %v498_v4 }
  0xc8   : > { %v481_v9 = vpop.xlane.xlu0 %480  ;;  %v483_v10 = vpop.xlane.xlu1 %482  ;;  %946 = vmatpush1.bf16.msra.mxu0 %v2714_v23 }
  0xc9   : > { %v499_v12 = vmul.f32 0.0078125, %v481_v9  ;;  %v529_v16 = vmul.f32 %v3146_v5, %v3146_v5  ;;  %v500_v17 = vmul.f32 0.0078125, %v483_v10  ;;  %v530_v19 = vmul.f32 %v3149_v6, %v3149_v6  ;;  %947 = vmatprep.subr.bf16.mxu0 %v2715_v24  ;;  %v3213_v9 = vld [vmem:[%s4373_s1] ss:$0 sm:$0xff] }
  0xca   : > { %v3220_v24 = vld [vmem:[%s4374_s2] ss:$0 sm:$0xff] }
  0xcb   : > { %v3162_v13 = vsub.f32 %v3085_v14, %v499_v12  ;;  %555 = vadd.xlane.f32.xlu1 %v528_v7  ;;  %557 = vadd.xlane.f32.xlu0 %v529_v16  ;;  %v3165_v18 = vsub.f32 %v3088_v15, %v500_v17 }
  0xcc   : > { %948 = vmatpush1.bf16.msra.mxu0 %v2717_v25 }
  0xcd   : > { %v531_v14 = vmul.f32 %v3162_v13, %v3162_v13  ;;  %v532_v15 = vmul.f32 %v3165_v18, %v3165_v18  ;;  %949 = vmatprep.subr.bf16.mxu0 %v2718_v26 }
  0xcf   : > { %559 = vadd.xlane.f32.xlu1 %v530_v19  ;;  %561 = vadd.xlane.f32.xlu0 %v531_v14 }
  0xd0   : > { %950 = vmatpush1.bf16.msra.mxu0 %v2720_v29 }
  0xd1   : > { %951 = vmatprep.subr.bf16.mxu0 %v2721_v30 }
  0xd3   : > { %563 = vadd.xlane.f32.xlu1 %v532_v15 }
  0xd4   : > { %952 = vmatpush1.bf16.msra.mxu0 %v2723_v31 }
  0xd5   : > { %953 = vmatprep.subr.bf16.mxu0 %v2724_v32 }
  0xd8   : > { %954 = vmatpush1.bf16.msra.mxu0 %v2726_v33 }
  0xd9   : > { %955 = vmatprep.subr.bf16.mxu0 %v2727_v34 }
  0xdc   : > { %956 = vmatpush1.bf16.msra.mxu0 %v2729_v37 }
 0x13c   : > { %v534_v39 = vpop.xlane.xlu0 %533 }
 0x13d   : > { %v565_v40 = vmul.f32 0.0078125, %v534_v39 }
 0x13f   : > { %v581_v41 = vadd.f32 1e-05, %v565_v40 }
 0x140   : > { %v536_v42 = vpop.xlane.xlu1 %535  ;;  %v538_v45 = vpop.xlane.xlu0 %537 }
 0x141   : > { %2754 = vrsqrt.f32 %v581_v41  ;;  %v566_v46 = vmul.f32 0.0078125, %v536_v42  ;;  %v567_v47 = vmul.f32 0.0078125, %v538_v45 }
 0x143   : > { %v582_v48 = vadd.f32 1e-05, %v566_v46  ;;  %v583_v49 = vadd.f32 1e-05, %v567_v47 }
 0x144   : > { %v540_v50 = vpop.xlane.xlu1 %539  ;;  %v542_v53 = vpop.xlane.xlu0 %541 }
 0x145   : > { %2756 = vrsqrt.f32 %v582_v48  ;;  %v568_v54 = vmul.f32 0.0078125, %v540_v50  ;;  %v569_v55 = vmul.f32 0.0078125, %v542_v53 }
 0x146   : > { %2758 = vrsqrt.f32 %v583_v49 }
 0x147   : > { %v584_v56 = vadd.f32 1e-05, %v568_v54  ;;  %v585_v57 = vadd.f32 1e-05, %v569_v55 }
 0x148   : > { %v544_v58 = vpop.xlane.xlu1 %543  ;;  %v546_v61 = vpop.xlane.xlu0 %545 }
 0x149   : > { %2760 = vrsqrt.f32 %v584_v56  ;;  %v570_v62 = vmul.f32 0.0078125, %v544_v58  ;;  %v571_v63 = vmul.f32 0.0078125, %v546_v61 }
 0x14a   : > { %2762 = vrsqrt.f32 %v585_v57 }
 0x14b   : > { %v586_v0 = vadd.f32 1e-05, %v570_v62  ;;  %v587_v1 = vadd.f32 1e-05, %v571_v63 }
 0x14c   : > { %v548_v2 = vpop.xlane.xlu1 %547  ;;  %v550_v3 = vpop.xlane.xlu0 %549 }
 0x14d   : > { %2764 = vrsqrt.f32 %v586_v0  ;;  %v572_v4 = vmul.f32 0.0078125, %v548_v2  ;;  %v573_v7 = vmul.f32 0.0078125, %v550_v3 }
 0x14e   : > { %v2755_v8 = vpop.eup %2754  ;;  %2766 = vrsqrt.f32 %v587_v1 }
 0x14f   : > { %v613_v10 = vmul.f32 %v2755_v8, %v3092_v20  ;;  %v588_v11 = vadd.f32 1e-05, %v572_v4  ;;  %v589_v12 = vadd.f32 1e-05, %v573_v7 }
 0x150   : > { %v552_v16 = vpop.xlane.xlu1 %551  ;;  %v554_v17 = vpop.xlane.xlu0 %553 }
 0x151   : > { %2768 = vrsqrt.f32 %v588_v11  ;;  %v574_v19 = vmul.f32 0.0078125, %v552_v16  ;;  %v575_v22 = vmul.f32 0.0078125, %v554_v17  ;;  %v635_v14 = vmul.f32 %v3213_v9, %v613_v10 }
 0x152   : > { %v2757_v23 = vpop.eup %2756  ;;  %2770 = vrsqrt.f32 %v589_v12 }
 0x153   : > { %v2759_v15 = vpop.eup %2758  ;;  %v614_v25 = vmul.f32 %v2757_v23, %v3098_v27  ;;  %v590_v20 = vadd.f32 1e-05, %v574_v19  ;;  %v591_v26 = vadd.f32 1e-05, %v575_v22  ;;  %v657_v39 = vadd.f32 %v3220_v24, %v635_v14 }
 0x154   : > { %v615_v29 = vmul.f32 %v2759_v15, %v3094_v21  ;;  %v556_v30 = vpop.xlane.xlu1 %555  ;;  %v558_v31 = vpop.xlane.xlu0 %557 }
 0x155   : > { %v636_v32 = vmul.f32 %v3213_v9, %v614_v25  ;;  %2772 = vrsqrt.f32 %v590_v20  ;;  %v576_v33 = vmul.f32 0.0078125, %v556_v30  ;;  %v577_v34 = vmul.f32 0.0078125, %v558_v31 }
 0x156   : > { %v2761_v37 = vpop.eup %2760  ;;  %v637_v40 = vmul.f32 %v3213_v9, %v615_v29  ;;  %2774 = vrsqrt.f32 %v591_v26 }
 0x157   : > { %v2763_v41 = vpop.eup %2762  ;;  %v658_v27 = vadd.f32 %v3220_v24, %v636_v32  ;;  %v616_v42 = vmul.f32 %v2761_v37, %v3100_v28  ;;  %v592_v45 = vadd.f32 1e-05, %v576_v33  ;;  %v593_v21 = vadd.f32 1e-05, %v577_v34 }
 0x158   : > { %v617_v46 = vmul.f32 %v2763_v41, %v3106_v35  ;;  %v560_v47 = vpop.xlane.xlu1 %559  ;;  %v562_v48 = vpop.xlane.xlu0 %561  ;;  %v659_v28 = vadd.f32 %v3220_v24, %v637_v40 }
 0x159   : > { %v2559_v49 = vpack.c.bf16 %v658_v27, %v657_v39  ;;  %v638_v50 = vmul.f32 %v3213_v9, %v616_v42  ;;  %2776 = vrsqrt.f32 %v592_v45  ;;  %v578_v53 = vmul.f32 0.0078125, %v560_v47 }
 0x15a   : > { %v2765_v54 = vpop.eup %2764  ;;  %v639_v55 = vmul.f32 %v3213_v9, %v617_v46  ;;  %2778 = vrsqrt.f32 %v593_v21  ;;  %v579_v56 = vmul.f32 0.0078125, %v562_v48 }
 0x15b   : > { %v2767_v57 = vpop.eup %2766  ;;  %2560 = vst [vmem:[#allocation3] sm:$0xff] %v2559_v49   ;;  %v660_v58 = vadd.f32 %v3220_v24, %v638_v50  ;;  %v618_v35 = vmul.f32 %v2765_v54, %v3108_v36  ;;  %v594_v61 = vadd.f32 1e-05, %v578_v53 }
 0x15c   : > { %v619_v62 = vmul.f32 %v2767_v57, %v3114_v43  ;;  %v595_v63 = vadd.f32 1e-05, %v579_v56  ;;  %v564_v0 = vpop.xlane.xlu1 %563  ;;  %v661_v7 = vadd.f32 %v3220_v24, %v639_v55 }
 0x15d   : > { %v2564_v1 = vpack.c.bf16 %v660_v58, %v659_v28  ;;  %v640_v2 = vmul.f32 %v3213_v9, %v618_v35  ;;  %2780 = vrsqrt.f32 %v594_v61  ;;  %v580_v3 = vmul.f32 0.0078125, %v564_v0  ;;  %v2738_v35 = vld [vmem:[%s4377_s5 + $0x78] sm:$0xff]   ;;  %v2743_v0 = vld [vmem:[%s4377_s5 + $0x28] sm:$0xff]  }
 0x15e   : > { %v2769_v4 = vpop.eup %2768  ;;  %2782 = vrsqrt.f32 %v595_v63  ;;  %v641_v36 = vmul.f32 %v3213_v9, %v619_v62  ;;  %v2739_v61 = vld [vmem:[%s4377_s5 + $0x38] sm:$0xff]   ;;  %2603 = vmatprep.subr.bf16.mxu1 %v2738_v35  ;;  %v2740_v62 = vld [vmem:[%s4377_s5 + $0x70] sm:$0xff]   ;;  %v2742_v63 = vld [vmem:[%s4377_s5 + $0x68] sm:$0xff]  }
 0x15f   : > { %v2771_v8 = vpop.eup %2770  ;;  %2596 = vst [vmem:[#allocation3 + $0x8] sm:$0xff] %v2564_v1   ;;  %v662_v10 = vadd.f32 %v3220_v24, %v640_v2  ;;  %v620_v11 = vmul.f32 %v2769_v4, %v3116_v44  ;;  %v596_v43 = vadd.f32 1e-05, %v580_v3  ;;  %2604 = vmatpush3.bf16.msra.mxu1 %v2739_v61  ;;  %v2744_v1 = vld [vmem:[%s4377_s5 + $0x60] sm:$0xff]   ;;  %v2746_v3 = vld [vmem:[%s4377_s5 + $0x58] sm:$0xff]  }
 0x160   : > { %v621_v12 = vmul.f32 %v2771_v8, %v3122_v51  ;;  %v663_v14 = vadd.f32 %v3220_v24, %v641_v36  ;;  %2605 = vmatprep.subr.bf16.mxu1 %v2740_v62  ;;  %v2745_v2 = vld [vmem:[%s4377_s5 + $0x20] sm:$0xff]   ;;  %v2747_v4 = vld [vmem:[%s4377_s5 + $0x18] sm:$0xff]  }
 0x161   : > { %v2569_v16 = vpack.c.bf16 %v662_v10, %v661_v7  ;;  %v642_v17 = vmul.f32 %v3213_v9, %v620_v11  ;;  %2784 = vrsqrt.f32 %v596_v43  ;;  %v803_v7 = vlaneseq  ;;  %v2748_v43 = vld [vmem:[%s4377_s5 + $0x50] sm:$0xff]  }
 0x162   : > { %v2773_v19 = vpop.eup %2772  ;;  %v2730_v22 = vld [vmem:[#allocation3] sm:$0xff]   ;;  %v643_v25 = vmul.f32 %v3213_v9, %v621_v12 }
 0x163   : > { %v2775_v23 = vpop.eup %2774  ;;  %2597 = vst [vmem:[#allocation3 + $0x10] sm:$0xff] %v2569_v16   ;;  %v664_v15 = vadd.f32 %v3220_v24, %v642_v17  ;;  %v622_v20 = vmul.f32 %v2773_v19, %v3124_v52  ;;  %974 = vmatmul.mubr.bf16.vlgmr.msra.gmra.mxu0 %v2730_v22  ;;  %v804_v10 = vshrl.u32 %v803_v7, 7  ;;  %v801_v12 = vld [vmem:[%s4376_s4] sm:$0x3]  ;;  %v2749_v16 = vld [vmem:[%s4377_s5 + $0x10] sm:$0xff]  }
 0x164   : > { %v623_v44 = vmul.f32 %v2775_v23, %v3130_v59  ;;  %983 = vmatprep.mubr.bf16.mxu0 %v2960_v38  ;;  %v665_v31 = vadd.f32 %v3220_v24, %v643_v25 }
 0x165   : > { %v2574_v51 = vpack.c.bf16 %v664_v15, %v663_v14  ;;  %v644_v26 = vmul.f32 %v3213_v9, %v622_v20  ;;  %v805_v11 = vsub.s32 0, %v804_v10  ;;  %v809_v15 = vsub.s32 1, %v804_v10  ;;  %v2750_v20 = vld [vmem:[%s4377_s5 + $0x48] sm:$0xff]  }
 0x166   : > { %v2777_v29 = vpop.eup %2776  ;;  %v645_v33 = vmul.f32 %v3213_v9, %v623_v44  ;;  %v2731_v40 = vld [vmem:[#allocation3 + $0x8] sm:$0xff]  }
 0x167   : > { %v2779_v30 = vpop.eup %2778  ;;  %2598 = vst [vmem:[#allocation3 + $0x18] sm:$0xff] %v2574_v51   ;;  %v666_v32 = vadd.f32 %v3220_v24, %v644_v26  ;;  %v624_v34 = vmul.f32 %v2777_v29, %v3133_v60  ;;  %v3314_v19 = vrot.slane %v801_v12, %v805_v11  ;;  %v2751_v51 = vld [vmem:[%s4377_s5 + $0x8] sm:$0xff]   ;;  %v3328_v26 = vrot.slane %v801_v12, %v809_v15 }
 0x168   : > { %v625_v52 = vmul.f32 %v2779_v30, %v3146_v5  ;;  %v667_v27 = vadd.f32 %v3220_v24, %v645_v33 }
 0x169   : > { %v2579_v59 = vpack.c.bf16 %v666_v32, %v665_v31  ;;  %v646_v37 = vmul.f32 %v3213_v9, %v624_v34 }
 0x16a   : > { %v2781_v39 = vpop.eup %2780  ;;  %v647_v45 = vmul.f32 %v3213_v9, %v625_v52 }
 0x16b   : > { %v2783_v41 = vpop.eup %2782  ;;  %2599 = vst [vmem:[#allocation3 + $0x20] sm:$0xff] %v2579_v59   ;;  %v668_v42 = vadd.f32 %v3220_v24, %v646_v37  ;;  %v626_v21 = vmul.f32 %v2781_v39, %v3149_v6  ;;  %984 = vmatmul.mubr.bf16.gmra.mxu0 %v2731_v40 }
 0x16c   : > { %v627_v46 = vmul.f32 %v2783_v41, %v3162_v13  ;;  %993 = vmatprep.mubr.bf16.mxu0 %v2960_v38  ;;  %v669_v48 = vadd.f32 %v3220_v24, %v647_v45  ;;  %v2732_v13 = vld [vmem:[#allocation3 + $0x10] sm:$0xff]  }
 0x16d   : > { %v2584_v60 = vpack.c.bf16 %v668_v42, %v667_v27  ;;  %v648_v5 = vmul.f32 %v3213_v9, %v626_v21 }
 0x16e   : > { %v2785_v47 = vpop.eup %2784  ;;  %v649_v50 = vmul.f32 %v3213_v9, %v627_v46  ;;  %v2733_v28 = vld [vmem:[#allocation3 + $0x18] sm:$0xff]  }
 0x16f   : > { %2600 = vst [vmem:[#allocation3 + $0x28] sm:$0xff] %v2584_v60   ;;  %v670_v49 = vadd.f32 %v3220_v24, %v648_v5  ;;  %v628_v53 = vmul.f32 %v2785_v47, %v3165_v18 }
 0x170   : > { %v671_v55 = vadd.f32 %v3220_v24, %v649_v50 }
 0x171   : > { %v2589_v54 = vpack.c.bf16 %v670_v49, %v669_v48  ;;  %v650_v6 = vmul.f32 %v3213_v9, %v628_v53 }
 0x172   : > { %v2734_v58 = vld [vmem:[#allocation3 + $0x20] sm:$0xff]  }
 0x173   : > { %2601 = vst [vmem:[#allocation3 + $0x30] sm:$0xff] %v2589_v54   ;;  %v672_v56 = vadd.f32 %v3220_v24, %v650_v6  ;;  %994 = vmatmul.mubr.bf16.gmra.mxu0 %v2732_v13  ;;  %v2752_v6 = vld [vmem:[%s4377_s5 + $0x40] sm:$0xff]  }
 0x174   : > { %1003 = vmatprep.mubr.bf16.mxu0 %v2960_v38 }
 0x175   : > { %v2594_v57 = vpack.c.bf16 %v672_v56, %v671_v55 }
 0x176   : > { %v2735_v18 = vld [vmem:[#allocation3 + $0x28] sm:$0xff]  }
 0x177   : > { %2602 = vst [vmem:[#allocation3 + $0x38] sm:$0xff] %v2594_v57   ;;  %v2753_v57 = vld [vmem:[%s4377_s5] sm:$0xff]  }
 0x17a   : > { %v2736_v9 = vld [vmem:[#allocation3 + $0x30] sm:$0xff]  }
 0x17b   : > { %1004 = vmatmul.mubr.bf16.gmra.mxu0 %v2733_v28 }
 0x17c   : > { %1013 = vmatprep.mubr.bf16.mxu0 %v2960_v38 }
 0x17e   : > { %v2737_v24 = vld [vmem:[#allocation3 + $0x38] sm:$0xff]  }
 0x183   : > { %1014 = vmatmul.mubr.bf16.gmra.mxu0 %v2734_v58 }
 0x184   : > { %1023 = vmatprep.mubr.bf16.mxu0 %v2960_v38 }
 0x18b   : > { %1024 = vmatmul.mubr.bf16.gmra.mxu0 %v2735_v18 }
 0x18c   : > { %1033 = vmatprep.mubr.bf16.mxu0 %v2960_v38 }
 0x193   : > { %1034 = vmatmul.mubr.bf16.gmra.mxu0 %v2736_v9 }
 0x194   : > { %1043 = vmatprep.mubr.bf16.mxu0 %v2960_v38  ;;  %v2741_v38 = vld [vmem:[%s4377_s5 + $0x30] sm:$0xff]  }
 0x195   : > { %2606 = vmatpush3.bf16.msra.mxu1 %v2741_v38 }
 0x196   : > { %2607 = vmatprep.subr.bf16.mxu1 %v2742_v63 }
 0x199   : > { %2608 = vmatpush3.bf16.msra.mxu1 %v2743_v0 }
 0x19a   : > { %2609 = vmatprep.subr.bf16.mxu1 %v2744_v1 }
 0x19b   : > { %1044 = vmatmul.mubr.bf16.gmra.mxu0 %v2737_v24 }
 0x19d   : > { %2610 = vmatpush3.bf16.msra.mxu1 %v2745_v2 }
 0x19e   : > { %2611 = vmatprep.subr.bf16.mxu1 %v2746_v3 }
 0x1a1   : > { %2612 = vmatpush3.bf16.msra.mxu1 %v2747_v4 }
 0x1a2   : > { %2613 = vmatprep.subr.bf16.mxu1 %v2748_v43 }
 0x1a5   : > { %2614 = vmatpush3.bf16.msra.mxu1 %v2749_v16 }
 0x1a6   : > { %2615 = vmatprep.subr.bf16.mxu1 %v2750_v20 }
 0x1a9   : > { %2616 = vmatpush3.bf16.msra.mxu1 %v2751_v51 }
 0x1aa   : > { %2617 = vmatprep.subr.bf16.mxu1 %v2752_v6 }
 0x1ad   : > { %2618 = vmatpush3.bf16.msra.mxu1 %v2753_v57 }
 0x223   : > { %v975_v8 = vpop.f32.mrf.mxu0 }
 0x224   : > { %v3317_v23 = vadd.f32 %v975_v8, %v3314_v19 }
 0x225   : > { %v977_v36 = vpop.f32.mrf.mxu0 }
 0x226   : > { %v3320_v25 = vmul.f32 0.70710677, %v3317_v23  ;;  %v978_v60 = vadd.f32 %v977_v36, %v3328_v26 }
 0x227   : > { %v979_v17 = vpop.f32.mrf.mxu0 }
 0x228   : > { %v3331_v29 = vadd.f32 %v979_v17, %v3314_v19  ;;  %v1182_v30 = vand.u32 2147483647, %v3320_v25  ;;  %v1087_v13 = vmul.f32 0.70710677, %v978_v60  ;;  %vm1118_vm0 = vcmp.lt.f32.partialorder %v3320_v25, 0.0 }
 0x229   : > { %v981_v22 = vpop.f32.mrf.mxu0  ;;  %v3418_v17 = vmul.f32 0.5, %v3317_v23 }
 0x22a   : > { %v3341_v34 = vmul.f32 0.70710677, %v3331_v29  ;;  %v1214_v52 = vmul.f32 0.3275911, %v1182_v30  ;;  %v982_v24 = vadd.f32 %v981_v22, %v3328_v26  ;;  %v1183_v61 = vand.u32 2147483647, %v1087_v13 }
 0x22b   : > { %v985_v14 = vpop.f32.mrf.mxu0  ;;  %v1630_v38 = vsub.f32 0.0, %v1182_v30  ;;  %vm1119_vm1 = vcmp.lt.f32.partialorder %v1087_v13, 0.0  ;;  %v3429_v23 = vmul.f32 0.5, %v3331_v29 }
 0x22c   : > { %v3335_v31 = vadd.f32 %v985_v14, %v3314_v19  ;;  %v3353_v41 = vand.u32 2147483647, %v3341_v34  ;;  %v1246_v27 = vadd.f32 1.0, %v1214_v52  ;;  %v3403_v1 = vmul.f32 0.70710677, %v982_v24 }
 0x22d   : > { %v987_v44 = vpop.f32.mrf.mxu0  ;;  %v1631_v3 = vsub.f32 0.0, %v1183_v61  ;;  %v1662_v8 = vmul.f32 %v1630_v38, %v1182_v30  ;;  %v1215_v43 = vmul.f32 0.3275911, %v1183_v61  ;;  %v3425_v30 = vmul.f32 0.5, %v978_v60 }
 0x22e   : > { %v3338_v32 = vadd.f32 %v987_v44, %v3328_v26  ;;  %v3344_v59 = vmul.f32 0.70710677, %v3335_v31  ;;  %v1216_v5 = vmul.f32 0.3275911, %v3353_v41  ;;  %2786 = vrcp.f32 %v1246_v27  ;;  %4412 = vst [vmem:[#allocation7_spill] sm:$0xff] %v3403_v1 }
 0x22f   : > { %v989_v33 = vpop.f32.mrf.mxu0  ;;  %v1185_v12 = vand.u32 2147483647, %v3403_v1  ;;  %v1663_v22 = vmul.f32 %v1631_v3, %v1183_v61  ;;  %v1694_v25 = vmul.f32 1.442695, %v1662_v8  ;;  %v1632_v20 = vsub.f32 0.0, %v3353_v41  ;;  %4413 = vst [vmem:[#allocation8_spill] sm:$0xff] %v3425_v30 }
 0x230   : > { %v3347_v37 = vmul.f32 0.70710677, %v3338_v32  ;;  %v3350_v39 = vadd.f32 %v989_v33, %v3314_v19  ;;  %v3356_v42 = vand.u32 2147483647, %v3344_v59  ;;  %v1248_v55 = vadd.f32 1.0, %v1216_v5 }
 0x231   : > { %v991_v40 = vpop.f32.mrf.mxu0  ;;  %v4381_v44 = vmov 1.0   ;;  %v1633_v27 = vsub.f32 0.0, %v1185_v12  ;;  %v1696_v5 = vmul.f32 1.442695, %v1663_v22  ;;  %vm1120_vm2 = vcmp.lt.f32.partialorder %v3341_v34, 0.0 }
 0x232   : > { %v3359_v45 = vand.u32 2147483647, %v3347_v37  ;;  %v3362_v21 = vmul.f32 0.70710677, %v3350_v39  ;;  %v3367_v47 = vadd.f32 %v991_v40, %v3328_v26  ;;  %v1218_v48 = vmul.f32 0.3275911, %v3356_v42 }
 0x233   : > { %v995_v46 = vpop.f32.mrf.mxu0  ;;  %2788 = vrcp.f32 %v1248_v55  ;;  %v3423_v51 = vsel %vm1118_vm0, -1.0, %v4381_v44  ;;  %v1247_v40 = vadd.f32 1.0, %v1215_v43  ;;  %v3441_v6 = vmul.f32 0.5, %v982_v24 }
 0x234   : > { %v1219_v49 = vmul.f32 0.3275911, %v3359_v45  ;;  %v3372_v50 = vadd.f32 %v995_v46, %v3314_v19  ;;  %v3375_v53 = vand.u32 2147483647, %v3362_v21  ;;  %v3381_v56 = vmul.f32 0.70710677, %v3367_v47 }
 0x235   : > { %v997_v54 = vpop.f32.mrf.mxu0  ;;  %v1250_v28 = vadd.f32 1.0, %v1218_v48  ;;  %v3436_v48 = vsel %vm1119_vm1, -1.0, %v4381_v44  ;;  %4415 = vst [vmem:[#allocation10_spill] sm:$0xff] %v3441_v6  ;;  %v1217_v55 = vmul.f32 0.3275911, %v1185_v12  ;;  %v1634_v57 = vsub.f32 0.0, %v3356_v42 }
 0x236   : > { %v1251_v58 = vadd.f32 1.0, %v1219_v49  ;;  %v3387_v18 = vmul.f32 0.70710677, %v3372_v50  ;;  %v3390_v9 = vadd.f32 %v997_v54, %v3328_v26  ;;  %v1220_v35 = vmul.f32 0.3275911, %v3375_v53  ;;  %4414 = vst [vmem:[#allocation9_spill] sm:$0xff] %v3436_v48 }
 0x237   : > { %v3395_v62 = vand.u32 2147483647, %v3381_v56  ;;  %2790 = vrcp.f32 %v1250_v28  ;;  %v999_v7 = vpop.f32.mrf.mxu0  ;;  %v1664_v54 = vmul.f32 %v1632_v20, %v3353_v41  ;;  %v1665_v61 = vmul.f32 %v1633_v27, %v1185_v12 }
 0x238   : > { %2792 = vrcp.f32 %v1251_v58  ;;  %v3398_v63 = vand.u32 2147483647, %v3387_v18  ;;  %v3401_v0 = vmul.f32 0.70710677, %v3390_v9  ;;  %v1252_v2 = vadd.f32 1.0, %v1220_v35 }
 0x239   : > { %v1221_v4 = vmul.f32 0.3275911, %v3395_v62  ;;  %v3415_v16 = vadd.f32 %v999_v7, %v3314_v19  ;;  %v1001_v29 = vpop.f32.mrf.mxu0  ;;  %v3451_v35 = vsel %vm1120_vm2, -1.0, %v4381_v44  ;;  %v3458_v38 = vmul.f32 0.5, %v3335_v31 }
 0x23a   : > { %v1222_v36 = vmul.f32 0.3275911, %v3398_v63  ;;  %v3411_v11 = vand.u32 2147483647, %v3401_v0  ;;  %2794 = vrcp.f32 %v1252_v2  ;;  %v3461_v2 = vadd.f32 %v1001_v29, %v3328_v26 }
 0x23b   : > { %v3406_v10 = vpop.eup %2786  ;;  %v1253_v14 = vadd.f32 1.0, %v1221_v4  ;;  %v3432_v46 = vmul.f32 0.70710677, %v3415_v16  ;;  %v1698_v4 = vmul.f32 1.442695, %v1664_v54  ;;  %v1635_v7 = vsub.f32 0.0, %v3359_v45 }
 0x23c   : > { %v1342_v15 = vmul.f32 1.0614054, %v3406_v10  ;;  %v1254_v33 = vadd.f32 1.0, %v1222_v36  ;;  %v1223_v52 = vmul.f32 0.3275911, %v3411_v11  ;;  %v1249_v8 = vadd.f32 1.0, %v1217_v55 }
 0x23d   : > { %2796 = vrcp.f32 %v1253_v14  ;;  %v3454_v41 = vand.u32 2147483647, %v3432_v46  ;;  %v1666_v36 = vmul.f32 %v1634_v57, %v3356_v42  ;;  %v1700_v12 = vmul.f32 1.442695, %v1665_v61 }
 0x23e   : > { %v1374_v49 = vadd.f32 -1.4531521, %v1342_v15  ;;  %2798 = vpow2.f32 %v1694_v25  ;;  %v1255_v28 = vadd.f32 1.0, %v1223_v52  ;;  %vm1122_vm3 = vcmp.lt.f32.partialorder %v3344_v59, 0.0 }
 0x23f   : > { %2800 = vrcp.f32 %v1254_v33  ;;  %v1636_v31 = vsub.f32 0.0, %v3375_v53  ;;  %v1224_v22 = vmul.f32 0.3275911, %v3454_v41  ;;  %v3474_v25 = vmul.f32 0.5, %v3338_v32 }
 0x240   : > { %v3438_v60 = vpop.eup %2788  ;;  %2802 = vrcp.f32 %v1247_v40  ;;  %v1406_v3 = vmul.f32 %v3406_v10, %v1374_v49  ;;  %vm1123_vm4 = vcmp.lt.f32.partialorder %v3347_v37, 0.0  ;;  %v3478_v42 = vmul.f32 0.70710677, %v3461_v2 }
 0x241   : > { %2804 = vpow2.f32 %v1696_v5  ;;  %v1344_v24 = vmul.f32 1.0614054, %v3438_v60  ;;  %v1667_v59 = vmul.f32 %v1635_v7, %v3359_v45  ;;  %v3482_v52 = vsel %vm1122_vm3, -1.0, %v4381_v44 }
 0x242   : > { %2806 = vrcp.f32 %v1255_v28  ;;  %v1438_v20 = vadd.f32 1.4214138, %v1406_v3  ;;  %v1702_v40 = vmul.f32 1.442695, %v1666_v36  ;;  %v3485_v5 = vsel %vm1123_vm4, -1.0, %v4381_v44 }
 0x243   : > { %v1376_v15 = vadd.f32 -1.4531521, %v1344_v24  ;;  %2808 = vpow2.f32 %v1698_v4  ;;  %v1668_v37 = vmul.f32 %v1636_v31, %v3375_v53  ;;  %v1256_v49 = vadd.f32 1.0, %v1224_v22 }
 0x244   : > { %v3443_v13 = vpop.eup %2790  ;;  %2810 = vrcp.f32 %v1249_v8  ;;  %v1637_v29 = vsub.f32 0.0, %v3395_v62  ;;  %v3492_v45 = vand.u32 2147483647, %v3478_v42  ;;  %v1470_v57 = vmul.f32 %v3406_v10, %v1438_v20 }
 0x245   : > { %v3446_v58 = vpop.eup %2792  ;;  %v1346_v34 = vmul.f32 1.0614054, %v3443_v13  ;;  %v1408_v54 = vmul.f32 %v3438_v60, %v1376_v15  ;;  %2812 = vpow2.f32 %v1700_v12  ;;  %v1704_v61 = vmul.f32 1.442695, %v1667_v59 }
 0x246   : > { %v1347_v43 = vmul.f32 1.0614054, %v3446_v58  ;;  %v3499_v24 = vmul.f32 0.5, %v3350_v39  ;;  %2814 = vpow2.f32 %v1702_v40  ;;  %vm1124_vm5 = vcmp.lt.f32.partialorder %v3362_v21, 0.0 }
 0x247   : > { %v3471_v14 = vpop.eup %2794  ;;  %v1378_v33 = vadd.f32 -1.4531521, %v1346_v34  ;;  %v3506_v4 = vmul.f32 0.5, %v3367_v47  ;;  %v1005_v34 = vpop.f32.mrf.mxu0  ;;  %v1706_v36 = vmul.f32 1.442695, %v1668_v37  ;;  %vm1125_vm6 = vcmp.lt.f32.partialorder %v3381_v56, 0.0 }
 0x248   : > { %v1379_v27 = vadd.f32 -1.4531521, %v1347_v43  ;;  %v1348_v32 = vmul.f32 1.0614054, %v3471_v14  ;;  %4416 = vst [vmem:[#allocation11_spill] sm:$0xff] %v3499_v24  ;;  %2816 = vrcp.f32 %v1256_v49  ;;  %v1669_v31 = vmul.f32 %v1637_v29, %v3395_v62 }
 0x249   : > { %v1410_v28 = vmul.f32 %v3443_v13, %v1378_v33  ;;  %4417 = vst [vmem:[#allocation12_spill] sm:$0xff] %v3506_v4  ;;  %v1440_v43 = vadd.f32 1.4214138, %v1408_v54  ;;  %v1225_v22 = vmul.f32 0.3275911, %v3492_v45  ;;  %2818 = vpow2.f32 %v1704_v61  ;;  %v1007_v40 = vpop.f32.mrf.mxu0 }
 0x24a   : > { %v3494_v55 = vpop.eup %2796  ;;  %v1411_v3 = vmul.f32 %v3446_v58, %v1379_v27  ;;  %v1380_v8 = vadd.f32 -1.4531521, %v1348_v32  ;;  %v1502_v47 = vadd.f32 -0.28449672, %v1470_v57  ;;  %v3521_v33 = vsel %vm1124_vm5, -1.0, %v4381_v44 }
 0x24b   : > { %v3501_v53 = vpop.eup %2798  ;;  %v1349_v12 = vmul.f32 1.0614054, %v3494_v55  ;;  %v1442_v20 = vadd.f32 1.4214138, %v1410_v28  ;;  %v3524_v59 = vsel %vm1125_vm6, -1.0, %v4381_v44  ;;  %vm1126_vm7 = vcmp.lt.f32.partialorder %v3387_v18, 0.0 }
 0x24c   : > { %v3508_v7 = vpop.eup %2800  ;;  %v1443_v56 = vadd.f32 1.4214138, %v1411_v3  ;;  %v1412_v32 = vmul.f32 %v3471_v14, %v1380_v8  ;;  %2820 = vpow2.f32 %v1706_v36  ;;  %v3532_v37 = vmul.f32 0.5, %v3372_v50 }
 0x24d   : > { %v3511_v39 = vpop.eup %2802  ;;  %v1350_v62 = vmul.f32 1.0614054, %v3508_v7  ;;  %v1638_v21 = vsub.f32 0.0, %v3398_v63  ;;  %v1472_v49 = vmul.f32 %v3438_v60, %v1440_v43  ;;  %v1381_v54 = vadd.f32 -1.4531521, %v1349_v12 }
 0x24e   : > { %4418 = vst [vmem:[#allocation13_spill] sm:$0xff] %v3511_v39  ;;  %v3516_v15 = vpop.eup %2804  ;;  %4420 = vst [vmem:[#allocation15_spill] sm:$0xff] %v3532_v37  ;;  %v1708_v29 = vmul.f32 1.442695, %v1669_v31  ;;  %v1257_v57 = vadd.f32 1.0, %v1225_v22  ;;  %v1534_v18 = vmul.f32 %v3406_v10, %v1502_v47  ;;  %v1474_v28 = vmul.f32 %v3443_v13, %v1442_v20  ;;  %v1009_v31 = vpop.f32.mrf.mxu0 }
 0x24f   : > { %4419 = vst [vmem:[#allocation14_spill] sm:$0xff] %v3516_v15  ;;  %v3528_v27 = vpop.eup %2806  ;;  %v3539_v61 = vsel %vm1126_vm7, -1.0, %v4381_v44  ;;  %v3542_v3 = vadd.f32 %v1005_v34, %v3314_v19  ;;  %v1475_v50 = vmul.f32 %v3446_v58, %v1443_v56  ;;  %v1382_v36 = vadd.f32 -1.4531521, %v1350_v62 }
 0x250   : > { %v3544_v8 = vpop.eup %2808  ;;  %v1351_v43 = vmul.f32 1.0614054, %v3528_v27  ;;  %v3549_v12 = vadd.f32 %v1007_v40, %v3328_v26  ;;  %v1444_v47 = vadd.f32 1.4214138, %v1412_v32  ;;  %v1670_v20 = vmul.f32 %v1638_v21, %v3398_v63 }
 0x251   : > { %v3551_v22 = vpop.eup %2810  ;;  %v3555_v44 = vmul.f32 0.5, %v3390_v9  ;;  %vm1127_vm8 = vcmp.lt.f32.partialorder %v3401_v0, 0.0  ;;  %v1504_v34 = vadd.f32 -0.28449672, %v1472_v49  ;;  %v1413_v56 = vmul.f32 %v3494_v55, %v1381_v54  ;;  %v1011_v49 = vpop.f32.mrf.mxu0 }
 0x252   : > { %4421 = vst [vmem:[#allocation16_spill] sm:$0xff] %v3551_v22  ;;  %v1639_v62 = vsub.f32 0.0, %v3411_v11  ;;  %2822 = vrcp.f32 %v1257_v57  ;;  %v3560_v6 = vpop.eup %2812  ;;  %v1566_v40 = vadd.f32 0.2548296, %v1534_v18  ;;  %v1506_v30 = vadd.f32 -0.28449672, %v1474_v28 }
 0x253   : > { %4422 = vst [vmem:[#allocation17_spill] sm:$0xff] %v3555_v44  ;;  %4423 = vst [vmem:[#allocation18_spill] sm:$0xff] %v3560_v6  ;;  %2824 = vpow2.f32 %v1708_v29  ;;  %v3563_v32 = vmul.f32 0.70710677, %v3542_v3  ;;  %v1507_v63 = vadd.f32 -0.28449672, %v1475_v50  ;;  %v1414_v9 = vmul.f32 %v3508_v7, %v1382_v36  ;;  %v3569_v54 = vpop.eup %2814 }
 0x254   : > { %v1383_v21 = vadd.f32 -1.4531521, %v1351_v43  ;;  %v3567_v48 = vmul.f32 0.70710677, %v3549_v12  ;;  %v1476_v57 = vmul.f32 %v3471_v14, %v1444_v47  ;;  %v1710_v15 = vmul.f32 1.442695, %v1670_v20 }
 0x255   : > { %v4424_v6 = vmov 1.0   ;;  %v3578_v18 = vmul.f32 0.5, %v3415_v16  ;;  %v3580_v28 = vpop.eup %2816  ;;  %v1536_v50 = vmul.f32 %v3438_v60, %v1504_v34  ;;  %v1445_v36 = vadd.f32 1.4214138, %v1413_v56 }
 0x256   : > { %v3575_v29 = vsel %vm1127_vm8, -1.0, %v4424_v6  ;;  %v1671_v43 = vmul.f32 %v1639_v62, %v3411_v11  ;;  %v3585_v1 = vadd.f32 %v1009_v31, %v3314_v19  ;;  %v1598_v47 = vmul.f32 %v3406_v10, %v1566_v40  ;;  %v2819_v22 = vpop.eup %2818  ;;  %v1015_v31 = vpop.f32.mrf.mxu0 }
 0x257   : > { %4425 = vst [vmem:[#allocation19_spill] sm:$0xff] %v3578_v18  ;;  %v1538_v20 = vmul.f32 %v3443_v13, %v1506_v30  ;;  %v3590_v0 = vand.u32 2147483647, %v3563_v32  ;;  %v3593_v16 = vadd.f32 %v1011_v49, %v3328_v26  ;;  %v1539_v39 = vmul.f32 %v3446_v58, %v1507_v63 }
 0x258   : > { %4426 = vst [vmem:[#allocation20_spill] sm:$0xff] %v3585_v1  ;;  %v1446_v34 = vadd.f32 1.4214138, %v1414_v9  ;;  %v1415_v56 = vmul.f32 %v3528_v27, %v1383_v21  ;;  %v3598_v11 = vand.u32 2147483647, %v3567_v48  ;;  %2826 = vpow2.f32 %v1710_v15  ;;  %v1017_v24 = vpop.f32.mrf.mxu0 }
 0x259   : > { %4427 = vst [vmem:[#allocation21_spill] sm:$0xff] %v3593_v16  ;;  %v1508_v62 = vadd.f32 -0.28449672, %v1476_v57  ;;  %vm1128_vm9 = vcmp.lt.f32.partialorder %v3432_v46, 0.0  ;;  %v1352_v10 = vmul.f32 1.0614054, %v3580_v28  ;;  %v3602_v30 = vpop.eup %2820  ;;  %v1477_v49 = vmul.f32 %v3494_v55, %v1445_v36 }
 0x25a   : > { %v1568_v40 = vadd.f32 0.2548296, %v1536_v50  ;;  %v1712_v18 = vmul.f32 1.442695, %v1671_v43  ;;  %v3606_v63 = vmul.f32 0.70710677, %v3585_v1  ;;  %v3613_v15 = vadd.f32 %v1015_v31, %v3314_v19 }
 0x25b   : > { %v1570_v9 = vadd.f32 0.2548296, %v1538_v20  ;;  %v1226_v21 = vmul.f32 0.3275911, %v3590_v0  ;;  %v3610_v44 = vmul.f32 0.70710677, %v3593_v16  ;;  %v1478_v37 = vmul.f32 %v3508_v7, %v1446_v34 }
 0x25c   : > { %4428 = vst [vmem:[#allocation22_spill] sm:$0xff] %v3606_v63  ;;  %4430 = vst [vmem:[#allocation24_spill] sm:$0xff] %v3613_v15  ;;  %v1571_v57 = vadd.f32 0.2548296, %v1539_v39  ;;  %v1447_v4 = vadd.f32 1.4214138, %v1415_v56  ;;  %v1758_v36 = vmul.f32 %v3501_v53, %v1598_v47  ;;  %v1540_v43 = vmul.f32 %v3471_v14, %v1508_v62 }
 0x25d   : > { %4429 = vst [vmem:[#allocation23_spill] sm:$0xff] %v3610_v44  ;;  %v1227_v50 = vmul.f32 0.3275911, %v3598_v11  ;;  %v3622_v20 = vsel %vm1128_vm9, -1.0, %v4424_v6  ;;  %v1384_v16 = vadd.f32 -1.4531521, %v1352_v10  ;;  %v1600_v1 = vmul.f32 %v3438_v60, %v1568_v40 }
 0x25e   : > { %4431 = vst [vmem:[#allocation25_spill] sm:$0xff] %v3622_v20  ;;  %v1509_v31 = vadd.f32 -0.28449672, %v1477_v49  ;;  %2828 = vpow2.f32 %v1712_v18  ;;  %v3626_v39 = vand.u32 2147483647, %v3606_v63  ;;  %v1602_v56 = vmul.f32 %v3443_v13, %v1570_v9 }
 0x25f   : > { %v3628_v34 = vpop.eup %2822  ;;  %v1258_v53 = vadd.f32 1.0, %v1226_v21  ;;  %v3632_v47 = vand.u32 2147483647, %v3610_v44  ;;  %v3635_v46 = vmul.f32 0.70710677, %v3613_v15  ;;  %v1603_v10 = vmul.f32 %v3446_v58, %v1571_v57 }
 0x260   : > { %v2825_v62 = vpop.eup %2824  ;;  %v1510_v60 = vadd.f32 -0.28449672, %v1478_v37  ;;  %v1479_v18 = vmul.f32 %v3528_v27, %v1447_v4  ;;  %v1259_v40 = vadd.f32 1.0, %v1227_v50  ;;  %v1790_v49 = vsub.f32 1.0, %v1758_v36 }
 0x261   : > { %4432 = vst [vmem:[#allocation26_spill] sm:$0xff] %v3635_v46  ;;  %v1572_v20 = vadd.f32 0.2548296, %v1540_v43  ;;  %v1416_v63 = vmul.f32 %v3580_v28, %v1384_v16  ;;  %v1640_v13 = vsub.f32 0.0, %v3454_v41  ;;  %v1760_v9 = vmul.f32 %v3544_v8, %v1600_v1 }
 0x262   : > { %v1541_v21 = vmul.f32 %v3494_v55, %v1509_v31  ;;  %v1353_v15 = vmul.f32 1.0614054, %v3628_v34  ;;  %v1228_v44 = vmul.f32 0.3275911, %v3626_v39  ;;  %v1762_v58 = vmul.f32 %v3569_v54, %v1602_v56 }
 0x263   : > { %2830 = vrcp.f32 %v1258_v53  ;;  %v1229_v4 = vmul.f32 0.3275911, %v3632_v47  ;;  %v3648_v37 = vand.u32 2147483647, %v3635_v46  ;;  %v1763_v16 = vmul.f32 %v2819_v22, %v1603_v10 }
 0x264   : > { %v1542_v57 = vmul.f32 %v3508_v7, %v1510_v60  ;;  %v1511_v50 = vadd.f32 -0.28449672, %v1479_v18  ;;  %2832 = vrcp.f32 %v1259_v40  ;;  %v1604_v1 = vmul.f32 %v3471_v14, %v1572_v20 }
 0x265   : > { %v1448_v8 = vadd.f32 1.4214138, %v1416_v63  ;;  %v1672_v36 = vmul.f32 %v1640_v13, %v3454_v41  ;;  %v3654_v43 = vadd.f32 %v1017_v24, %v3328_v26  ;;  %v2827_v54 = vpop.eup %2826  ;;  %v1573_v31 = vadd.f32 0.2548296, %v1541_v21 }
 0x266   : > { %v3657_v56 = vmul.f32 0.5, %v3461_v2  ;;  %v1385_v53 = vadd.f32 -1.4531521, %v1353_v15  ;;  %v1260_v46 = vadd.f32 1.0, %v1228_v44  ;;  %v1792_v22 = vsub.f32 1.0, %v1760_v9 }
 0x267   : > { %v1794_v10 = vsub.f32 1.0, %v1762_v58  ;;  %v1261_v60 = vadd.f32 1.0, %v1229_v4  ;;  %v1230_v18 = vmul.f32 0.3275911, %v3648_v37  ;;  %v1822_v14 = vmul.f32 %v1790_v49, %v3423_v51  ;;  %v1019_v51 = vpop.f32.mrf.mxu0 }
 0x268   : > { %v1795_v63 = vsub.f32 1.0, %v1763_v16  ;;  %v1574_v20 = vadd.f32 0.2548296, %v1542_v57  ;;  %v1543_v41 = vmul.f32 %v3528_v27, %v1511_v50  ;;  %v1764_v24 = vmul.f32 %v3602_v30, %v1604_v1 }
 0x269   : > { %v1480_v40 = vmul.f32 %v3580_v28, %v1448_v8  ;;  %v1714_v13 = vmul.f32 1.442695, %v1672_v36  ;;  %v3665_v2 = vmul.f32 0.70710677, %v3654_v43  ;;  %v1605_v44 = vmul.f32 %v3494_v55, %v1573_v31 }
 0x26a   : > { %v1417_v15 = vmul.f32 %v3628_v34, %v1385_v53  ;;  %v1641_v9 = vsub.f32 0.0, %v3492_v45  ;;  %2834 = vrcp.f32 %v1260_v46  ;;  %v1824_v21 = vmul.f32 %v1792_v22, %v3451_v35 }
 0x26b   : > { %v2829_v49 = vpop.eup %2828  ;;  %v1826_v58 = vmul.f32 %v1794_v10, %v3482_v52  ;;  %2836 = vrcp.f32 %v1261_v60  ;;  %v1262_v30 = vadd.f32 1.0, %v1230_v18  ;;  %v1854_v4 = vadd.f32 1.0, %v1822_v14 }
 0x26c   : > { %v1827_v16 = vmul.f32 %v1795_v63, %v3485_v5  ;;  %v1606_v57 = vmul.f32 %v3508_v7, %v1574_v20  ;;  %v1575_v50 = vadd.f32 0.2548296, %v1543_v41  ;;  %v1796_v55 = vsub.f32 1.0, %v1764_v24 }
 0x26d   : > { %v1512_v1 = vadd.f32 -0.28449672, %v1480_v40  ;;  %v3675_v8 = vand.u32 2147483647, %v3665_v2  ;;  %v3678_v46 = vadd.f32 %v1019_v51, %v3314_v19  ;;  %v1765_v36 = vmul.f32 %v2825_v62, %v1605_v44  ;;  %v1021_v40 = vpop.f32.mrf.mxu0 }
 0x26e   : > { %2838 = vpow2.f32 %v1714_v13  ;;  %v1449_v35 = vadd.f32 1.4214138, %v1417_v15  ;;  %v1673_v52 = vmul.f32 %v1641_v9, %v3492_v45  ;;  %v1856_v31 = vadd.f32 1.0, %v1824_v21 }
 0x26f   : > { %v1858_v53 = vadd.f32 1.0, %v1826_v58  ;;  %vm1129_vm10 = vcmp.lt.f32.partialorder %v3478_v42, 0.0  ;;  %2840 = vrcp.f32 %v1262_v30  ;;  %v3685_v7 = vmul.f32 %v1854_v4, %v3418_v17 }
 0x270   : > { %v3682_v5 = vpop.eup %2830  ;;  %v1859_v22 = vadd.f32 1.0, %v1827_v16  ;;  %v1766_v10 = vmul.f32 %v2827_v54, %v1606_v57  ;;  %v1607_v60 = vmul.f32 %v3528_v27, %v1575_v50  ;;  %v1828_v62 = vmul.f32 %v1796_v55, %v3521_v33 }
 0x271   : > { %v3688_v18 = vpop.eup %2832  ;;  %v1544_v45 = vmul.f32 %v3580_v28, %v1512_v1  ;;  %v1231_v14 = vmul.f32 0.3275911, %v3675_v8  ;;  %v3694_v42 = vmul.f32 0.70710677, %v3678_v46  ;;  %v1797_v63 = vsub.f32 1.0, %v1765_v36 }
 0x272   : > { %v3697_v20 = vsel %vm1129_vm10, -1.0, %v4424_v6  ;;  %v1481_v17 = vmul.f32 %v3628_v34, %v1449_v35  ;;  %v1716_v54 = vmul.f32 1.442695, %v1673_v52  ;;  %v3701_v27 = vmul.f32 %v1856_v31, %v3429_v23 }
 0x273   : > { %v3704_v41 = vmul.f32 %v1858_v53, %v3458_v38  ;;  %v3707_v33 = vmul.f32 0.5, %v3542_v3  ;;  %v1354_v24 = vmul.f32 1.0614054, %v3682_v5  ;;  %v3711_v13 = vmul.f32 %v1859_v22, %v3474_v25 }
 0x274   : > { %v1798_v44 = vsub.f32 1.0, %v1766_v10  ;;  %v1767_v15 = vmul.f32 %v2829_v49, %v1607_v60  ;;  %v1355_v9 = vmul.f32 1.0614054, %v3688_v18  ;;  %v1860_v51 = vadd.f32 1.0, %v1828_v62 }
 0x275   : > { %4433 = vst [vmem:[#allocation27_spill] sm:$0xff] %v3704_v41  ;;  %v1576_v21 = vadd.f32 0.2548296, %v1544_v45  ;;  %v1263_v23 = vadd.f32 1.0, %v1231_v14  ;;  %v3715_v58 = vand.u32 2147483647, %v3694_v42  ;;  %v1829_v38 = vmul.f32 %v1797_v63, %v3524_v59 }
 0x276   : > { %v1513_v3 = vadd.f32 -0.28449672, %v1481_v17  ;;  %2842 = vpow2.f32 %v1716_v54  ;;  %v3719_v30 = vadd.f32 %v1021_v40, %v3328_v26  ;;  %vm1130_vm11 = vcmp.lt.f32.partialorder %v3563_v32, 0.0 }
 0x277   : > { %v3721_v4 = vpop.eup %2834  ;;  %v1386_v25 = vadd.f32 -1.4531521, %v1354_v24  ;;  %v3725_v49 = vmul.f32 0.5, %v3549_v12  ;;  %vm1131_vm12 = vcmp.lt.f32.partialorder %v3567_v48, 0.0  ;;  %v1830_v57 = vmul.f32 %v1798_v44, %v3539_v61  ;;  %v4434_v48 = vld [vmem:[#allocation11_spill] sm:$0xff] }
 0x278   : > { %v3728_v16 = vpop.eup %2836  ;;  %v1799_v59 = vsub.f32 1.0, %v1767_v15  ;;  %v1642_v50 = vsub.f32 0.0, %v3590_v0  ;;  %v1387_v55 = vadd.f32 -1.4531521, %v1355_v9  ;;  %v1608_v1 = vmul.f32 %v3580_v28, %v1576_v21 }
 0x279   : > { %v1643_v36 = vsub.f32 0.0, %v3598_v11  ;;  %2844 = vrcp.f32 %v1263_v23  ;;  %v1232_v35 = vmul.f32 0.3275911, %v3715_v58  ;;  %v1861_v52 = vadd.f32 1.0, %v1829_v38  ;;  %v4436_v23 = vld [vmem:[#allocation12_spill] sm:$0xff] }
 0x27a   : > { %v1545_v12 = vmul.f32 %v3628_v34, %v1513_v3  ;;  %v1356_v31 = vmul.f32 1.0614054, %v3721_v4  ;;  %v3738_v53 = vmul.f32 0.70710677, %v3719_v30  ;;  %v3743_v22 = vsel %vm1130_vm11, -1.0, %v4424_v6 }
 0x27b   : > { %v2839_v61 = vpop.eup %2838  ;;  %v1418_v28 = vmul.f32 %v3682_v5, %v1386_v25  ;;  %v3749_v10 = vsel %vm1131_vm12, -1.0, %v4424_v6  ;;  %v1357_v60 = vmul.f32 1.0614054, %v3728_v16  ;;  %v1862_v45 = vadd.f32 1.0, %v1830_v57  ;;  %v4437_v25 = vld [vmem:[#allocation15_spill] sm:$0xff] }
 0x27c   : > { %v3752_v62 = vpop.eup %2840  ;;  %v1831_v14 = vmul.f32 %v1799_v59, %v3575_v29  ;;  %v1674_v63 = vmul.f32 %v1642_v50, %v3590_v0  ;;  %v1419_v32 = vmul.f32 %v3688_v18, %v1387_v55  ;;  %v1768_v17 = vmul.f32 %v2839_v61, %v1608_v1  ;;  %v4439_v50 = vld [vmem:[#allocation20_spill] sm:$0xff] }
 0x27d   : > { %v1675_v54 = vmul.f32 %v1643_v36, %v3598_v11  ;;  %v1644_v24 = vsub.f32 0.0, %v3626_v39  ;;  %v1264_v40 = vadd.f32 1.0, %v1232_v35  ;;  %v3760_v44 = vmul.f32 %v1860_v51, %v4434_v48 }
 0x27e   : > { %v1577_v15 = vadd.f32 0.2548296, %v1545_v12  ;;  %v1388_v9 = vadd.f32 -1.4531521, %v1356_v31  ;;  %v3763_v21 = vand.u32 2147483647, %v3738_v53  ;;  %v3766_v29 = vmul.f32 %v1861_v52, %v4436_v23 }
 0x27f   : > { %4435 = vst [vmem:[#allocation11_spill] sm:$0xff] %v3760_v44  ;;  %v1450_v0 = vadd.f32 1.4214138, %v1418_v28  ;;  %v1389_v38 = vadd.f32 -1.4531521, %v1357_v60  ;;  %v3770_v11 = vmul.f32 %v1862_v45, %v4437_v25  ;;  %v3773_v51 = vmul.f32 0.5, %v4439_v50 }
 0x280   : > { %v1358_v3 = vmul.f32 1.0614054, %v3752_v62  ;;  %v1718_v57 = vmul.f32 1.442695, %v1674_v63  ;;  %v1451_v59 = vadd.f32 1.4214138, %v1419_v32  ;;  %2846 = vrcp.f32 %v1264_v40 }
 0x281   : > { %4438 = vst [vmem:[#allocation12_spill] sm:$0xff] %v3770_v11  ;;  %v1863_v55 = vadd.f32 1.0, %v1831_v14  ;;  %v1800_v1 = vsub.f32 1.0, %v1768_v17  ;;  %v1720_v36 = vmul.f32 1.442695, %v1675_v54  ;;  %v1609_v35 = vmul.f32 %v3628_v34, %v1577_v15  ;;  %v4440_v52 = vld [vmem:[#allocation22_spill] sm:$0xff]  ;;  %v1025_v14 = vpop.f32.mrf.mxu0 }
 0x282   : > { %vm1132_vm13 = vcmp.lt.f32.partialorder %v4440_v52, 0.0  ;;  %v1420_v12 = vmul.f32 %v3721_v4, %v1388_v9  ;;  %v1233_v31 = vmul.f32 0.3275911, %v3763_v21  ;;  %v1482_v28 = vmul.f32 %v3682_v5, %v1450_v0  ;;  %v4441_v17 = vld [vmem:[#allocation21_spill] sm:$0xff]  ;;  %v4444_v23 = vld [vmem:[#allocation23_spill] sm:$0xff] }
 0x283   : > { %v2843_v61 = vpop.eup %2842  ;;  %v1676_v60 = vmul.f32 %v1644_v24, %v3626_v39  ;;  %v1421_v45 = vmul.f32 %v3728_v16, %v1389_v38  ;;  %v1390_v63 = vadd.f32 -1.4531521, %v1358_v3  ;;  %2848 = vpow2.f32 %v1718_v57  ;;  %v4442_v40 = vld [vmem:[#allocation17_spill] sm:$0xff] }
 0x284   : > { %v1483_v32 = vmul.f32 %v3688_v18, %v1451_v59  ;;  %v3784_v34 = vmul.f32 0.5, %v4441_v17  ;;  %v1645_v54 = vsub.f32 0.0, %v3632_v47  ;;  %v3788_v48 = vmul.f32 %v1863_v55, %v4442_v40  ;;  %v4443_v15 = vld [vmem:[#allocation25_spill] sm:$0xff]  ;;  %v1027_v55 = vpop.f32.mrf.mxu0  ;;  %v4446_v40 = vld [vmem:[#allocation26_spill] sm:$0xff] }
 0x285   : > { %v1832_v9 = vmul.f32 %v1800_v1, %v4443_v15  ;;  %2850 = vpow2.f32 %v1720_v36  ;;  %vm1133_vm14 = vcmp.lt.f32.partialorder %v4444_v23, 0.0  ;;  %v1769_v24 = vmul.f32 %v2843_v61, %v1609_v35  ;;  %v4445_v35 = vld [vmem:[#allocation24_spill] sm:$0xff] }
 0x286   : > { %v3792_v39 = vpop.eup %2844  ;;  %v3797_v0 = vsel %vm1132_vm13, -1.0, %v4424_v6  ;;  %v1452_v38 = vadd.f32 1.4214138, %v1420_v12  ;;  %v1265_v3 = vadd.f32 1.0, %v1233_v31  ;;  %v1514_v25 = vadd.f32 -0.28449672, %v1482_v28 }
 0x287   : > { %v1722_v57 = vmul.f32 1.442695, %v1676_v60  ;;  %v1453_v59 = vadd.f32 1.4214138, %v1421_v45  ;;  %v1422_v50 = vmul.f32 %v3752_v62, %v1390_v63  ;;  %v1515_v1 = vadd.f32 -0.28449672, %v1483_v32 }
 0x288   : > { %v3801_v36 = vsel %vm1133_vm14, -1.0, %v4424_v6  ;;  %v1677_v17 = vmul.f32 %v1645_v54, %v3632_v47  ;;  %v3805_v61 = vmul.f32 0.5, %v4445_v35  ;;  %v1864_v52 = vadd.f32 1.0, %v1832_v9  ;;  %v1029_v54 = vpop.f32.mrf.mxu0 }
 0x289   : > { %vm1134_vm15 = vcmp.lt.f32.partialorder %v4446_v40, 0.0  ;;  %v1646_v12 = vsub.f32 0.0, %v3648_v37  ;;  %v1359_v31 = vmul.f32 1.0614054, %v3792_v39  ;;  %v1801_v28 = vsub.f32 1.0, %v1769_v24 }
 0x28a   : > { %v1484_v60 = vmul.f32 %v3721_v4, %v1452_v38  ;;  %2852 = vrcp.f32 %v1265_v3  ;;  %v3812_v45 = vadd.f32 %v1025_v14, %v3314_v19  ;;  %v1546_v63 = vmul.f32 %v3682_v5, %v1514_v25  ;;  %v4447_v38 = vld [vmem:[#allocation19_spill] sm:$0xff] }
 0x28b   : > { %2854 = vpow2.f32 %v1722_v57  ;;  %v1485_v47 = vmul.f32 %v3728_v16, %v1453_v59  ;;  %v1454_v32 = vadd.f32 1.4214138, %v1422_v50  ;;  %v1547_v15 = vmul.f32 %v3688_v18, %v1515_v1 }
 0x28c   : > { %v1724_v9 = vmul.f32 1.442695, %v1677_v17  ;;  %v3818_v23 = vsel %vm1134_vm15, -1.0, %v4424_v6  ;;  %v1647_v24 = vsub.f32 0.0, %v3675_v8  ;;  %v3822_v3 = vmul.f32 %v1864_v52, %v4447_v38 }
 0x28d   : > { %v1678_v14 = vmul.f32 %v1646_v12, %v3648_v37  ;;  %v3826_v25 = vmul.f32 0.5, %v3654_v43  ;;  %v1391_v57 = vadd.f32 -1.4531521, %v1359_v31  ;;  %v3828_v59 = vpop.eup %2846  ;;  %v1833_v50 = vmul.f32 %v1801_v28, %v3697_v20  ;;  %v1031_v43 = vpop.f32.mrf.mxu0 }
 0x28e   : > { %4448 = vst [vmem:[#allocation15_spill] sm:$0xff] %v3822_v3  ;;  %v1516_v1 = vadd.f32 -0.28449672, %v1484_v60  ;;  %v3832_v17 = vmul.f32 0.5, %v3678_v46  ;;  %v3835_v35 = vmul.f32 0.70710677, %v3812_v45  ;;  %v1486_v38 = vmul.f32 %v3752_v62, %v1454_v32 }
 0x28f   : > { %v1578_v40 = vadd.f32 0.2548296, %v1546_v63  ;;  %v1517_v52 = vadd.f32 -0.28449672, %v1485_v47  ;;  %v3839_v37 = vadd.f32 %v1027_v55, %v3328_v26  ;;  %v1579_v12 = vadd.f32 0.2548296, %v1547_v15 }
 0x290   : > { %4449 = vst [vmem:[#allocation20_spill] sm:$0xff] %v3832_v17  ;;  %2856 = vpow2.f32 %v1724_v9  ;;  %v1679_v31 = vmul.f32 %v1647_v24, %v3675_v8  ;;  %v1648_v20 = vsub.f32 0.0, %v3715_v58  ;;  %v2849_v28 = vpop.eup %2848  ;;  %v1726_v46 = vmul.f32 1.442695, %v1678_v14  ;;  %v3856_v14 = vpop.f32.mrf.mxu0 }
 0x291   : > { %vm1135_vm0 = vcmp.lt.f32.partialorder %v3665_v2, 0.0  ;;  %v1423_v60 = vmul.f32 %v3792_v39, %v1391_v57  ;;  %v1360_v63 = vmul.f32 1.0614054, %v3828_v59  ;;  %v1865_v32 = vadd.f32 1.0, %v1833_v50 }
 0x292   : > { %v2851_v47 = vpop.eup %2850  ;;  %v1548_v55 = vmul.f32 %v3721_v4, %v1516_v1  ;;  %vm1136_vm1 = vcmp.lt.f32.partialorder %v3694_v42, 0.0  ;;  %v3849_v15 = vand.u32 2147483647, %v3835_v35  ;;  %v1610_v8 = vmul.f32 %v3682_v5, %v1578_v40 }
 0x293   : > { %v1549_v9 = vmul.f32 %v3728_v16, %v1517_v52  ;;  %v1518_v24 = vadd.f32 -0.28449672, %v1486_v38  ;;  %v3854_v2 = vmul.f32 0.70710677, %v3839_v37  ;;  %v1611_v57 = vmul.f32 %v3688_v18, %v1579_v12 }
 0x294   : > { %v3860_v50 = vsel %vm1135_vm0, -1.0, %v4424_v6  ;;  %v1728_v1 = vmul.f32 1.442695, %v1679_v31  ;;  %v1680_v17 = vmul.f32 %v1648_v20, %v3715_v58  ;;  %2858 = vpow2.f32 %v1726_v46  ;;  %v1037_v46 = vpop.f32.mrf.mxu0 }
 0x295   : > { %v1455_v3 = vadd.f32 1.4214138, %v1423_v60  ;;  %v1392_v11 = vadd.f32 -1.4531521, %v1360_v63  ;;  %v3864_v5 = vmul.f32 0.5, %v3719_v30  ;;  %v3867_v40 = vmul.f32 %v1865_v32, %v3657_v56 }
 0x296   : > { %v1580_v52 = vadd.f32 0.2548296, %v1548_v55  ;;  %v3872_v18 = vsel %vm1136_vm1, -1.0, %v4424_v6  ;;  %v1234_v38 = vmul.f32 0.3275911, %v3849_v15  ;;  %v1770_v58 = vmul.f32 %v2849_v28, %v1610_v8 }
 0x297   : > { %4450 = vst [vmem:[#allocation22_spill] sm:$0xff] %v3864_v5  ;;  %4451 = vst [vmem:[#allocation21_spill] sm:$0xff] %v3867_v40  ;;  %v3875_v12 = vpop.eup %2852  ;;  %v1581_v31 = vadd.f32 0.2548296, %v1549_v9  ;;  %v1550_v20 = vmul.f32 %v3752_v62, %v1518_v24  ;;  %v3879_v30 = vand.u32 2147483647, %v3854_v2  ;;  %v1771_v60 = vmul.f32 %v2851_v47, %v1611_v57 }
 0x298   : > { %v2855_v56 = vpop.eup %2854  ;;  %2860 = vpow2.f32 %v1728_v1  ;;  %v1730_v63 = vmul.f32 1.442695, %v1680_v17  ;;  %v3882_v42 = vadd.f32 %v1029_v54, %v3314_v19  ;;  %v1487_v32 = vmul.f32 %v3792_v39, %v1455_v3 }
 0x299   : > { %v1424_v55 = vmul.f32 %v3828_v59, %v1392_v11  ;;  %v1649_v28 = vsub.f32 0.0, %v3763_v21  ;;  %v3888_v8 = vadd.f32 %v1031_v43, %v3328_v26  ;;  %v1612_v9 = vmul.f32 %v3721_v4, %v1580_v52  ;;  %v3897_v11 = vpop.f32.mrf.mxu0 }
 0x29a   : > { %v1361_v24 = vmul.f32 1.0614054, %v3875_v12  ;;  %v3893_v47 = vmul.f32 0.5, %v3812_v45  ;;  %v1266_v17 = vadd.f32 1.0, %v1234_v38  ;;  %v1802_v57 = vsub.f32 1.0, %v1770_v58 }
 0x29b   : > { %v1613_v54 = vmul.f32 %v3728_v16, %v1581_v31  ;;  %v1582_v1 = vadd.f32 0.2548296, %v1550_v20  ;;  %v1235_v3 = vmul.f32 0.3275911, %v3879_v30  ;;  %v1803_v5 = vsub.f32 1.0, %v1771_v60  ;;  %v1041_v40 = vpop.f32.mrf.mxu0 }
 0x29c   : > { %4452 = vst [vmem:[#allocation17_spill] sm:$0xff] %v3893_v47  ;;  %vm1137_vm2 = vcmp.lt.f32.partialorder %v3738_v53, 0.0  ;;  %vm1138_vm3 = vcmp.lt.f32.partialorder %v3835_v35, 0.0  ;;  %v3902_v4 = vmul.f32 0.70710677, %v3882_v42  ;;  %v1681_v38 = vmul.f32 %v1649_v28, %v3763_v21 }
 0x29d   : > { %v2857_v43 = vpop.eup %2856  ;;  %v1519_v45 = vadd.f32 -0.28449672, %v1487_v32  ;;  %v1456_v52 = vadd.f32 1.4214138, %v1424_v55  ;;  %v3906_v16 = vmul.f32 0.70710677, %v3888_v8  ;;  %v1772_v58 = vmul.f32 %v2855_v56, %v1612_v9 }
 0x29e   : > { %v1393_v31 = vadd.f32 -1.4531521, %v1361_v24  ;;  %2862 = vrcp.f32 %v1266_v17  ;;  %v1650_v20 = vsub.f32 0.0, %v3849_v15  ;;  %v1834_v60 = vmul.f32 %v1802_v57, %v3743_v22 }
 0x29f   : > { %v1773_v47 = vmul.f32 %v2857_v43, %v1613_v54  ;;  %v1614_v44 = vmul.f32 %v3752_v62, %v1582_v1  ;;  %v1267_v41 = vadd.f32 1.0, %v1235_v3  ;;  %v1835_v32 = vmul.f32 %v1803_v5, %v3749_v10 }
 0x2a0   : > { %v3915_v21 = vsel %vm1137_vm2, -1.0, %v4424_v6  ;;  %v3920_v56 = vsel %vm1138_vm3, -1.0, %v4424_v6  ;;  %v3923_v55 = vand.u32 2147483647, %v3902_v4  ;;  %v1551_v22 = vmul.f32 %v3792_v39, %v1519_v45 }
 0x2a1   : > { %4453 = vst [vmem:[#allocation25_spill] sm:$0xff] %v3920_v56  ;;  %v1488_v62 = vmul.f32 %v3828_v59, %v1456_v52  ;;  %v1732_v28 = vmul.f32 1.442695, %v1681_v38  ;;  %v3928_v10 = vand.u32 2147483647, %v3906_v16  ;;  %v2859_v5 = vpop.eup %2858  ;;  %v1804_v53 = vsub.f32 1.0, %v1772_v58 }
 0x2a2   : > { %v1425_v9 = vmul.f32 %v3875_v12, %v1393_v31  ;;  %v1682_v24 = vmul.f32 %v1650_v20, %v3849_v15  ;;  %v3933_v35 = vadd.f32 %v1041_v40, %v3328_v26  ;;  %v1866_v17 = vadd.f32 1.0, %v1834_v60  ;;  %v3943_v40 = vpop.f32.mrf.mxu0 }
 0x2a3   : > { %v1805_v57 = vsub.f32 1.0, %v1773_v47  ;;  %v1774_v54 = vmul.f32 %v2859_v5, %v1614_v44  ;;  %2864 = vrcp.f32 %v1267_v41  ;;  %v1867_v1 = vadd.f32 1.0, %v1835_v32 }
 0x2a4   : > { %4454 = vst [vmem:[#allocation23_spill] sm:$0xff] %v3933_v35  ;;  %v3936_v3 = vmul.f32 0.5, %v3839_v37  ;;  %v1236_v43 = vmul.f32 0.3275911, %v3923_v55  ;;  %v3940_v45 = vadd.f32 %v1037_v46, %v3328_v26  ;;  %v1583_v38 = vadd.f32 0.2548296, %v1551_v22 }
 0x2a5   : > { %v2861_v52 = vpop.eup %2860  ;;  %v1520_v58 = vadd.f32 -0.28449672, %v1488_v62  ;;  %2866 = vpow2.f32 %v1730_v63  ;;  %v1237_v15 = vmul.f32 0.3275911, %v3928_v10  ;;  %v1836_v44 = vmul.f32 %v1804_v53, %v3797_v0 }
 0x2a6   : > { %4455 = vst [vmem:[#allocation24_spill] sm:$0xff] %v3936_v3  ;;  %4456 = vst [vmem:[#allocation26_spill] sm:$0xff] %v3940_v45  ;;  %v1457_v41 = vadd.f32 1.4214138, %v1425_v9  ;;  %v1734_v47 = vmul.f32 1.442695, %v1682_v24  ;;  %v1837_v31 = vmul.f32 %v1805_v57, %v3801_v36  ;;  %2868 = vpow2.f32 %v1732_v28  ;;  %v1047_v28 = vpop.f32.mrf.mxu0 }
 0x2a7   : > { %v3947_v37 = vmul.f32 0.70710677, %v3933_v35  ;;  %v1806_v20 = vsub.f32 1.0, %v1774_v54  ;;  %v1651_v46 = vsub.f32 0.0, %v3879_v30  ;;  %v3952_v60 = vmul.f32 %v1866_v17, %v3707_v33 }
 0x2a8   : > { %v3955_v63 = vmul.f32 %v1867_v1, %v3725_v49  ;;  %v1268_v32 = vadd.f32 1.0, %v1236_v43  ;;  %v3958_v0 = vmul.f32 0.70710677, %v3940_v45  ;;  %v1615_v22 = vmul.f32 %v3792_v39, %v1583_v38 }
 0x2a9   : > { %v1552_v62 = vmul.f32 %v3828_v59, %v1520_v58  ;;  %vm1139_vm4 = vcmp.lt.f32.partialorder %v3854_v2, 0.0  ;;  %v1269_v36 = vadd.f32 1.0, %v1237_v15  ;;  %v1868_v5 = vadd.f32 1.0, %v1836_v44 }
 0x2aa   : > { %v1489_v53 = vmul.f32 %v3875_v12, %v1457_v41  ;;  %2870 = vpow2.f32 %v1734_v47  ;;  %v3965_v33 = vand.u32 2147483647, %v3947_v37  ;;  %v1869_v9 = vadd.f32 1.0, %v1837_v31 }
 0x2ab   : > { %v3967_v49 = vpop.eup %2862  ;;  %v1838_v24 = vmul.f32 %v1806_v20, %v3818_v23  ;;  %v1683_v39 = vmul.f32 %v1651_v46, %v3879_v30  ;;  %v3973_v17 = vadd.f32 %v3897_v11, %v3314_v19  ;;  %2872 = vrcp.f32 %v1268_v32  ;;  %v1049_v46 = vpop.f32.mrf.mxu0 }
 0x2ac   : > { %v3977_v57 = vadd.f32 %v3856_v14, %v3314_v19  ;;  %v3980_v54 = vand.u32 2147483647, %v3958_v0  ;;  %v3983_v1 = vadd.f32 %v1047_v28, %v3328_v26  ;;  %v1775_v43 = vmul.f32 %v2861_v52, %v1615_v22 }
 0x2ad   : > { %4457 = vst [vmem:[#allocation19_spill] sm:$0xff] %v3973_v17  ;;  %v1584_v38 = vadd.f32 0.2548296, %v1552_v62  ;;  %v3988_v23 = vsel %vm1139_vm4, -1.0, %v4424_v6  ;;  %2874 = vrcp.f32 %v1269_v36  ;;  %v3991_v30 = vmul.f32 %v1868_v5, %v3773_v51 }
 0x2ae   : > { %4458 = vst [vmem:[#allocation28_spill] sm:$0xff] %v3977_v57  ;;  %4459 = vst [vmem:[#allocation29_spill] sm:$0xff] %v3983_v1  ;;  %v1521_v11 = vadd.f32 -0.28449672, %v1489_v53  ;;  %v1362_v14 = vmul.f32 1.0614054, %v3967_v49  ;;  %v4004_v47 = vmul.f32 %v1869_v9, %v3784_v34 }
 0x2af   : > { %v1241_v58 = vmul.f32 0.3275911, %v3965_v33  ;;  %v1870_v15 = vadd.f32 1.0, %v1838_v24  ;;  %v1736_v44 = vmul.f32 1.442695, %v1683_v39  ;;  %v3996_v41 = vmul.f32 0.5, %v3882_v42 }
 0x2b0   : > { %v3999_v52 = vmul.f32 0.70710677, %v3973_v17  ;;  %v4001_v2 = vpop.eup %2864  ;;  %v4007_v51 = vmul.f32 0.70710677, %v3977_v57  ;;  %v1239_v31 = vmul.f32 0.3275911, %v3980_v54  ;;  %v1616_v42 = vmul.f32 %v3828_v59, %v1584_v38 }
 0x2b1   : > { %4460 = vst [vmem:[#allocation30_spill] sm:$0xff] %v3996_v41  ;;  %v4011_v20 = vmul.f32 0.70710677, %v3983_v1  ;;  %v1807_v32 = vsub.f32 1.0, %v1775_v43  ;;  %vm1140_vm5 = vcmp.lt.f32.partialorder %v3902_v4, 0.0  ;;  %v1652_v22 = vsub.f32 0.0, %v3923_v55 }
 0x2b2   : > { %4461 = vst [vmem:[#allocation31_spill] sm:$0xff] %v3999_v52  ;;  %4462 = vst [vmem:[#allocation32_spill] sm:$0xff] %v4007_v51  ;;  %v2867_v62 = vpop.eup %2866  ;;  %v1553_v34 = vmul.f32 %v3875_v12, %v1521_v11  ;;  %v1394_v36 = vadd.f32 -1.4531521, %v1362_v14  ;;  %v4018_v28 = vmul.f32 0.5, %v3888_v8  ;;  %v1273_v5 = vadd.f32 1.0, %v1241_v58 }
 0x2b3   : > { %4463 = vst [vmem:[#allocation33_spill] sm:$0xff] %v4011_v20  ;;  %v1363_v53 = vmul.f32 1.0614054, %v4001_v2  ;;  %vm1141_vm6 = vcmp.lt.f32.partialorder %v3906_v16, 0.0  ;;  %v4023_v9 = vand.u32 2147483647, %v3999_v52  ;;  %v4026_v59 = vadd.f32 %v1049_v46, %v3314_v19  ;;  %v2869_v4 = vpop.eup %2868 }
 0x2b4   : > { %4464 = vst [vmem:[#allocation34_spill] sm:$0xff] %v4018_v28  ;;  %v4029_v24 = vsel %vm1140_vm5, -1.0, %v4424_v6  ;;  %v4032_v39 = vand.u32 2147483647, %v4007_v51  ;;  %v1271_v8 = vadd.f32 1.0, %v1239_v31  ;;  %v1839_v38 = vmul.f32 %v1807_v32, %v3860_v50  ;;  %v4472_v41 = vld [vmem:[#allocation16_spill] sm:$0xff] }
 0x2b5   : > { %4465 = vst [vmem:[#allocation35_spill] sm:$0xff] %v4026_v59  ;;  %4466 = vst [vmem:[#allocation36_spill] sm:$0xff] %v4029_v24  ;;  %v4035_v43 = vand.u32 2147483647, %v4011_v20  ;;  %v1776_v16 = vmul.f32 %v2867_v62, %v1616_v42  ;;  %v1684_v11 = vmul.f32 %v1652_v22, %v3923_v55  ;;  %v4041_v14 = vadd.f32 %v3943_v40, %v3314_v19 }
 0x2b6   : > { %v1585_v58 = vadd.f32 0.2548296, %v1553_v34  ;;  %v1426_v46 = vmul.f32 %v3967_v49, %v1394_v36  ;;  %v4045_v57 = vsel %vm1141_vm6, -1.0, %v4424_v6  ;;  %2876 = vrcp.f32 %v1273_v5 }
 0x2b7   : > { %4467 = vst [vmem:[#allocation37_spill] sm:$0xff] %v4041_v14  ;;  %v4047_v31 = vpop.eup %2870  ;;  %v1395_v1 = vadd.f32 -1.4531521, %v1363_v53  ;;  %2878 = vpow2.f32 %v1736_v44  ;;  %v1240_v50 = vmul.f32 0.3275911, %v4023_v9  ;;  %v1653_v55 = vsub.f32 0.0, %v3928_v10 }
 0x2b8   : > { %v4051_v32 = vmul.f32 0.70710677, %v4026_v59  ;;  %v1238_v19 = vmul.f32 0.3275911, %v4032_v39  ;;  %2880 = vrcp.f32 %v1271_v8  ;;  %v1243_v40 = vmul.f32 0.3275911, %v4035_v43  ;;  %v4056_v42 = vpop.eup %2872 }
 0x2b9   : > { %v1871_v22 = vadd.f32 1.0, %v1839_v38  ;;  %v1808_v62 = vsub.f32 1.0, %v1776_v16  ;;  %v4059_v34 = vmul.f32 0.70710677, %v4041_v14  ;;  %v4470_v44 = vld [vmem:[#allocation13_spill] sm:$0xff]  ;;  %v4065_v53 = vmul.f32 %v1870_v15, %v3805_v61  ;;  %v1051_v14 = vpop.f32.mrf.mxu0 }
 0x2ba   : > { %4468 = vst [vmem:[#allocation38_spill] sm:$0xff] %v4051_v32  ;;  %v1343_v36 = vmul.f32 1.0614054, %v4470_v44  ;;  %v4062_v5 = vpop.eup %2874  ;;  %v1458_v59 = vadd.f32 1.4214138, %v1426_v46  ;;  %v1617_v45 = vmul.f32 %v3875_v12, %v1585_v58  ;;  %v1427_v20 = vmul.f32 %v4001_v2, %v1395_v1 }
 0x2bb   : > { %4469 = vst [vmem:[#allocation39_spill] sm:$0xff] %v4059_v34  ;;  %4471 = vst [vmem:[#allocation13_spill] sm:$0xff] %v4065_v53  ;;  %v1738_v17 = vmul.f32 1.442695, %v1684_v11  ;;  %v1345_v8 = vmul.f32 1.0614054, %v4472_v41  ;;  %v1685_v11 = vmul.f32 %v1653_v55, %v3928_v10  ;;  %v4080_v12 = vmul.f32 %v1871_v22, %v3826_v25 }
 0x2bc   : > { %v1272_v38 = vadd.f32 1.0, %v1240_v50  ;;  %v4071_v16 = vand.u32 2147483647, %v4051_v32  ;;  %v1270_v35 = vadd.f32 1.0, %v1238_v19  ;;  %v1275_v52 = vadd.f32 1.0, %v1243_v40 }
 0x2bd   : > { %v1375_v56 = vadd.f32 -1.4531521, %v1343_v36  ;;  %v1377_v51 = vadd.f32 -1.4531521, %v1345_v8  ;;  %v1364_v61 = vmul.f32 1.0614054, %v4056_v42  ;;  %v4085_v50 = vadd.f32 %v1051_v14, %v3328_v26 }
 0x2be   : > { %v1365_v15 = vmul.f32 1.0614054, %v4062_v5  ;;  %v4077_v46 = vand.u32 2147483647, %v4059_v34  ;;  %v1777_v19 = vmul.f32 %v2869_v4, %v1617_v45  ;;  %v1490_v40 = vmul.f32 %v3967_v49, %v1458_v59 }
 0x2bf   : > { %v1407_v1 = vmul.f32 %v4470_v44, %v1375_v56  ;;  %v1409_v58 = vmul.f32 %v4472_v41, %v1377_v51  ;;  %4473 = vst [vmem:[#allocation16_spill] sm:$0xff] %v4085_v50  ;;  %2882 = vrcp.f32 %v1272_v38  ;;  %v1244_v36 = vmul.f32 0.3275911, %v4071_v16  ;;  %v4475_v38 = vld [vmem:[#allocation7_spill] sm:$0xff] }
 0x2c0   : > { %v1459_v10 = vadd.f32 1.4214138, %v1427_v20  ;;  %2884 = vrcp.f32 %v1275_v52  ;;  %v1396_v34 = vadd.f32 -1.4531521, %v1364_v61  ;;  %v1397_v25 = vadd.f32 -1.4531521, %v1365_v15 }
 0x2c1   : > { %v1439_v55 = vadd.f32 1.4214138, %v1407_v1  ;;  %v1441_v8 = vadd.f32 1.4214138, %v1409_v58  ;;  %2886 = vrcp.f32 %v1270_v35  ;;  %v1242_v56 = vmul.f32 0.3275911, %v4077_v46 }
 0x2c2   : > { %v4091_v51 = vmul.f32 %v1808_v62, %v3872_v18  ;;  %v4096_v59 = vmul.f32 0.70710677, %v4085_v50  ;;  %v1522_v52 = vadd.f32 -0.28449672, %v1490_v40  ;;  %v1740_v20 = vmul.f32 1.442695, %v1685_v11 }
 0x2c3   : > { %v1471_v26 = vmul.f32 %v4470_v44, %v1439_v55  ;;  %v1473_v45 = vmul.f32 %v4472_v41, %v1441_v8  ;;  %v4098_v4 = vpop.eup %2876  ;;  %v1654_v14 = vsub.f32 0.0, %v4032_v39  ;;  %v1276_v22 = vadd.f32 1.0, %v1244_v36 }
 0x2c4   : > { %4474 = vst [vmem:[#allocation40_spill] sm:$0xff] %v4096_v59  ;;  %v4101_v35 = vpop.eup %2878  ;;  %vm1121_vm7 = vcmp.lt.f32.partialorder %v4475_v38, 0.0  ;;  %v1809_v18 = vsub.f32 1.0, %v1777_v19  ;;  %2888 = vpow2.f32 %v1738_v17  ;;  %v1491_v1 = vmul.f32 %v4001_v2, %v1459_v10 }
 0x2c5   : > { %v1503_v62 = vadd.f32 -0.28449672, %v1471_v26  ;;  %v1505_v61 = vadd.f32 -0.28449672, %v1473_v45  ;;  %v4104_v15 = vpop.eup %2880  ;;  %v1428_v58 = vmul.f32 %v4056_v42, %v1396_v34  ;;  %v1429_v40 = vmul.f32 %v4062_v5, %v1397_v25 }
 0x2c6   : > { %v1274_v11 = vadd.f32 1.0, %v1242_v56  ;;  %v1369_v55 = vmul.f32 1.0614054, %v4098_v4  ;;  %v4113_v19 = vand.u32 2147483647, %v4096_v59  ;;  %v1554_v17 = vmul.f32 %v3967_v49, %v1522_v52 }
 0x2c7   : > { %v1535_v36 = vmul.f32 %v4470_v44, %v1503_v62  ;;  %v1537_v8 = vmul.f32 %v4472_v41, %v1505_v61  ;;  %v1686_v26 = vmul.f32 %v1654_v14, %v4032_v39  ;;  %v1655_v10 = vsub.f32 0.0, %v3980_v54 }
 0x2c8   : > { %2890 = vrcp.f32 %v1276_v22  ;;  %v1841_v34 = vmul.f32 %v1809_v18, %v3915_v21  ;;  %v1367_v25 = vmul.f32 1.0614054, %v4104_v15  ;;  %v1460_v50 = vadd.f32 1.4214138, %v1428_v58 }
 0x2c9   : > { %v1567_v56 = vadd.f32 0.2548296, %v1535_v36  ;;  %v1569_v45 = vadd.f32 0.2548296, %v1537_v8  ;;  %v1461_v62 = vadd.f32 1.4214138, %v1429_v40  ;;  %2892 = vrcp.f32 %v1274_v11 }
 0x2ca   : > { %v1245_v61 = vmul.f32 0.3275911, %v4113_v19  ;;  %v1523_v32 = vadd.f32 -0.28449672, %v1491_v1  ;;  %v1401_v53 = vadd.f32 -1.4531521, %v1369_v55  ;;  %2894 = vpow2.f32 %v1740_v20 }
 0x2cb   : > { %v1599_v52 = vmul.f32 %v4470_v44, %v1567_v56  ;;  %v1601_v39 = vmul.f32 %v4472_v41, %v1569_v45  ;;  %v1586_v14 = vadd.f32 0.2548296, %v1554_v17  ;;  %v4123_v22 = vmul.f32 1.442695, %v1686_v26  ;;  %v4476_v40 = vld [vmem:[#allocation14_spill] sm:$0xff] }
 0x2cc   : > { %v1277_v21 = vadd.f32 1.0, %v1245_v61  ;;  %v4125_v18 = vpop.eup %2882  ;;  %v4127_v36 = vadd.f32 1.0, %v1841_v34  ;;  %v1399_v58 = vadd.f32 -1.4531521, %v1367_v25  ;;  %v4477_v8 = vld [vmem:[#allocation18_spill] sm:$0xff]  ;;  %v1492_v44 = vmul.f32 %v4056_v42, %v1460_v50  ;;  %v4478_v61 = vld [vmem:[#allocation9_spill] sm:$0xff] }
 0x2cd   : > { %v1759_v11 = vmul.f32 %v4476_v40, %v1599_v52  ;;  %v1761_v59 = vmul.f32 %v4477_v8, %v1601_v39  ;;  %v4131_v1 = vpop.eup %2884  ;;  %v1493_v41 = vmul.f32 %v4062_v5, %v1461_v62  ;;  %v1687_v20 = vmul.f32 %v1655_v10, %v3980_v54 }
 0x2ce   : > { %2896 = vrcp.f32 %v1277_v21  ;;  %v4138_v55 = vpop.eup %2886  ;;  %v1555_v17 = vmul.f32 %v4001_v2, %v1523_v32  ;;  %v1433_v26 = vmul.f32 %v4098_v4, %v1401_v53  ;;  %v1368_v56 = vmul.f32 1.0614054, %v4125_v18 }
 0x2cf   : > { %v1791_v34 = vsub.f32 1.0, %v1759_v11  ;;  %v1793_v25 = vsub.f32 1.0, %v1761_v59  ;;  %v1656_v45 = vsub.f32 0.0, %v4023_v9  ;;  %v1657_v50 = vsub.f32 0.0, %v3965_v33 }
 0x2d0   : > { %v1153_v54 = vsel %vm1121_vm7, -1.0, %v4424_v6  ;;  %v1431_v10 = vmul.f32 %v4104_v15, %v1399_v58  ;;  %v1371_v62 = vmul.f32 1.0614054, %v4131_v1  ;;  %v4154_v59 = vmul.f32 %v3967_v49, %v1586_v14  ;;  %v4479_v14 = vld [vmem:[#allocation8_spill] sm:$0xff] }
 0x2d1   : > { %v1823_v32 = vmul.f32 %v1791_v34, %v4478_v61  ;;  %v1825_v52 = vmul.f32 %v1793_v25, %v1153_v54  ;;  %v4151_v53 = vpop.eup %2888  ;;  %v1524_v39 = vadd.f32 -0.28449672, %v1492_v44  ;;  %v1525_v21 = vadd.f32 -0.28449672, %v1493_v41  ;;  %v4480_v41 = vld [vmem:[#allocation10_spill] sm:$0xff] }
 0x2d2   : > { %v1366_v40 = vmul.f32 1.0614054, %v4138_v55  ;;  %v1744_v11 = vmul.f32 1.442695, %v1687_v20  ;;  %v1465_v38 = vadd.f32 1.4214138, %v1433_v26  ;;  %v1688_v28 = vmul.f32 %v1656_v45, %v4023_v9 }
 0x2d3   : > { %v1855_v8 = vadd.f32 1.0, %v1823_v32  ;;  %v1857_v3 = vadd.f32 1.0, %v1825_v52  ;;  %v1587_v58 = vadd.f32 0.2548296, %v1555_v17  ;;  %v1400_v24 = vadd.f32 -1.4531521, %v1368_v56 }
 0x2d4   : > { %v1689_v34 = vmul.f32 %v1657_v50, %v3965_v33  ;;  %v1463_v54 = vadd.f32 1.4214138, %v1431_v10  ;;  %v1403_v49 = vadd.f32 -1.4531521, %v1371_v62  ;;  %v1556_v20 = vmul.f32 %v4056_v42, %v1524_v39 }
 0x2d5   : > { %v4159_v25 = vpop.eup %2890  ;;  %v1887_v44 = vmul.f32 %v1855_v8, %v4479_v14  ;;  %v1889_v61 = vmul.f32 %v1857_v3, %v4480_v41  ;;  %v1557_v26 = vmul.f32 %v4062_v5, %v1525_v21  ;;  %v1398_v32 = vadd.f32 -1.4531521, %v1366_v40 }
 0x2d6   : > { %v2250_v52 = vstv %s4136_s30  ;;  %v4166_v17 = vpop.eup %2892  ;;  %v1497_v9 = vmul.f32 %v4098_v4, %v1465_v38  ;;  %v1937_v33 = vpack.c.bf16 %v3766_v29, %v3711_v13  ;;  %v1619_v45 = vmul.f32 %v4001_v2, %v1587_v58 }
 0x2d7   : > { %v1935_v56 = vpack.c.bf16 %v1889_v61, %v1887_v44  ;;  %2898 = vtanh.f32 %v2250_v52  ;;  %v1432_v50 = vmul.f32 %v4125_v18, %v1400_v24  ;;  %v1372_v3 = vmul.f32 1.0614054, %v4159_v25  ;;  %v2895_v62 = vpop.eup %2894  ;;  %v4481_v52 = vld [vmem:[#allocation21_spill] sm:$0xff] }
 0x2d8   : > { %v1934_v10 = vpack.c.bf16 %v3701_v27, %v3685_v7  ;;  %v1495_v39 = vmul.f32 %v4104_v15, %v1463_v54  ;;  %v1748_v21 = vmul.f32 1.442695, %v1689_v34  ;;  %v1435_v40 = vmul.f32 %v4131_v1, %v1403_v49 }
 0x2d9   : > { %2110 = vmatprep.mubr.bf16.mxu1 %v1935_v56  ;;  %v1661_v38 = vsub.f32 0.0, %v4113_v19  ;;  %v1588_v13 = vadd.f32 0.2548296, %v1556_v20  ;;  %v1430_v29 = vmul.f32 %v4138_v55, %v1398_v32  ;;  %v1746_v2 = vmul.f32 1.442695, %v1688_v28 }
 0x2da   : > { %v1370_v24 = vmul.f32 1.0614054, %v4166_v17  ;;  %2111 = vmatmul.mubr.bf16.vlgmr.msra.gmra.mxu1 %v1934_v10  ;;  %v1589_v58 = vadd.f32 0.2548296, %v1557_v26  ;;  %2900 = vpow2.f32 %v4123_v22  ;;  %v1529_v7 = vadd.f32 -0.28449672, %v1497_v9 }
 0x2db   : > { %v4181_v8 = vpop.eup %2896  ;;  %v1659_v27 = vsub.f32 0.0, %v4035_v43  ;;  %2118 = vmatprep.mubr.bf16.mxu1 %v1937_v33  ;;  %2902 = vpow2.f32 %v1744_v11  ;;  %v1464_v34 = vadd.f32 1.4214138, %v1432_v50  ;;  %v1404_v54 = vadd.f32 -1.4531521, %v1372_v3 }
 0x2dc   : > { %v1373_v49 = vmul.f32 1.0614054, %v4181_v8  ;;  %v1527_v14 = vadd.f32 -0.28449672, %v1495_v39  ;;  %2904 = vpow2.f32 %v1748_v21  ;;  %v1467_v28 = vadd.f32 1.4214138, %v1435_v40 }
 0x2dd   : > { %v1693_v44 = vmul.f32 %v1661_v38, %v4113_v19  ;;  %v4188_v41 = vmul.f32 %v4101_v35, %v1619_v45  ;;  %v1462_v61 = vadd.f32 1.4214138, %v1430_v29  ;;  %v1402_v20 = vadd.f32 -1.4531521, %v1370_v24  ;;  %v4482_v35 = vld [vmem:[#allocation27_spill] sm:$0xff] }
 0x2de   : > { %v1405_v22 = vadd.f32 -1.4531521, %v1373_v49  ;;  %v1621_v26 = vmul.f32 %v4062_v5, %v1589_v58  ;;  %v1561_v32 = vmul.f32 %v4098_v4, %v1529_v7  ;;  %v1691_v11 = vmul.f32 %v1659_v27, %v4035_v43  ;;  %v4483_v45 = vld [vmem:[#allocation11_spill] sm:$0xff] }
 0x2df   : > { %v1939_v9 = vpack.c.bf16 %v4481_v52, %v3788_v48  ;;  %v1496_v56 = vmul.f32 %v4125_v18, %v1464_v34  ;;  %v1436_v33 = vmul.f32 %v4159_v25, %v1404_v54  ;;  %v1936_v50 = vpack.c.bf16 %v4483_v45, %v4482_v35  ;;  %v4485_v52 = vld [vmem:[#allocation15_spill] sm:$0xff] }
 0x2e0   : > { %v1437_v19 = vmul.f32 %v4181_v8, %v1405_v22  ;;  %v1559_v3 = vmul.f32 %v4104_v15, %v1527_v14  ;;  %v1658_v5 = vsub.f32 0.0, %v4077_v46  ;;  %v1499_v10 = vmul.f32 %v4131_v1, %v1467_v28 }
 0x2e1   : > { %v1756_v39 = vmul.f32 1.442695, %v1693_v44  ;;  %v1494_v43 = vmul.f32 %v4138_v55, %v1462_v61  ;;  %v1434_v48 = vmul.f32 %v4166_v17, %v1402_v20  ;;  %v1660_v21 = vsub.f32 0.0, %v4071_v16 }
 0x2e2   : > { %v1469_v40 = vadd.f32 1.4214138, %v1437_v19  ;;  %2119 = vmatmul.mubr.bf16.gmra.mxu1 %v1936_v50  ;;  %v1781_v38 = vmul.f32 %v2895_v62, %v1621_v26  ;;  %2906 = vpow2.f32 %v1746_v2  ;;  %v1593_v29 = vadd.f32 0.2548296, %v1561_v32 }
 0x2e3   : > { %v1752_v24 = vmul.f32 1.442695, %v1691_v11  ;;  %2126 = vmatprep.mubr.bf16.mxu1 %v1939_v9  ;;  %v1620_v7 = vmul.f32 %v4056_v42, %v1588_v13  ;;  %v1528_v27 = vadd.f32 -0.28449672, %v1496_v56  ;;  %v1468_v34 = vadd.f32 1.4214138, %v1436_v33 }
 0x2e4   : > { %v2899_v58 = vpop.eup %2898  ;;  %v1501_v54 = vmul.f32 %v4181_v8, %v1469_v40  ;;  %v1591_v49 = vadd.f32 0.2548296, %v1559_v3  ;;  %v1690_v14 = vmul.f32 %v1658_v5, %v4077_v46  ;;  %v1531_v28 = vadd.f32 -0.28449672, %v1499_v10  ;;  %v4484_v11 = vld [vmem:[#allocation12_spill] sm:$0xff]  ;;  %v4486_v3 = vld [vmem:[#allocation22_spill] sm:$0xff] }
 0x2e5   : > { %2908 = vpow2.f32 %v1756_v39  ;;  %2667 = vpush %v2899_v58  ;;  %v1526_v44 = vadd.f32 -0.28449672, %v1494_v43  ;;  %v1466_v61 = vadd.f32 1.4214138, %v1434_v48  ;;  %v1692_v62 = vmul.f32 %v1660_v21, %v4071_v16 }
 0x2e6   : > { %v1533_v2 = vadd.f32 -0.28449672, %v1501_v54  ;;  %v1813_v20 = vsub.f32 1.0, %v1781_v38  ;;  %v1625_v22 = vmul.f32 %v4098_v4, %v1593_v29  ;;  %2910 = vpow2.f32 %v1752_v24 }
 0x2e7   : > { %v1941_v42 = vpack.c.bf16 %v4004_v47, %v3955_v63  ;;  %v4213_v13 = vpop.eup %2900  ;;  %v1560_v26 = vmul.f32 %v4125_v18, %v1528_v27  ;;  %v1500_v46 = vmul.f32 %v4159_v25, %v1468_v34  ;;  %v1938_v9 = vpack.c.bf16 %v4485_v52, %v4484_v11 }
 0x2e8   : > { %v1565_v32 = vmul.f32 %v4181_v8, %v1533_v2  ;;  %v2903_v16 = vpop.eup %2902  ;;  %v1872_v56 = vadd.f32 1.0, %v4091_v51  ;;  %v1811_v4 = vsub.f32 1.0, %v4188_v41  ;;  %v1623_v33 = vmul.f32 %v4104_v15, %v1591_v49 }
 0x2e9   : > { %v1563_v63 = vmul.f32 %v4131_v1, %v1531_v28  ;;  %v2905_v47 = vpop.eup %2904  ;;  %v1780_v19 = vmul.f32 %v4151_v53, %v1620_v7  ;;  %v1558_v35 = vmul.f32 %v4138_v55, %v1526_v44  ;;  %v1498_v45 = vmul.f32 %v4166_v17, %v1466_v61  ;;  %v4487_v44 = vld [vmem:[#allocation20_spill] sm:$0xff] }
 0x2ea   : > { %v1754_v50 = vmul.f32 1.442695, %v1692_v62  ;;  %2127 = vmatmul.mubr.bf16.gmra.mxu1 %v1938_v9  ;;  %v1905_v5 = vmul.f32 %v4127_v36, %v4486_v3  ;;  %v1845_v51 = vmul.f32 %v1813_v20, %v4045_v57  ;;  %v1785_v10 = vmul.f32 %v2905_v47, %v1625_v22  ;;  %v4492_v9 = vld [vmem:[#allocation25_spill] sm:$0xff]  ;;  %v4494_v47 = vld [vmem:[#allocation40_spill] sm:$0xff] }
 0x2eb   : > { %v1597_v41 = vadd.f32 0.2548296, %v1565_v32  ;;  %2134 = vmatprep.mubr.bf16.mxu1 %v1941_v42  ;;  %v1778_v15 = vmul.f32 %v4047_v31, %v4154_v59  ;;  %v1592_v39 = vadd.f32 0.2548296, %v1560_v26  ;;  %v1750_v43 = vmul.f32 1.442695, %v1690_v14 }
 0x2ec   : > { %v1532_v53 = vadd.f32 -0.28449672, %v1500_v46  ;;  %v1843_v48 = vmul.f32 %v1811_v4, %v3988_v23  ;;  %v1783_v21 = vmul.f32 %v2903_v16, %v1623_v33  ;;  %vm1145_vm8 = vcmp.lt.f32.partialorder %v3947_v37, 0.0  ;;  %v4490_v26 = vld [vmem:[#allocation24_spill] sm:$0xff]  ;;  %v4493_v4 = vld [vmem:[#allocation31_spill] sm:$0xff]  ;;  %v4495_v3 = vld [vmem:[#allocation13_spill] sm:$0xff] }
 0x2ed   : > { %v1595_v40 = vadd.f32 0.2548296, %v1563_v63  ;;  %v1812_v38 = vsub.f32 1.0, %v1780_v19  ;;  %v1590_v29 = vadd.f32 0.2548296, %v1558_v35  ;;  %2912 = vpow2.f32 %v1754_v50  ;;  %v4491_v32 = vld [vmem:[#allocation32_spill] sm:$0xff] }
 0x2ee   : > { %v1530_v36 = vadd.f32 -0.28449672, %v1498_v45  ;;  %v1877_v57 = vadd.f32 1.0, %v1845_v51  ;;  %v1817_v24 = vsub.f32 1.0, %v1785_v10  ;;  %v1629_v58 = vmul.f32 %v4181_v8, %v1597_v41  ;;  %v4496_v10 = vld [vmem:[#allocation23_spill] sm:$0xff] }
 0x2ef   : > { %v1943_v7 = vpack.c.bf16 %v1905_v5, %v4080_v12  ;;  %v2907_v31 = vpop.eup %2906  ;;  %v1624_v59 = vmul.f32 %v4125_v18, %v1592_v39  ;;  %2914 = vpow2.f32 %v1750_v43  ;;  %v1564_v23 = vmul.f32 %v4159_v25, %v1532_v53 }
 0x2f0   : > { %v1940_v27 = vpack.c.bf16 %v3991_v30, %v3952_v60  ;;  %v1875_v34 = vadd.f32 1.0, %v1843_v48  ;;  %vm1143_vm9 = vcmp.lt.f32.partialorder %v3958_v0, 0.0  ;;  %v1815_v54 = vsub.f32 1.0, %v1783_v21  ;;  %v4488_v60 = vld [vmem:[#allocation34_spill] sm:$0xff] }
 0x2f1   : > { %v1627_v49 = vmul.f32 %v4131_v1, %v1595_v40  ;;  %v1810_v28 = vsub.f32 1.0, %v1778_v15  ;;  %v1622_v8 = vmul.f32 %v4138_v55, %v1590_v29  ;;  %v1177_v12 = vsel %vm1145_vm8, -1.0, %v4424_v6  ;;  %v4489_v1 = vld [vmem:[#allocation36_spill] sm:$0xff]  ;;  %v4497_v15 = vld [vmem:[#allocation33_spill] sm:$0xff]  ;;  %v4498_v40 = vld [vmem:[#allocation26_spill] sm:$0xff] }
 0x2f2   : > { %v2909_v14 = vpop.eup %2908  ;;  %v1562_v18 = vmul.f32 %v4166_v17, %v1530_v36  ;;  %2135 = vmatmul.mubr.bf16.gmra.mxu1 %v1940_v27  ;;  %v1904_v61 = vmul.f32 %v1872_v56, %v4487_v44  ;;  %v1909_v30 = vmul.f32 %v1877_v57, %v4488_v60  ;;  %v1849_v62 = vmul.f32 %v1817_v24, %v1177_v12  ;;  %v4499_v57 = vld [vmem:[#allocation30_spill] sm:$0xff] }
 0x2f3   : > { %v1789_v2 = vmul.f32 %v2909_v14, %v1629_v58  ;;  %2142 = vmatprep.mubr.bf16.mxu1 %v1943_v7  ;;  %v2911_v20 = vpop.eup %2910  ;;  %v1844_v22 = vmul.f32 %v1812_v38, %v4489_v1  ;;  %v1175_v55 = vsel %vm1143_vm9, -1.0, %v4424_v6  ;;  %v1784_v42 = vmul.f32 %v2907_v31, %v1624_v59 }
 0x2f4   : > { %v1596_v37 = vadd.f32 0.2548296, %v1564_v23  ;;  %v1907_v46 = vmul.f32 %v1875_v34, %v4490_v26  ;;  %vm1142_vm10 = vcmp.lt.f32.partialorder %v4491_v32, 0.0  ;;  %v1847_v11 = vmul.f32 %v1815_v54, %v1175_v55  ;;  %v4500_v34 = vld [vmem:[#allocation17_spill] sm:$0xff]  ;;  %v4506_v32 = vld [vmem:[#allocation28_spill] sm:$0xff] }
 0x2f5   : > { %v1787_v52 = vmul.f32 %v2911_v20, %v1627_v49  ;;  %v1842_v16 = vmul.f32 %v1810_v28, %v4492_v9  ;;  %v1782_v56 = vmul.f32 %v4213_v13, %v1622_v8  ;;  %vm1144_vm11 = vcmp.lt.f32.partialorder %v4493_v4, 0.0  ;;  %v4503_v20 = vld [vmem:[#allocation19_spill] sm:$0xff] }
 0x2f6   : > { %v1594_v33 = vadd.f32 0.2548296, %v1562_v18  ;;  %v1881_v63 = vadd.f32 1.0, %v1849_v62  ;;  %vm1149_vm12 = vcmp.lt.f32.partialorder %v4494_v47, 0.0  ;;  %v1821_v0 = vsub.f32 1.0, %v1789_v2  ;;  %v4501_v18 = vld [vmem:[#allocation38_spill] sm:$0xff] }
 0x2f7   : > { %v1945_v19 = vpack.c.bf16 %v1909_v30, %v1907_v46  ;;  %v1876_v35 = vadd.f32 1.0, %v1844_v22  ;;  %v1816_v45 = vsub.f32 1.0, %v1784_v42  ;;  %v1628_v50 = vmul.f32 %v4159_v25, %v1596_v37  ;;  %v4502_v30 = vld [vmem:[#allocation16_spill] sm:$0xff]  ;;  %v4504_v22 = vld [vmem:[#allocation39_spill] sm:$0xff]  ;;  %v4505_v42 = vld [vmem:[#allocation29_spill] sm:$0xff] }
 0x2f8   : > { %v1942_v5 = vpack.c.bf16 %v1904_v61, %v4495_v3  ;;  %v1879_v51 = vadd.f32 1.0, %v1847_v11  ;;  %v1081_v41 = vmul.f32 0.5, %v4496_v10  ;;  %vm1147_vm13 = vcmp.lt.f32.partialorder %v4497_v15, 0.0  ;;  %v4288_v15 = vld [vmem:[%s4378_s6] ss:$0 sm:$0xff] }
 0x2f9   : > { %v1819_v13 = vsub.f32 1.0, %v1787_v52  ;;  %v1874_v39 = vadd.f32 1.0, %v1842_v16  ;;  %v1814_v43 = vsub.f32 1.0, %v1782_v56  ;;  %v1626_v53 = vmul.f32 %v4166_v17, %v1594_v33 }
 0x2fa   : > { %v1181_v48 = vsel %vm1149_vm12, -1.0, %v4424_v6  ;;  %2143 = vmatmul.mubr.bf16.gmra.mxu1 %v1942_v5  ;;  %v2913_v21 = vpop.eup %2912  ;;  %v1079_v38 = vmul.f32 0.5, %v4498_v40  ;;  %v1176_v25 = vsel %vm1144_vm11, -1.0, %v4424_v6  ;;  %v1913_v29 = vmul.f32 %v1881_v63, %v1081_v41 }
 0x2fb   : > { %v1853_v36 = vmul.f32 %v1821_v0, %v1181_v48  ;;  %2150 = vmatprep.mubr.bf16.mxu1 %v1945_v19  ;;  %v1908_v24 = vmul.f32 %v1876_v35, %v4499_v57  ;;  %v1848_v58 = vmul.f32 %v1816_v45, %v1176_v25  ;;  %v1179_v7 = vsel %vm1147_vm13, -1.0, %v4424_v6  ;;  %v4507_v35 = vld [vmem:[#allocation35_spill] sm:$0xff]  ;;  %v2271_v57 = vld [vmem:[%s3059_s20 + $0x8] sm:$0xff] }
 0x2fc   : > { %v1788_v31 = vmul.f32 %v2913_v21, %v1628_v50  ;;  %v2915_v17 = vpop.eup %2914  ;;  %v1174_v59 = vsel %vm1142_vm10, -1.0, %v4424_v6  ;;  %v1911_v23 = vmul.f32 %v1879_v51, %v1079_v38  ;;  %v1851_v27 = vmul.f32 %v1819_v13, %v1179_v7  ;;  %v4508_v50 = vld [vmem:[#allocation37_spill] sm:$0xff]  ;;  %v2270_v48 = vld [vmem:[%s3059_s20] sm:$0xff] }
 0x2fd   : > { %v1906_v54 = vmul.f32 %v1874_v39, %v4500_v34  ;;  %v1846_v49 = vmul.f32 %v1814_v43, %v1174_v59  ;;  %v1786_v14 = vmul.f32 %v2915_v17, %v1626_v53  ;;  %v1885_v28 = vadd.f32 1.0, %v1853_v36 }
 0x2fe   : > { %v1947_v8 = vpack.c.bf16 %v1913_v29, %v1911_v23  ;;  %v1880_v12 = vadd.f32 1.0, %v1848_v58  ;;  %vm1148_vm14 = vcmp.lt.f32.partialorder %v4501_v18, 0.0  ;;  %v1820_v44 = vsub.f32 1.0, %v1788_v31  ;;  %v2272_v23 = vld [vmem:[%s3059_s20 + $0x10] sm:$0xff] }
 0x2ff   : > { %v1944_v61 = vpack.c.bf16 %v1908_v24, %v1906_v54  ;;  %v1883_v60 = vadd.f32 1.0, %v1851_v27  ;;  %v1085_v62 = vmul.f32 0.5, %v4502_v30  ;;  %v1878_v2 = vadd.f32 1.0, %v1846_v49 }
 0x300   : > { %v1080_v1 = vmul.f32 0.5, %v4503_v20  ;;  %vm1146_vm15 = vcmp.lt.f32.partialorder %v4504_v22, 0.0  ;;  %v1818_v55 = vsub.f32 1.0, %v1786_v14  ;;  %v1083_v37 = vmul.f32 0.5, %v4505_v42 }
 0x301   : > { %v1180_v26 = vsel %vm1148_vm14, -1.0, %v4424_v6  ;;  %v1917_v46 = vmul.f32 %v1885_v28, %v1085_v62  ;;  %v1078_v11 = vmul.f32 0.5, %v4506_v32  ;;  %v1178_v16 = vsel %vm1146_vm15, -1.0, %v4424_v6  ;;  %v2274_v62 = vld [vmem:[%s3059_s20 + $0x20] sm:$0xff] }
 0x302   : > { %2151 = vmatmul.mubr.bf16.gmra.mxu1 %v1944_v61  ;;  %v1912_v52 = vmul.f32 %v1880_v12, %v1080_v1  ;;  %v1852_v9 = vmul.f32 %v1820_v44, %v1180_v26  ;;  %v1915_v56 = vmul.f32 %v1883_v60, %v1083_v37  ;;  %v1850_v33 = vmul.f32 %v1818_v55, %v1178_v16  ;;  %v2275_v37 = vld [vmem:[%s3059_s20 + $0x28] sm:$0xff]  ;;  %v2276_v16 = vld [vmem:[%s3059_s20 + $0x30] sm:$0xff] }
 0x303   : > { %2158 = vmatprep.mubr.bf16.mxu1 %v1947_v8  ;;  %v1910_v4 = vmul.f32 %v1878_v2, %v1078_v11  ;;  %v1084_v45 = vmul.f32 0.5, %v4507_v35  ;;  %v1082_v3 = vmul.f32 0.5, %v4508_v50  ;;  %v2273_v8 = vld [vmem:[%s3059_s20 + $0x18] sm:$0xff] }
 0x304   : > { %v1949_v63 = vpack.c.bf16 %v1917_v46, %v1915_v56  ;;  %v1884_v47 = vadd.f32 1.0, %v1852_v9  ;;  %v1882_v19 = vadd.f32 1.0, %v1850_v33 }
 0x305   : > { %v1946_v0 = vpack.c.bf16 %v1912_v52, %v1910_v4 }
 0x306   : > { %v1916_v5 = vmul.f32 %v1884_v47, %v1084_v45  ;;  %v1914_v51 = vmul.f32 %v1882_v19, %v1082_v3  ;;  %v2277_v19 = vld [vmem:[%s3059_s20 + $0x38] sm:$0xff] }
 0x308   : > { %v1948_v10 = vpack.c.bf16 %v1916_v5, %v1914_v51 }
 0x30a   : > { %2159 = vmatmul.mubr.bf16.gmra.mxu1 %v1946_v0 }
 0x30b   : > { %2166 = vmatprep.mubr.bf16.mxu1 %v1949_v63 }
 0x312   : > { %2167 = vmatmul.mubr.bf16.gmra.mxu1 %v1948_v10  ;;  %v2278_v10 = vld [vmem:[%s3059_s20 + $0x40] sm:$0xff] }
 0x316   : > { %s2668_s10 = spop %2667 }
 0x317   : > { %v4290_v43 = vstv %s2668_s10 }
 0x39a   : > { %v2619_v6 = vpop.f32.mrf.mxu1 }
 0x39c   : > { %v2620_v41 = vpop.f32.mrf.mxu1 }
 0x39d   : > { %v2621_v13 = vadd.f32 %v2620_v41, %v2619_v6 }
 0x39e   : > { %v2622_v39 = vpop.f32.mrf.mxu1 }
 0x39f   : > { %v2233_v53 = vadd.f32 %v2621_v13, %v4288_v15 }
 0x3a0   : > { %v2623_v21 = vpop.f32.mrf.mxu1 }
 0x3a1   : > { %v2254_v40 = vmul.f32 %v4290_v43, %v2233_v53  ;;  %v2624_v38 = vadd.f32 %v2623_v21, %v2622_v39  ;;  %v2279_v21 = vld [vmem:[%s3059_s20 + $0x48] sm:$0xff] }
 0x3a2   : > { %v2625_v25 = vpop.f32.mrf.mxu1 }
 0x3a3   : > { %v2286_v29 = vadd.f32 %v2270_v48, %v2254_v40  ;;  %v2234_v36 = vadd.f32 %v2624_v38, %v4288_v15 }
 0x3a4   : > { %v2626_v24 = vpop.f32.mrf.mxu1 }
 0x3a5   : > { %2302 = vst [vmem:[%s4300_s15] sm:$0xff] %v2286_v29  ;;  %v2255_v58 = vmul.f32 %v4290_v43, %v2234_v36  ;;  %v2627_v7 = vadd.f32 %v2626_v24, %v2625_v25  ;;  %v2280_v24 = vld [vmem:[%s3059_s20 + $0x50] sm:$0xff] }
 0x3a6   : > { %v2628_v31 = vpop.f32.mrf.mxu1 }
 0x3a7   : > { %v2287_v17 = vadd.f32 %v2271_v57, %v2255_v58  ;;  %v2235_v59 = vadd.f32 %v2627_v7, %v4288_v15 }
 0x3a8   : > { %v2629_v27 = vpop.f32.mrf.mxu1 }
 0x3a9   : > { %2303 = vst [vmem:[%s4300_s15 + $0x8] sm:$0xff] %v2287_v17  ;;  %v2256_v34 = vmul.f32 %v4290_v43, %v2235_v59  ;;  %v2630_v54 = vadd.f32 %v2629_v27, %v2628_v31  ;;  %v2281_v27 = vld [vmem:[%s3059_s20 + $0x58] sm:$0xff] }
 0x3aa   : > { %v2631_v49 = vpop.f32.mrf.mxu1 }
 0x3ab   : > { %v2288_v14 = vadd.f32 %v2272_v23, %v2256_v34  ;;  %v2236_v28 = vadd.f32 %v2630_v54, %v4288_v15 }
 0x3ac   : > { %v2632_v12 = vpop.f32.mrf.mxu1 }
 0x3ad   : > { %2304 = vst [vmem:[%s4300_s15 + $0x10] sm:$0xff] %v2288_v14  ;;  %v2257_v18 = vmul.f32 %v4290_v43, %v2236_v28  ;;  %v2633_v44 = vadd.f32 %v2632_v12, %v2631_v49  ;;  %v2282_v12 = vld [vmem:[%s3059_s20 + $0x60] sm:$0xff] }
 0x3ae   : > { %v2634_v61 = vpop.f32.mrf.mxu1 }
 0x3af   : > { %v2289_v60 = vadd.f32 %v2273_v8, %v2257_v18  ;;  %v2237_v30 = vadd.f32 %v2633_v44, %v4288_v15 }
 0x3b0   : > { %v2635_v2 = vpop.f32.mrf.mxu1 }
 0x3b1   : > { %2305 = vst [vmem:[%s4300_s15 + $0x18] sm:$0xff] %v2289_v60  ;;  %v2258_v20 = vmul.f32 %v4290_v43, %v2237_v30  ;;  %v2636_v1 = vadd.f32 %v2635_v2, %v2634_v61  ;;  %v2283_v2 = vld [vmem:[%s3059_s20 + $0x68] sm:$0xff] }
 0x3b2   : > { %v2637_v22 = vpop.f32.mrf.mxu1 }
 0x3b3   : > { %v2290_v55 = vadd.f32 %v2274_v62, %v2258_v20  ;;  %v2238_v42 = vadd.f32 %v2636_v1, %v4288_v15 }
 0x3b4   : > { %v2638_v26 = vpop.f32.mrf.mxu1 }
 0x3b5   : > { %2306 = vst [vmem:[%s4300_s15 + $0x20] sm:$0xff] %v2290_v55  ;;  %v2259_v46 = vmul.f32 %v4290_v43, %v2238_v42  ;;  %v2639_v32 = vadd.f32 %v2638_v26, %v2637_v22  ;;  %v2284_v26 = vld [vmem:[%s3059_s20 + $0x70] sm:$0xff] }
 0x3b6   : > { %v2640_v11 = vpop.f32.mrf.mxu1 }
 0x3b7   : > { %v2291_v52 = vadd.f32 %v2275_v37, %v2259_v46  ;;  %v2239_v9 = vadd.f32 %v2639_v32, %v4288_v15 }
 0x3b8   : > { %v2641_v56 = vpop.f32.mrf.mxu1 }
 0x3b9   : > { %2307 = vst [vmem:[%s4300_s15 + $0x28] sm:$0xff] %v2291_v52  ;;  %v2260_v4 = vmul.f32 %v4290_v43, %v2239_v9  ;;  %v2642_v33 = vadd.f32 %v2641_v56, %v2640_v11 }
 0x3ba   : > { %v2643_v63 = vpop.f32.mrf.mxu1 }
 0x3bb   : > { %v2292_v47 = vadd.f32 %v2276_v16, %v2260_v4  ;;  %v2240_v0 = vadd.f32 %v2642_v33, %v4288_v15  ;;  %v2285_v16 = vld [vmem:[%s3059_s20 + $0x78] sm:$0xff] }
 0x3bc   : > { %v2644_v35 = vpop.f32.mrf.mxu1 }
 0x3bd   : > { %2308 = vst [vmem:[%s4300_s15 + $0x30] sm:$0xff] %v2292_v47  ;;  %v2261_v45 = vmul.f32 %v4290_v43, %v2240_v0  ;;  %v2645_v50 = vadd.f32 %v2644_v35, %v2643_v63 }
 0x3be   : > { %v2646_v3 = vpop.f32.mrf.mxu1 }
 0x3bf   : > { %v2293_v5 = vadd.f32 %v2277_v19, %v2261_v45  ;;  %v2241_v51 = vadd.f32 %v2645_v50, %v4288_v15 }
 0x3c0   : > { %v2647_v6 = vpop.f32.mrf.mxu1 }
 0x3c1   : > { %2309 = vst [vmem:[%s4300_s15 + $0x38] sm:$0xff] %v2293_v5  ;;  %v2262_v41 = vmul.f32 %v4290_v43, %v2241_v51  ;;  %v2648_v13 = vadd.f32 %v2647_v6, %v2646_v3 }
 0x3c2   : > { %v2649_v39 = vpop.f32.mrf.mxu1 }
 0x3c3   : > { %v2294_v53 = vadd.f32 %v2278_v10, %v2262_v41  ;;  %v2242_v48 = vadd.f32 %v2648_v13, %v4288_v15 }
 0x3c4   : > { %v2650_v40 = vpop.f32.mrf.mxu1 }
 0x3c5   : > { %2310 = vst [vmem:[%s4300_s15 + $0x40] sm:$0xff] %v2294_v53  ;;  %v2263_v38 = vmul.f32 %v4290_v43, %v2242_v48  ;;  %v2651_v25 = vadd.f32 %v2650_v40, %v2649_v39 }
 0x3c6   : > { %v2652_v29 = vpop.f32.mrf.mxu1 }
 0x3c7   : > { %v2295_v36 = vadd.f32 %v2279_v21, %v2263_v38  ;;  %v2243_v57 = vadd.f32 %v2651_v25, %v4288_v15 }
 0x3c8   : > { %v2653_v58 = vpop.f32.mrf.mxu1 }
 0x3c9   : > { %2311 = vst [vmem:[%s4300_s15 + $0x48] sm:$0xff] %v2295_v36  ;;  %v2264_v7 = vmul.f32 %v4290_v43, %v2243_v57  ;;  %v2654_v31 = vadd.f32 %v2653_v58, %v2652_v29 }
 0x3ca   : > { %v2655_v17 = vpop.f32.mrf.mxu1 }
 0x3cb   : > { %v2296_v59 = vadd.f32 %v2280_v24, %v2264_v7  ;;  %v2244_v23 = vadd.f32 %v2654_v31, %v4288_v15 }
 0x3cc   : > { %v2656_v34 = vpop.f32.mrf.mxu1 }
 0x3cd   : > { %2312 = vst [vmem:[%s4300_s15 + $0x50] sm:$0xff] %v2296_v59  ;;  %v2265_v54 = vmul.f32 %v4290_v43, %v2244_v23  ;;  %v2657_v49 = vadd.f32 %v2656_v34, %v2655_v17 }
 0x3ce   : > { %v2658_v14 = vpop.f32.mrf.mxu1 }
 0x3cf   : > { %v2297_v28 = vadd.f32 %v2281_v27, %v2265_v54  ;;  %v2245_v8 = vadd.f32 %v2657_v49, %v4288_v15 }
 0x3d0   : > { %v2659_v18 = vpop.f32.mrf.mxu1 }
 0x3d1   : > { %2313 = vst [vmem:[%s4300_s15 + $0x58] sm:$0xff] %v2297_v28  ;;  %v2266_v44 = vmul.f32 %v4290_v43, %v2245_v8  ;;  %v2660_v61 = vadd.f32 %v2659_v18, %v2658_v14 }
 0x3d2   : > { %v2661_v60 = vpop.f32.mrf.mxu1 }
 0x3d3   : > { %v2298_v30 = vadd.f32 %v2282_v12, %v2266_v44  ;;  %v2246_v62 = vadd.f32 %v2660_v61, %v4288_v15 }
 0x3d4   : > { %v2662_v20 = vpop.f32.mrf.mxu1 }
 0x3d5   : > { %2314 = vst [vmem:[%s4300_s15 + $0x60] sm:$0xff] %v2298_v30  ;;  %v2267_v1 = vmul.f32 %v4290_v43, %v2246_v62  ;;  %v2663_v22 = vadd.f32 %v2662_v20, %v2661_v60 }
 0x3d6   : > { %v2664_v55 = vpop.f32.mrf.mxu1 }
 0x3d7   : > { %v2299_v42 = vadd.f32 %v2283_v2, %v2267_v1  ;;  %v2247_v37 = vadd.f32 %v2663_v22, %v4288_v15 }
 0x3d8   : > { %v2665_v46 = vpop.f32.mrf.mxu1 }
 0x3d9   : > { %2315 = vst [vmem:[%s4300_s15 + $0x68] sm:$0xff] %v2299_v42  ;;  %v2268_v32 = vmul.f32 %v4290_v43, %v2247_v37  ;;  %v2666_v11 = vadd.f32 %v2665_v46, %v2664_v55 }
 0x3db   : > { %v2300_v52 = vadd.f32 %v2284_v26, %v2268_v32  ;;  %v2248_v9 = vadd.f32 %v2666_v11, %v4288_v15 }
 0x3dd   : > { %2316 = vst [vmem:[%s4300_s15 + $0x70] sm:$0xff] %v2300_v52  ;;  %v2269_v56 = vmul.f32 %v4290_v43, %v2248_v9 }
 0x3df   : > { %v2301_v4 = vadd.f32 %v2285_v16, %v2269_v56 }
 0x3e1   : > { %2317 = vst [vmem:[%s4300_s15 + $0x78] sm:$0xff] %v2301_v4 }
 0x3e2 PF: > { %s19_s29 = sadd.s32 1, %s2957_s29   ;;  %s4509_s27 = smov %s2953_s28 }
 0x3e3   : > { %p16_p2 = scmp.ge.s32.totalorder %s19_s29, 4   ;;  %s4510_s28 = smov %s4512_s9 }
 0x3e5   :  { %18 = sbr.rel (!%p16_p2) target bundleno = 2 (0x2), region = 104 }
 0x3ea   :  { %2348 = vsyncpa [#allocation5], 1 }
 0x3eb   :  { %2350 = vsyncpa [#allocation5 + $0x1], 1 }

</bundles_post_ra>
